<compile_context>
chip_gen: v6e
topology: v6e:2x2x1
jax: 0.10.0
libtpu: 0.0.40
codegen_flags: <defaults>
</compile_context>

<pallas_src>
import functools
import math

import jax
import jax.numpy as jnp
from jax.experimental import pallas as pl
from jax.experimental.pallas import tpu as pltpu

# ------------------------------ configuration ------------------------------
N_POINTS = 64          # number of input points (single graph, batch all zeros)
N_IN = 3               # input feature channels (data.x)
N_HIDDEN = 16          # nhidden
N_OUT = 16             # nOut == nhidden so lin_final's (nhidden*2) input matches
DEPTH = 3
RATIO = 0.5
RADIUS = 2.0
MAX_NEIGHBORS = 32
KNN_K = 3
N_HET_EDGES = 10
REL_PAD = 8            # pad the 3-dim relative-position block to a sublane multiple

assert MAX_NEIGHBORS & (MAX_NEIGHBORS - 1) == 0, "tree max assumes power-of-two K"


# ------------------------ fused forward Pallas kernel -----------------------
def _fused_kernel(E, *refs):
    """Whole PointNetPP feature pipeline in one kernel.

    Operand order (all 2-D, full-array blocks):
      x_in |
      lin_in (W,b)x2 |
      SA level 0..2: (W1_feat, W1_rel(padded), b1, W2, b2) |
      FP (application order, coarse->fine): (W1_interp, W1_skip, b1, W2, b2) x3 |
      lin_out (W,b)x2 |
      lin_final (W1_left, W1_right, b1, W2, b2, W3, b3) |
      SA level 0..2: (onehot[K*M,N] bf16, rel[K*M,8] f32) |
      FP knn-interp matrices (application order) x3 |
      het one-hots (left, right)
    """
    o_ref = refs[-1]
    refs = refs[:-1]
    cursor = 0

    def take(n):
        nonlocal cursor
        out = refs[cursor:cursor + n]
        cursor += n
        return out

    relu = lambda v: jnp.maximum(v, 0.0)
    elu = lambda v: jnp.where(v > 0.0, v, jnp.exp(v) - 1.0)
    b16 = lambda v: v.astype(jnp.bfloat16)

    def dotf(a, b):
        return jnp.dot(a, b, preferred_element_type=jnp.float32)

    (x_in_ref,) = take(1)
    w_li0, b_li0, w_li1, b_li1 = take(4)
    sa_w = [take(5) for _ in range(DEPTH)]
    fp_w = [take(5) for _ in range(DEPTH)]       # application order (coarse -> fine)
    w_o0, b_o0, w_o1, b_o1 = take(4)
    w_lf0l, w_lf0r, b_lf0, w_lf1, b_lf1, w_lf2, b_lf2 = take(7)
    sa_g = [take(2) for _ in range(DEPTH)]       # (onehot, rel) per SA level
    fp_a = [take(1)[0] for _ in range(DEPTH)]    # knn-interp matrices
    oh_l, oh_r = take(2)
    assert cursor == len(refs)

    # ---- lin_in (relu, relu) ----
    x = relu(dotf(b16(x_in_ref[...]), w_li0[...]) + b_li0[...])
    x = relu(dotf(b16(x), w_li1[...]) + b_li1[...])

    # ---- SA stack: PointConv message MLP + max-over-neighbors ----
    xs = [x]
    for i in range(DEPTH):
        wm1f, wm1r, bm1, wm2, bm2 = sa_w[i]
        oh, rel = sa_g[i]
        # in-kernel feature gather: one-hot MXU matmul (K-major flattened)
        gathered = dotf(oh[...], b16(xs[i]))                          # [K*M, C]
        # [x_j | pos_j - pos_i] concat folded into split layer-1 weights
        h = relu(dotf(b16(gathered), wm1f[...])
                 + dotf(b16(rel[...]), wm1r[...]) + bm1[...])         # [K*M, C+3]
        h = relu(dotf(b16(h), wm2[...]) + bm2[...])                   # [K*M, C]
        # max over K neighbors: pairwise-halving tree over sublane-aligned halves
        m_pts = h.shape[0] // MAX_NEIGHBORS
        length = h.shape[0]
        while length > m_pts:
            half = length // 2
            h = jnp.maximum(h[:half], h[half:length])
            length = half
        xs.append(h)                                                  # [M, C]

    # ---- FP stack (knn_interpolate as one matmul, concat folded into weights) ----
    fp_x = xs[DEPTH]
    for t in range(DEPTH):
        wfi, wfs, bfa, wfb, bfb = fp_w[t]
        skip = xs[DEPTH - 1 - t]
        interp = dotf(fp_a[t][...], b16(fp_x))                        # [N_skip, C]
        h = relu(dotf(b16(interp), wfi[...])
                 + dotf(b16(skip), wfs[...]) + bfa[...])
        fp_x = relu(dotf(b16(h), wfb[...]) + bfb[...])

    # ---- lin_out (relu, None) ----
    h = relu(dotf(b16(fp_x), w_o0[...]) + b_o0[...])
    x_out = dotf(b16(h), w_o1[...]) + b_o1[...]                       # [N0, nOut]

    # ---- het-edge gather + lin_final (elu, elu, None) + masked mean ----
    xb = b16(x_out)
    left = dotf(oh_l[...], xb)                                        # [E_pad, C]
    right = dotf(oh_r[...], xb)
    h = elu(dotf(b16(left), w_lf0l[...]) + dotf(b16(right), w_lf0r[...]) + b_lf0[...])
    h = elu(dotf(b16(h), w_lf1[...]) + b_lf1[...])
    y = dotf(b16(h), w_lf2[...]) + b_lf2[...]                         # [E_pad, nOut]

    row = jax.lax.broadcasted_iota(jnp.int32, y.shape, 0)
    y = jnp.where(row < E, y, 0.0)                                    # drop padded edges
    total = jnp.sum(jnp.sum(y, axis=1, keepdims=True), axis=0, keepdims=True)  # [1,1]
    mean = total * (1.0 / (E * y.shape[1]))
    o_ref[...] = jnp.zeros(o_ref.shape, jnp.float32) + mean           # lane-dense row


# ----------------------- graph-construction glue (JAX) ----------------------
# TODO(synk): FPS / radius / knn glue below is data-dependent graph construction
# with no clean rectangular-tile Pallas form; it depends only on `pos`, so it runs
# once up front and only dense gather/interp matrices enter the fused kernel.
def fps_jax(pos, num_samples):
    """Farthest point sampling, deterministic start at node 0 (random_start=False)."""
    idxs = jnp.zeros((num_samples,), dtype=jnp.int32)
    min_d = jnp.sum((pos - pos[0]) ** 2, axis=-1)

    def body(i, state):
        cur_idxs, cur_min = state
        nxt = jnp.argmax(cur_min).astype(jnp.int32)
        cur_idxs = cur_idxs.at[i].set(nxt)
        cur_min = jnp.minimum(cur_min, jnp.sum((pos - pos[nxt]) ** 2, axis=-1))
        return cur_idxs, cur_min

    idxs, _ = jax.lax.fori_loop(1, num_samples, body, (idxs, min_d))
    return idxs


def radius_neighbors(pos_src, pos_query, r, K):
    """Up to K neighbors of each query within radius r (K nearest chosen).
    # TODO(synk): torch_cluster.radius keeps the *first* K hits in scan order, not
    # the K nearest; deterministic K-nearest-in-radius is used here instead."""
    d2 = jnp.sum((pos_query[:, None, :] - pos_src[None, :, :]) ** 2, axis=-1)
    k_eff = min(K, pos_src.shape[0])
    vals, idx = jax.lax.top_k(-d2, k_eff)
    valid = (-vals) <= (r * r)
    if k_eff < K:
        pad = K - k_eff
        idx = jnp.pad(idx, ((0, 0), (0, pad)))
        valid = jnp.pad(valid, ((0, 0), (0, pad)))
    return idx.astype(jnp.int32), valid


def knn_interp_matrix(pos_src, pos_dst, k):
    """torch_geometric.knn_interpolate folded into a dense [N_dst, N_src] matrix
    (inverse-square-distance weights, row-normalized); applied in-kernel as 1 matmul."""
    d2 = jnp.sum((pos_dst[:, None, :] - pos_src[None, :, :]) ** 2, axis=-1)
    k_eff = min(k, pos_src.shape[0])
    vals, idx = jax.lax.top_k(-d2, k_eff)
    w = 1.0 / jnp.maximum(-vals, 1e-16)                               # [Nd, k]
    w = w / jnp.sum(w, axis=1, keepdims=True)
    oh = (idx[..., None] == jnp.arange(pos_src.shape[0])[None, None, :])
    return jnp.sum(w[..., None] * oh.astype(jnp.float32), axis=1).astype(jnp.bfloat16)


# ----------------------------- parameter handling ----------------------------
def init_linear(key, cin, cout):
    k1, k2 = jax.random.split(key)
    bound = 1.0 / math.sqrt(cin)
    w = jax.random.uniform(k1, (cin, cout), minval=-bound, maxval=bound, dtype=jnp.float32)
    b = jax.random.uniform(k2, (cout,), minval=-bound, maxval=bound, dtype=jnp.float32)
    return w, b


def init_mlp(key, dims):
    keys = jax.random.split(key, len(dims) - 1)
    return [init_linear(keys[i], dims[i], dims[i + 1]) for i in range(len(dims) - 1)]


def init_params(key):
    ks = jax.random.split(key, 4 + 2 * DEPTH)
    return {
        'lin_in': init_mlp(ks[0], [N_IN, N_HIDDEN, N_HIDDEN]),
        'sa': [init_mlp(ks[1 + i], [N_HIDDEN + 3, N_HIDDEN + 3, N_HIDDEN]) for i in range(DEPTH)],
        'fp': [init_mlp(ks[1 + DEPTH + i], [2 * N_HIDDEN, 2 * N_HIDDEN, N_HIDDEN]) for i in range(DEPTH)],
        'lin_out': init_mlp(ks[1 + 2 * DEPTH], [N_HIDDEN, N_HIDDEN, N_OUT]),
        'lin_final': init_mlp(ks[2 + 2 * DEPTH], [2 * N_HIDDEN, N_HIDDEN, N_HIDDEN // 2, N_OUT]),
    }


def prepare_params(params):
    """One-time conversion to the fused kernel's operand layout: bf16 weights,
    (1,C) f32 biases, concat-splits of first-layer weights, sublane padding of the
    3-row rel block.  Done once outside jit so no per-forward casts remain."""
    bf16, f32 = jnp.bfloat16, jnp.float32
    flat = []

    def emit(w, b):
        flat.append(w.astype(bf16))
        flat.append(b.reshape(1, -1).astype(f32))

    for w, b in params['lin_in']:
        emit(w, b)
    for i in range(DEPTH):
        (w1, b1), (w2, b2) = params['sa'][i]
        flat.append(w1[:N_HIDDEN].astype(bf16))                                        # feature rows
        flat.append(jnp.pad(w1[N_HIDDEN:], ((0, REL_PAD - 3), (0, 0))).astype(bf16))   # rel rows, padded
        flat.append(b1.reshape(1, -1).astype(f32))
        flat.append(w2.astype(bf16))
        flat.append(b2.reshape(1, -1).astype(f32))
    for j in range(DEPTH - 1, -1, -1):                                                 # application order
        (w1, b1), (w2, b2) = params['fp'][j]
        flat.append(w1[:N_HIDDEN].astype(bf16))                                        # interp rows
        flat.append(w1[N_HIDDEN:].astype(bf16))                                        # skip rows
        flat.append(b1.reshape(1, -1).astype(f32))
        flat.append(w2.astype(bf16))
        flat.append(b2.reshape(1, -1).astype(f32))
    for w, b in params['lin_out']:
        emit(w, b)
    (w1, b1), (w2, b2), (w3, b3) = params['lin_final']
    flat.append(w1[:N_OUT].astype(bf16))                                               # left rows
    flat.append(w1[N_OUT:].astype(bf16))                                               # right rows
    flat.append(b1.reshape(1, -1).astype(f32))
    flat.append(w2.astype(bf16))
    flat.append(b2.reshape(1, -1).astype(f32))
    flat.append(w3.astype(bf16))
    flat.append(b3.reshape(1, -1).astype(f32))
    return flat


# ------------------------------- full forward --------------------------------
def pointnet_pp_forward(flat_params, x_in, pos, norm, het_edge_index):
    del norm  # only needed by the PPFConv variant; PointConv ignores it

    # ---- pos-only graph construction (plain JAX glue) ----
    pos_levels = [pos]
    sa_graph = []
    cur_pos, n = pos, pos.shape[0]
    for _ in range(DEPTH):
        m = int(math.ceil(RATIO * n))
        samp = fps_jax(cur_pos, m)
        pos_q = cur_pos[samp]
        nbr_idx, valid = radius_neighbors(cur_pos, pos_q, RADIUS, MAX_NEIGHBORS)
        # Invalid / padded slots -> the sampled point's own index.  The self message
        # (feat=x_i, rel=0) is always a valid in-radius neighbor (d=0), so the max
        # aggregation is unchanged and no in-kernel mask is needed.
        # TODO(synk): PyG PointNetConv's bipartite add_self_loops quirk is not
        # reproduced (each sampled point already includes itself as a neighbor).
        nbr_idx = jnp.where(valid, nbr_idx, samp[:, None])
        rel = cur_pos[nbr_idx] - pos_q[:, None, :]                          # [M, K, 3]
        idx_flat = jnp.swapaxes(nbr_idx, 0, 1).reshape(-1)                  # K-major [K*M]
        rel_flat = jnp.swapaxes(rel, 0, 1).reshape(-1, 3).astype(jnp.float32)
        rel_flat = jnp.pad(rel_flat, ((0, 0), (0, REL_PAD - 3)))            # 3 -> 8 lanes
        onehot = (idx_flat[:, None] == jnp.arange(n, dtype=jnp.int32)[None, :])
        sa_graph += [onehot.astype(jnp.bfloat16), rel_flat]
        cur_pos, n = pos_q, m
        pos_levels.append(cur_pos)

    # knn-interpolation matrices for the FP stack (coarse -> fine application order)
    fp_mats = [knn_interp_matrix(pos_levels[lvl], pos_levels[lvl - 1], KNN_K)
               for lvl in range(DEPTH, 0, -1)]

    # padded het-edge one-hot gather matrices (padded rows are all-zero)
    E = het_edge_index.shape[0]
    E_pad = max(8, ((E + 7) // 8) * 8)
    cols = jnp.arange(N_POINTS, dtype=jnp.int32)[None, :]
    idx_l = jnp.pad(het_edge_index[:, 0], (0, E_pad - E), constant_values=-1)
    idx_r = jnp.pad(het_edge_index[:, 1], (0, E_pad - E), constant_values=-1)
    oh_l = (idx_l[:, None] == cols).astype(jnp.bfloat16)
    oh_r = (idx_r[:, None] == cols).astype(jnp.bfloat16)

    # ---- single fused pallas_call ----
    arrays = [x_in] + list(flat_params) + sa_graph + fp_mats + [oh_l, oh_r]
    in_specs = [pl.BlockSpec(a.shape, lambda i: (0, 0)) for a in arrays]

    out = pl.pallas_call(
        functools.partial(_fused_kernel, E),
        out_shape=jax.ShapeDtypeStruct((1, 128), jnp.float32),
        grid=(1,),
        in_specs=in_specs,
        out_specs=pl.BlockSpec((1, 128), lambda i: (0, 0)),
        compiler_params=pltpu.CompilerParams(dimension_semantics=("arbitrary",)),
    )(*arrays)
    return out[0, 0]


# ---------------------------------- main ------------------------------------
if __name__ == "__main__":
    key = jax.random.PRNGKey(0)
    k_par, k_x, k_pos, k_norm, k_het = jax.random.split(key, 5)

    params = init_params(k_par)
    flat_params = prepare_params(params)          # one-time cast / split / pad

    x_in = jax.random.normal(k_x, (N_POINTS, N_IN), dtype=jnp.float32)
    pos = jax.random.uniform(k_pos, (N_POINTS, 3), dtype=jnp.float32)
    norm = jax.random.normal(k_norm, (N_POINTS, 3), dtype=jnp.float32)
    het_edge_index = jax.random.randint(k_het, (N_HET_EDGES, 2), 0, N_POINTS, dtype=jnp.int32)

    fwd = jax.jit(pointnet_pp_forward)
    out = fwd(flat_params, x_in, pos, norm, het_edge_index)
    out = jax.block_until_ready(out)
    assert out.shape == () and jnp.isfinite(out)
    print("KERNEL_OK")
</pallas_src>

<mosaic_0001>
module attributes {stable_mosaic.version = 11 : i64} {
  func.func @_fused_kernel(%arg0: i32, %arg1: memref<64x3xf32, #tpu.memory_space<vmem>>, %arg2: memref<3x16xbf16, #tpu.memory_space<vmem>>, %arg3: memref<1x16xf32, #tpu.memory_space<vmem>>, %arg4: memref<16x16xbf16, #tpu.memory_space<vmem>>, %arg5: memref<1x16xf32, #tpu.memory_space<vmem>>, %arg6: memref<16x19xbf16, #tpu.memory_space<vmem>>, %arg7: memref<8x19xbf16, #tpu.memory_space<vmem>>, %arg8: memref<1x19xf32, #tpu.memory_space<vmem>>, %arg9: memref<19x16xbf16, #tpu.memory_space<vmem>>, %arg10: memref<1x16xf32, #tpu.memory_space<vmem>>, %arg11: memref<16x19xbf16, #tpu.memory_space<vmem>>, %arg12: memref<8x19xbf16, #tpu.memory_space<vmem>>, %arg13: memref<1x19xf32, #tpu.memory_space<vmem>>, %arg14: memref<19x16xbf16, #tpu.memory_space<vmem>>, %arg15: memref<1x16xf32, #tpu.memory_space<vmem>>, %arg16: memref<16x19xbf16, #tpu.memory_space<vmem>>, %arg17: memref<8x19xbf16, #tpu.memory_space<vmem>>, %arg18: memref<1x19xf32, #tpu.memory_space<vmem>>, %arg19: memref<19x16xbf16, #tpu.memory_space<vmem>>, %arg20: memref<1x16xf32, #tpu.memory_space<vmem>>, %arg21: memref<16x32xbf16, #tpu.memory_space<vmem>>, %arg22: memref<16x32xbf16, #tpu.memory_space<vmem>>, %arg23: memref<1x32xf32, #tpu.memory_space<vmem>>, %arg24: memref<32x16xbf16, #tpu.memory_space<vmem>>, %arg25: memref<1x16xf32, #tpu.memory_space<vmem>>, %arg26: memref<16x32xbf16, #tpu.memory_space<vmem>>, %arg27: memref<16x32xbf16, #tpu.memory_space<vmem>>, %arg28: memref<1x32xf32, #tpu.memory_space<vmem>>, %arg29: memref<32x16xbf16, #tpu.memory_space<vmem>>, %arg30: memref<1x16xf32, #tpu.memory_space<vmem>>, %arg31: memref<16x32xbf16, #tpu.memory_space<vmem>>, %arg32: memref<16x32xbf16, #tpu.memory_space<vmem>>, %arg33: memref<1x32xf32, #tpu.memory_space<vmem>>, %arg34: memref<32x16xbf16, #tpu.memory_space<vmem>>, %arg35: memref<1x16xf32, #tpu.memory_space<vmem>>, %arg36: memref<16x16xbf16, #tpu.memory_space<vmem>>, %arg37: memref<1x16xf32, #tpu.memory_space<vmem>>, %arg38: memref<16x16xbf16, #tpu.memory_space<vmem>>, %arg39: memref<1x16xf32, #tpu.memory_space<vmem>>, %arg40: memref<16x16xbf16, #tpu.memory_space<vmem>>, %arg41: memref<16x16xbf16, #tpu.memory_space<vmem>>, %arg42: memref<1x16xf32, #tpu.memory_space<vmem>>, %arg43: memref<16x8xbf16, #tpu.memory_space<vmem>>, %arg44: memref<1x8xf32, #tpu.memory_space<vmem>>, %arg45: memref<8x16xbf16, #tpu.memory_space<vmem>>, %arg46: memref<1x16xf32, #tpu.memory_space<vmem>>, %arg47: memref<1024x64xbf16, #tpu.memory_space<vmem>>, %arg48: memref<1024x8xf32, #tpu.memory_space<vmem>>, %arg49: memref<512x32xbf16, #tpu.memory_space<vmem>>, %arg50: memref<512x8xf32, #tpu.memory_space<vmem>>, %arg51: memref<256x16xbf16, #tpu.memory_space<vmem>>, %arg52: memref<256x8xf32, #tpu.memory_space<vmem>>, %arg53: memref<16x8xbf16, #tpu.memory_space<vmem>>, %arg54: memref<32x16xbf16, #tpu.memory_space<vmem>>, %arg55: memref<64x32xbf16, #tpu.memory_space<vmem>>, %arg56: memref<16x64xbf16, #tpu.memory_space<vmem>>, %arg57: memref<16x64xbf16, #tpu.memory_space<vmem>>, %arg58: memref<1x128xf32, #tpu.memory_space<vmem>>) attributes {dimension_semantics = [#tpu.dimension_semantics<arbitrary>], iteration_bounds = array<i64: 1>, scalar_prefetch = 0 : i64, scratch_operands = 0 : i64, tpu.core_type = #tpu.core_type<tc>, window_params = [{pipeline_mode = #tpu.pipeline_mode<synchronous>, transform_indices = @transform_0, window_bounds = array<i64: 64, 3>}, {pipeline_mode = #tpu.pipeline_mode<synchronous>, transform_indices = @transform_1, window_bounds = array<i64: 3, 16>}, {pipeline_mode = #tpu.pipeline_mode<synchronous>, transform_indices = @transform_2, window_bounds = array<i64: 1, 16>}, {pipeline_mode = #tpu.pipeline_mode<synchronous>, transform_indices = @transform_3, window_bounds = array<i64: 16, 16>}, {pipeline_mode = #tpu.pipeline_mode<synchronous>, transform_indices = @transform_4, window_bounds = array<i64: 1, 16>}, {pipeline_mode = #tpu.pipeline_mode<synchronous>, transform_indices = @transform_5, window_bounds = array<i64: 16, 19>}, {pipeline_mode = #tpu.pipeline_mode<synchronous>, transform_indices = @transform_6, window_bounds = array<i64: 8, 19>}, {pipeline_mode = #tpu.pipeline_mode<synchronous>, transform_indices = @transform_7, window_bounds = array<i64: 1, 19>}, {pipeline_mode = #tpu.pipeline_mode<synchronous>, transform_indices = @transform_8, window_bounds = array<i64: 19, 16>}, {pipeline_mode = #tpu.pipeline_mode<synchronous>, transform_indices = @transform_9, window_bounds = array<i64: 1, 16>}, {pipeline_mode = #tpu.pipeline_mode<synchronous>, transform_indices = @transform_10, window_bounds = array<i64: 16, 19>}, {pipeline_mode = #tpu.pipeline_mode<synchronous>, transform_indices = @transform_11, window_bounds = array<i64: 8, 19>}, {pipeline_mode = #tpu.pipeline_mode<synchronous>, transform_indices = @transform_12, window_bounds = array<i64: 1, 19>}, {pipeline_mode = #tpu.pipeline_mode<synchronous>, transform_indices = @transform_13, window_bounds = array<i64: 19, 16>}, {pipeline_mode = #tpu.pipeline_mode<synchronous>, transform_indices = @transform_14, window_bounds = array<i64: 1, 16>}, {pipeline_mode = #tpu.pipeline_mode<synchronous>, transform_indices = @transform_15, window_bounds = array<i64: 16, 19>}, {pipeline_mode = #tpu.pipeline_mode<synchronous>, transform_indices = @transform_16, window_bounds = array<i64: 8, 19>}, {pipeline_mode = #tpu.pipeline_mode<synchronous>, transform_indices = @transform_17, window_bounds = array<i64: 1, 19>}, {pipeline_mode = #tpu.pipeline_mode<synchronous>, transform_indices = @transform_18, window_bounds = array<i64: 19, 16>}, {pipeline_mode = #tpu.pipeline_mode<synchronous>, transform_indices = @transform_19, window_bounds = array<i64: 1, 16>}, {pipeline_mode = #tpu.pipeline_mode<synchronous>, transform_indices = @transform_20, window_bounds = array<i64: 16, 32>}, {pipeline_mode = #tpu.pipeline_mode<synchronous>, transform_indices = @transform_21, window_bounds = array<i64: 16, 32>}, {pipeline_mode = #tpu.pipeline_mode<synchronous>, transform_indices = @transform_22, window_bounds = array<i64: 1, 32>}, {pipeline_mode = #tpu.pipeline_mode<synchronous>, transform_indices = @transform_23, window_bounds = array<i64: 32, 16>}, {pipeline_mode = #tpu.pipeline_mode<synchronous>, transform_indices = @transform_24, window_bounds = array<i64: 1, 16>}, {pipeline_mode = #tpu.pipeline_mode<synchronous>, transform_indices = @transform_25, window_bounds = array<i64: 16, 32>}, {pipeline_mode = #tpu.pipeline_mode<synchronous>, transform_indices = @transform_26, window_bounds = array<i64: 16, 32>}, {pipeline_mode = #tpu.pipeline_mode<synchronous>, transform_indices = @transform_27, window_bounds = array<i64: 1, 32>}, {pipeline_mode = #tpu.pipeline_mode<synchronous>, transform_indices = @transform_28, window_bounds = array<i64: 32, 16>}, {pipeline_mode = #tpu.pipeline_mode<synchronous>, transform_indices = @transform_29, window_bounds = array<i64: 1, 16>}, {pipeline_mode = #tpu.pipeline_mode<synchronous>, transform_indices = @transform_30, window_bounds = array<i64: 16, 32>}, {pipeline_mode = #tpu.pipeline_mode<synchronous>, transform_indices = @transform_31, window_bounds = array<i64: 16, 32>}, {pipeline_mode = #tpu.pipeline_mode<synchronous>, transform_indices = @transform_32, window_bounds = array<i64: 1, 32>}, {pipeline_mode = #tpu.pipeline_mode<synchronous>, transform_indices = @transform_33, window_bounds = array<i64: 32, 16>}, {pipeline_mode = #tpu.pipeline_mode<synchronous>, transform_indices = @transform_34, window_bounds = array<i64: 1, 16>}, {pipeline_mode = #tpu.pipeline_mode<synchronous>, transform_indices = @transform_35, window_bounds = array<i64: 16, 16>}, {pipeline_mode = #tpu.pipeline_mode<synchronous>, transform_indices = @transform_36, window_bounds = array<i64: 1, 16>}, {pipeline_mode = #tpu.pipeline_mode<synchronous>, transform_indices = @transform_37, window_bounds = array<i64: 16, 16>}, {pipeline_mode = #tpu.pipeline_mode<synchronous>, transform_indices = @transform_38, window_bounds = array<i64: 1, 16>}, {pipeline_mode = #tpu.pipeline_mode<synchronous>, transform_indices = @transform_39, window_bounds = array<i64: 16, 16>}, {pipeline_mode = #tpu.pipeline_mode<synchronous>, transform_indices = @transform_40, window_bounds = array<i64: 16, 16>}, {pipeline_mode = #tpu.pipeline_mode<synchronous>, transform_indices = @transform_41, window_bounds = array<i64: 1, 16>}, {pipeline_mode = #tpu.pipeline_mode<synchronous>, transform_indices = @transform_42, window_bounds = array<i64: 16, 8>}, {pipeline_mode = #tpu.pipeline_mode<synchronous>, transform_indices = @transform_43, window_bounds = array<i64: 1, 8>}, {pipeline_mode = #tpu.pipeline_mode<synchronous>, transform_indices = @transform_44, window_bounds = array<i64: 8, 16>}, {pipeline_mode = #tpu.pipeline_mode<synchronous>, transform_indices = @transform_45, window_bounds = array<i64: 1, 16>}, {pipeline_mode = #tpu.pipeline_mode<synchronous>, transform_indices = @transform_46, window_bounds = array<i64: 1024, 64>}, {pipeline_mode = #tpu.pipeline_mode<synchronous>, transform_indices = @transform_47, window_bounds = array<i64: 1024, 8>}, {pipeline_mode = #tpu.pipeline_mode<synchronous>, transform_indices = @transform_48, window_bounds = array<i64: 512, 32>}, {pipeline_mode = #tpu.pipeline_mode<synchronous>, transform_indices = @transform_49, window_bounds = array<i64: 512, 8>}, {pipeline_mode = #tpu.pipeline_mode<synchronous>, transform_indices = @transform_50, window_bounds = array<i64: 256, 16>}, {pipeline_mode = #tpu.pipeline_mode<synchronous>, transform_indices = @transform_51, window_bounds = array<i64: 256, 8>}, {pipeline_mode = #tpu.pipeline_mode<synchronous>, transform_indices = @transform_52, window_bounds = array<i64: 16, 8>}, {pipeline_mode = #tpu.pipeline_mode<synchronous>, transform_indices = @transform_53, window_bounds = array<i64: 32, 16>}, {pipeline_mode = #tpu.pipeline_mode<synchronous>, transform_indices = @transform_54, window_bounds = array<i64: 64, 32>}, {pipeline_mode = #tpu.pipeline_mode<synchronous>, transform_indices = @transform_55, window_bounds = array<i64: 16, 64>}, {pipeline_mode = #tpu.pipeline_mode<synchronous>, transform_indices = @transform_56, window_bounds = array<i64: 16, 64>}, {pipeline_mode = #tpu.pipeline_mode<synchronous>, transform_indices = @transform_57, window_bounds = array<i64: 1, 128>}]} {
    %c0 = arith.constant 0 : index
    %c0_0 = arith.constant 0 : index
    %0 = vector.load %arg1[%c0, %c0_0] : memref<64x3xf32, #tpu.memory_space<vmem>>, vector<64x3xf32>
    %1 = arith.truncf %0 : vector<64x3xf32> to vector<64x3xbf16>
    %c0_1 = arith.constant 0 : index
    %c0_2 = arith.constant 0 : index
    %2 = vector.load %arg2[%c0_1, %c0_2] : memref<3x16xbf16, #tpu.memory_space<vmem>>, vector<3x16xbf16>
    %cst = arith.constant dense<0.000000e+00> : vector<64x16xf32>
    %3 = tpu.matmul %1, %2, %cst {dimension_numbers = #tpu.dot_dimension_numbers<[1], [0], [0], [1], [0, 0, 1, 1], [], []>} : vector<64x3xbf16>, vector<3x16xbf16>, vector<64x16xf32> -> vector<64x16xf32>
    %c0_3 = arith.constant 0 : index
    %c0_4 = arith.constant 0 : index
    %4 = vector.load %arg3[%c0_3, %c0_4] : memref<1x16xf32, #tpu.memory_space<vmem>>, vector<1x16xf32>
    %5 = vector.broadcast %4 : vector<1x16xf32> to vector<64x16xf32>
    %6 = arith.addf %3, %5 : vector<64x16xf32>
    %cst_5 = arith.constant 0.000000e+00 : f32
    %7 = vector.broadcast %cst_5 : f32 to vector<64x16xf32>
    %8 = arith.maximumf %6, %7 : vector<64x16xf32>
    %9 = arith.truncf %8 : vector<64x16xf32> to vector<64x16xbf16>
    %c0_6 = arith.constant 0 : index
    %c0_7 = arith.constant 0 : index
    %10 = vector.load %arg4[%c0_6, %c0_7] : memref<16x16xbf16, #tpu.memory_space<vmem>>, vector<16x16xbf16>
    %cst_8 = arith.constant dense<0.000000e+00> : vector<64x16xf32>
    %11 = tpu.matmul %9, %10, %cst_8 {dimension_numbers = #tpu.dot_dimension_numbers<[1], [0], [0], [1], [0, 0, 1, 1], [], []>} : vector<64x16xbf16>, vector<16x16xbf16>, vector<64x16xf32> -> vector<64x16xf32>
    %c0_9 = arith.constant 0 : index
    %c0_10 = arith.constant 0 : index
    %12 = vector.load %arg5[%c0_9, %c0_10] : memref<1x16xf32, #tpu.memory_space<vmem>>, vector<1x16xf32>
    %13 = vector.broadcast %12 : vector<1x16xf32> to vector<64x16xf32>
    %14 = arith.addf %11, %13 : vector<64x16xf32>
    %cst_11 = arith.constant 0.000000e+00 : f32
    %15 = vector.broadcast %cst_11 : f32 to vector<64x16xf32>
    %16 = arith.maximumf %14, %15 : vector<64x16xf32>
    %c0_12 = arith.constant 0 : index
    %c0_13 = arith.constant 0 : index
    %17 = vector.load %arg47[%c0_12, %c0_13] : memref<1024x64xbf16, #tpu.memory_space<vmem>>, vector<1024x64xbf16>
    %18 = arith.truncf %16 : vector<64x16xf32> to vector<64x16xbf16>
    %cst_14 = arith.constant dense<0.000000e+00> : vector<1024x16xf32>
    %19 = tpu.matmul %17, %18, %cst_14 {dimension_numbers = #tpu.dot_dimension_numbers<[1], [0], [0], [1], [0, 0, 1, 1], [], []>} : vector<1024x64xbf16>, vector<64x16xbf16>, vector<1024x16xf32> -> vector<1024x16xf32>
    %20 = arith.truncf %19 : vector<1024x16xf32> to vector<1024x16xbf16>
    %c0_15 = arith.constant 0 : index
    %c0_16 = arith.constant 0 : index
    %21 = vector.load %arg6[%c0_15, %c0_16] : memref<16x19xbf16, #tpu.memory_space<vmem>>, vector<16x19xbf16>
    %cst_17 = arith.constant dense<0.000000e+00> : vector<1024x19xf32>
    %22 = tpu.matmul %20, %21, %cst_17 {dimension_numbers = #tpu.dot_dimension_numbers<[1], [0], [0], [1], [0, 0, 1, 1], [], []>} : vector<1024x16xbf16>, vector<16x19xbf16>, vector<1024x19xf32> -> vector<1024x19xf32>
    %c0_18 = arith.constant 0 : index
    %c0_19 = arith.constant 0 : index
    %23 = vector.load %arg48[%c0_18, %c0_19] : memref<1024x8xf32, #tpu.memory_space<vmem>>, vector<1024x8xf32>
    %24 = arith.truncf %23 : vector<1024x8xf32> to vector<1024x8xbf16>
    %c0_20 = arith.constant 0 : index
    %c0_21 = arith.constant 0 : index
    %25 = vector.load %arg7[%c0_20, %c0_21] : memref<8x19xbf16, #tpu.memory_space<vmem>>, vector<8x19xbf16>
    %cst_22 = arith.constant dense<0.000000e+00> : vector<1024x19xf32>
    %26 = tpu.matmul %24, %25, %cst_22 {dimension_numbers = #tpu.dot_dimension_numbers<[1], [0], [0], [1], [0, 0, 1, 1], [], []>} : vector<1024x8xbf16>, vector<8x19xbf16>, vector<1024x19xf32> -> vector<1024x19xf32>
    %27 = arith.addf %22, %26 : vector<1024x19xf32>
    %c0_23 = arith.constant 0 : index
    %c0_24 = arith.constant 0 : index
    %28 = vector.load %arg8[%c0_23, %c0_24] : memref<1x19xf32, #tpu.memory_space<vmem>>, vector<1x19xf32>
    %29 = vector.broadcast %28 : vector<1x19xf32> to vector<1024x19xf32>
    %30 = arith.addf %27, %29 : vector<1024x19xf32>
    %cst_25 = arith.constant 0.000000e+00 : f32
    %31 = vector.broadcast %cst_25 : f32 to vector<1024x19xf32>
    %32 = arith.maximumf %30, %31 : vector<1024x19xf32>
    %33 = arith.truncf %32 : vector<1024x19xf32> to vector<1024x19xbf16>
    %c0_26 = arith.constant 0 : index
    %c0_27 = arith.constant 0 : index
    %34 = vector.load %arg9[%c0_26, %c0_27] : memref<19x16xbf16, #tpu.memory_space<vmem>>, vector<19x16xbf16>
    %cst_28 = arith.constant dense<0.000000e+00> : vector<1024x16xf32>
    %35 = tpu.matmul %33, %34, %cst_28 {dimension_numbers = #tpu.dot_dimension_numbers<[1], [0], [0], [1], [0, 0, 1, 1], [], []>} : vector<1024x19xbf16>, vector<19x16xbf16>, vector<1024x16xf32> -> vector<1024x16xf32>
    %c0_29 = arith.constant 0 : index
    %c0_30 = arith.constant 0 : index
    %36 = vector.load %arg10[%c0_29, %c0_30] : memref<1x16xf32, #tpu.memory_space<vmem>>, vector<1x16xf32>
    %37 = vector.broadcast %36 : vector<1x16xf32> to vector<1024x16xf32>
    %38 = arith.addf %35, %37 : vector<1024x16xf32>
    %cst_31 = arith.constant 0.000000e+00 : f32
    %39 = vector.broadcast %cst_31 : f32 to vector<1024x16xf32>
    %40 = arith.maximumf %38, %39 : vector<1024x16xf32>
    %41 = vector.extract_strided_slice %40 {offsets = [0, 0], sizes = [512, 16], strides = [1, 1]} : vector<1024x16xf32> to vector<512x16xf32>
    %42 = vector.extract_strided_slice %40 {offsets = [512, 0], sizes = [512, 16], strides = [1, 1]} : vector<1024x16xf32> to vector<512x16xf32>
    %43 = arith.maximumf %41, %42 : vector<512x16xf32>
    %44 = vector.extract_strided_slice %43 {offsets = [0, 0], sizes = [256, 16], strides = [1, 1]} : vector<512x16xf32> to vector<256x16xf32>
    %45 = vector.extract_strided_slice %43 {offsets = [256, 0], sizes = [256, 16], strides = [1, 1]} : vector<512x16xf32> to vector<256x16xf32>
    %46 = arith.maximumf %44, %45 : vector<256x16xf32>
    %47 = vector.extract_strided_slice %46 {offsets = [0, 0], sizes = [128, 16], strides = [1, 1]} : vector<256x16xf32> to vector<128x16xf32>
    %48 = vector.extract_strided_slice %46 {offsets = [128, 0], sizes = [128, 16], strides = [1, 1]} : vector<256x16xf32> to vector<128x16xf32>
    %49 = arith.maximumf %47, %48 : vector<128x16xf32>
    %50 = vector.extract_strided_slice %49 {offsets = [0, 0], sizes = [64, 16], strides = [1, 1]} : vector<128x16xf32> to vector<64x16xf32>
    %51 = vector.extract_strided_slice %49 {offsets = [64, 0], sizes = [64, 16], strides = [1, 1]} : vector<128x16xf32> to vector<64x16xf32>
    %52 = arith.maximumf %50, %51 : vector<64x16xf32>
    %53 = vector.extract_strided_slice %52 {offsets = [0, 0], sizes = [32, 16], strides = [1, 1]} : vector<64x16xf32> to vector<32x16xf32>
    %54 = vector.extract_strided_slice %52 {offsets = [32, 0], sizes = [32, 16], strides = [1, 1]} : vector<64x16xf32> to vector<32x16xf32>
    %55 = arith.maximumf %53, %54 : vector<32x16xf32>
    %c0_32 = arith.constant 0 : index
    %c0_33 = arith.constant 0 : index
    %56 = vector.load %arg49[%c0_32, %c0_33] : memref<512x32xbf16, #tpu.memory_space<vmem>>, vector<512x32xbf16>
    %57 = arith.truncf %55 : vector<32x16xf32> to vector<32x16xbf16>
    %cst_34 = arith.constant dense<0.000000e+00> : vector<512x16xf32>
    %58 = tpu.matmul %56, %57, %cst_34 {dimension_numbers = #tpu.dot_dimension_numbers<[1], [0], [0], [1], [0, 0, 1, 1], [], []>} : vector<512x32xbf16>, vector<32x16xbf16>, vector<512x16xf32> -> vector<512x16xf32>
    %59 = arith.truncf %58 : vector<512x16xf32> to vector<512x16xbf16>
    %c0_35 = arith.constant 0 : index
    %c0_36 = arith.constant 0 : index
    %60 = vector.load %arg11[%c0_35, %c0_36] : memref<16x19xbf16, #tpu.memory_space<vmem>>, vector<16x19xbf16>
    %cst_37 = arith.constant dense<0.000000e+00> : vector<512x19xf32>
    %61 = tpu.matmul %59, %60, %cst_37 {dimension_numbers = #tpu.dot_dimension_numbers<[1], [0], [0], [1], [0, 0, 1, 1], [], []>} : vector<512x16xbf16>, vector<16x19xbf16>, vector<512x19xf32> -> vector<512x19xf32>
    %c0_38 = arith.constant 0 : index
    %c0_39 = arith.constant 0 : index
    %62 = vector.load %arg50[%c0_38, %c0_39] : memref<512x8xf32, #tpu.memory_space<vmem>>, vector<512x8xf32>
    %63 = arith.truncf %62 : vector<512x8xf32> to vector<512x8xbf16>
    %c0_40 = arith.constant 0 : index
    %c0_41 = arith.constant 0 : index
    %64 = vector.load %arg12[%c0_40, %c0_41] : memref<8x19xbf16, #tpu.memory_space<vmem>>, vector<8x19xbf16>
    %cst_42 = arith.constant dense<0.000000e+00> : vector<512x19xf32>
    %65 = tpu.matmul %63, %64, %cst_42 {dimension_numbers = #tpu.dot_dimension_numbers<[1], [0], [0], [1], [0, 0, 1, 1], [], []>} : vector<512x8xbf16>, vector<8x19xbf16>, vector<512x19xf32> -> vector<512x19xf32>
    %66 = arith.addf %61, %65 : vector<512x19xf32>
    %c0_43 = arith.constant 0 : index
    %c0_44 = arith.constant 0 : index
    %67 = vector.load %arg13[%c0_43, %c0_44] : memref<1x19xf32, #tpu.memory_space<vmem>>, vector<1x19xf32>
    %68 = vector.broadcast %67 : vector<1x19xf32> to vector<512x19xf32>
    %69 = arith.addf %66, %68 : vector<512x19xf32>
    %cst_45 = arith.constant 0.000000e+00 : f32
    %70 = vector.broadcast %cst_45 : f32 to vector<512x19xf32>
    %71 = arith.maximumf %69, %70 : vector<512x19xf32>
    %72 = arith.truncf %71 : vector<512x19xf32> to vector<512x19xbf16>
    %c0_46 = arith.constant 0 : index
    %c0_47 = arith.constant 0 : index
    %73 = vector.load %arg14[%c0_46, %c0_47] : memref<19x16xbf16, #tpu.memory_space<vmem>>, vector<19x16xbf16>
    %cst_48 = arith.constant dense<0.000000e+00> : vector<512x16xf32>
    %74 = tpu.matmul %72, %73, %cst_48 {dimension_numbers = #tpu.dot_dimension_numbers<[1], [0], [0], [1], [0, 0, 1, 1], [], []>} : vector<512x19xbf16>, vector<19x16xbf16>, vector<512x16xf32> -> vector<512x16xf32>
    %c0_49 = arith.constant 0 : index
    %c0_50 = arith.constant 0 : index
    %75 = vector.load %arg15[%c0_49, %c0_50] : memref<1x16xf32, #tpu.memory_space<vmem>>, vector<1x16xf32>
    %76 = vector.broadcast %75 : vector<1x16xf32> to vector<512x16xf32>
    %77 = arith.addf %74, %76 : vector<512x16xf32>
    %cst_51 = arith.constant 0.000000e+00 : f32
    %78 = vector.broadcast %cst_51 : f32 to vector<512x16xf32>
    %79 = arith.maximumf %77, %78 : vector<512x16xf32>
    %80 = vector.extract_strided_slice %79 {offsets = [0, 0], sizes = [256, 16], strides = [1, 1]} : vector<512x16xf32> to vector<256x16xf32>
    %81 = vector.extract_strided_slice %79 {offsets = [256, 0], sizes = [256, 16], strides = [1, 1]} : vector<512x16xf32> to vector<256x16xf32>
    %82 = arith.maximumf %80, %81 : vector<256x16xf32>
    %83 = vector.extract_strided_slice %82 {offsets = [0, 0], sizes = [128, 16], strides = [1, 1]} : vector<256x16xf32> to vector<128x16xf32>
    %84 = vector.extract_strided_slice %82 {offsets = [128, 0], sizes = [128, 16], strides = [1, 1]} : vector<256x16xf32> to vector<128x16xf32>
    %85 = arith.maximumf %83, %84 : vector<128x16xf32>
    %86 = vector.extract_strided_slice %85 {offsets = [0, 0], sizes = [64, 16], strides = [1, 1]} : vector<128x16xf32> to vector<64x16xf32>
    %87 = vector.extract_strided_slice %85 {offsets = [64, 0], sizes = [64, 16], strides = [1, 1]} : vector<128x16xf32> to vector<64x16xf32>
    %88 = arith.maximumf %86, %87 : vector<64x16xf32>
    %89 = vector.extract_strided_slice %88 {offsets = [0, 0], sizes = [32, 16], strides = [1, 1]} : vector<64x16xf32> to vector<32x16xf32>
    %90 = vector.extract_strided_slice %88 {offsets = [32, 0], sizes = [32, 16], strides = [1, 1]} : vector<64x16xf32> to vector<32x16xf32>
    %91 = arith.maximumf %89, %90 : vector<32x16xf32>
    %92 = vector.extract_strided_slice %91 {offsets = [0, 0], sizes = [16, 16], strides = [1, 1]} : vector<32x16xf32> to vector<16x16xf32>
    %93 = vector.extract_strided_slice %91 {offsets = [16, 0], sizes = [16, 16], strides = [1, 1]} : vector<32x16xf32> to vector<16x16xf32>
    %94 = arith.maximumf %92, %93 : vector<16x16xf32>
    %c0_52 = arith.constant 0 : index
    %c0_53 = arith.constant 0 : index
    %95 = vector.load %arg51[%c0_52, %c0_53] : memref<256x16xbf16, #tpu.memory_space<vmem>>, vector<256x16xbf16>
    %96 = arith.truncf %94 : vector<16x16xf32> to vector<16x16xbf16>
    %cst_54 = arith.constant dense<0.000000e+00> : vector<256x16xf32>
    %97 = tpu.matmul %95, %96, %cst_54 {dimension_numbers = #tpu.dot_dimension_numbers<[1], [0], [0], [1], [0, 0, 1, 1], [], []>} : vector<256x16xbf16>, vector<16x16xbf16>, vector<256x16xf32> -> vector<256x16xf32>
    %98 = arith.truncf %97 : vector<256x16xf32> to vector<256x16xbf16>
    %c0_55 = arith.constant 0 : index
    %c0_56 = arith.constant 0 : index
    %99 = vector.load %arg16[%c0_55, %c0_56] : memref<16x19xbf16, #tpu.memory_space<vmem>>, vector<16x19xbf16>
    %cst_57 = arith.constant dense<0.000000e+00> : vector<256x19xf32>
    %100 = tpu.matmul %98, %99, %cst_57 {dimension_numbers = #tpu.dot_dimension_numbers<[1], [0], [0], [1], [0, 0, 1, 1], [], []>} : vector<256x16xbf16>, vector<16x19xbf16>, vector<256x19xf32> -> vector<256x19xf32>
    %c0_58 = arith.constant 0 : index
    %c0_59 = arith.constant 0 : index
    %101 = vector.load %arg52[%c0_58, %c0_59] : memref<256x8xf32, #tpu.memory_space<vmem>>, vector<256x8xf32>
    %102 = arith.truncf %101 : vector<256x8xf32> to vector<256x8xbf16>
    %c0_60 = arith.constant 0 : index
    %c0_61 = arith.constant 0 : index
    %103 = vector.load %arg17[%c0_60, %c0_61] : memref<8x19xbf16, #tpu.memory_space<vmem>>, vector<8x19xbf16>
    %cst_62 = arith.constant dense<0.000000e+00> : vector<256x19xf32>
    %104 = tpu.matmul %102, %103, %cst_62 {dimension_numbers = #tpu.dot_dimension_numbers<[1], [0], [0], [1], [0, 0, 1, 1], [], []>} : vector<256x8xbf16>, vector<8x19xbf16>, vector<256x19xf32> -> vector<256x19xf32>
    %105 = arith.addf %100, %104 : vector<256x19xf32>
    %c0_63 = arith.constant 0 : index
    %c0_64 = arith.constant 0 : index
    %106 = vector.load %arg18[%c0_63, %c0_64] : memref<1x19xf32, #tpu.memory_space<vmem>>, vector<1x19xf32>
    %107 = vector.broadcast %106 : vector<1x19xf32> to vector<256x19xf32>
    %108 = arith.addf %105, %107 : vector<256x19xf32>
    %cst_65 = arith.constant 0.000000e+00 : f32
    %109 = vector.broadcast %cst_65 : f32 to vector<256x19xf32>
    %110 = arith.maximumf %108, %109 : vector<256x19xf32>
    %111 = arith.truncf %110 : vector<256x19xf32> to vector<256x19xbf16>
    %c0_66 = arith.constant 0 : index
    %c0_67 = arith.constant 0 : index
    %112 = vector.load %arg19[%c0_66, %c0_67] : memref<19x16xbf16, #tpu.memory_space<vmem>>, vector<19x16xbf16>
    %cst_68 = arith.constant dense<0.000000e+00> : vector<256x16xf32>
    %113 = tpu.matmul %111, %112, %cst_68 {dimension_numbers = #tpu.dot_dimension_numbers<[1], [0], [0], [1], [0, 0, 1, 1], [], []>} : vector<256x19xbf16>, vector<19x16xbf16>, vector<256x16xf32> -> vector<256x16xf32>
    %c0_69 = arith.constant 0 : index
    %c0_70 = arith.constant 0 : index
    %114 = vector.load %arg20[%c0_69, %c0_70] : memref<1x16xf32, #tpu.memory_space<vmem>>, vector<1x16xf32>
    %115 = vector.broadcast %114 : vector<1x16xf32> to vector<256x16xf32>
    %116 = arith.addf %113, %115 : vector<256x16xf32>
    %cst_71 = arith.constant 0.000000e+00 : f32
    %117 = vector.broadcast %cst_71 : f32 to vector<256x16xf32>
    %118 = arith.maximumf %116, %117 : vector<256x16xf32>
    %119 = vector.extract_strided_slice %118 {offsets = [0, 0], sizes = [128, 16], strides = [1, 1]} : vector<256x16xf32> to vector<128x16xf32>
    %120 = vector.extract_strided_slice %118 {offsets = [128, 0], sizes = [128, 16], strides = [1, 1]} : vector<256x16xf32> to vector<128x16xf32>
    %121 = arith.maximumf %119, %120 : vector<128x16xf32>
    %122 = vector.extract_strided_slice %121 {offsets = [0, 0], sizes = [64, 16], strides = [1, 1]} : vector<128x16xf32> to vector<64x16xf32>
    %123 = vector.extract_strided_slice %121 {offsets = [64, 0], sizes = [64, 16], strides = [1, 1]} : vector<128x16xf32> to vector<64x16xf32>
    %124 = arith.maximumf %122, %123 : vector<64x16xf32>
    %125 = vector.extract_strided_slice %124 {offsets = [0, 0], sizes = [32, 16], strides = [1, 1]} : vector<64x16xf32> to vector<32x16xf32>
    %126 = vector.extract_strided_slice %124 {offsets = [32, 0], sizes = [32, 16], strides = [1, 1]} : vector<64x16xf32> to vector<32x16xf32>
    %127 = arith.maximumf %125, %126 : vector<32x16xf32>
    %128 = vector.extract_strided_slice %127 {offsets = [0, 0], sizes = [16, 16], strides = [1, 1]} : vector<32x16xf32> to vector<16x16xf32>
    %129 = vector.extract_strided_slice %127 {offsets = [16, 0], sizes = [16, 16], strides = [1, 1]} : vector<32x16xf32> to vector<16x16xf32>
    %130 = arith.maximumf %128, %129 : vector<16x16xf32>
    %131 = vector.extract_strided_slice %130 {offsets = [0, 0], sizes = [8, 16], strides = [1, 1]} : vector<16x16xf32> to vector<8x16xf32>
    %132 = vector.extract_strided_slice %130 {offsets = [8, 0], sizes = [8, 16], strides = [1, 1]} : vector<16x16xf32> to vector<8x16xf32>
    %133 = arith.maximumf %131, %132 : vector<8x16xf32>
    %c0_72 = arith.constant 0 : index
    %c0_73 = arith.constant 0 : index
    %134 = vector.load %arg53[%c0_72, %c0_73] : memref<16x8xbf16, #tpu.memory_space<vmem>>, vector<16x8xbf16>
    %135 = arith.truncf %133 : vector<8x16xf32> to vector<8x16xbf16>
    %cst_74 = arith.constant dense<0.000000e+00> : vector<16x16xf32>
    %136 = tpu.matmul %134, %135, %cst_74 {dimension_numbers = #tpu.dot_dimension_numbers<[1], [0], [0], [1], [0, 0, 1, 1], [], []>} : vector<16x8xbf16>, vector<8x16xbf16>, vector<16x16xf32> -> vector<16x16xf32>
    %137 = arith.truncf %136 : vector<16x16xf32> to vector<16x16xbf16>
    %c0_75 = arith.constant 0 : index
    %c0_76 = arith.constant 0 : index
    %138 = vector.load %arg21[%c0_75, %c0_76] : memref<16x32xbf16, #tpu.memory_space<vmem>>, vector<16x32xbf16>
    %cst_77 = arith.constant dense<0.000000e+00> : vector<16x32xf32>
    %139 = tpu.matmul %137, %138, %cst_77 {dimension_numbers = #tpu.dot_dimension_numbers<[1], [0], [0], [1], [0, 0, 1, 1], [], []>} : vector<16x16xbf16>, vector<16x32xbf16>, vector<16x32xf32> -> vector<16x32xf32>
    %140 = arith.truncf %94 : vector<16x16xf32> to vector<16x16xbf16>
    %c0_78 = arith.constant 0 : index
    %c0_79 = arith.constant 0 : index
    %141 = vector.load %arg22[%c0_78, %c0_79] : memref<16x32xbf16, #tpu.memory_space<vmem>>, vector<16x32xbf16>
    %cst_80 = arith.constant dense<0.000000e+00> : vector<16x32xf32>
    %142 = tpu.matmul %140, %141, %cst_80 {dimension_numbers = #tpu.dot_dimension_numbers<[1], [0], [0], [1], [0, 0, 1, 1], [], []>} : vector<16x16xbf16>, vector<16x32xbf16>, vector<16x32xf32> -> vector<16x32xf32>
    %143 = arith.addf %139, %142 : vector<16x32xf32>
    %c0_81 = arith.constant 0 : index
    %c0_82 = arith.constant 0 : index
    %144 = vector.load %arg23[%c0_81, %c0_82] : memref<1x32xf32, #tpu.memory_space<vmem>>, vector<1x32xf32>
    %145 = vector.broadcast %144 : vector<1x32xf32> to vector<16x32xf32>
    %146 = arith.addf %143, %145 : vector<16x32xf32>
    %cst_83 = arith.constant 0.000000e+00 : f32
    %147 = vector.broadcast %cst_83 : f32 to vector<16x32xf32>
    %148 = arith.maximumf %146, %147 : vector<16x32xf32>
    %149 = arith.truncf %148 : vector<16x32xf32> to vector<16x32xbf16>
    %c0_84 = arith.constant 0 : index
    %c0_85 = arith.constant 0 : index
    %150 = vector.load %arg24[%c0_84, %c0_85] : memref<32x16xbf16, #tpu.memory_space<vmem>>, vector<32x16xbf16>
    %cst_86 = arith.constant dense<0.000000e+00> : vector<16x16xf32>
    %151 = tpu.matmul %149, %150, %cst_86 {dimension_numbers = #tpu.dot_dimension_numbers<[1], [0], [0], [1], [0, 0, 1, 1], [], []>} : vector<16x32xbf16>, vector<32x16xbf16>, vector<16x16xf32> -> vector<16x16xf32>
    %c0_87 = arith.constant 0 : index
    %c0_88 = arith.constant 0 : index
    %152 = vector.load %arg25[%c0_87, %c0_88] : memref<1x16xf32, #tpu.memory_space<vmem>>, vector<1x16xf32>
    %153 = vector.broadcast %152 : vector<1x16xf32> to vector<16x16xf32>
    %154 = arith.addf %151, %153 : vector<16x16xf32>
    %cst_89 = arith.constant 0.000000e+00 : f32
    %155 = vector.broadcast %cst_89 : f32 to vector<16x16xf32>
    %156 = arith.maximumf %154, %155 : vector<16x16xf32>
    %c0_90 = arith.constant 0 : index
    %c0_91 = arith.constant 0 : index
    %157 = vector.load %arg54[%c0_90, %c0_91] : memref<32x16xbf16, #tpu.memory_space<vmem>>, vector<32x16xbf16>
    %158 = arith.truncf %156 : vector<16x16xf32> to vector<16x16xbf16>
    %cst_92 = arith.constant dense<0.000000e+00> : vector<32x16xf32>
    %159 = tpu.matmul %157, %158, %cst_92 {dimension_numbers = #tpu.dot_dimension_numbers<[1], [0], [0], [1], [0, 0, 1, 1], [], []>} : vector<32x16xbf16>, vector<16x16xbf16>, vector<32x16xf32> -> vector<32x16xf32>
    %160 = arith.truncf %159 : vector<32x16xf32> to vector<32x16xbf16>
    %c0_93 = arith.constant 0 : index
    %c0_94 = arith.constant 0 : index
    %161 = vector.load %arg26[%c0_93, %c0_94] : memref<16x32xbf16, #tpu.memory_space<vmem>>, vector<16x32xbf16>
    %cst_95 = arith.constant dense<0.000000e+00> : vector<32x32xf32>
    %162 = tpu.matmul %160, %161, %cst_95 {dimension_numbers = #tpu.dot_dimension_numbers<[1], [0], [0], [1], [0, 0, 1, 1], [], []>} : vector<32x16xbf16>, vector<16x32xbf16>, vector<32x32xf32> -> vector<32x32xf32>
    %163 = arith.truncf %55 : vector<32x16xf32> to vector<32x16xbf16>
    %c0_96 = arith.constant 0 : index
    %c0_97 = arith.constant 0 : index
    %164 = vector.load %arg27[%c0_96, %c0_97] : memref<16x32xbf16, #tpu.memory_space<vmem>>, vector<16x32xbf16>
    %cst_98 = arith.constant dense<0.000000e+00> : vector<32x32xf32>
    %165 = tpu.matmul %163, %164, %cst_98 {dimension_numbers = #tpu.dot_dimension_numbers<[1], [0], [0], [1], [0, 0, 1, 1], [], []>} : vector<32x16xbf16>, vector<16x32xbf16>, vector<32x32xf32> -> vector<32x32xf32>
    %166 = arith.addf %162, %165 : vector<32x32xf32>
    %c0_99 = arith.constant 0 : index
    %c0_100 = arith.constant 0 : index
    %167 = vector.load %arg28[%c0_99, %c0_100] : memref<1x32xf32, #tpu.memory_space<vmem>>, vector<1x32xf32>
    %168 = vector.broadcast %167 : vector<1x32xf32> to vector<32x32xf32>
    %169 = arith.addf %166, %168 : vector<32x32xf32>
    %cst_101 = arith.constant 0.000000e+00 : f32
    %170 = vector.broadcast %cst_101 : f32 to vector<32x32xf32>
    %171 = arith.maximumf %169, %170 : vector<32x32xf32>
    %172 = arith.truncf %171 : vector<32x32xf32> to vector<32x32xbf16>
    %c0_102 = arith.constant 0 : index
    %c0_103 = arith.constant 0 : index
    %173 = vector.load %arg29[%c0_102, %c0_103] : memref<32x16xbf16, #tpu.memory_space<vmem>>, vector<32x16xbf16>
    %cst_104 = arith.constant dense<0.000000e+00> : vector<32x16xf32>
    %174 = tpu.matmul %172, %173, %cst_104 {dimension_numbers = #tpu.dot_dimension_numbers<[1], [0], [0], [1], [0, 0, 1, 1], [], []>} : vector<32x32xbf16>, vector<32x16xbf16>, vector<32x16xf32> -> vector<32x16xf32>
    %c0_105 = arith.constant 0 : index
    %c0_106 = arith.constant 0 : index
    %175 = vector.load %arg30[%c0_105, %c0_106] : memref<1x16xf32, #tpu.memory_space<vmem>>, vector<1x16xf32>
    %176 = vector.broadcast %175 : vector<1x16xf32> to vector<32x16xf32>
    %177 = arith.addf %174, %176 : vector<32x16xf32>
    %cst_107 = arith.constant 0.000000e+00 : f32
    %178 = vector.broadcast %cst_107 : f32 to vector<32x16xf32>
    %179 = arith.maximumf %177, %178 : vector<32x16xf32>
    %c0_108 = arith.constant 0 : index
    %c0_109 = arith.constant 0 : index
    %180 = vector.load %arg55[%c0_108, %c0_109] : memref<64x32xbf16, #tpu.memory_space<vmem>>, vector<64x32xbf16>
    %181 = arith.truncf %179 : vector<32x16xf32> to vector<32x16xbf16>
    %cst_110 = arith.constant dense<0.000000e+00> : vector<64x16xf32>
    %182 = tpu.matmul %180, %181, %cst_110 {dimension_numbers = #tpu.dot_dimension_numbers<[1], [0], [0], [1], [0, 0, 1, 1], [], []>} : vector<64x32xbf16>, vector<32x16xbf16>, vector<64x16xf32> -> vector<64x16xf32>
    %183 = arith.truncf %182 : vector<64x16xf32> to vector<64x16xbf16>
    %c0_111 = arith.constant 0 : index
    %c0_112 = arith.constant 0 : index
    %184 = vector.load %arg31[%c0_111, %c0_112] : memref<16x32xbf16, #tpu.memory_space<vmem>>, vector<16x32xbf16>
    %cst_113 = arith.constant dense<0.000000e+00> : vector<64x32xf32>
    %185 = tpu.matmul %183, %184, %cst_113 {dimension_numbers = #tpu.dot_dimension_numbers<[1], [0], [0], [1], [0, 0, 1, 1], [], []>} : vector<64x16xbf16>, vector<16x32xbf16>, vector<64x32xf32> -> vector<64x32xf32>
    %186 = arith.truncf %16 : vector<64x16xf32> to vector<64x16xbf16>
    %c0_114 = arith.constant 0 : index
    %c0_115 = arith.constant 0 : index
    %187 = vector.load %arg32[%c0_114, %c0_115] : memref<16x32xbf16, #tpu.memory_space<vmem>>, vector<16x32xbf16>
    %cst_116 = arith.constant dense<0.000000e+00> : vector<64x32xf32>
    %188 = tpu.matmul %186, %187, %cst_116 {dimension_numbers = #tpu.dot_dimension_numbers<[1], [0], [0], [1], [0, 0, 1, 1], [], []>} : vector<64x16xbf16>, vector<16x32xbf16>, vector<64x32xf32> -> vector<64x32xf32>
    %189 = arith.addf %185, %188 : vector<64x32xf32>
    %c0_117 = arith.constant 0 : index
    %c0_118 = arith.constant 0 : index
    %190 = vector.load %arg33[%c0_117, %c0_118] : memref<1x32xf32, #tpu.memory_space<vmem>>, vector<1x32xf32>
    %191 = vector.broadcast %190 : vector<1x32xf32> to vector<64x32xf32>
    %192 = arith.addf %189, %191 : vector<64x32xf32>
    %cst_119 = arith.constant 0.000000e+00 : f32
    %193 = vector.broadcast %cst_119 : f32 to vector<64x32xf32>
    %194 = arith.maximumf %192, %193 : vector<64x32xf32>
    %195 = arith.truncf %194 : vector<64x32xf32> to vector<64x32xbf16>
    %c0_120 = arith.constant 0 : index
    %c0_121 = arith.constant 0 : index
    %196 = vector.load %arg34[%c0_120, %c0_121] : memref<32x16xbf16, #tpu.memory_space<vmem>>, vector<32x16xbf16>
    %cst_122 = arith.constant dense<0.000000e+00> : vector<64x16xf32>
    %197 = tpu.matmul %195, %196, %cst_122 {dimension_numbers = #tpu.dot_dimension_numbers<[1], [0], [0], [1], [0, 0, 1, 1], [], []>} : vector<64x32xbf16>, vector<32x16xbf16>, vector<64x16xf32> -> vector<64x16xf32>
    %c0_123 = arith.constant 0 : index
    %c0_124 = arith.constant 0 : index
    %198 = vector.load %arg35[%c0_123, %c0_124] : memref<1x16xf32, #tpu.memory_space<vmem>>, vector<1x16xf32>
    %199 = vector.broadcast %198 : vector<1x16xf32> to vector<64x16xf32>
    %200 = arith.addf %197, %199 : vector<64x16xf32>
    %cst_125 = arith.constant 0.000000e+00 : f32
    %201 = vector.broadcast %cst_125 : f32 to vector<64x16xf32>
    %202 = arith.maximumf %200, %201 : vector<64x16xf32>
    %203 = arith.truncf %202 : vector<64x16xf32> to vector<64x16xbf16>
    %c0_126 = arith.constant 0 : index
    %c0_127 = arith.constant 0 : index
    %204 = vector.load %arg36[%c0_126, %c0_127] : memref<16x16xbf16, #tpu.memory_space<vmem>>, vector<16x16xbf16>
    %cst_128 = arith.constant dense<0.000000e+00> : vector<64x16xf32>
    %205 = tpu.matmul %203, %204, %cst_128 {dimension_numbers = #tpu.dot_dimension_numbers<[1], [0], [0], [1], [0, 0, 1, 1], [], []>} : vector<64x16xbf16>, vector<16x16xbf16>, vector<64x16xf32> -> vector<64x16xf32>
    %c0_129 = arith.constant 0 : index
    %c0_130 = arith.constant 0 : index
    %206 = vector.load %arg37[%c0_129, %c0_130] : memref<1x16xf32, #tpu.memory_space<vmem>>, vector<1x16xf32>
    %207 = vector.broadcast %206 : vector<1x16xf32> to vector<64x16xf32>
    %208 = arith.addf %205, %207 : vector<64x16xf32>
    %cst_131 = arith.constant 0.000000e+00 : f32
    %209 = vector.broadcast %cst_131 : f32 to vector<64x16xf32>
    %210 = arith.maximumf %208, %209 : vector<64x16xf32>
    %211 = arith.truncf %210 : vector<64x16xf32> to vector<64x16xbf16>
    %c0_132 = arith.constant 0 : index
    %c0_133 = arith.constant 0 : index
    %212 = vector.load %arg38[%c0_132, %c0_133] : memref<16x16xbf16, #tpu.memory_space<vmem>>, vector<16x16xbf16>
    %cst_134 = arith.constant dense<0.000000e+00> : vector<64x16xf32>
    %213 = tpu.matmul %211, %212, %cst_134 {dimension_numbers = #tpu.dot_dimension_numbers<[1], [0], [0], [1], [0, 0, 1, 1], [], []>} : vector<64x16xbf16>, vector<16x16xbf16>, vector<64x16xf32> -> vector<64x16xf32>
    %c0_135 = arith.constant 0 : index
    %c0_136 = arith.constant 0 : index
    %214 = vector.load %arg39[%c0_135, %c0_136] : memref<1x16xf32, #tpu.memory_space<vmem>>, vector<1x16xf32>
    %215 = vector.broadcast %214 : vector<1x16xf32> to vector<64x16xf32>
    %216 = arith.addf %213, %215 : vector<64x16xf32>
    %217 = arith.truncf %216 : vector<64x16xf32> to vector<64x16xbf16>
    %c0_137 = arith.constant 0 : index
    %c0_138 = arith.constant 0 : index
    %218 = vector.load %arg56[%c0_137, %c0_138] : memref<16x64xbf16, #tpu.memory_space<vmem>>, vector<16x64xbf16>
    %cst_139 = arith.constant dense<0.000000e+00> : vector<16x16xf32>
    %219 = tpu.matmul %218, %217, %cst_139 {dimension_numbers = #tpu.dot_dimension_numbers<[1], [0], [0], [1], [0, 0, 1, 1], [], []>} : vector<16x64xbf16>, vector<64x16xbf16>, vector<16x16xf32> -> vector<16x16xf32>
    %c0_140 = arith.constant 0 : index
    %c0_141 = arith.constant 0 : index
    %220 = vector.load %arg57[%c0_140, %c0_141] : memref<16x64xbf16, #tpu.memory_space<vmem>>, vector<16x64xbf16>
    %cst_142 = arith.constant dense<0.000000e+00> : vector<16x16xf32>
    %221 = tpu.matmul %220, %217, %cst_142 {dimension_numbers = #tpu.dot_dimension_numbers<[1], [0], [0], [1], [0, 0, 1, 1], [], []>} : vector<16x64xbf16>, vector<64x16xbf16>, vector<16x16xf32> -> vector<16x16xf32>
    %222 = arith.truncf %219 : vector<16x16xf32> to vector<16x16xbf16>
    %c0_143 = arith.constant 0 : index
    %c0_144 = arith.constant 0 : index
    %223 = vector.load %arg40[%c0_143, %c0_144] : memref<16x16xbf16, #tpu.memory_space<vmem>>, vector<16x16xbf16>
    %cst_145 = arith.constant dense<0.000000e+00> : vector<16x16xf32>
    %224 = tpu.matmul %222, %223, %cst_145 {dimension_numbers = #tpu.dot_dimension_numbers<[1], [0], [0], [1], [0, 0, 1, 1], [], []>} : vector<16x16xbf16>, vector<16x16xbf16>, vector<16x16xf32> -> vector<16x16xf32>
    %225 = arith.truncf %221 : vector<16x16xf32> to vector<16x16xbf16>
    %c0_146 = arith.constant 0 : index
    %c0_147 = arith.constant 0 : index
    %226 = vector.load %arg41[%c0_146, %c0_147] : memref<16x16xbf16, #tpu.memory_space<vmem>>, vector<16x16xbf16>
    %cst_148 = arith.constant dense<0.000000e+00> : vector<16x16xf32>
    %227 = tpu.matmul %225, %226, %cst_148 {dimension_numbers = #tpu.dot_dimension_numbers<[1], [0], [0], [1], [0, 0, 1, 1], [], []>} : vector<16x16xbf16>, vector<16x16xbf16>, vector<16x16xf32> -> vector<16x16xf32>
    %228 = arith.addf %224, %227 : vector<16x16xf32>
    %c0_149 = arith.constant 0 : index
    %c0_150 = arith.constant 0 : index
    %229 = vector.load %arg42[%c0_149, %c0_150] : memref<1x16xf32, #tpu.memory_space<vmem>>, vector<1x16xf32>
    %230 = vector.broadcast %229 : vector<1x16xf32> to vector<16x16xf32>
    %231 = arith.addf %228, %230 : vector<16x16xf32>
    %cst_151 = arith.constant 0.000000e+00 : f32
    %232 = vector.broadcast %cst_151 : f32 to vector<16x16xf32>
    %233 = arith.cmpf ogt, %231, %232 : vector<16x16xf32>
    %234 = math.exp %231 : vector<16x16xf32>
    %cst_152 = arith.constant 1.000000e+00 : f32
    %235 = vector.broadcast %cst_152 : f32 to vector<16x16xf32>
    %236 = arith.subf %234, %235 : vector<16x16xf32>
    %237 = arith.select %233, %231, %236 : vector<16x16xi1>, vector<16x16xf32>
    %238 = arith.truncf %237 : vector<16x16xf32> to vector<16x16xbf16>
    %c0_153 = arith.constant 0 : index
    %c0_154 = arith.constant 0 : index
    %239 = vector.load %arg43[%c0_153, %c0_154] : memref<16x8xbf16, #tpu.memory_space<vmem>>, vector<16x8xbf16>
    %cst_155 = arith.constant dense<0.000000e+00> : vector<16x8xf32>
    %240 = tpu.matmul %238, %239, %cst_155 {dimension_numbers = #tpu.dot_dimension_numbers<[1], [0], [0], [1], [0, 0, 1, 1], [], []>} : vector<16x16xbf16>, vector<16x8xbf16>, vector<16x8xf32> -> vector<16x8xf32>
    %c0_156 = arith.constant 0 : index
    %c0_157 = arith.constant 0 : index
    %241 = vector.load %arg44[%c0_156, %c0_157] : memref<1x8xf32, #tpu.memory_space<vmem>>, vector<1x8xf32>
    %242 = vector.broadcast %241 : vector<1x8xf32> to vector<16x8xf32>
    %243 = arith.addf %240, %242 : vector<16x8xf32>
    %cst_158 = arith.constant 0.000000e+00 : f32
    %244 = vector.broadcast %cst_158 : f32 to vector<16x8xf32>
    %245 = arith.cmpf ogt, %243, %244 : vector<16x8xf32>
    %246 = math.exp %243 : vector<16x8xf32>
    %cst_159 = arith.constant 1.000000e+00 : f32
    %247 = vector.broadcast %cst_159 : f32 to vector<16x8xf32>
    %248 = arith.subf %246, %247 : vector<16x8xf32>
    %249 = arith.select %245, %243, %248 : vector<16x8xi1>, vector<16x8xf32>
    %250 = arith.truncf %249 : vector<16x8xf32> to vector<16x8xbf16>
    %c0_160 = arith.constant 0 : index
    %c0_161 = arith.constant 0 : index
    %251 = vector.load %arg45[%c0_160, %c0_161] : memref<8x16xbf16, #tpu.memory_space<vmem>>, vector<8x16xbf16>
    %cst_162 = arith.constant dense<0.000000e+00> : vector<16x16xf32>
    %252 = tpu.matmul %250, %251, %cst_162 {dimension_numbers = #tpu.dot_dimension_numbers<[1], [0], [0], [1], [0, 0, 1, 1], [], []>} : vector<16x8xbf16>, vector<8x16xbf16>, vector<16x16xf32> -> vector<16x16xf32>
    %c0_163 = arith.constant 0 : index
    %c0_164 = arith.constant 0 : index
    %253 = vector.load %arg46[%c0_163, %c0_164] : memref<1x16xf32, #tpu.memory_space<vmem>>, vector<1x16xf32>
    %254 = vector.broadcast %253 : vector<1x16xf32> to vector<16x16xf32>
    %255 = arith.addf %252, %254 : vector<16x16xf32>
    %256 = tpu.iota {dimensions = array<i32: 0>} : vector<16x16xi32>
    %c10_i32 = arith.constant 10 : i32
    %257 = vector.broadcast %c10_i32 : i32 to vector<16x16xi32>
    %258 = arith.cmpi slt, %256, %257 : vector<16x16xi32>
    %cst_165 = arith.constant 0.000000e+00 : f32
    %259 = vector.broadcast %cst_165 : f32 to vector<16x16xf32>
    %260 = arith.select %258, %255, %259 : vector<16x16xi1>, vector<16x16xf32>
    %cst_166 = arith.constant dense<0.000000e+00> : vector<16xf32>
    %261 = vector.multi_reduction <add>, %260, %cst_166 [1] : vector<16x16xf32> to vector<16xf32>
    %262 = vector.shape_cast %261 : vector<16xf32> to vector<16x1xf32>
    %cst_167 = arith.constant dense<0.000000e+00> : vector<1xf32>
    %263 = vector.multi_reduction <add>, %262, %cst_167 [0] : vector<16x1xf32> to vector<1xf32>
    %264 = vector.shape_cast %263 : vector<1xf32> to vector<1x1xf32>
    %cst_168 = arith.constant 6.250000e-03 : f32
    %265 = vector.broadcast %cst_168 : f32 to vector<1x1xf32>
    %266 = arith.mulf %264, %265 : vector<1x1xf32>
    %cst_169 = arith.constant 0.000000e+00 : f32
    %267 = vector.broadcast %cst_169 : f32 to vector<1x128xf32>
    %268 = vector.broadcast %266 : vector<1x1xf32> to vector<1x128xf32>
    %269 = arith.addf %267, %268 : vector<1x128xf32>
    %c0_170 = arith.constant 0 : index
    %c0_171 = arith.constant 0 : index
    %270 = vector.load %arg58[%c0_170, %c0_171] : memref<1x128xf32, #tpu.memory_space<vmem>>, vector<1x128xf32>
    tpu.vector_store %arg58[%c0_170, %c0_171], %269 {strides = array<i32>} : memref<1x128xf32, #tpu.memory_space<vmem>>, vector<1x128xf32>,
    return
  }
  func.func @transform_0(%arg0: i32) -> (i32, i32) {
    %c0_i32 = arith.constant 0 : i32
    %c0_i32_0 = arith.constant 0 : i32
    %c0_i32_1 = arith.constant 0 : i32
    return %c0_i32, %c0_i32_0 : i32, i32
  }
  func.func @transform_1(%arg0: i32) -> (i32, i32) {
    %c0_i32 = arith.constant 0 : i32
    %c0_i32_0 = arith.constant 0 : i32
    %c0_i32_1 = arith.constant 0 : i32
    return %c0_i32, %c0_i32_0 : i32, i32
  }
  func.func @transform_2(%arg0: i32) -> (i32, i32) {
    %c0_i32 = arith.constant 0 : i32
    %c0_i32_0 = arith.constant 0 : i32
    %c0_i32_1 = arith.constant 0 : i32
    return %c0_i32, %c0_i32_0 : i32, i32
  }
  func.func @transform_3(%arg0: i32) -> (i32, i32) {
    %c0_i32 = arith.constant 0 : i32
    %c0_i32_0 = arith.constant 0 : i32
    %c0_i32_1 = arith.constant 0 : i32
    return %c0_i32, %c0_i32_0 : i32, i32
  }
  func.func @transform_4(%arg0: i32) -> (i32, i32) {
    %c0_i32 = arith.constant 0 : i32
    %c0_i32_0 = arith.constant 0 : i32
    %c0_i32_1 = arith.constant 0 : i32
    return %c0_i32, %c0_i32_0 : i32, i32
  }
  func.func @transform_5(%arg0: i32) -> (i32, i32) {
    %c0_i32 = arith.constant 0 : i32
    %c0_i32_0 = arith.constant 0 : i32
    %c0_i32_1 = arith.constant 0 : i32
    return %c0_i32, %c0_i32_0 : i32, i32
  }
  func.func @transform_6(%arg0: i32) -> (i32, i32) {
    %c0_i32 = arith.constant 0 : i32
    %c0_i32_0 = arith.constant 0 : i32
    %c0_i32_1 = arith.constant 0 : i32
    return %c0_i32, %c0_i32_0 : i32, i32
  }
  func.func @transform_7(%arg0: i32) -> (i32, i32) {
    %c0_i32 = arith.constant 0 : i32
    %c0_i32_0 = arith.constant 0 : i32
    %c0_i32_1 = arith.constant 0 : i32
    return %c0_i32, %c0_i32_0 : i32, i32
  }
  func.func @transform_8(%arg0: i32) -> (i32, i32) {
    %c0_i32 = arith.constant 0 : i32
    %c0_i32_0 = arith.constant 0 : i32
    %c0_i32_1 = arith.constant 0 : i32
    return %c0_i32, %c0_i32_0 : i32, i32
  }
  func.func @transform_9(%arg0: i32) -> (i32, i32) {
    %c0_i32 = arith.constant 0 : i32
    %c0_i32_0 = arith.constant 0 : i32
    %c0_i32_1 = arith.constant 0 : i32
    return %c0_i32, %c0_i32_0 : i32, i32
  }
  func.func @transform_10(%arg0: i32) -> (i32, i32) {
    %c0_i32 = arith.constant 0 : i32
    %c0_i32_0 = arith.constant 0 : i32
    %c0_i32_1 = arith.constant 0 : i32
    return %c0_i32, %c0_i32_0 : i32, i32
  }
  func.func @transform_11(%arg0: i32) -> (i32, i32) {
    %c0_i32 = arith.constant 0 : i32
    %c0_i32_0 = arith.constant 0 : i32
    %c0_i32_1 = arith.constant 0 : i32
    return %c0_i32, %c0_i32_0 : i32, i32
  }
  func.func @transform_12(%arg0: i32) -> (i32, i32) {
    %c0_i32 = arith.constant 0 : i32
    %c0_i32_0 = arith.constant 0 : i32
    %c0_i32_1 = arith.constant 0 : i32
    return %c0_i32, %c0_i32_0 : i32, i32
  }
  func.func @transform_13(%arg0: i32) -> (i32, i32) {
    %c0_i32 = arith.constant 0 : i32
    %c0_i32_0 = arith.constant 0 : i32
    %c0_i32_1 = arith.constant 0 : i32
    return %c0_i32, %c0_i32_0 : i32, i32
  }
  func.func @transform_14(%arg0: i32) -> (i32, i32) {
    %c0_i32 = arith.constant 0 : i32
    %c0_i32_0 = arith.constant 0 : i32
    %c0_i32_1 = arith.constant 0 : i32
    return %c0_i32, %c0_i32_0 : i32, i32
  }
  func.func @transform_15(%arg0: i32) -> (i32, i32) {
    %c0_i32 = arith.constant 0 : i32
    %c0_i32_0 = arith.constant 0 : i32
    %c0_i32_1 = arith.constant 0 : i32
    return %c0_i32, %c0_i32_0 : i32, i32
  }
  func.func @transform_16(%arg0: i32) -> (i32, i32) {
    %c0_i32 = arith.constant 0 : i32
    %c0_i32_0 = arith.constant 0 : i32
    %c0_i32_1 = arith.constant 0 : i32
    return %c0_i32, %c0_i32_0 : i32, i32
  }
  func.func @transform_17(%arg0: i32) -> (i32, i32) {
    %c0_i32 = arith.constant 0 : i32
    %c0_i32_0 = arith.constant 0 : i32
    %c0_i32_1 = arith.constant 0 : i32
    return %c0_i32, %c0_i32_0 : i32, i32
  }
  func.func @transform_18(%arg0: i32) -> (i32, i32) {
    %c0_i32 = arith.constant 0 : i32
    %c0_i32_0 = arith.constant 0 : i32
    %c0_i32_1 = arith.constant 0 : i32
    return %c0_i32, %c0_i32_0 : i32, i32
  }
  func.func @transform_19(%arg0: i32) -> (i32, i32) {
    %c0_i32 = arith.constant 0 : i32
    %c0_i32_0 = arith.constant 0 : i32
    %c0_i32_1 = arith.constant 0 : i32
    return %c0_i32, %c0_i32_0 : i32, i32
  }
  func.func @transform_20(%arg0: i32) -> (i32, i32) {
    %c0_i32 = arith.constant 0 : i32
    %c0_i32_0 = arith.constant 0 : i32
    %c0_i32_1 = arith.constant 0 : i32
    return %c0_i32, %c0_i32_0 : i32, i32
  }
  func.func @transform_21(%arg0: i32) -> (i32, i32) {
    %c0_i32 = arith.constant 0 : i32
    %c0_i32_0 = arith.constant 0 : i32
    %c0_i32_1 = arith.constant 0 : i32
    return %c0_i32, %c0_i32_0 : i32, i32
  }
  func.func @transform_22(%arg0: i32) -> (i32, i32) {
    %c0_i32 = arith.constant 0 : i32
    %c0_i32_0 = arith.constant 0 : i32
    %c0_i32_1 = arith.constant 0 : i32
    return %c0_i32, %c0_i32_0 : i32, i32
  }
  func.func @transform_23(%arg0: i32) -> (i32, i32) {
    %c0_i32 = arith.constant 0 : i32
    %c0_i32_0 = arith.constant 0 : i32
    %c0_i32_1 = arith.constant 0 : i32
    return %c0_i32, %c0_i32_0 : i32, i32
  }
  func.func @transform_24(%arg0: i32) -> (i32, i32) {
    %c0_i32 = arith.constant 0 : i32
    %c0_i32_0 = arith.constant 0 : i32
    %c0_i32_1 = arith.constant 0 : i32
    return %c0_i32, %c0_i32_0 : i32, i32
  }
  func.func @transform_25(%arg0: i32) -> (i32, i32) {
    %c0_i32 = arith.constant 0 : i32
    %c0_i32_0 = arith.constant 0 : i32
    %c0_i32_1 = arith.constant 0 : i32
    return %c0_i32, %c0_i32_0 : i32, i32
  }
  func.func @transform_26(%arg0: i32) -> (i32, i32) {
    %c0_i32 = arith.constant 0 : i32
    %c0_i32_0 = arith.constant 0 : i32
    %c0_i32_1 = arith.constant 0 : i32
    return %c0_i32, %c0_i32_0 : i32, i32
  }
  func.func @transform_27(%arg0: i32) -> (i32, i32) {
    %c0_i32 = arith.constant 0 : i32
    %c0_i32_0 = arith.constant 0 : i32
    %c0_i32_1 = arith.constant 0 : i32
    return %c0_i32, %c0_i32_0 : i32, i32
  }
  func.func @transform_28(%arg0: i32) -> (i32, i32) {
    %c0_i32 = arith.constant 0 : i32
    %c0_i32_0 = arith.constant 0 : i32
    %c0_i32_1 = arith.constant 0 : i32
    return %c0_i32, %c0_i32_0 : i32, i32
  }
  func.func @transform_29(%arg0: i32) -> (i32, i32) {
    %c0_i32 = arith.constant 0 : i32
    %c0_i32_0 = arith.constant 0 : i32
    %c0_i32_1 = arith.constant 0 : i32
    return %c0_i32, %c0_i32_0 : i32, i32
  }
  func.func @transform_30(%arg0: i32) -> (i32, i32) {
    %c0_i32 = arith.constant 0 : i32
    %c0_i32_0 = arith.constant 0 : i32
    %c0_i32_1 = arith.constant 0 : i32
    return %c0_i32, %c0_i32_0 : i32, i32
  }
  func.func @transform_31(%arg0: i32) -> (i32, i32) {
    %c0_i32 = arith.constant 0 : i32
    %c0_i32_0 = arith.constant 0 : i32
    %c0_i32_1 = arith.constant 0 : i32
    return %c0_i32, %c0_i32_0 : i32, i32
  }
  func.func @transform_32(%arg0: i32) -> (i32, i32) {
    %c0_i32 = arith.constant 0 : i32
    %c0_i32_0 = arith.constant 0 : i32
    %c0_i32_1 = arith.constant 0 : i32
    return %c0_i32, %c0_i32_0 : i32, i32
  }
  func.func @transform_33(%arg0: i32) -> (i32, i32) {
    %c0_i32 = arith.constant 0 : i32
    %c0_i32_0 = arith.constant 0 : i32
    %c0_i32_1 = arith.constant 0 : i32
    return %c0_i32, %c0_i32_0 : i32, i32
  }
  func.func @transform_34(%arg0: i32) -> (i32, i32) {
    %c0_i32 = arith.constant 0 : i32
    %c0_i32_0 = arith.constant 0 : i32
    %c0_i32_1 = arith.constant 0 : i32
    return %c0_i32, %c0_i32_0 : i32, i32
  }
  func.func @transform_35(%arg0: i32) -> (i32, i32) {
    %c0_i32 = arith.constant 0 : i32
    %c0_i32_0 = arith.constant 0 : i32
    %c0_i32_1 = arith.constant 0 : i32
    return %c0_i32, %c0_i32_0 : i32, i32
  }
  func.func @transform_36(%arg0: i32) -> (i32, i32) {
    %c0_i32 = arith.constant 0 : i32
    %c0_i32_0 = arith.constant 0 : i32
    %c0_i32_1 = arith.constant 0 : i32
    return %c0_i32, %c0_i32_0 : i32, i32
  }
  func.func @transform_37(%arg0: i32) -> (i32, i32) {
    %c0_i32 = arith.constant 0 : i32
    %c0_i32_0 = arith.constant 0 : i32
    %c0_i32_1 = arith.constant 0 : i32
    return %c0_i32, %c0_i32_0 : i32, i32
  }
  func.func @transform_38(%arg0: i32) -> (i32, i32) {
    %c0_i32 = arith.constant 0 : i32
    %c0_i32_0 = arith.constant 0 : i32
    %c0_i32_1 = arith.constant 0 : i32
    return %c0_i32, %c0_i32_0 : i32, i32
  }
  func.func @transform_39(%arg0: i32) -> (i32, i32) {
    %c0_i32 = arith.constant 0 : i32
    %c0_i32_0 = arith.constant 0 : i32
    %c0_i32_1 = arith.constant 0 : i32
    return %c0_i32, %c0_i32_0 : i32, i32
  }
  func.func @transform_40(%arg0: i32) -> (i32, i32) {
    %c0_i32 = arith.constant 0 : i32
    %c0_i32_0 = arith.constant 0 : i32
    %c0_i32_1 = arith.constant 0 : i32
    return %c0_i32, %c0_i32_0 : i32, i32
  }
  func.func @transform_41(%arg0: i32) -> (i32, i32) {
    %c0_i32 = arith.constant 0 : i32
    %c0_i32_0 = arith.constant 0 : i32
    %c0_i32_1 = arith.constant 0 : i32
    return %c0_i32, %c0_i32_0 : i32, i32
  }
  func.func @transform_42(%arg0: i32) -> (i32, i32) {
    %c0_i32 = arith.constant 0 : i32
    %c0_i32_0 = arith.constant 0 : i32
    %c0_i32_1 = arith.constant 0 : i32
    return %c0_i32, %c0_i32_0 : i32, i32
  }
  func.func @transform_43(%arg0: i32) -> (i32, i32) {
    %c0_i32 = arith.constant 0 : i32
    %c0_i32_0 = arith.constant 0 : i32
    %c0_i32_1 = arith.constant 0 : i32
    return %c0_i32, %c0_i32_0 : i32, i32
  }
  func.func @transform_44(%arg0: i32) -> (i32, i32) {
    %c0_i32 = arith.constant 0 : i32
    %c0_i32_0 = arith.constant 0 : i32
    %c0_i32_1 = arith.constant 0 : i32
    return %c0_i32, %c0_i32_0 : i32, i32
  }
  func.func @transform_45(%arg0: i32) -> (i32, i32) {
    %c0_i32 = arith.constant 0 : i32
    %c0_i32_0 = arith.constant 0 : i32
    %c0_i32_1 = arith.constant 0 : i32
    return %c0_i32, %c0_i32_0 : i32, i32
  }
  func.func @transform_46(%arg0: i32) -> (i32, i32) {
    %c0_i32 = arith.constant 0 : i32
    %c0_i32_0 = arith.constant 0 : i32
    %c0_i32_1 = arith.constant 0 : i32
    return %c0_i32, %c0_i32_0 : i32, i32
  }
  func.func @transform_47(%arg0: i32) -> (i32, i32) {
    %c0_i32 = arith.constant 0 : i32
    %c0_i32_0 = arith.constant 0 : i32
    %c0_i32_1 = arith.constant 0 : i32
    return %c0_i32, %c0_i32_0 : i32, i32
  }
  func.func @transform_48(%arg0: i32) -> (i32, i32) {
    %c0_i32 = arith.constant 0 : i32
    %c0_i32_0 = arith.constant 0 : i32
    %c0_i32_1 = arith.constant 0 : i32
    return %c0_i32, %c0_i32_0 : i32, i32
  }
  func.func @transform_49(%arg0: i32) -> (i32, i32) {
    %c0_i32 = arith.constant 0 : i32
    %c0_i32_0 = arith.constant 0 : i32
    %c0_i32_1 = arith.constant 0 : i32
    return %c0_i32, %c0_i32_0 : i32, i32
  }
  func.func @transform_50(%arg0: i32) -> (i32, i32) {
    %c0_i32 = arith.constant 0 : i32
    %c0_i32_0 = arith.constant 0 : i32
    %c0_i32_1 = arith.constant 0 : i32
    return %c0_i32, %c0_i32_0 : i32, i32
  }
  func.func @transform_51(%arg0: i32) -> (i32, i32) {
    %c0_i32 = arith.constant 0 : i32
    %c0_i32_0 = arith.constant 0 : i32
    %c0_i32_1 = arith.constant 0 : i32
    return %c0_i32, %c0_i32_0 : i32, i32
  }
  func.func @transform_52(%arg0: i32) -> (i32, i32) {
    %c0_i32 = arith.constant 0 : i32
    %c0_i32_0 = arith.constant 0 : i32
    %c0_i32_1 = arith.constant 0 : i32
    return %c0_i32, %c0_i32_0 : i32, i32
  }
  func.func @transform_53(%arg0: i32) -> (i32, i32) {
    %c0_i32 = arith.constant 0 : i32
    %c0_i32_0 = arith.constant 0 : i32
    %c0_i32_1 = arith.constant 0 : i32
    return %c0_i32, %c0_i32_0 : i32, i32
  }
  func.func @transform_54(%arg0: i32) -> (i32, i32) {
    %c0_i32 = arith.constant 0 : i32
    %c0_i32_0 = arith.constant 0 : i32
    %c0_i32_1 = arith.constant 0 : i32
    return %c0_i32, %c0_i32_0 : i32, i32
  }
  func.func @transform_55(%arg0: i32) -> (i32, i32) {
    %c0_i32 = arith.constant 0 : i32
    %c0_i32_0 = arith.constant 0 : i32
    %c0_i32_1 = arith.constant 0 : i32
    return %c0_i32, %c0_i32_0 : i32, i32
  }
  func.func @transform_56(%arg0: i32) -> (i32, i32) {
    %c0_i32 = arith.constant 0 : i32
    %c0_i32_0 = arith.constant 0 : i32
    %c0_i32_1 = arith.constant 0 : i32
    return %c0_i32, %c0_i32_0 : i32, i32
  }
  func.func @transform_57(%arg0: i32) -> (i32, i32) {
    %c0_i32 = arith.constant 0 : i32
    %c0_i32_0 = arith.constant 0 : i32
    %c0_i32_1 = arith.constant 0 : i32
    return %c0_i32, %c0_i32_0 : i32, i32
  }
}

</mosaic_0001>

<bundles_post_ra>
// kernel: neg.12
= control target key start
LH: loop header
LB: loop body
LE: loop exit
PB: predicated region body
PF: predicated region fallthrough
CT: control target
= control target key end

     0   :  { %s72_s0 = inlined_call_operand.vmem [shape: f32[32,64], index: 0, kind: input, shape index: {}]   ;;  %s73_s1 = inlined_call_operand.vmem [shape: f32[32,64], index: 1, kind: output, shape index: {}]  }
   0x1   :  { %v2_v0 = vld [vmem:[%s72_s0] sm:$0xff]  ;;  %v32_v1 = vld [vmem:[%s72_s0 + $0x8] sm:$0xff]  ;;  %v34_v2 = vld [vmem:[%s72_s0 + $0x10] sm:$0xff] }
   0x2   :  { %v5_v3 = vxor.u32 2147483648, %v2_v0  ;;  %v12_v4 = vxor.u32 2147483648, %v32_v1  ;;  %v20_v5 = vxor.u32 2147483648, %v34_v2  ;;  %v36_v6 = vld [vmem:[%s72_s0 + $0x18] sm:$0xff] }
   0x3   :  { %v28_v7 = vxor.u32 2147483648, %v36_v6 }
   0x4   :  { %7 = vst [vmem:[%s73_s1] sm:$0xff] %v5_v3  ;;  %33 = vst [vmem:[%s73_s1 + $0x8] sm:$0xff] %v12_v4 }
   0x5   :  { %35 = vst [vmem:[%s73_s1 + $0x10] sm:$0xff] %v20_v5  ;;  %37 = vst [vmem:[%s73_s1 + $0x18] sm:$0xff] %v28_v7 }

// kernel: eq.63
= control target key start
LH: loop header
LB: loop body
LE: loop exit
PB: predicated region body
PF: predicated region fallthrough
CT: control target
= control target key end

     0   :  { %vm3_vm0 = vcmask 261120   ;;  %s29_s10 = smov 96   ;;  %s31_s17 = smov 64   ;;  %vm9_vm1 = vcmask 1048320   ;;  %vm15_vm2 = vcmask 785920   ;;  %vm21_vm3 = vcmask 523520   ;;  %s66_s0 = inlined_call_operand.vmem [shape: s32[32,32], index: 0, kind: input, shape index: {}]   ;;  %s67_s1 = inlined_call_operand.vmem [shape: s32[1024], index: 1, kind: output, shape index: {}]  }
   0x1   :  { %v23_v0 = vld [vmem:[%s66_s0 + $0x3] ss:$4 sm:$0xff]   ;;  %v25_v1 = vld [vmem:[%s66_s0 + $0x1] ss:$4 sm:$0xff]   ;;  %v2_v2 = vld [vmem:[%s66_s0] ss:$4 sm:$0xff]  }
   0x2   :  { %7 = vrot.lane.b32.xlu0 %v23_v0, %s29_s10  ;;  %v24_v3 = vld [vmem:[%s66_s0 + $0x2] ss:$4 sm:$0xff]   ;;  %s30_s0 = smov 32   ;;  %4 = vst.msk [vmem:[%s67_s1] sm:$0xff] %vm3_vm0, %v2_v2  }
   0x3   :  { %19 = vrot.lane.b32.xlu1 %v25_v1, %s30_s0 }
   0x6   :  { %13 = vrot.lane.b32.xlu0 %v24_v3, %s31_s17 }
  0x74   :  { %v8_v4 = vpop.permute.xlu0 %7  }
  0x75   :  { %10 = vst.msk [vmem:[%s67_s1] sm:$0xff] %vm9_vm1, %v8_v4   ;;  %v20_v5 = vpop.permute.xlu1 %19  }
  0x78   :  { %v14_v6 = vpop.permute.xlu0 %13  }
  0x79   :  { %16 = vst.msk [vmem:[%s67_s1] sm:$0xff] %vm15_vm2, %v14_v6  }
  0x7a   :  { %22 = vst.msk [vmem:[%s67_s1] sm:$0xff] %vm21_vm3, %v20_v5  }

// kernel: neg.14
= control target key start
LH: loop header
LB: loop body
LE: loop exit
PB: predicated region body
PF: predicated region fallthrough
CT: control target
= control target key end

     0   :  { %s72_s0 = inlined_call_operand.vmem [shape: f32[16,32], index: 0, kind: input, shape index: {}]   ;;  %s73_s1 = inlined_call_operand.vmem [shape: f32[16,32], index: 1, kind: output, shape index: {}]  }
   0x1   :  { %v2_v0 = vld [vmem:[%s72_s0] sm:$0xff]  ;;  %v32_v1 = vld [vmem:[%s72_s0 + $0x8] sm:$0xff]  ;;  %v34_v2 = vld [vmem:[%s72_s0 + $0x10] sm:$0xff] }
   0x2   :  { %v5_v3 = vxor.u32 2147483648, %v2_v0  ;;  %v12_v4 = vxor.u32 2147483648, %v32_v1  ;;  %v20_v5 = vxor.u32 2147483648, %v34_v2  ;;  %v36_v6 = vld [vmem:[%s72_s0 + $0x18] sm:$0xff] }
   0x3   :  { %v28_v7 = vxor.u32 2147483648, %v36_v6 }
   0x4   :  { %7 = vst [vmem:[%s73_s1] sm:$0xff] %v5_v3  ;;  %33 = vst [vmem:[%s73_s1 + $0x8] sm:$0xff] %v12_v4 }
   0x5   :  { %35 = vst [vmem:[%s73_s1 + $0x10] sm:$0xff] %v20_v5  ;;  %37 = vst [vmem:[%s73_s1 + $0x18] sm:$0xff] %v28_v7 }

// kernel: eq.70
= control target key start
LH: loop header
LB: loop body
LE: loop exit
PB: predicated region body
PF: predicated region fallthrough
CT: control target
= control target key end

     0   :  { %s69_s8 = smov 112   ;;  %s70_s11 = smov 80   ;;  %vm3_vm0 = vcmask 130048   ;;  %vm9_vm1 = vcmask 1048448   ;;  %vm15_vm2 = vcmask 917248   ;;  %vm21_vm3 = vcmask 786048   ;;  %s113_s0 = inlined_call_operand.vmem [shape: s32[32,16], index: 0, kind: input, shape index: {}]   ;;  %s114_s1 = inlined_call_operand.vmem [shape: s32[512], index: 1, kind: output, shape index: {}]  }
   0x1   :  { %v55_v0 = vld [vmem:[%s113_s0 + $0x7] ss:$8 sm:$0xf]   ;;  %v57_v1 = vld [vmem:[%s113_s0 + $0x5] ss:$8 sm:$0xf]  }
   0x2   :  { %7 = vrot.lane.b32.xlu0 %v55_v0, %s69_s8  ;;  %19 = vrot.lane.b32.xlu1 %v57_v1, %s70_s11  ;;  %v56_v2 = vld [vmem:[%s113_s0 + $0x6] ss:$8 sm:$0xf]   ;;  %v58_v3 = vld [vmem:[%s113_s0 + $0x4] ss:$8 sm:$0xf]  }
   0x3   :  { %s71_s16 = smov 96   ;;  %v2_v4 = vld [vmem:[%s113_s0] ss:$8 sm:$0xf]   ;;  %s72_s19 = smov 64   ;;  %vm27_vm4 = vcmask 654848  }
   0x4   :  { %v59_v5 = vld [vmem:[%s113_s0 + $0x3] ss:$8 sm:$0xf]   ;;  %4 = vst.msk [vmem:[#allocation0] sm:$0xf] %vm3_vm0, %v2_v4   ;;  %s73_s24 = smov 48  }
   0x5   :  { %v60_v6 = vld [vmem:[%s113_s0 + $0x2] ss:$8 sm:$0xf]   ;;  %s74_s25 = smov 32   ;;  %vm33_vm5 = vcmask 523648   ;;  %vm39_vm6 = vcmask 392448  }
   0x6   :  { %13 = vrot.lane.b32.xlu0 %v56_v2, %s71_s16  ;;  %25 = vrot.lane.b32.xlu1 %v58_v3, %s72_s19  ;;  %v61_v7 = vld [vmem:[%s113_s0 + $0x1] ss:$8 sm:$0xf]   ;;  %s75_s0 = smov 16   ;;  %vm45_vm7 = vcmask 261248  }
   0xa   :  { %31 = vrot.lane.b32.xlu0 %v59_v5, %s73_s24  ;;  %37 = vrot.lane.b32.xlu1 %v60_v6, %s74_s25 }
   0xe   :  { %43 = vrot.lane.b32.xlu0 %v61_v7, %s75_s0 }
  0x74   :  { %v8_v8 = vpop.permute.xlu0 %7   ;;  %v20_v9 = vpop.permute.xlu1 %19  }
  0x75   :  { %10 = vst.msk [vmem:[#allocation0] sm:$0xf] %vm9_vm1, %v8_v8  }
  0x78   :  { %v14_v10 = vpop.permute.xlu0 %13   ;;  %v26_v11 = vpop.permute.xlu1 %25  }
  0x79   :  { %16 = vst.msk [vmem:[#allocation0] sm:$0xf] %vm15_vm2, %v14_v10  }
  0x7a   :  { %22 = vst.msk [vmem:[#allocation0] sm:$0xf] %vm21_vm3, %v20_v9  }
  0x7b   :  { %28 = vst.msk [vmem:[#allocation0] sm:$0xf] %vm27_vm4, %v26_v11  }
  0x7c   :  { %v32_v12 = vpop.permute.xlu0 %31   ;;  %v38_v13 = vpop.permute.xlu1 %37  }
  0x7d   :  { %34 = vst.msk [vmem:[#allocation0] sm:$0xf] %vm33_vm5, %v32_v12  }
  0x7e   :  { %40 = vst.msk [vmem:[#allocation0] sm:$0xf] %vm39_vm6, %v38_v13  }
  0x80   :  { %v44_v14 = vpop.permute.xlu0 %43  }
  0x81   :  { %46 = vst.msk [vmem:[#allocation0] sm:$0xf] %vm45_vm7, %v44_v14  }
  0x88   :  { %v51_v15 = vld [vmem:[#allocation0] sm:$0xf] }
  0x89   :  { %54 = vst [vmem:[%s114_s1] sm:$0xf] %v51_v15 }

// kernel: neg.16
= control target key start
LH: loop header
LB: loop body
LE: loop exit
PB: predicated region body
PF: predicated region fallthrough
CT: control target
= control target key end

     0   :  { %s24_s0 = inlined_call_operand.vmem [shape: f32[8,16], index: 0, kind: input, shape index: {}]   ;;  %s25_s1 = inlined_call_operand.vmem [shape: f32[8,16], index: 1, kind: output, shape index: {}]  }
   0x1   :  { %v2_v0 = vld [vmem:[%s24_s0] sm:$0xff] }
   0x2   :  { %v5_v1 = vxor.u32 2147483648, %v2_v0 }
   0x4   :  { %7 = vst [vmem:[%s25_s1] sm:$0xff] %v5_v1 }

// kernel: eq.77
= control target key start
LH: loop header
LB: loop body
LE: loop exit
PB: predicated region body
PF: predicated region fallthrough
CT: control target
= control target key end

     0   :  { %s7_s6 = smov 3  ;;  %s21_s9 = smov 3  ;;  %vm4_vm0 = vcmask 64512   ;;  %vm11_vm1 = vcmask 1048512   ;;  %vm18_vm2 = vcmask 982912   ;;  %vm25_vm3 = vcmask 917312   ;;  %s225_s0 = inlined_call_operand.vmem [shape: s32[32,8], index: 0, kind: input, shape index: {}]   ;;  %s226_s1 = inlined_call_operand.vmem [shape: s32[256], index: 1, kind: output, shape index: {}]  }
   0x1   :  { %v119_v0 = vld [vmem:[%s225_s0 + $0xf] ss:$16 sm:%s7_s6]   ;;  %s149_s10 = smov 120   ;;  %v121_v1 = vld [vmem:[%s225_s0 + $0xd] ss:$16 sm:%s21_s9]   ;;  %s14_s13 = smov 3 }
   0x2   :  { %9 = vrot.lane.b32.xlu0 %v119_v0, %s149_s10  ;;  %s150_s14 = smov 104   ;;  %v120_v2 = vld [vmem:[%s225_s0 + $0xe] ss:$16 sm:%s14_s13]   ;;  %s28_s17 = smov 3  ;;  %vm32_vm4 = vcmask 851712   ;;  %vm39_vm5 = vcmask 786112  }
   0x3   :  { %23 = vrot.lane.b32.xlu1 %v121_v1, %s150_s14  ;;  %v122_v3 = vld [vmem:[%s225_s0 + $0xc] ss:$16 sm:%s28_s17]   ;;  %s35_s20 = smov 3  ;;  %s42_s21 = smov 3  ;;  %vm46_vm6 = vcmask 720512   ;;  %vm53_vm7 = vcmask 654912  }
   0x4   :  { %s151_s22 = smov 112   ;;  %s152_s23 = smov 96   ;;  %v123_v4 = vld [vmem:[%s225_s0 + $0xb] ss:$16 sm:%s35_s20]   ;;  %v124_v5 = vld [vmem:[%s225_s0 + $0xa] ss:$16 sm:%s42_s21]  }
   0x5   :  { %s49_s28 = smov 3  ;;  %s56_s29 = smov 3  ;;  %vm60_vm8 = vcmask 589312   ;;  %vm67_vm9 = vcmask 523712   ;;  %vm74_vm10 = vcmask 458112   ;;  %vm81_vm11 = vcmask 392512  }
   0x6   :  { %16 = vrot.lane.b32.xlu0 %v120_v2, %s151_s22  ;;  %s153_s30 = smov 88   ;;  %s154_s2 = smov 80   ;;  %v125_v6 = vld [vmem:[%s225_s0 + $0x9] ss:$16 sm:%s49_s28]   ;;  %vm88_vm12 = vcmask 326912   ;;  %vm95_vm13 = vcmask 261312  }
   0x7   :  { %30 = vrot.lane.b32.xlu1 %v122_v3, %s152_s23  ;;  %v126_v7 = vld [vmem:[%s225_s0 + $0x8] ss:$16 sm:%s56_s29]   ;;  %s63_s7 = smov 3  ;;  %s70_s8 = smov 3  ;;  %vm102_vm14 = vcmask 195712   ;;  %vm109_vm15 = vcmask 130112  }
   0x8   :  { %s155_s9 = smov 72   ;;  %s156_s10 = smov 64   ;;  %v127_v8 = vld [vmem:[%s225_s0 + $0x7] ss:$16 sm:%s63_s7]   ;;  %v128_v9 = vld [vmem:[%s225_s0 + $0x6] ss:$16 sm:%s70_s8]  }
   0x9   :  { %s2_s13 = smov 3  ;;  %s77_s16 = smov 3 }
   0xa   :  { %37 = vrot.lane.b32.xlu0 %v123_v4, %s153_s30  ;;  %v3_v10 = vld [vmem:[%s225_s0] ss:$16 sm:%s2_s13]   ;;  %s84_s19 = smov 3  ;;  %s157_s20 = smov 56  }
   0xb   :  { %44 = vrot.lane.b32.xlu1 %v124_v5, %s154_s2  ;;  %5 = vst.msk [vmem:[#allocation0] sm:$0x3] %vm4_vm0, %v3_v10   ;;  %s158_s21 = smov 48   ;;  %v129_v11 = vld [vmem:[%s225_s0 + $0x5] ss:$16 sm:%s77_s16]   ;;  %s91_s26 = smov 3 }
   0xc   :  { %v130_v12 = vld [vmem:[%s225_s0 + $0x4] ss:$16 sm:%s84_s19]   ;;  %s98_s27 = smov 3  ;;  %s159_s28 = smov 40   ;;  %v131_v13 = vld [vmem:[%s225_s0 + $0x3] ss:$16 sm:%s91_s26]  }
   0xd   :  { %s160_s29 = smov 32   ;;  %v132_v14 = vld [vmem:[%s225_s0 + $0x2] ss:$16 sm:%s98_s27]   ;;  %s105_s5 = smov 3 }
   0xe   :  { %51 = vrot.lane.b32.xlu0 %v125_v6, %s155_s9  ;;  %s161_s6 = smov 24   ;;  %s162_s7 = smov 16   ;;  %v133_v15 = vld [vmem:[%s225_s0 + $0x1] ss:$16 sm:%s105_s5]  }
   0xf   :  { %58 = vrot.lane.b32.xlu1 %v126_v7, %s156_s10  ;;  %s163_s0 = smov 8  }
  0x12   :  { %65 = vrot.lane.b32.xlu0 %v127_v8, %s157_s20 }
  0x13   :  { %72 = vrot.lane.b32.xlu1 %v128_v9, %s158_s21 }
  0x16   :  { %79 = vrot.lane.b32.xlu0 %v129_v11, %s159_s28 }
  0x17   :  { %86 = vrot.lane.b32.xlu1 %v130_v12, %s160_s29 }
  0x1a   :  { %93 = vrot.lane.b32.xlu0 %v131_v13, %s161_s6 }
  0x1b   :  { %100 = vrot.lane.b32.xlu1 %v132_v14, %s162_s7 }
  0x1e   :  { %107 = vrot.lane.b32.xlu0 %v133_v15, %s163_s0 }
  0x74   :  { %v10_v16 = vpop.permute.xlu0 %9  }
  0x75   :  { %12 = vst.msk [vmem:[#allocation0] sm:$0x3] %vm11_vm1, %v10_v16   ;;  %v24_v17 = vpop.permute.xlu1 %23  }
  0x78   :  { %v17_v18 = vpop.permute.xlu0 %16  }
  0x79   :  { %19 = vst.msk [vmem:[#allocation0] sm:$0x3] %vm18_vm2, %v17_v18   ;;  %v31_v19 = vpop.permute.xlu1 %30  }
  0x7a   :  { %26 = vst.msk [vmem:[#allocation0] sm:$0x3] %vm25_vm3, %v24_v17  }
  0x7b   :  { %33 = vst.msk [vmem:[#allocation0] sm:$0x3] %vm32_vm4, %v31_v19  }
  0x7c   :  { %v38_v20 = vpop.permute.xlu0 %37  }
  0x7d   :  { %40 = vst.msk [vmem:[#allocation0] sm:$0x3] %vm39_vm5, %v38_v20   ;;  %v45_v21 = vpop.permute.xlu1 %44  }
  0x7e   :  { %47 = vst.msk [vmem:[#allocation0] sm:$0x3] %vm46_vm6, %v45_v21  }
  0x80   :  { %v52_v22 = vpop.permute.xlu0 %51  }
  0x81   :  { %54 = vst.msk [vmem:[#allocation0] sm:$0x3] %vm53_vm7, %v52_v22   ;;  %v59_v23 = vpop.permute.xlu1 %58  }
  0x82   :  { %61 = vst.msk [vmem:[#allocation0] sm:$0x3] %vm60_vm8, %v59_v23  }
  0x84   :  { %v66_v24 = vpop.permute.xlu0 %65  }
  0x85   :  { %68 = vst.msk [vmem:[#allocation0] sm:$0x3] %vm67_vm9, %v66_v24   ;;  %v73_v25 = vpop.permute.xlu1 %72  }
  0x86   :  { %75 = vst.msk [vmem:[#allocation0] sm:$0x3] %vm74_vm10, %v73_v25  }
  0x88   :  { %v80_v26 = vpop.permute.xlu0 %79  }
  0x89   :  { %82 = vst.msk [vmem:[#allocation0] sm:$0x3] %vm81_vm11, %v80_v26   ;;  %v87_v27 = vpop.permute.xlu1 %86  }
  0x8a   :  { %89 = vst.msk [vmem:[#allocation0] sm:$0x3] %vm88_vm12, %v87_v27  }
  0x8c   :  { %v94_v28 = vpop.permute.xlu0 %93  }
  0x8d   :  { %96 = vst.msk [vmem:[#allocation0] sm:$0x3] %vm95_vm13, %v94_v28   ;;  %v101_v29 = vpop.permute.xlu1 %100  }
  0x8e   :  { %103 = vst.msk [vmem:[#allocation0] sm:$0x3] %vm102_vm14, %v101_v29  }
  0x90   :  { %v108_v30 = vpop.permute.xlu0 %107  }
  0x91   :  { %110 = vst.msk [vmem:[#allocation0] sm:$0x3] %vm109_vm15, %v108_v30  }
  0x98   :  { %v115_v31 = vld [vmem:[#allocation0] sm:$0x3] }
  0x99   :  { %118 = vst [vmem:[%s226_s1] sm:$0x3] %v115_v31 }

// kernel: neg.18
= control target key start
LH: loop header
LB: loop body
LE: loop exit
PB: predicated region body
PF: predicated region fallthrough
CT: control target
= control target key end

     0   :  { %s24_s0 = inlined_call_operand.vmem [shape: f32[16,8], index: 0, kind: input, shape index: {}]   ;;  %s25_s1 = inlined_call_operand.vmem [shape: f32[16,8], index: 1, kind: output, shape index: {}]  }
   0x1   :  { %v2_v0 = vld [vmem:[%s24_s0] sm:$0xff] }
   0x2   :  { %v5_v1 = vxor.u32 2147483648, %v2_v0 }
   0x4   :  { %7 = vst [vmem:[%s25_s1] sm:$0xff] %v5_v1 }

// kernel: neg.20
= control target key start
LH: loop header
LB: loop body
LE: loop exit
PB: predicated region body
PF: predicated region fallthrough
CT: control target
= control target key end

     0   :  { %s40_s0 = inlined_call_operand.vmem [shape: f32[32,16], index: 0, kind: input, shape index: {}]   ;;  %s41_s1 = inlined_call_operand.vmem [shape: f32[32,16], index: 1, kind: output, shape index: {}]  }
   0x1   :  { %v2_v0 = vld [vmem:[%s40_s0] sm:$0xff]  ;;  %v16_v1 = vld [vmem:[%s40_s0 + $0x8] sm:$0xff] }
   0x2   :  { %v5_v2 = vxor.u32 2147483648, %v2_v0  ;;  %v12_v3 = vxor.u32 2147483648, %v16_v1 }
   0x4   :  { %7 = vst [vmem:[%s41_s1] sm:$0xff] %v5_v2  ;;  %17 = vst [vmem:[%s41_s1 + $0x8] sm:$0xff] %v12_v3 }

// kernel: neg.22
= control target key start
LH: loop header
LB: loop body
LE: loop exit
PB: predicated region body
PF: predicated region fallthrough
CT: control target
= control target key end

     0   :  { %s72_s0 = inlined_call_operand.vmem [shape: f32[64,32], index: 0, kind: input, shape index: {}]   ;;  %s73_s1 = inlined_call_operand.vmem [shape: f32[64,32], index: 1, kind: output, shape index: {}]  }
   0x1   :  { %v2_v0 = vld [vmem:[%s72_s0] sm:$0xff]  ;;  %v32_v1 = vld [vmem:[%s72_s0 + $0x8] sm:$0xff]  ;;  %v34_v2 = vld [vmem:[%s72_s0 + $0x10] sm:$0xff] }
   0x2   :  { %v5_v3 = vxor.u32 2147483648, %v2_v0  ;;  %v12_v4 = vxor.u32 2147483648, %v32_v1  ;;  %v20_v5 = vxor.u32 2147483648, %v34_v2  ;;  %v36_v6 = vld [vmem:[%s72_s0 + $0x18] sm:$0xff] }
   0x3   :  { %v28_v7 = vxor.u32 2147483648, %v36_v6 }
   0x4   :  { %7 = vst [vmem:[%s73_s1] sm:$0xff] %v5_v3  ;;  %33 = vst [vmem:[%s73_s1 + $0x8] sm:$0xff] %v12_v4 }
   0x5   :  { %35 = vst [vmem:[%s73_s1 + $0x10] sm:$0xff] %v20_v5  ;;  %37 = vst [vmem:[%s73_s1 + $0x18] sm:$0xff] %v28_v7 }

// kernel: pointnet_pp_forward.1
= control target key start
LH: loop header
LB: loop body
LE: loop exit
PB: predicated region body
PF: predicated region fallthrough
CT: control target
= control target key end

     0   :  { %s12331_s6 = smov 1   ;;  %s12332_s10 = smov 2   ;;  %s15292_s0 = inlined_call_operand.smem [shape: u32[58], index: -1, kind: input, shape index: {}] }
   0x1   :  { %s12400_s5 = sld [smem:[%s15292_s0]]   ;;  %s12333_s14 = smov 3  }
   0x2   :  { %s12405_s9 = sld [smem:[%s15292_s0 + %s12331_s6]]   ;;  %s12334_s18 = smov 4  }
   0x3   :  { %s12410_s13 = sld [smem:[%s15292_s0 + %s12332_s10]]   ;;  %s12335_s22 = smov 5  }
   0x4   :  { %s12415_s17 = sld [smem:[%s15292_s0 + %s12333_s14]]   ;;  %s12336_s26 = smov 6  }
   0x5   :  { %s12420_s21 = sld [smem:[%s15292_s0 + %s12334_s18]]   ;;  %s12337_s30 = smov 7  }
   0x6   :  { %s12425_s25 = sld [smem:[%s15292_s0 + %s12335_s22]]   ;;  %s12338_s4 = smov 8  }
   0x7   :  { %s12430_s29 = sld [smem:[%s15292_s0 + %s12336_s26]]   ;;  %s12339_s10 = smov 9  }
   0x8   :  { %s12435_s3 = sld [smem:[%s15292_s0 + %s12337_s30]]   ;;  %s12340_s15 = smov 10  }
   0x9   :  { %s12440_s8 = sld [smem:[%s15292_s0 + %s12338_s4]]   ;;  %s12341_s20 = smov 11  }
   0xa   :  { %s12445_s14 = sld [smem:[%s15292_s0 + %s12339_s10]]   ;;  %s12342_s26 = smov 12  }
   0xb   :  { %s12450_s19 = sld [smem:[%s15292_s0 + %s12340_s15]]   ;;  %s12343_s1 = smov 13  }
   0xc   :  { %s12455_s24 = sld [smem:[%s15292_s0 + %s12341_s20]]   ;;  %s12344_s7 = smov 14  }
   0xd   :  { %s12460_s30 = sld [smem:[%s15292_s0 + %s12342_s26]]   ;;  %s12345_s15 = smov 15  }
   0xe   :  { %s12465_s6 = sld [smem:[%s15292_s0 + %s12343_s1]]   ;;  %s12346_s22 = smov 16  }
   0xf   :  { %s12470_s12 = sld [smem:[%s15292_s0 + %s12344_s7]]   ;;  %s12347_s28 = smov 17  }
  0x10   :  { %s12475_s20 = sld [smem:[%s15292_s0 + %s12345_s15]]   ;;  %s12348_s7 = smov 18  }
  0x11   :  { %15308 = sst [smem:[#allocation5_spill]] %s12450_s19  ;;  %s12349_s15 = smov 19  }
  0x12   :  { %s12480_s27 = sld [smem:[%s15292_s0 + %s12346_s22]]   ;;  %s12350_s22 = smov 20  }
  0x13   :  { %15309 = sst [smem:[#allocation6_spill]] %s12460_s30 }
  0x14   :  { %15310 = sst [smem:[#allocation7_spill]] %s12465_s6 }
  0x15   :  { %15311 = sst [smem:[#allocation8_spill]] %s12470_s12 }
  0x16   :  { %15312 = sst [smem:[#allocation9_spill]] %s12475_s20 }
  0x17   :  { %s12485_s4 = sld [smem:[%s15292_s0 + %s12347_s28]]   ;;  %s12351_s28 = smov 21  }
  0x18   :  { %15313 = sst [smem:[#allocation10_spill]] %s12480_s27 }
  0x19   :  { %s12490_s12 = sld [smem:[%s15292_s0 + %s12348_s7]]   ;;  %s12352_s7 = smov 22  }
  0x1a   :  { %s12495_s20 = sld [smem:[%s15292_s0 + %s12349_s15]]   ;;  %s12353_s15 = smov 23  }
  0x1b   :  { %s12500_s27 = sld [smem:[%s15292_s0 + %s12350_s22]]   ;;  %s12354_s22 = smov 24  }
  0x1d   :  { %15314 = sst [smem:[#allocation11_spill]] %s12485_s4 }
  0x1e   :  { %s12505_s4 = sld [smem:[%s15292_s0 + %s12351_s28]]   ;;  %s12355_s28 = smov 25  }
  0x1f   :  { %15315 = sst [smem:[#allocation12_spill]] %s12490_s12 }
  0x20   :  { %15316 = sst [smem:[#allocation13_spill]] %s12495_s20 }
  0x21   :  { %15317 = sst [smem:[#allocation14_spill]] %s12500_s27 }
  0x22   :  { %s12510_s12 = sld [smem:[%s15292_s0 + %s12352_s7]]   ;;  %s12356_s7 = smov 26  }
  0x23   :  { %s12515_s20 = sld [smem:[%s15292_s0 + %s12353_s15]]   ;;  %s12357_s15 = smov 27  }
  0x24   :  { %15318 = sst [smem:[#allocation15_spill]] %s12505_s4 }
  0x25   :  { %s12520_s27 = sld [smem:[%s15292_s0 + %s12354_s22]]   ;;  %s12358_s22 = smov 28  }
  0x26   :  { %s12525_s4 = sld [smem:[%s15292_s0 + %s12355_s28]]   ;;  %s12359_s28 = smov 29  }
  0x28   :  { %15319 = sst [smem:[#allocation16_spill]] %s12510_s12 }
  0x29   :  { %15320 = sst [smem:[#allocation17_spill]] %s12515_s20 }
  0x2a   :  { %s12530_s12 = sld [smem:[%s15292_s0 + %s12356_s7]]   ;;  %s12360_s7 = smov 30  }
  0x2b   :  { %15321 = sst [smem:[#allocation18_spill]] %s12520_s27 }
  0x2c   :  { %15322 = sst [smem:[#allocation19_spill]] %s12525_s4 }
  0x2d   :  { %s12535_s20 = sld [smem:[%s15292_s0 + %s12357_s15]]   ;;  %s12361_s15 = smov 31  }
  0x2e   :  { %s12540_s27 = sld [smem:[%s15292_s0 + %s12358_s22]]   ;;  %s12362_s22 = smov 32  }
  0x2f   :  { %s12545_s4 = sld [smem:[%s15292_s0 + %s12359_s28]]   ;;  %s12363_s28 = smov 33  }
  0x30   :  { %15323 = sst [smem:[#allocation20_spill]] %s12530_s12 }
  0x31   :  { %s12550_s12 = sld [smem:[%s15292_s0 + %s12360_s7]]   ;;  %s12364_s7 = smov 34  }
  0x33   :  { %15324 = sst [smem:[#allocation21_spill]] %s12535_s20 }
  0x34   :  { %15325 = sst [smem:[#allocation22_spill]] %s12540_s27 }
  0x35   :  { %15326 = sst [smem:[#allocation23_spill]] %s12545_s4 }
  0x36   :  { %s12555_s20 = sld [smem:[%s15292_s0 + %s12361_s15]]   ;;  %s12365_s15 = smov 35  }
  0x37   :  { %15327 = sst [smem:[#allocation24_spill]] %s12550_s12 }
  0x38   :  { %s12560_s27 = sld [smem:[%s15292_s0 + %s12362_s22]]   ;;  %s12366_s22 = smov 36  }
  0x39   :  { %s12565_s4 = sld [smem:[%s15292_s0 + %s12363_s28]]   ;;  %s12367_s28 = smov 37  }
  0x3a   :  { %s12570_s12 = sld [smem:[%s15292_s0 + %s12364_s7]]   ;;  %s12368_s7 = smov 38  }
  0x3c   :  { %15328 = sst [smem:[#allocation25_spill]] %s12555_s20 }
  0x3d   :  { %s12575_s20 = sld [smem:[%s15292_s0 + %s12365_s15]]   ;;  %s12369_s15 = smov 39  }
  0x3e   :  { %15329 = sst [smem:[#allocation26_spill]] %s12560_s27 }
  0x3f   :  { %15330 = sst [smem:[#allocation27_spill]] %s12565_s4 }
  0x40   :  { %15331 = sst [smem:[#allocation28_spill]] %s12570_s12 }
  0x41   :  { %s12580_s27 = sld [smem:[%s15292_s0 + %s12366_s22]]   ;;  %s12370_s22 = smov 40  }
  0x42   :  { %s12585_s4 = sld [smem:[%s15292_s0 + %s12367_s28]]   ;;  %s12371_s28 = smov 41  }
  0x43   :  { %15332 = sst [smem:[#allocation29_spill]] %s12575_s20 }
  0x44   :  { %s12590_s12 = sld [smem:[%s15292_s0 + %s12368_s7]]   ;;  %s12372_s7 = smov 42  }
  0x45   :  { %s12595_s20 = sld [smem:[%s15292_s0 + %s12369_s15]]   ;;  %s12373_s15 = smov 43  }
  0x47   :  { %15333 = sst [smem:[#allocation30_spill]] %s12580_s27 }
  0x48   :  { %15334 = sst [smem:[#allocation31_spill]] %s12585_s4 }
  0x49   :  { %s12600_s27 = sld [smem:[%s15292_s0 + %s12370_s22]]   ;;  %s12374_s22 = smov 44  }
  0x4a   :  { %15335 = sst [smem:[#allocation32_spill]] %s12590_s12 }
  0x4b   :  { %15336 = sst [smem:[#allocation33_spill]] %s12595_s20 }
  0x4c   :  { %s12605_s4 = sld [smem:[%s15292_s0 + %s12371_s28]]   ;;  %s12375_s28 = smov 45  }
  0x4d   :  { %s12610_s12 = sld [smem:[%s15292_s0 + %s12372_s7]]   ;;  %s12376_s7 = smov 46  }
  0x4e   :  { %s12615_s20 = sld [smem:[%s15292_s0 + %s12373_s15]]   ;;  %s12377_s15 = smov 47  }
  0x4f   :  { %15337 = sst [smem:[#allocation34_spill]] %s12600_s27 }
  0x50   :  { %s12620_s27 = sld [smem:[%s15292_s0 + %s12374_s22]]   ;;  %s12378_s22 = smov 48  }
  0x52   :  { %15338 = sst [smem:[#allocation35_spill]] %s12605_s4 }
  0x53   :  { %15339 = sst [smem:[#allocation36_spill]] %s12610_s12 }
  0x54   :  { %15340 = sst [smem:[#allocation37_spill]] %s12615_s20 }
  0x55   :  { %s12625_s4 = sld [smem:[%s15292_s0 + %s12375_s28]]   ;;  %s12379_s28 = smov 49  }
  0x56   :  { %15341 = sst [smem:[#allocation38_spill]] %s12620_s27 }
  0x57   :  { %s12630_s12 = sld [smem:[%s15292_s0 + %s12376_s7]]   ;;  %s12380_s7 = smov 50  }
  0x58   :  { %s12635_s20 = sld [smem:[%s15292_s0 + %s12377_s15]]   ;;  %s12381_s15 = smov 51  }
  0x59   :  { %s12640_s27 = sld [smem:[%s15292_s0 + %s12378_s22]]   ;;  %s12382_s22 = smov 52  }
  0x5a   :  { %s12650_s30 = sld [smem:[%s15292_s0 + %s12380_s7]]   ;;  %s12384_s7 = smov 54  }
  0x5b   :  { %15342 = sst [smem:[#allocation39_spill]] %s12625_s4 }
  0x5c   :  { %s12645_s4 = sld [smem:[%s15292_s0 + %s12379_s28]]   ;;  %s12383_s28 = smov 53  }
  0x5d   :  { %s12655_s6 = sld [smem:[%s15292_s0 + %s12381_s15]]   ;;  %s12385_s15 = smov 55  }
  0x5e   :  { %s12660_s19 = sld [smem:[%s15292_s0 + %s12382_s22]]   ;;  %s12386_s22 = smov 56  }
  0x60   :  { %15344 = sst [smem:[#allocation41_spill]] %s12650_s30 }
  0x61   :  { %s12670_s30 = sld [smem:[%s15292_s0 + %s12384_s7]]  }
  0x62   :  { %15343 = sst [smem:[#allocation40_spill]] %s12645_s4 }
  0x63   :  { %15345 = sst [smem:[#allocation42_spill]] %s12655_s6 }
  0x64   :  { %15346 = sst [smem:[#allocation43_spill]] %s12660_s19 }
  0x65   :  { %s12665_s4 = sld [smem:[%s15292_s0 + %s12383_s28]]   ;;  %s12387_s28 = smov 57  }
  0x66   :  { %s12675_s6 = sld [smem:[%s15292_s0 + %s12385_s15]]  }
  0x67   :  { %s12680_s19 = sld [smem:[%s15292_s0 + %s12386_s22]]  }
  0x6b   :  { %15347 = sst [smem:[#allocation44_spill]] %s12665_s4 }
  0x6c   :  { %s12685_s4 = sld [smem:[%s15292_s0 + %s12387_s28]]  }
  0x6d   :  { %v248_v0 = vld [vmem:[%s12405_s9] sm:$0x3]  ;;  %vm269_vm0 = vcmask 1040384   ;;  %vm270_vm1 = vcmask 1041408   ;;  %v12388_v2 = vmov 65535   ;;  %v237_v4 = vld [vmem:[%s12400_s5 + $0x8] sm:$0xff] }
  0x6e   :  { %v236_v1 = vld [vmem:[%s12400_s5] sm:$0xff]  ;;  %v271_v3 = vsel %vm269_vm0, 4294967295, %v12388_v2  ;;  %vm256_vm2 = vcmask 23552   ;;  %v238_v7 = vld [vmem:[%s12400_s5 + $0x10] sm:$0xff]  ;;  %v239_v8 = vld [vmem:[%s12400_s5 + $0x18] sm:$0xff] }
  0x6f   :  { %v12690_v5 = vsel %vm270_vm1, %v271_v3, 0  ;;  %v244_v6 = vpack.c.bf16 %v237_v4, %v236_v1  ;;  %v240_v9 = vld [vmem:[%s12400_s5 + $0x20] sm:$0xff]  ;;  %v241_v11 = vld [vmem:[%s12400_s5 + $0x28] sm:$0xff]  ;;  %v245_v12 = vpack.c.bf16 %v239_v8, %v238_v7  ;;  %v242_v14 = vld [vmem:[%s12400_s5 + $0x30] sm:$0xff] }
  0x70   :  { %15348 = vst [vmem:[#allocation45_spill] sm:$0xff] %v12690_v5  ;;  %v274_v10 = vand.u32 %v12690_v5, %v248_v0  ;;  %v246_v13 = vpack.c.bf16 %v241_v11, %v240_v9  ;;  %v243_v15 = vld [vmem:[%s12400_s5 + $0x38] sm:$0xff]  ;;  %v12151_v17 = vld [vmem:[%s12415_s17] sm:$0xff]  }
  0x71   :  { %10971 = vmatprep.mubr.msk.bf16.mxu0 %vm256_vm2, %v244_v6  ;;  %v247_v16 = vpack.c.bf16 %v243_v15, %v242_v14  ;;  %10979 = vmatprep.subr.bf16.mxu1 %v12151_v17 }
  0x72   :  { %10969 = vmatprep.subr.bf16.mxu0 %v274_v10  ;;  %10980 = vmatpush3.bf16.msra.mxu1 %v12151_v17 }
  0x73   :  { %10970 = vmatpush3.bf16.msra.mxu0 %v274_v10 }
  0x76   :  { %10972 = vmatmul.mubr.msk.bf16.vlgmr.msra.gmra.mxu0 %vm256_vm2, %v245_v12 }
  0x77   :  { %10975 = vmatprep.mubr.msk.bf16.mxu0 %vm256_vm2, %v246_v13 }
  0x7e   :  { %10976 = vmatmul.mubr.msk.bf16.gmra.mxu0 %vm256_vm2, %v247_v16 }
  0x7f   :  { %120 = vsyncpa [#allocation3], 0  ;;  %v9751_v20 = vld [vmem:[%s12410_s13] ss:$0 sm:$0xff]  ;;  %vm368_vm3 = vcmask 130048   ;;  %vm906_vm4 = vcmask 523264  }
  0x80   :  { %v12152_v47 = vld [vmem:[%s12630_s12] sm:$0xff]   ;;  %v12153_v14 = vld [vmem:[%s12630_s12 + $0x8] sm:$0xff]   ;;  %v12154_v15 = vld [vmem:[%s12630_s12 + $0x10] sm:$0xff]   ;;  %vm2096_vm5 = vcmask 1043456   ;;  %vm1903_vm6 = vcmask 64512   ;;  %vm3734_vm7 = vcmask 154624  }
  0x81   :  { %10997 = vmatprep.mubr.msk.bf16.mxu0 %vm906_vm4, %v12152_v47  ;;  %v9756_v53 = vld [vmem:[%s12420_s21] ss:$0 sm:$0xff]  ;;  %v12155_v16 = vld [vmem:[%s12630_s12 + $0x18] sm:$0xff]   ;;  %v1716_v47 = vld [vmem:[%s12635_s20 + $0x30] sm:$0xff]  ;;  %vm4953_vm8 = vcmask 261120   ;;  %s15457_s0 = sld [smem:[#allocation40_spill]] }
  0x82   :  { %v12156_v17 = vld [vmem:[%s12630_s12 + $0x20] sm:$0xff]   ;;  %s15458_s5 = sld [smem:[#allocation5_spill]]  ;;  %vm12390_vm9 = vmmov 0  }
  0x83   :  { %s15459_s9 = sld [smem:[#allocation7_spill]] }
  0x84   :  { %s15461_s13 = sld [smem:[#allocation6_spill]] }
  0x85   :  { %s15462_s17 = sld [smem:[#allocation8_spill]] }
  0x86   :  { %s15463_s21 = sld [smem:[#allocation41_spill]] }
  0x87   :  { %s15473_s7 = sld [smem:[#allocation17_spill]] }
  0x88   :  { %s15474_s10 = sld [smem:[#allocation20_spill]] }
  0x89   :  { %s15475_s11 = sld [smem:[#allocation16_spill]] }
  0x8a   :  { %s15476_s15 = sld [smem:[#allocation44_spill]] }
  0x8b   :  { %s15477_s16 = sld [smem:[#allocation18_spill]] }
  0x8c   :  { %s15478_s18 = sld [smem:[#allocation19_spill]] }
  0x8d   :  { %s15479_s22 = sld [smem:[#allocation22_spill]] }
  0x8e   :  { %s15480_s23 = sld [smem:[#allocation25_spill]] }
  0x8f   :  { %s15481_s26 = sld [smem:[#allocation21_spill]] }
  0x90   :  { %s15482_s28 = sld [smem:[#allocation23_spill]] }
  0x91   :  { %s15487_s1 = sld [smem:[#allocation24_spill]] }
  0x92   :  { %s15488_s2 = sld [smem:[#allocation27_spill]] }
 0x136   :  { %v10973_v18 = vpop.f32.mrf.mxu0 }
 0x137   :  { %v319_v24 = vadd.f32 %v10973_v18, %v9751_v20  ;;  %v12157_v18 = vld [vmem:[%s12630_s12 + $0x28] sm:$0xff]  }
 0x138   :  { %v310_v19 = vpop.f32.mrf.mxu0 }
 0x139   :  { %v311_v22 = vadd.f32 %v9751_v20, %v310_v19  ;;  %v343_v31 = vmax.f32 %v319_v24, 0.0  ;;  %v12158_v19 = vld [vmem:[%s12630_s12 + $0x30] sm:$0xff]   ;;  %v12163_v24 = vld [vmem:[%s12630_s12 + $0x58] sm:$0xff]  }
 0x13a   :  { %v10974_v21 = vpop.f32.mrf.mxu0 }
 0x13b   :  { %v322_v23 = vadd.f32 %v10974_v21, %v9751_v20  ;;  %v341_v29 = vmax.f32 %v311_v22, 0.0  ;;  %v12160_v21 = vld [vmem:[%s12630_s12 + $0x40] sm:$0xff]   ;;  %v12161_v22 = vld [vmem:[%s12630_s12 + $0x48] sm:$0xff]  }
 0x13c   :  { %v313_v25 = vpop.f32.mrf.mxu0 }
 0x13d   :  { %v314_v26 = vadd.f32 %v9751_v20, %v313_v25  ;;  %v344_v27 = vmax.f32 %v322_v23, 0.0  ;;  %v12162_v23 = vld [vmem:[%s12630_s12 + $0x50] sm:$0xff]   ;;  %v12164_v25 = vld [vmem:[%s12630_s12 + $0x60] sm:$0xff]  }
 0x13e   :  { %v10977_v28 = vpop.f32.mrf.mxu0 }
 0x13f   :  { %v342_v30 = vmax.f32 %v314_v26, 0.0  ;;  %v350_v34 = vpack.c.bf16 %v344_v27, %v343_v31  ;;  %v335_v38 = vadd.f32 %v10977_v28, %v9751_v20  ;;  %v12165_v26 = vld [vmem:[%s12630_s12 + $0x68] sm:$0xff]   ;;  %v12166_v27 = vld [vmem:[%s12630_s12 + $0x70] sm:$0xff]   ;;  %v12167_v28 = vld [vmem:[%s12630_s12 + $0x78] sm:$0xff]  }
 0x140   :  { %v326_v32 = vpop.f32.mrf.mxu0  ;;  %v12170_v31 = vld [vmem:[%s12630_s12 + $0x90] sm:$0xff]  }
 0x141   :  { %v349_v33 = vpack.c.bf16 %v342_v30, %v341_v29  ;;  %v327_v36 = vadd.f32 %v9751_v20, %v326_v32  ;;  %v347_v44 = vmax.f32 %v335_v38, 0.0  ;;  %v12168_v29 = vld [vmem:[%s12630_s12 + $0x80] sm:$0xff]   ;;  %v12169_v30 = vld [vmem:[%s12630_s12 + $0x88] sm:$0xff]   ;;  %v12171_v32 = vld [vmem:[%s12630_s12 + $0x98] sm:$0xff]  }
 0x142   :  { %v10978_v35 = vpop.f32.mrf.mxu0 }
 0x143   :  { %v338_v37 = vadd.f32 %v10978_v35, %v9751_v20  ;;  %10981 = vmatprep.mubr.msk.bf16.mxu1 %vm368_vm3, %v349_v33  ;;  %v345_v42 = vmax.f32 %v327_v36, 0.0  ;;  %v12172_v33 = vld [vmem:[%s12630_s12 + $0xa0] sm:$0xff]  }
 0x144   :  { %v329_v39 = vpop.f32.mrf.mxu0  ;;  %10982 = vmatmul.mubr.msk.bf16.vlgmr.msra.gmra.mxu1 %vm368_vm3, %v350_v34  ;;  %v1902_v34 = vld [vmem:[%s12430_s29] sm:$0xf]  ;;  %s15465_s29 = sld [smem:[#allocation42_spill]] }
 0x145   :  { %v330_v40 = vadd.f32 %v9751_v20, %v329_v39  ;;  %v348_v41 = vmax.f32 %v338_v37, 0.0  ;;  %v12159_v20 = vld [vmem:[%s12630_s12 + $0x38] sm:$0xff]   ;;  %12087 = vmatprep.subr.msk.bf16.mxu1 %vm2096_vm5, %v1902_v34  ;;  %v2098_v35 = vsel %vm2096_vm5, %v1902_v34, 0  ;;  %v1710_v36 = vld [vmem:[%s12635_s20] sm:$0xff]  ;;  %v1711_v37 = vld [vmem:[%s12635_s20 + $0x8] sm:$0xff] }
 0x146   :  { %11126 = vmatpush3.bf16.msra.mxu1 %v2098_v35  ;;  %v1838_v38 = vpack.c.bf16 %v1711_v37, %v1710_v36  ;;  %v1712_v39 = vld [vmem:[%s12635_s20 + $0x10] sm:$0xff]  ;;  %v1738_v34 = vld [vmem:[%s12635_s20 + $0xe0] sm:$0xff]  ;;  %v1739_v35 = vld [vmem:[%s12635_s20 + $0xe8] sm:$0xff] }
 0x147   :  { %v346_v43 = vmax.f32 %v330_v40, 0.0  ;;  %v352_v46 = vpack.c.bf16 %v348_v41, %v347_v44  ;;  %v1713_v40 = vld [vmem:[%s12635_s20 + $0x18] sm:$0xff]  ;;  %v1714_v44 = vld [vmem:[%s12635_s20 + $0x20] sm:$0xff]  ;;  %v1852_v36 = vpack.c.bf16 %v1739_v35, %v1738_v34  ;;  %v1740_v37 = vld [vmem:[%s12635_s20 + $0xf0] sm:$0xff] }
 0x148   :  { %v1839_v41 = vpack.c.bf16 %v1713_v40, %v1712_v39  ;;  %v12187_v40 = vld [vmem:[%s12630_s12 + $0x118] sm:$0xff]   ;;  %v1768_v34 = vld [vmem:[%s12635_s20 + $0x1d0] sm:$0xff] }
 0x149   :  { %v351_v45 = vpack.c.bf16 %v346_v43, %v345_v42  ;;  %v12173_v42 = vld [vmem:[%s12630_s12 + $0xa8] sm:$0xff]   ;;  %v12174_v43 = vld [vmem:[%s12630_s12 + $0xb0] sm:$0xff]   ;;  %v1769_v35 = vld [vmem:[%s12635_s20 + $0x1d8] sm:$0xff] }
 0x14b   :  { %10985 = vmatprep.mubr.msk.bf16.mxu1 %vm368_vm3, %v351_v45  ;;  %v1715_v45 = vld [vmem:[%s12635_s20 + $0x28] sm:$0xff] }
 0x14c   :  { %10986 = vmatmul.mubr.msk.bf16.gmra.mxu1 %vm368_vm3, %v352_v46  ;;  %v1840_v46 = vpack.c.bf16 %v1715_v45, %v1714_v44  ;;  %v1744_v45 = vld [vmem:[%s12635_s20 + $0x110] sm:$0xff] }
 0x14d   :  { %11127 = vmatprep.mubr.msk.bf16.mxu1 %vm1903_vm6, %v1838_v38  ;;  %v1741_v38 = vld [vmem:[%s12635_s20 + $0xf8] sm:$0xff] }
 0x14e   :  { %v1853_v39 = vpack.c.bf16 %v1741_v38, %v1740_v37  ;;  %v12201_v37 = vld [vmem:[%s12630_s12 + $0x188] sm:$0xff]   ;;  %v12202_v38 = vld [vmem:[%s12630_s12 + $0x190] sm:$0xff]  }
 0x154   :  { %11128 = vmatmul.mubr.msk.bf16.vlgmr.msra.gmra.mxu1 %vm1903_vm6, %v1839_v41  ;;  %v12188_v41 = vld [vmem:[%s12630_s12 + $0x120] sm:$0xff]  }
 0x155   :  { %11131 = vmatprep.mubr.msk.bf16.mxu1 %vm1903_vm6, %v1840_v46  ;;  %v1745_v46 = vld [vmem:[%s12635_s20 + $0x118] sm:$0xff] }
 0x204   :  { %v10983_v48 = vpop.f32.mrf.mxu1 }
 0x205   :  { %v424_v0 = vadd.f32 %v10983_v48, %v9756_v53  ;;  %v1717_v48 = vld [vmem:[%s12635_s20 + $0x38] sm:$0xff] }
 0x206   :  { %v415_v49 = vpop.f32.mrf.mxu1 }
 0x207   :  { %v448_v8 = vmax.f32 %v424_v0, 0.0  ;;  %v416_v9 = vadd.f32 %v9756_v53, %v415_v49  ;;  %v1841_v49 = vpack.c.bf16 %v1717_v48, %v1716_v47  ;;  %v1725_v0 = vld [vmem:[%s12635_s20 + $0x78] sm:$0xff]  ;;  %v1855_v47 = vpack.c.bf16 %v1745_v46, %v1744_v45  ;;  %v12189_v48 = vld [vmem:[%s12630_s12 + $0x128] sm:$0xff]  }
 0x208   :  { %v10984_v50 = vpop.f32.mrf.mxu1 }
 0x209   :  { %v427_v60 = vadd.f32 %v10984_v50, %v9756_v53  ;;  %v446_v12 = vmax.f32 %v416_v9, 0.0  ;;  %11132 = vmatmul.mubr.msk.bf16.gmra.mxu1 %vm1903_vm6, %v1841_v49  ;;  %v12175_v50 = vld [vmem:[%s12630_s12 + $0xb8] sm:$0xff]   ;;  %v12190_v49 = vld [vmem:[%s12630_s12 + $0x130] sm:$0xff]  }
 0x20a   :  { %v418_v51 = vpop.f32.mrf.mxu1 }
 0x20b   :  { %v449_v4 = vmax.f32 %v427_v60, 0.0  ;;  %v419_v6 = vadd.f32 %v9756_v53, %v418_v51  ;;  %v12176_v51 = vld [vmem:[%s12630_s12 + $0xc0] sm:$0xff]  }
 0x20c   :  { %v10987_v52 = vpop.f32.mrf.mxu1  ;;  %v1722_v60 = vld [vmem:[%s12635_s20 + $0x60] sm:$0xff] }
 0x20d   :  { %v440_v55 = vadd.f32 %v10987_v52, %v9756_v53  ;;  %v12719_v10 = vpack.c.bf16 %v449_v4, %v448_v8  ;;  %v447_v11 = vmax.f32 %v419_v6, 0.0  ;;  %v1718_v52 = vld [vmem:[%s12635_s20 + $0x40] sm:$0xff]  ;;  %v1727_v8 = vld [vmem:[%s12635_s20 + $0x88] sm:$0xff] }
 0x20e   :  { %v431_v54 = vpop.f32.mrf.mxu1  ;;  %v12180_v4 = vld [vmem:[%s12630_s12 + $0xe0] sm:$0xff]  }
 0x20f   :  { %v432_v57 = vadd.f32 %v9756_v53, %v431_v54  ;;  %v452_v61 = vmax.f32 %v440_v55, 0.0  ;;  %15351 = vst [vmem:[#allocation48_spill] sm:$0xff] %v12719_v10  ;;  %v12723_v13 = vpack.c.bf16 %v447_v11, %v446_v12  ;;  %v1720_v55 = vld [vmem:[%s12635_s20 + $0x50] sm:$0xff]  ;;  %v1726_v6 = vld [vmem:[%s12635_s20 + $0x80] sm:$0xff]  ;;  %v1729_v12 = vld [vmem:[%s12635_s20 + $0x98] sm:$0xff] }
 0x210   :  { %v10988_v56 = vpop.f32.mrf.mxu1  ;;  %v1846_v9 = vpack.c.bf16 %v1727_v8, %v1726_v6  ;;  %v1728_v11 = vld [vmem:[%s12635_s20 + $0x90] sm:$0xff] }
 0x211   :  { %v443_v58 = vadd.f32 %v10988_v56, %v9756_v53  ;;  %v450_v1 = vmax.f32 %v432_v57, 0.0  ;;  %15352 = vst [vmem:[#allocation49_spill] sm:$0xff] %v12723_v13  ;;  %v1721_v56 = vld [vmem:[%s12635_s20 + $0x58] sm:$0xff]  ;;  %v1756_v8 = vld [vmem:[%s12635_s20 + $0x170] sm:$0xff] }
 0x212   :  { %v434_v59 = vpop.f32.mrf.mxu1  ;;  %v1843_v57 = vpack.c.bf16 %v1721_v56, %v1720_v55  ;;  %v12191_v56 = vld [vmem:[%s12630_s12 + $0x138] sm:$0xff]  }
 0x213   :  { %v453_v62 = vmax.f32 %v443_v58, 0.0  ;;  %v435_v63 = vadd.f32 %v9756_v53, %v434_v59  ;;  %v1719_v53 = vld [vmem:[%s12635_s20 + $0x48] sm:$0xff]  ;;  %v12178_v59 = vld [vmem:[%s12630_s12 + $0xd0] sm:$0xff]  }
 0x214   :  { %v1842_v54 = vpack.c.bf16 %v1719_v53, %v1718_v52  ;;  %v12177_v58 = vld [vmem:[%s12630_s12 + $0xc8] sm:$0xff]   ;;  %v1748_v53 = vld [vmem:[%s12635_s20 + $0x130] sm:$0xff] }
 0x215   :  { %v12712_v2 = vpack.c.bf16 %v453_v62, %v452_v61  ;;  %v451_v3 = vmax.f32 %v435_v63, 0.0  ;;  %v1723_v61 = vld [vmem:[%s12635_s20 + $0x68] sm:$0xff]  ;;  %v1724_v63 = vld [vmem:[%s12635_s20 + $0x70] sm:$0xff] }
 0x216   :  { %11135 = vmatprep.mubr.msk.bf16.mxu1 %vm1903_vm6, %v1842_v54  ;;  %v1844_v62 = vpack.c.bf16 %v1723_v61, %v1722_v60  ;;  %v1749_v54 = vld [vmem:[%s12635_s20 + $0x138] sm:$0xff]  ;;  %v1752_v61 = vld [vmem:[%s12635_s20 + $0x150] sm:$0xff] }
 0x217   :  { %15349 = vst [vmem:[#allocation46_spill] sm:$0xff] %v12712_v2  ;;  %10989 = vmatprep.subr.bf16.mxu0 %v12712_v2  ;;  %v12715_v7 = vpack.c.bf16 %v451_v3, %v450_v1  ;;  %11136 = vmatmul.mubr.msk.bf16.gmra.mxu1 %vm1903_vm6, %v1843_v57  ;;  %v1845_v1 = vpack.c.bf16 %v1725_v0, %v1724_v63  ;;  %v12179_v3 = vld [vmem:[%s12630_s12 + $0xd8] sm:$0xff]   ;;  %v12192_v57 = vld [vmem:[%s12630_s12 + $0x140] sm:$0xff]   ;;  %v12193_v0 = vld [vmem:[%s12630_s12 + $0x148] sm:$0xff]  }
 0x218   :  { %10990 = vmatpush3.bf16.msra.mxu0 %v12712_v2  ;;  %11139 = vmatprep.mubr.msk.bf16.mxu1 %vm1903_vm6, %v1844_v62  ;;  %v1857_v55 = vpack.c.bf16 %v1749_v54, %v1748_v53  ;;  %v1753_v62 = vld [vmem:[%s12635_s20 + $0x158] sm:$0xff]  ;;  %v1776_v54 = vld [vmem:[%s12635_s20 + $0x210] sm:$0xff] }
 0x219   :  { %15350 = vst [vmem:[#allocation47_spill] sm:$0xff] %v12715_v7  ;;  %10991 = vmatprep.subr.bf16.mxu0 %v12715_v7  ;;  %v1859_v63 = vpack.c.bf16 %v1753_v62, %v1752_v61  ;;  %v12206_v61 = vld [vmem:[%s12630_s12 + $0x1b0] sm:$0xff]  }
 0x21a   :  { %v1832_v2 = vld [vmem:[%s12635_s20 + $0x3d0] sm:$0xff] }
 0x21c   :  { %10992 = vmatpush3.bf16.msra.mxu0 %v12715_v7 }
 0x21d   :  { %10993 = vmatprep.subr.bf16.mxu0 %v12719_v10 }
 0x21f   :  { %11140 = vmatmul.mubr.msk.bf16.gmra.mxu1 %vm1903_vm6, %v1845_v1  ;;  %v12194_v1 = vld [vmem:[%s12630_s12 + $0x150] sm:$0xff]  }
 0x220   :  { %10994 = vmatpush3.bf16.msra.mxu0 %v12719_v10  ;;  %11143 = vmatprep.mubr.msk.bf16.mxu1 %vm1903_vm6, %v1846_v9  ;;  %v1757_v9 = vld [vmem:[%s12635_s20 + $0x178] sm:$0xff] }
 0x221   :  { %10995 = vmatprep.subr.bf16.mxu0 %v12723_v13 }
 0x224   :  { %10996 = vmatpush3.bf16.msra.mxu0 %v12723_v13 }
 0x227   :  { %10998 = vmatmul.mubr.msk.bf16.vlgmr.msra.gmra.mxu0 %vm906_vm4, %v12153_v14  ;;  %v1847_v14 = vpack.c.bf16 %v1729_v12, %v1728_v11  ;;  %v1861_v11 = vpack.c.bf16 %v1757_v9, %v1756_v8  ;;  %v12195_v12 = vld [vmem:[%s12630_s12 + $0x158] sm:$0xff]  }
 0x228   :  { %11001 = vmatprep.mubr.msk.bf16.mxu0 %vm906_vm4, %v12154_v15  ;;  %v12181_v15 = vld [vmem:[%s12630_s12 + $0xe8] sm:$0xff]  }
 0x229   :  { %11144 = vmatmul.mubr.msk.bf16.gmra.mxu1 %vm1903_vm6, %v1847_v14  ;;  %v12196_v14 = vld [vmem:[%s12630_s12 + $0x160] sm:$0xff]  }
 0x22f   :  { %11002 = vmatmul.mubr.msk.bf16.gmra.mxu0 %vm906_vm4, %v12155_v16  ;;  %v12182_v16 = vld [vmem:[%s12630_s12 + $0xf0] sm:$0xff]  }
 0x230   :  { %11005 = vmatprep.mubr.msk.bf16.mxu0 %vm906_vm4, %v12156_v17  ;;  %v1730_v17 = vld [vmem:[%s12635_s20 + $0xa0] sm:$0xff] }
 0x237   :  { %11006 = vmatmul.mubr.msk.bf16.gmra.mxu0 %vm906_vm4, %v12157_v18  ;;  %v1731_v18 = vld [vmem:[%s12635_s20 + $0xa8] sm:$0xff] }
 0x238   :  { %11009 = vmatprep.mubr.msk.bf16.mxu0 %vm906_vm4, %v12158_v19  ;;  %v1848_v19 = vpack.c.bf16 %v1731_v18, %v1730_v17  ;;  %v1760_v18 = vld [vmem:[%s12635_s20 + $0x190] sm:$0xff] }
 0x23a   :  { %11147 = vmatprep.mubr.msk.bf16.mxu1 %vm1903_vm6, %v1848_v19  ;;  %v1761_v19 = vld [vmem:[%s12635_s20 + $0x198] sm:$0xff] }
 0x23f   :  { %11010 = vmatmul.mubr.msk.bf16.gmra.mxu0 %vm906_vm4, %v12159_v20  ;;  %v1732_v20 = vld [vmem:[%s12635_s20 + $0xb0] sm:$0xff] }
 0x240   :  { %11013 = vmatprep.mubr.msk.bf16.mxu0 %vm906_vm4, %v12160_v21  ;;  %v1733_v21 = vld [vmem:[%s12635_s20 + $0xb8] sm:$0xff] }
 0x247   :  { %11014 = vmatmul.mubr.msk.bf16.gmra.mxu0 %vm906_vm4, %v12161_v22  ;;  %v1849_v22 = vpack.c.bf16 %v1733_v21, %v1732_v20  ;;  %v1863_v20 = vpack.c.bf16 %v1761_v19, %v1760_v18  ;;  %v12197_v21 = vld [vmem:[%s12630_s12 + $0x168] sm:$0xff]   ;;  %v1784_v19 = vld [vmem:[%s12635_s20 + $0x250] sm:$0xff] }
 0x248   :  { %11017 = vmatprep.mubr.msk.bf16.mxu0 %vm906_vm4, %v12162_v23  ;;  %v12183_v23 = vld [vmem:[%s12630_s12 + $0xf8] sm:$0xff]  }
 0x249   :  { %11148 = vmatmul.mubr.msk.bf16.gmra.mxu1 %vm1903_vm6, %v1849_v22  ;;  %v12198_v22 = vld [vmem:[%s12630_s12 + $0x170] sm:$0xff]  }
 0x24f   :  { %11018 = vmatmul.mubr.msk.bf16.gmra.mxu0 %vm906_vm4, %v12163_v24  ;;  %v12184_v24 = vld [vmem:[%s12630_s12 + $0x100] sm:$0xff]  }
 0x250   :  { %11021 = vmatprep.mubr.msk.bf16.mxu0 %vm906_vm4, %v12164_v25  ;;  %v1734_v25 = vld [vmem:[%s12635_s20 + $0xc0] sm:$0xff] }
 0x257   :  { %11022 = vmatmul.mubr.msk.bf16.gmra.mxu0 %vm906_vm4, %v12165_v26  ;;  %v1735_v26 = vld [vmem:[%s12635_s20 + $0xc8] sm:$0xff] }
 0x258   :  { %11025 = vmatprep.mubr.msk.bf16.mxu0 %vm906_vm4, %v12166_v27  ;;  %v1850_v27 = vpack.c.bf16 %v1735_v26, %v1734_v25  ;;  %v1764_v26 = vld [vmem:[%s12635_s20 + $0x1b0] sm:$0xff] }
 0x25a   :  { %11151 = vmatprep.mubr.msk.bf16.mxu1 %vm1903_vm6, %v1850_v27  ;;  %v1765_v27 = vld [vmem:[%s12635_s20 + $0x1b8] sm:$0xff] }
 0x25f   :  { %11026 = vmatmul.mubr.msk.bf16.gmra.mxu0 %vm906_vm4, %v12167_v28  ;;  %v1736_v28 = vld [vmem:[%s12635_s20 + $0xd0] sm:$0xff] }
 0x260   :  { %11029 = vmatprep.mubr.msk.bf16.mxu0 %vm906_vm4, %v12168_v29  ;;  %v1737_v29 = vld [vmem:[%s12635_s20 + $0xd8] sm:$0xff] }
 0x267   :  { %11030 = vmatmul.mubr.msk.bf16.gmra.mxu0 %vm906_vm4, %v12169_v30  ;;  %v12216_v30 = vld [vmem:[%s12425_s25] sm:$0xff]   ;;  %s15464_s25 = sld [smem:[#allocation10_spill]] }
 0x268   :  { %11033 = vmatprep.mubr.msk.bf16.mxu0 %vm906_vm4, %v12170_v31  ;;  %v1851_v31 = vpack.c.bf16 %v1737_v29, %v1736_v28  ;;  %11255 = vmatprep.subr.bf16.mxu0 %v12216_v30  ;;  %v1865_v28 = vpack.c.bf16 %v1765_v27, %v1764_v26  ;;  %v12199_v29 = vld [vmem:[%s12630_s12 + $0x178] sm:$0xff]   ;;  %v12210_v26 = vld [vmem:[%s12630_s12 + $0x1d0] sm:$0xff]  }
 0x269   :  { %11256 = vmatpush3.bf16.msra.mxu0 %v12216_v30  ;;  %v12200_v30 = vld [vmem:[%s12630_s12 + $0x180] sm:$0xff]  }
 0x26a   :  { %11152 = vmatmul.mubr.msk.bf16.gmra.mxu1 %vm1903_vm6, %v1851_v31  ;;  %v1766_v31 = vld [vmem:[%s12635_s20 + $0x1c0] sm:$0xff] }
 0x26b   :  { %11155 = vmatprep.mubr.msk.bf16.mxu1 %vm1903_vm6, %v1852_v36  ;;  %v1867_v36 = vpack.c.bf16 %v1769_v35, %v1768_v34 }
 0x26f   :  { %11034 = vmatmul.mubr.msk.bf16.gmra.mxu0 %vm906_vm4, %v12171_v32  ;;  %v12185_v32 = vld [vmem:[%s12630_s12 + $0x108] sm:$0xff]  }
 0x270   :  { %11037 = vmatprep.mubr.msk.bf16.mxu0 %vm906_vm4, %v12172_v33  ;;  %v12186_v33 = vld [vmem:[%s12630_s12 + $0x110] sm:$0xff]  }
 0x272   :  { %11156 = vmatmul.mubr.msk.bf16.gmra.mxu1 %vm1903_vm6, %v1853_v39  ;;  %v1770_v39 = vld [vmem:[%s12635_s20 + $0x1e0] sm:$0xff] }
 0x277   :  { %11038 = vmatmul.mubr.msk.bf16.gmra.mxu0 %vm906_vm4, %v12173_v42  ;;  %v1742_v42 = vld [vmem:[%s12635_s20 + $0x100] sm:$0xff] }
 0x278   :  { %11041 = vmatprep.mubr.msk.bf16.mxu0 %vm906_vm4, %v12174_v43  ;;  %v1743_v43 = vld [vmem:[%s12635_s20 + $0x108] sm:$0xff] }
 0x279   :  { %v1854_v44 = vpack.c.bf16 %v1743_v43, %v1742_v42  ;;  %v1772_v42 = vld [vmem:[%s12635_s20 + $0x1f0] sm:$0xff]  ;;  %v1773_v43 = vld [vmem:[%s12635_s20 + $0x1f8] sm:$0xff] }
 0x27a   :  { %v1869_v45 = vpack.c.bf16 %v1773_v43, %v1772_v42  ;;  %v1792_v43 = vld [vmem:[%s12635_s20 + $0x290] sm:$0xff] }
 0x27b   :  { %11159 = vmatprep.mubr.msk.bf16.mxu1 %vm1903_vm6, %v1854_v44 }
 0x27c   :  { %11160 = vmatmul.mubr.msk.bf16.gmra.mxu1 %vm1903_vm6, %v1855_v47 }
 0x27f   :  { %11042 = vmatmul.mubr.msk.bf16.gmra.mxu0 %vm906_vm4, %v12175_v50  ;;  %v1746_v50 = vld [vmem:[%s12635_s20 + $0x120] sm:$0xff] }
 0x280   :  { %11045 = vmatprep.mubr.msk.bf16.mxu0 %vm906_vm4, %v12176_v51  ;;  %v1747_v51 = vld [vmem:[%s12635_s20 + $0x128] sm:$0xff] }
 0x281   :  { %v1856_v52 = vpack.c.bf16 %v1747_v51, %v1746_v50  ;;  %v1774_v51 = vld [vmem:[%s12635_s20 + $0x200] sm:$0xff] }
 0x283   :  { %11163 = vmatprep.mubr.msk.bf16.mxu1 %vm1903_vm6, %v1856_v52  ;;  %v1775_v52 = vld [vmem:[%s12635_s20 + $0x208] sm:$0xff] }
 0x284   :  { %11164 = vmatmul.mubr.msk.bf16.gmra.mxu1 %vm1903_vm6, %v1857_v55  ;;  %v1870_v53 = vpack.c.bf16 %v1775_v52, %v1774_v51  ;;  %v1777_v55 = vld [vmem:[%s12635_s20 + $0x218] sm:$0xff] }
 0x287   :  { %11046 = vmatmul.mubr.msk.bf16.gmra.mxu0 %vm906_vm4, %v12177_v58  ;;  %v1750_v58 = vld [vmem:[%s12635_s20 + $0x140] sm:$0xff] }
 0x288   :  { %11049 = vmatprep.mubr.msk.bf16.mxu0 %vm906_vm4, %v12178_v59  ;;  %v1751_v59 = vld [vmem:[%s12635_s20 + $0x148] sm:$0xff] }
 0x289   :  { %v1858_v60 = vpack.c.bf16 %v1751_v59, %v1750_v58 }
 0x28b   :  { %11167 = vmatprep.mubr.msk.bf16.mxu1 %vm1903_vm6, %v1858_v60  ;;  %v12205_v60 = vld [vmem:[%s12630_s12 + $0x1a8] sm:$0xff]  }
 0x28c   :  { %11168 = vmatmul.mubr.msk.bf16.gmra.mxu1 %vm1903_vm6, %v1859_v63  ;;  %v1778_v63 = vld [vmem:[%s12635_s20 + $0x220] sm:$0xff] }
 0x28f   :  { %11050 = vmatmul.mubr.msk.bf16.gmra.mxu0 %vm906_vm4, %v12179_v3  ;;  %v1754_v3 = vld [vmem:[%s12635_s20 + $0x160] sm:$0xff] }
 0x290   :  { %11053 = vmatprep.mubr.msk.bf16.mxu0 %vm906_vm4, %v12180_v4  ;;  %v1755_v4 = vld [vmem:[%s12635_s20 + $0x168] sm:$0xff] }
 0x291   :  { %v1860_v6 = vpack.c.bf16 %v1755_v4, %v1754_v3  ;;  %v1780_v3 = vld [vmem:[%s12635_s20 + $0x230] sm:$0xff]  ;;  %v1781_v4 = vld [vmem:[%s12635_s20 + $0x238] sm:$0xff] }
 0x292   :  { %v1873_v8 = vpack.c.bf16 %v1781_v4, %v1780_v3 }
 0x293   :  { %11171 = vmatprep.mubr.msk.bf16.mxu1 %vm1903_vm6, %v1860_v6 }
 0x294   :  { %11172 = vmatmul.mubr.msk.bf16.gmra.mxu1 %vm1903_vm6, %v1861_v11 }
 0x297   :  { %11054 = vmatmul.mubr.msk.bf16.gmra.mxu0 %vm906_vm4, %v12181_v15  ;;  %v1758_v15 = vld [vmem:[%s12635_s20 + $0x180] sm:$0xff] }
 0x298   :  { %11057 = vmatprep.mubr.msk.bf16.mxu0 %vm906_vm4, %v12182_v16  ;;  %v1759_v16 = vld [vmem:[%s12635_s20 + $0x188] sm:$0xff] }
 0x299   :  { %v1862_v17 = vpack.c.bf16 %v1759_v16, %v1758_v15  ;;  %v1782_v16 = vld [vmem:[%s12635_s20 + $0x240] sm:$0xff] }
 0x29b   :  { %11175 = vmatprep.mubr.msk.bf16.mxu1 %vm1903_vm6, %v1862_v17  ;;  %v1783_v17 = vld [vmem:[%s12635_s20 + $0x248] sm:$0xff] }
 0x29c   :  { %11176 = vmatmul.mubr.msk.bf16.gmra.mxu1 %vm1903_vm6, %v1863_v20  ;;  %v1874_v18 = vpack.c.bf16 %v1783_v17, %v1782_v16  ;;  %v1785_v20 = vld [vmem:[%s12635_s20 + $0x258] sm:$0xff]  ;;  %v1798_v16 = vld [vmem:[%s12635_s20 + $0x2c0] sm:$0xff]  ;;  %v1799_v17 = vld [vmem:[%s12635_s20 + $0x2c8] sm:$0xff] }
 0x29f   :  { %11058 = vmatmul.mubr.msk.bf16.gmra.mxu0 %vm906_vm4, %v12183_v23  ;;  %v1762_v23 = vld [vmem:[%s12635_s20 + $0x1a0] sm:$0xff] }
 0x2a0   :  { %11061 = vmatprep.mubr.msk.bf16.mxu0 %vm906_vm4, %v12184_v24  ;;  %v1763_v24 = vld [vmem:[%s12635_s20 + $0x1a8] sm:$0xff] }
 0x2a1   :  { %v1864_v25 = vpack.c.bf16 %v1763_v24, %v1762_v23 }
 0x2a3   :  { %11179 = vmatprep.mubr.msk.bf16.mxu1 %vm1903_vm6, %v1864_v25  ;;  %v12209_v25 = vld [vmem:[%s12630_s12 + $0x1c8] sm:$0xff]  }
 0x2a4   :  { %11180 = vmatmul.mubr.msk.bf16.gmra.mxu1 %vm1903_vm6, %v1865_v28  ;;  %v1786_v28 = vld [vmem:[%s12635_s20 + $0x260] sm:$0xff] }
 0x2a7   :  { %11062 = vmatmul.mubr.msk.bf16.gmra.mxu0 %vm906_vm4, %v12185_v32  ;;  %v1767_v32 = vld [vmem:[%s12635_s20 + $0x1c8] sm:$0xff] }
 0x2a8   :  { %11065 = vmatprep.mubr.msk.bf16.mxu0 %vm906_vm4, %v12186_v33  ;;  %v1866_v33 = vpack.c.bf16 %v1767_v32, %v1766_v31  ;;  %v1788_v31 = vld [vmem:[%s12635_s20 + $0x270] sm:$0xff]  ;;  %v1789_v32 = vld [vmem:[%s12635_s20 + $0x278] sm:$0xff] }
 0x2a9   :  { %v1877_v34 = vpack.c.bf16 %v1789_v32, %v1788_v31  ;;  %v1803_v31 = vld [vmem:[%s12635_s20 + $0x2e8] sm:$0xff] }
 0x2aa   :  { %11183 = vmatprep.mubr.msk.bf16.mxu1 %vm1903_vm6, %v1866_v33 }
 0x2ac   :  { %11184 = vmatmul.mubr.msk.bf16.gmra.mxu1 %vm1903_vm6, %v1867_v36 }
 0x2af   :  { %11066 = vmatmul.mubr.msk.bf16.gmra.mxu0 %vm906_vm4, %v12187_v40  ;;  %v1771_v40 = vld [vmem:[%s12635_s20 + $0x1e8] sm:$0xff] }
 0x2b0   :  { %11069 = vmatprep.mubr.msk.bf16.mxu0 %vm906_vm4, %v12188_v41  ;;  %v1868_v41 = vpack.c.bf16 %v1771_v40, %v1770_v39  ;;  %v1790_v40 = vld [vmem:[%s12635_s20 + $0x280] sm:$0xff] }
 0x2b2   :  { %11187 = vmatprep.mubr.msk.bf16.mxu1 %vm1903_vm6, %v1868_v41  ;;  %v1791_v41 = vld [vmem:[%s12635_s20 + $0x288] sm:$0xff] }
 0x2b3   :  { %v1878_v42 = vpack.c.bf16 %v1791_v41, %v1790_v40 }
 0x2b4   :  { %11188 = vmatmul.mubr.msk.bf16.gmra.mxu1 %vm1903_vm6, %v1869_v45  ;;  %v1793_v45 = vld [vmem:[%s12635_s20 + $0x298] sm:$0xff] }
 0x2b5   :  { %11191 = vmatprep.mubr.msk.bf16.mxu1 %vm1903_vm6, %v1870_v53  ;;  %v12213_v53 = vld [vmem:[%s12630_s12 + $0x1e8] sm:$0xff]  }
 0x2b7   :  { %11070 = vmatmul.mubr.msk.bf16.gmra.mxu0 %vm906_vm4, %v12189_v48  ;;  %v12203_v48 = vld [vmem:[%s12630_s12 + $0x198] sm:$0xff]  }
 0x2b8   :  { %11073 = vmatprep.mubr.msk.bf16.mxu0 %vm906_vm4, %v12190_v49  ;;  %v12204_v49 = vld [vmem:[%s12630_s12 + $0x1a0] sm:$0xff]  }
 0x2bf   :  { %11074 = vmatmul.mubr.msk.bf16.gmra.mxu0 %vm906_vm4, %v12191_v56 }
 0x2c0   :  { %11077 = vmatprep.mubr.msk.bf16.mxu0 %vm906_vm4, %v12192_v57  ;;  %v1871_v57 = vpack.c.bf16 %v1777_v55, %v1776_v54  ;;  %v12214_v54 = vld [vmem:[%s12630_s12 + $0x1f0] sm:$0xff]  }
 0x2c2   :  { %11192 = vmatmul.mubr.msk.bf16.gmra.mxu1 %vm1903_vm6, %v1871_v57  ;;  %v1794_v57 = vld [vmem:[%s12635_s20 + $0x2a0] sm:$0xff] }
 0x2c7   :  { %11078 = vmatmul.mubr.msk.bf16.gmra.mxu0 %vm906_vm4, %v12193_v0  ;;  %v1779_v0 = vld [vmem:[%s12635_s20 + $0x228] sm:$0xff] }
 0x2c8   :  { %11081 = vmatprep.mubr.msk.bf16.mxu0 %vm906_vm4, %v12194_v1  ;;  %v1872_v1 = vpack.c.bf16 %v1779_v0, %v1778_v63  ;;  %v1796_v63 = vld [vmem:[%s12635_s20 + $0x2b0] sm:$0xff]  ;;  %v1797_v0 = vld [vmem:[%s12635_s20 + $0x2b8] sm:$0xff] }
 0x2c9   :  { %v1881_v3 = vpack.c.bf16 %v1797_v0, %v1796_v63 }
 0x2ca   :  { %11195 = vmatprep.mubr.msk.bf16.mxu1 %vm1903_vm6, %v1872_v1 }
 0x2cb   :  { %11196 = vmatmul.mubr.msk.bf16.gmra.mxu1 %vm1903_vm6, %v1873_v8 }
 0x2cc   :  { %11199 = vmatprep.mubr.msk.bf16.mxu1 %vm1903_vm6, %v1874_v18 }
 0x2cf   :  { %11082 = vmatmul.mubr.msk.bf16.gmra.mxu0 %vm906_vm4, %v12195_v12  ;;  %v12207_v12 = vld [vmem:[%s12630_s12 + $0x1b8] sm:$0xff]  }
 0x2d0   :  { %11085 = vmatprep.mubr.msk.bf16.mxu0 %vm906_vm4, %v12196_v14  ;;  %v12208_v14 = vld [vmem:[%s12630_s12 + $0x1c0] sm:$0xff]  }
 0x2d7   :  { %11086 = vmatmul.mubr.msk.bf16.gmra.mxu0 %vm906_vm4, %v12197_v21 }
 0x2d8   :  { %11089 = vmatprep.mubr.msk.bf16.mxu0 %vm906_vm4, %v12198_v22  ;;  %v1875_v22 = vpack.c.bf16 %v1785_v20, %v1784_v19  ;;  %v1882_v19 = vpack.c.bf16 %v1799_v17, %v1798_v16  ;;  %v1800_v20 = vld [vmem:[%s12635_s20 + $0x2d0] sm:$0xff] }
 0x2da   :  { %11200 = vmatmul.mubr.msk.bf16.gmra.mxu1 %vm1903_vm6, %v1875_v22  ;;  %v1801_v22 = vld [vmem:[%s12635_s20 + $0x2d8] sm:$0xff] }
 0x2df   :  { %11090 = vmatmul.mubr.msk.bf16.gmra.mxu0 %vm906_vm4, %v12199_v29  ;;  %v1787_v29 = vld [vmem:[%s12635_s20 + $0x268] sm:$0xff] }
 0x2e0   :  { %11093 = vmatprep.mubr.msk.bf16.mxu0 %vm906_vm4, %v12200_v30  ;;  %v1876_v30 = vpack.c.bf16 %v1787_v29, %v1786_v28 }
 0x2e2   :  { %11203 = vmatprep.mubr.msk.bf16.mxu1 %vm1903_vm6, %v1876_v30  ;;  %v1802_v30 = vld [vmem:[%s12635_s20 + $0x2e0] sm:$0xff] }
 0x2e3   :  { %11204 = vmatmul.mubr.msk.bf16.gmra.mxu1 %vm1903_vm6, %v1877_v34  ;;  %v1884_v34 = vpack.c.bf16 %v1803_v31, %v1802_v30 }
 0x2e4   :  { %11207 = vmatprep.mubr.msk.bf16.mxu1 %vm1903_vm6, %v1878_v42  ;;  %v1806_v42 = vld [vmem:[%s12635_s20 + $0x300] sm:$0xff] }
 0x2e7   :  { %v12924_v44 = vpop.f32.mrf.mxu0  ;;  %11094 = vmatmul.mubr.msk.bf16.gmra.mxu0 %vm906_vm4, %v12201_v37  ;;  %v12211_v37 = vld [vmem:[%s12630_s12 + $0x1d8] sm:$0xff]  }
 0x2e8   :  { %11097 = vmatprep.mubr.msk.bf16.mxu0 %vm906_vm4, %v12202_v38  ;;  %v12212_v38 = vld [vmem:[%s12630_s12 + $0x1e0] sm:$0xff]  }
 0x2e9   :  { %v12929_v46 = vpop.f32.mrf.mxu0 }
 0x2eb   :  { %v12932_v47 = vpop.f32.mrf.mxu0 }
 0x2ed   :  { %v12936_v50 = vpop.f32.mrf.mxu0 }
 0x2ee   :  { %v1644_v18 = vpack.c.bf16 %v12936_v50, %v12929_v46  ;;  %v1645_v46 = vpack.c.bf16 %v12932_v47, %v12924_v44 }
 0x2ef   :  { %v12942_v56 = vpop.f32.mrf.mxu0  ;;  %11098 = vmatmul.mubr.msk.bf16.gmra.mxu0 %vm906_vm4, %v12203_v48 }
 0x2f0   :  { %11101 = vmatprep.mubr.msk.bf16.mxu0 %vm906_vm4, %v12204_v49  ;;  %v1879_v49 = vpack.c.bf16 %v1793_v45, %v1792_v43  ;;  %v1807_v43 = vld [vmem:[%s12635_s20 + $0x308] sm:$0xff] }
 0x2f1   :  { %v12947_v58 = vpop.f32.mrf.mxu0 }
 0x2f2   :  { %11208 = vmatmul.mubr.msk.bf16.gmra.mxu1 %vm1903_vm6, %v1879_v49  ;;  %v1886_v49 = vpack.c.bf16 %v1807_v43, %v1806_v42 }
 0x2f3   :  { %v12950_v59 = vpop.f32.mrf.mxu0 }
 0x2f5   :  { %v12954_v62 = vpop.f32.mrf.mxu0 }
 0x2f6   :  { %v1646_v32 = vpack.c.bf16 %v12954_v62, %v12947_v58  ;;  %v1647_v58 = vpack.c.bf16 %v12950_v59, %v12942_v56  ;;  %v13098_v59 = vpop.f32.mrf.mxu1 }
 0x2f7   :  { %v12960_v6 = vpop.f32.mrf.mxu0  ;;  %11102 = vmatmul.mubr.msk.bf16.gmra.mxu0 %vm906_vm4, %v12205_v60  ;;  %v1795_v60 = vld [vmem:[%s12635_s20 + $0x2a8] sm:$0xff] }
 0x2f8   :  { %11105 = vmatprep.mubr.msk.bf16.mxu0 %vm906_vm4, %v12206_v61  ;;  %v1880_v61 = vpack.c.bf16 %v1795_v60, %v1794_v57 }
 0x2f9   :  { %v12965_v9 = vpop.f32.mrf.mxu0 }
 0x2fa   :  { %11211 = vmatprep.mubr.msk.bf16.mxu1 %vm1903_vm6, %v1880_v61 }
 0x2fb   :  { %v12968_v11 = vpop.f32.mrf.mxu0  ;;  %11212 = vmatmul.mubr.msk.bf16.gmra.mxu1 %vm1903_vm6, %v1881_v3  ;;  %v1810_v3 = vld [vmem:[%s12635_s20 + $0x320] sm:$0xff] }
 0x2fc   :  { %11215 = vmatprep.mubr.msk.bf16.mxu1 %vm1903_vm6, %v1882_v19  ;;  %v1649_v61 = vpack.c.bf16 %v12968_v11, %v12960_v6  ;;  %v1813_v19 = vld [vmem:[%s12635_s20 + $0x338] sm:$0xff] }
 0x2fd   :  { %v12972_v15 = vpop.f32.mrf.mxu0 }
 0x2fe   :  { %v1648_v45 = vpack.c.bf16 %v12972_v15, %v12965_v9  ;;  %v13103_v15 = vpop.f32.mrf.mxu1 }
 0x2ff   :  { %v12978_v21 = vpop.f32.mrf.mxu0  ;;  %11106 = vmatmul.mubr.msk.bf16.gmra.mxu0 %vm906_vm4, %v12207_v12  ;;  %v12215_v12 = vld [vmem:[%s12630_s12 + $0x1f8] sm:$0xff]   ;;  %s15470_s12 = sld [smem:[#allocation13_spill]] }
 0x300   :  { %11109 = vmatprep.mubr.msk.bf16.mxu0 %vm906_vm4, %v12208_v14  ;;  %v13109_v0 = vpop.f32.mrf.mxu1 }
 0x301   :  { %v12983_v23 = vpop.f32.mrf.mxu0 }
 0x303   :  { %v12986_v24 = vpop.f32.mrf.mxu0 }
 0x305   :  { %v12990_v27 = vpop.f32.mrf.mxu0 }
 0x306   :  { %v1650_v16 = vpack.c.bf16 %v12990_v27, %v12983_v23 }
 0x307   :  { %v12996_v33 = vpop.f32.mrf.mxu0  ;;  %11110 = vmatmul.mubr.msk.bf16.gmra.mxu0 %vm906_vm4, %v12209_v25 }
 0x308   :  { %11113 = vmatprep.mubr.msk.bf16.mxu0 %vm906_vm4, %v12210_v26  ;;  %v1883_v26 = vpack.c.bf16 %v1801_v22, %v1800_v20  ;;  %v13120_v22 = vpop.f32.mrf.mxu1 }
 0x309   :  { %v13001_v35 = vpop.f32.mrf.mxu0 }
 0x30a   :  { %11216 = vmatmul.mubr.msk.bf16.gmra.mxu1 %vm1903_vm6, %v1883_v26  ;;  %v13126_v23 = vpop.f32.mrf.mxu1 }
 0x30b   :  { %v13004_v36 = vpop.f32.mrf.mxu0  ;;  %11219 = vmatprep.mubr.msk.bf16.mxu1 %vm1903_vm6, %v1884_v34  ;;  %v1815_v34 = vld [vmem:[%s12635_s20 + $0x348] sm:$0xff] }
 0x30c   :  { %v13131_v26 = vpop.f32.mrf.mxu1 }
 0x30d   :  { %v13008_v39 = vpop.f32.mrf.mxu0 }
 0x30e   :  { %v13137_v31 = vpop.f32.mrf.mxu1 }
 0x30f   :  { %v13014_v48 = vpop.f32.mrf.mxu0  ;;  %11114 = vmatmul.mubr.msk.bf16.gmra.mxu0 %vm906_vm4, %v12211_v37  ;;  %v1804_v37 = vld [vmem:[%s12635_s20 + $0x2f0] sm:$0xff] }
 0x310   :  { %11117 = vmatprep.mubr.msk.bf16.mxu0 %vm906_vm4, %v12212_v38  ;;  %v1805_v38 = vld [vmem:[%s12635_s20 + $0x2f8] sm:$0xff]  ;;  %v13148_v43 = vpop.f32.mrf.mxu1 }
 0x311   :  { %v13019_v51 = vpop.f32.mrf.mxu0  ;;  %v1885_v41 = vpack.c.bf16 %v1805_v38, %v1804_v37  ;;  %v1652_v37 = vpack.c.bf16 %v13008_v39, %v13001_v35 }
 0x312   :  { %v13154_v35 = vpop.f32.mrf.mxu1 }
 0x313   :  { %v13022_v52 = vpop.f32.mrf.mxu0  ;;  %11220 = vmatmul.mubr.msk.bf16.gmra.mxu1 %vm1903_vm6, %v1885_v41  ;;  %v1816_v41 = vld [vmem:[%s12635_s20 + $0x350] sm:$0xff] }
 0x314   :  { %11223 = vmatprep.mubr.msk.bf16.mxu1 %vm1903_vm6, %v1886_v49  ;;  %v1653_v49 = vpack.c.bf16 %v13004_v36, %v12996_v33 }
 0x315   :  { %v13026_v55 = vpop.f32.mrf.mxu0 }
 0x317   :  { %v13032_v1 = vpop.f32.mrf.mxu0  ;;  %11118 = vmatmul.mubr.msk.bf16.gmra.mxu0 %vm906_vm4, %v12213_v53  ;;  %v1808_v53 = vld [vmem:[%s12635_s20 + $0x310] sm:$0xff] }
 0x318   :  { %11121 = vmatprep.mubr.msk.bf16.mxu0 %vm906_vm4, %v12214_v54  ;;  %v1809_v54 = vld [vmem:[%s12635_s20 + $0x318] sm:$0xff] }
 0x319   :  { %v13037_v4 = vpop.f32.mrf.mxu0  ;;  %v1887_v60 = vpack.c.bf16 %v1809_v54, %v1808_v53 }
 0x31b   :  { %v13040_v8 = vpop.f32.mrf.mxu0  ;;  %11224 = vmatmul.mubr.msk.bf16.gmra.mxu1 %vm1903_vm6, %v1887_v60  ;;  %v1818_v60 = vld [vmem:[%s12635_s20 + $0x360] sm:$0xff] }
 0x31d   :  { %v13043_v14 = vpop.f32.mrf.mxu0 }
 0x31f   :  { %v13051_v25 = vpop.f32.mrf.mxu0  ;;  %11122 = vmatmul.mubr.msk.bf16.gmra.mxu0 %vm906_vm4, %v12215_v12  ;;  %v1811_v12 = vld [vmem:[%s12635_s20 + $0x328] sm:$0xff] }
 0x320   :  { %11257 = vmatprep.mubr.msk.bf16.mxu0 %vm368_vm3, %v1644_v18  ;;  %v1888_v17 = vpack.c.bf16 %v1811_v12, %v1810_v3  ;;  %v1812_v18 = vld [vmem:[%s12635_s20 + $0x330] sm:$0xff]  ;;  %v1654_v3 = vpack.c.bf16 %v13026_v55, %v13019_v51 }
 0x321   :  { %v13056_v28 = vpop.f32.mrf.mxu0  ;;  %v1889_v6 = vpack.c.bf16 %v1813_v19, %v1812_v18 }
 0x322   :  { %11227 = vmatprep.mubr.msk.bf16.mxu1 %vm1903_vm6, %v1888_v17  ;;  %v1821_v17 = vld [vmem:[%s12635_s20 + $0x378] sm:$0xff] }
 0x323   :  { %v13059_v29 = vpop.f32.mrf.mxu0  ;;  %11228 = vmatmul.mubr.msk.bf16.gmra.mxu1 %vm1903_vm6, %v1889_v6 }
 0x325   :  { %v13063_v50 = vpop.f32.mrf.mxu0 }
 0x327   :  { %v13071_v40 = vpop.f32.mrf.mxu0  ;;  %11258 = vmatmul.mubr.msk.bf16.vlgmr.msra.gmra.mxu0 %vm368_vm3, %v1645_v46  ;;  %v1651_v46 = vpack.c.bf16 %v12986_v24, %v12978_v21 }
 0x328   :  { %11261 = vmatprep.mubr.msk.bf16.mxu0 %vm368_vm3, %v1646_v32  ;;  %v1814_v32 = vld [vmem:[%s12635_s20 + $0x340] sm:$0xff] }
 0x329   :  { %v13076_v44 = vpop.f32.mrf.mxu0  ;;  %v1890_v38 = vpack.c.bf16 %v1815_v34, %v1814_v32 }
 0x32b   :  { %v13079_v47 = vpop.f32.mrf.mxu0  ;;  %11231 = vmatprep.mubr.msk.bf16.mxu1 %vm1903_vm6, %v1890_v38  ;;  %v1823_v38 = vld [vmem:[%s12635_s20 + $0x388] sm:$0xff] }
 0x32d   :  { %v13083_v62 = vpop.f32.mrf.mxu0 }
 0x32f   :  { %v13091_v57 = vpop.f32.mrf.mxu0  ;;  %11262 = vmatmul.mubr.msk.bf16.gmra.mxu0 %vm368_vm3, %v1647_v58  ;;  %v1817_v58 = vld [vmem:[%s12635_s20 + $0x358] sm:$0xff] }
 0x330   :  { %11265 = vmatprep.mubr.msk.bf16.mxu0 %vm368_vm3, %v1648_v45  ;;  %v1891_v21 = vpack.c.bf16 %v1817_v58, %v1816_v41  ;;  %v13159_v45 = vpop.f32.mrf.mxu1  ;;  %v1656_v41 = vpack.c.bf16 %v13043_v14, %v13037_v4 }
 0x331   :  { %v13096_v56 = vpop.f32.mrf.mxu0 }
 0x332   :  { %11232 = vmatmul.mubr.msk.bf16.gmra.mxu1 %vm1903_vm6, %v1891_v21  ;;  %v13165_v54 = vpop.f32.mrf.mxu1  ;;  %v1824_v21 = vld [vmem:[%s12635_s20 + $0x390] sm:$0xff] }
 0x333   :  { %v13101_v9 = vpop.f32.mrf.mxu0 }
 0x334   :  { %v13176_v19 = vpop.f32.mrf.mxu1 }
 0x335   :  { %v13107_v63 = vpop.f32.mrf.mxu0 }
 0x336   :  { %v13182_v51 = vpop.f32.mrf.mxu1 }
 0x337   :  { %v13117_v20 = vpop.f32.mrf.mxu0  ;;  %11266 = vmatmul.mubr.msk.bf16.gmra.mxu0 %vm368_vm3, %v1649_v61  ;;  %v1819_v61 = vld [vmem:[%s12635_s20 + $0x368] sm:$0xff] }
 0x338   :  { %11269 = vmatprep.mubr.msk.bf16.mxu0 %vm368_vm3, %v1650_v16  ;;  %v1892_v12 = vpack.c.bf16 %v1819_v61, %v1818_v60  ;;  %v1820_v16 = vld [vmem:[%s12635_s20 + $0x370] sm:$0xff]  ;;  %v13187_v6 = vpop.f32.mrf.mxu1 }
 0x339   :  { %v13124_v11 = vpop.f32.mrf.mxu0  ;;  %v1893_v33 = vpack.c.bf16 %v1821_v17, %v1820_v16 }
 0x33a   :  { %11235 = vmatprep.mubr.msk.bf16.mxu1 %vm1903_vm6, %v1892_v12  ;;  %v13193_v34 = vpop.f32.mrf.mxu1  ;;  %v1657_v12 = vpack.c.bf16 %v13040_v8, %v13032_v1 }
 0x33b   :  { %v13129_v27 = vpop.f32.mrf.mxu0  ;;  %11236 = vmatmul.mubr.msk.bf16.gmra.mxu1 %vm1903_vm6, %v1893_v33  ;;  %v1826_v33 = vld [vmem:[%s12635_s20 + $0x3a0] sm:$0xff] }
 0x33c   :  { %v13204_v61 = vpop.f32.mrf.mxu1 }
 0x33d   :  { %v13135_v30 = vpop.f32.mrf.mxu0 }
 0x33e   :  { %v13210_v4 = vpop.f32.mrf.mxu1 }
 0x33f   :  { %v13145_v42 = vpop.f32.mrf.mxu0  ;;  %11270 = vmatmul.mubr.msk.bf16.gmra.mxu0 %vm368_vm3, %v1651_v46  ;;  %v1655_v46 = vpack.c.bf16 %v13022_v52, %v13014_v48 }
 0x340   :  { %11273 = vmatprep.mubr.msk.bf16.mxu0 %vm368_vm3, %v1652_v37  ;;  %v1822_v37 = vld [vmem:[%s12635_s20 + $0x380] sm:$0xff] }
 0x341   :  { %v13152_v24 = vpop.f32.mrf.mxu0  ;;  %v1894_v58 = vpack.c.bf16 %v1823_v38, %v1822_v37  ;;  %v1658_v37 = vpack.c.bf16 %v13063_v50, %v13056_v28 }
 0x343   :  { %v13157_v39 = vpop.f32.mrf.mxu0  ;;  %11239 = vmatprep.mubr.msk.bf16.mxu1 %vm1903_vm6, %v1894_v58  ;;  %v1829_v58 = vld [vmem:[%s12635_s20 + $0x3b8] sm:$0xff] }
 0x345   :  { %v13163_v53 = vpop.f32.mrf.mxu0 }
 0x347   :  { %v13173_v18 = vpop.f32.mrf.mxu0  ;;  %11274 = vmatmul.mubr.msk.bf16.gmra.mxu0 %vm368_vm3, %v1653_v49  ;;  %v1825_v49 = vld [vmem:[%s12635_s20 + $0x398] sm:$0xff] }
 0x348   :  { %11277 = vmatprep.mubr.msk.bf16.mxu0 %vm368_vm3, %v1654_v3  ;;  %v1895_v48 = vpack.c.bf16 %v1825_v49, %v1824_v21  ;;  %v13215_v3 = vpop.f32.mrf.mxu1 }
 0x349   :  { %v13180_v36 = vpop.f32.mrf.mxu0 }
 0x34a   :  { %11240 = vmatmul.mubr.msk.bf16.gmra.mxu1 %vm1903_vm6, %v1895_v48  ;;  %v13221_v17 = vpop.f32.mrf.mxu1 }
 0x34b   :  { %v13185_v55 = vpop.f32.mrf.mxu0 }
 0x34c   :  { %v13232_v49 = vpop.f32.mrf.mxu1 }
 0x34d   :  { %v13191_v32 = vpop.f32.mrf.mxu0 }
 0x34e   :  { %v13238_v28 = vpop.f32.mrf.mxu1 }
 0x34f   :  { %v13201_v60 = vpop.f32.mrf.mxu0  ;;  %11278 = vmatmul.mubr.msk.bf16.gmra.mxu0 %vm368_vm3, %v1655_v46  ;;  %v1827_v46 = vld [vmem:[%s12635_s20 + $0x3a8] sm:$0xff] }
 0x350   :  { %11281 = vmatprep.mubr.msk.bf16.mxu0 %vm368_vm3, %v1656_v41  ;;  %v1896_v38 = vpack.c.bf16 %v1827_v46, %v1826_v33  ;;  %v1828_v41 = vld [vmem:[%s12635_s20 + $0x3b0] sm:$0xff]  ;;  %v13243_v48 = vpop.f32.mrf.mxu1 }
 0x351   :  { %v13208_v52 = vpop.f32.mrf.mxu0  ;;  %v1897_v1 = vpack.c.bf16 %v1829_v58, %v1828_v41  ;;  %v1831_v41 = vld [vmem:[%s12635_s20 + $0x3c8] sm:$0xff] }
 0x352   :  { %11243 = vmatprep.mubr.msk.bf16.mxu1 %vm1903_vm6, %v1896_v38  ;;  %v13249_v46 = vpop.f32.mrf.mxu1  ;;  %v1660_v38 = vpack.c.bf16 %v13083_v62, %v13076_v44 }
 0x353   :  { %v13213_v14 = vpop.f32.mrf.mxu0  ;;  %11244 = vmatmul.mubr.msk.bf16.gmra.mxu1 %vm1903_vm6, %v1897_v1  ;;  %v1833_v1 = vld [vmem:[%s12635_s20 + $0x3d8] sm:$0xff] }
 0x354   :  { %v13260_v10 = vpop.f32.mrf.mxu1 }
 0x355   :  { %v13219_v16 = vpop.f32.mrf.mxu0  ;;  %15353 = vst [vmem:[#allocation50_spill] sm:$0xff] %v13260_v10 }
 0x356   :  { %v13266_v44 = vpop.f32.mrf.mxu1 }
 0x357   :  { %v13229_v21 = vpop.f32.mrf.mxu0  ;;  %11282 = vmatmul.mubr.msk.bf16.gmra.mxu0 %vm368_vm3, %v1657_v12  ;;  %v1659_v12 = vpack.c.bf16 %v13059_v29, %v13051_v25  ;;  %v1899_v25 = vpack.c.bf16 %v1833_v1, %v1832_v2  ;;  %15354 = vst [vmem:[#allocation51_spill] sm:$0xff] %v13266_v44  ;;  %v1835_v1 = vld [vmem:[%s12635_s20 + $0x3e8] sm:$0xff]  ;;  %v1836_v44 = vld [vmem:[%s12635_s20 + $0x3f0] sm:$0xff] }
 0x358   :  { %11285 = vmatprep.mubr.msk.bf16.mxu0 %vm368_vm3, %v1658_v37  ;;  %v1830_v37 = vld [vmem:[%s12635_s20 + $0x3c0] sm:$0xff] }
 0x359   :  { %v13236_v8 = vpop.f32.mrf.mxu0  ;;  %v1898_v58 = vpack.c.bf16 %v1831_v41, %v1830_v37  ;;  %v13271_v37 = vpop.f32.mrf.mxu1 }
 0x35a   :  { %15355 = vst [vmem:[#allocation52_spill] sm:$0xff] %v13271_v37 }
 0x35b   :  { %v13241_v50 = vpop.f32.mrf.mxu0  ;;  %11247 = vmatprep.mubr.msk.bf16.mxu1 %vm1903_vm6, %v1898_v58  ;;  %v13277_v2 = vpop.f32.mrf.mxu1  ;;  %v1662_v58 = vpack.c.bf16 %v13107_v63, %v13096_v56 }
 0x35c   :  { %11248 = vmatmul.mubr.msk.bf16.gmra.mxu1 %vm1903_vm6, %v1899_v25  ;;  %15356 = vst [vmem:[#allocation53_spill] sm:$0xff] %v13277_v2  ;;  %v1837_v25 = vld [vmem:[%s12635_s20 + $0x3f8] sm:$0xff] }
 0x35d   :  { %v13247_v33 = vpop.f32.mrf.mxu0  ;;  %v13288_v37 = vpop.f32.mrf.mxu1 }
 0x35f   :  { %v13257_v7 = vpop.f32.mrf.mxu0  ;;  %11286 = vmatmul.mubr.msk.bf16.gmra.mxu0 %vm368_vm3, %v1659_v12  ;;  %v1661_v12 = vpack.c.bf16 %v13079_v47, %v13071_v40  ;;  %v1901_v40 = vpack.c.bf16 %v1837_v25, %v1836_v44  ;;  %v13294_v2 = vpop.f32.mrf.mxu1 }
 0x360   :  { %11289 = vmatprep.mubr.msk.bf16.mxu0 %vm368_vm3, %v1660_v38  ;;  %v1834_v38 = vld [vmem:[%s12635_s20 + $0x3e0] sm:$0xff]  ;;  %15357 = vst [vmem:[#allocation54_spill] sm:$0xff] %v13294_v2  ;;  %s15471_s20 = sld [smem:[#allocation43_spill]] }
 0x361   :  { %v13264_v29 = vpop.f32.mrf.mxu0  ;;  %v1900_v13 = vpack.c.bf16 %v1835_v1, %v1834_v38  ;;  %v13299_v63 = vpop.f32.mrf.mxu1  ;;  %v12217_v38 = vld [vmem:[%s12440_s8 + $0x8] ss:$0 sps:$4 sm:$0x33]  }
 0x363   :  { %v13269_v62 = vpop.f32.mrf.mxu0  ;;  %11251 = vmatprep.mubr.msk.bf16.mxu1 %vm1903_vm6, %v1900_v13  ;;  %v13306_v1 = vpop.f32.mrf.mxu1  ;;  %v3928_v13 = vand.u32 %v12217_v38, %v12690_v5 }
 0x364   :  { %11252 = vmatmul.mubr.msk.bf16.gmra.mxu1 %vm1903_vm6, %v1901_v40  ;;  %15358 = vst [vmem:[#allocation55_spill] sm:$0xff] %v13306_v1  ;;  %v12218_v1 = vld [vmem:[%s12440_s8] sm:$0xff]   ;;  %s15467_s8 = sld [smem:[#allocation12_spill]] }
 0x365   :  { %v13275_v41 = vpop.f32.mrf.mxu0  ;;  %v13314_v40 = vpop.f32.mrf.mxu1  ;;  %11385 = vmatprep.subr.bf16.mxu1 %v3928_v13 }
 0x366   :  { %15359 = vst [vmem:[#allocation56_spill] sm:$0xff] %v13314_v40  ;;  %11386 = vmatpush3.bf16.msra.mxu1 %v3928_v13  ;;  %v1666_v13 = vpack.c.bf16 %v13163_v53, %v13152_v24 }
 0x367   :  { %v13285_v10 = vpop.f32.mrf.mxu0  ;;  %11290 = vmatmul.mubr.msk.bf16.gmra.mxu0 %vm368_vm3, %v1661_v12  ;;  %v1663_v12 = vpack.c.bf16 %v13101_v9, %v13091_v57  ;;  %v13319_v9 = vpop.f32.mrf.mxu1  ;;  %11387 = vmatprep.subr.bf16.mxu1 %v12218_v1 }
 0x368   :  { %11293 = vmatprep.mubr.msk.bf16.mxu0 %vm368_vm3, %v1662_v58  ;;  %v1664_v58 = vpack.c.bf16 %v13135_v30, %v13124_v11  ;;  %15360 = vst [vmem:[#allocation57_spill] sm:$0xff] %v13319_v9  ;;  %v1665_v11 = vpack.c.bf16 %v13129_v27, %v13117_v20 }
 0x369   :  { %v13292_v47 = vpop.f32.mrf.mxu0  ;;  %v13324_v38 = vpop.f32.mrf.mxu1 }
 0x36a   :  { %15361 = vst [vmem:[#allocation58_spill] sm:$0xff] %v13324_v38  ;;  %11388 = vmatpush3.bf16.msra.mxu1 %v12218_v1 }
 0x36b   :  { %v13297_v56 = vpop.f32.mrf.mxu0 }
 0x36d   :  { %v13304_v44 = vpop.f32.mrf.mxu0 }
 0x36f   :  { %v13311_v25 = vpop.f32.mrf.mxu0  ;;  %11294 = vmatmul.mubr.msk.bf16.gmra.mxu0 %vm368_vm3, %v1663_v12  ;;  %v13330_v12 = vpop.f32.mrf.mxu1 }
 0x370   :  { %11297 = vmatprep.mubr.msk.bf16.mxu0 %vm368_vm3, %v1664_v58  ;;  %15362 = vst [vmem:[#allocation59_spill] sm:$0xff] %v13330_v12  ;;  %v1667_v12 = vpack.c.bf16 %v13157_v39, %v13145_v42 }
 0x371   :  { %v13317_v57 = vpop.f32.mrf.mxu0  ;;  %v13337_v5 = vpop.f32.mrf.mxu1 }
 0x372   :  { %15363 = vst [vmem:[#allocation60_spill] sm:$0xff] %v13337_v5 }
 0x373   :  { %v13322_v2 = vpop.f32.mrf.mxu0  ;;  %v13342_v1 = vpop.f32.mrf.mxu1 }
 0x374   :  { %15364 = vst [vmem:[#allocation61_spill] sm:$0xff] %v13342_v1 }
 0x375   :  { %v13328_v30 = vpop.f32.mrf.mxu0  ;;  %v13346_v27 = vpop.f32.mrf.mxu1 }
 0x376   :  { %15365 = vst [vmem:[#allocation62_spill] sm:$0xff] %v13346_v27 }
 0x377   :  { %v13334_v58 = vpop.f32.mrf.mxu0  ;;  %11298 = vmatmul.mubr.msk.bf16.gmra.mxu0 %vm368_vm3, %v1665_v11  ;;  %v13352_v53 = vpop.f32.mrf.mxu1  ;;  %v1668_v11 = vpack.c.bf16 %v13191_v32, %v13180_v36 }
 0x378   :  { %11301 = vmatprep.mubr.msk.bf16.mxu0 %vm368_vm3, %v1666_v13  ;;  %15366 = vst [vmem:[#allocation63_spill] sm:$0xff] %v13352_v53  ;;  %v1669_v53 = vpack.c.bf16 %v13185_v55, %v13173_v18 }
 0x379   :  { %v13340_v9 = vpop.f32.mrf.mxu0  ;;  %v13359_v13 = vpop.f32.mrf.mxu1 }
 0x37a   :  { %15367 = vst [vmem:[#allocation64_spill] sm:$0xff] %v13359_v13 }
 0x37b   :  { %v13344_v20 = vpop.f32.mrf.mxu0  ;;  %v13364_v27 = vpop.f32.mrf.mxu1 }
 0x37c   :  { %15368 = vst [vmem:[#allocation65_spill] sm:$0xff] %v13364_v27 }
 0x37d   :  { %v13350_v24 = vpop.f32.mrf.mxu0  ;;  %v13368_v39 = vpop.f32.mrf.mxu1 }
 0x37e   :  { %15369 = vst [vmem:[#allocation66_spill] sm:$0xff] %v13368_v39 }
 0x37f   :  { %v13356_v5 = vpop.f32.mrf.mxu0  ;;  %11302 = vmatmul.mubr.msk.bf16.gmra.mxu0 %vm368_vm3, %v1667_v12  ;;  %v13374_v32 = vpop.f32.mrf.mxu1  ;;  %v1670_v12 = vpack.c.bf16 %v13219_v16, %v13208_v52 }
 0x380   :  { %11305 = vmatprep.mubr.msk.bf16.mxu0 %vm368_vm3, %v1668_v11  ;;  %15370 = vst [vmem:[#allocation67_spill] sm:$0xff] %v13374_v32  ;;  %v1671_v32 = vpack.c.bf16 %v13213_v14, %v13201_v60 }
 0x381   :  { %v13362_v1 = vpop.f32.mrf.mxu0  ;;  %v13381_v11 = vpop.f32.mrf.mxu1 }
 0x382   :  { %15371 = vst [vmem:[#allocation68_spill] sm:$0xff] %v13381_v11 }
 0x383   :  { %v13366_v42 = vpop.f32.mrf.mxu0  ;;  %v13386_v39 = vpop.f32.mrf.mxu1 }
 0x384   :  { %15372 = vst [vmem:[#allocation69_spill] sm:$0xff] %v13386_v39 }
 0x385   :  { %v13372_v36 = vpop.f32.mrf.mxu0  ;;  %v13390_v55 = vpop.f32.mrf.mxu1 }
 0x386   :  { %15373 = vst [vmem:[#allocation70_spill] sm:$0xff] %v13390_v55 }
 0x387   :  { %v13378_v13 = vpop.f32.mrf.mxu0  ;;  %11306 = vmatmul.mubr.msk.bf16.gmra.mxu0 %vm368_vm3, %v1669_v53  ;;  %v13396_v16 = vpop.f32.mrf.mxu1  ;;  %v1672_v53 = vpack.c.bf16 %v13247_v33, %v13236_v8 }
 0x388   :  { %11309 = vmatprep.mubr.msk.bf16.mxu0 %vm368_vm3, %v1670_v12  ;;  %15374 = vst [vmem:[#allocation71_spill] sm:$0xff] %v13396_v16  ;;  %v1673_v16 = vpack.c.bf16 %v13241_v50, %v13229_v21 }
 0x389   :  { %v13384_v27 = vpop.f32.mrf.mxu0  ;;  %v13403_v12 = vpop.f32.mrf.mxu1 }
 0x38a   :  { %15375 = vst [vmem:[#allocation72_spill] sm:$0xff] %v13403_v12 }
 0x38b   :  { %v13388_v18 = vpop.f32.mrf.mxu0  ;;  %v13408_v55 = vpop.f32.mrf.mxu1 }
 0x38c   :  { %15376 = vst [vmem:[#allocation73_spill] sm:$0xff] %v13408_v55 }
 0x38d   :  { %v13394_v52 = vpop.f32.mrf.mxu0  ;;  %v13412_v14 = vpop.f32.mrf.mxu1 }
 0x38e   :  { %15377 = vst [vmem:[#allocation74_spill] sm:$0xff] %v13412_v14 }
 0x38f   :  { %v13400_v11 = vpop.f32.mrf.mxu0  ;;  %11310 = vmatmul.mubr.msk.bf16.gmra.mxu0 %vm368_vm3, %v1671_v32  ;;  %v13418_v33 = vpop.f32.mrf.mxu1  ;;  %v1674_v32 = vpack.c.bf16 %v13275_v41, %v13264_v29 }
 0x390   :  { %11313 = vmatprep.mubr.msk.bf16.mxu0 %vm368_vm3, %v1672_v53  ;;  %15378 = vst [vmem:[#allocation75_spill] sm:$0xff] %v13418_v33  ;;  %v1675_v33 = vpack.c.bf16 %v13269_v62, %v13257_v7 }
 0x391   :  { %v13406_v39 = vpop.f32.mrf.mxu0  ;;  %v13425_v53 = vpop.f32.mrf.mxu1 }
 0x392   :  { %15379 = vst [vmem:[#allocation76_spill] sm:$0xff] %v13425_v53 }
 0x393   :  { %v13410_v60 = vpop.f32.mrf.mxu0  ;;  %v13430_v14 = vpop.f32.mrf.mxu1 }
 0x394   :  { %15380 = vst [vmem:[#allocation77_spill] sm:$0xff] %v13430_v14 }
 0x395   :  { %v13416_v8 = vpop.f32.mrf.mxu0  ;;  %v13434_v50 = vpop.f32.mrf.mxu1 }
 0x396   :  { %15381 = vst [vmem:[#allocation78_spill] sm:$0xff] %v13434_v50 }
 0x397   :  { %v13422_v12 = vpop.f32.mrf.mxu0  ;;  %11314 = vmatmul.mubr.msk.bf16.gmra.mxu0 %vm368_vm3, %v1673_v16  ;;  %v13440_v41 = vpop.f32.mrf.mxu1  ;;  %v1676_v16 = vpack.c.bf16 %v13304_v44, %v13292_v47 }
 0x398   :  { %11317 = vmatprep.mubr.msk.bf16.mxu0 %vm368_vm3, %v1674_v32  ;;  %15382 = vst [vmem:[#allocation79_spill] sm:$0xff] %v13440_v41  ;;  %v1677_v41 = vpack.c.bf16 %v13297_v56, %v13285_v10  ;;  %v1679_v56 = vpack.c.bf16 %v13322_v2, %v13311_v25  ;;  %v1681_v2 = vpack.c.bf16 %v13344_v20, %v13334_v58 }
 0x399   :  { %v13428_v55 = vpop.f32.mrf.mxu0  ;;  %v13447_v32 = vpop.f32.mrf.mxu1  ;;  %v1683_v58 = vpack.c.bf16 %v13366_v42, %v13356_v5  ;;  %v1685_v5 = vpack.c.bf16 %v13388_v18, %v13378_v13  ;;  %v1687_v13 = vpack.c.bf16 %v13410_v60, %v13400_v11 }
 0x39a   :  { %15383 = vst [vmem:[#allocation80_spill] sm:$0xff] %v13447_v32 }
 0x39b   :  { %v13432_v21 = vpop.f32.mrf.mxu0  ;;  %v13452_v50 = vpop.f32.mrf.mxu1 }
 0x39c   :  { %15384 = vst [vmem:[#allocation81_spill] sm:$0xff] %v13452_v50  ;;  %v1689_v11 = vpack.c.bf16 %v13432_v21, %v13422_v12 }
 0x39d   :  { %v13438_v29 = vpop.f32.mrf.mxu0  ;;  %v13456_v62 = vpop.f32.mrf.mxu1 }
 0x39e   :  { %15385 = vst [vmem:[#allocation82_spill] sm:$0xff] %v13456_v62 }
 0x39f   :  { %v13444_v53 = vpop.f32.mrf.mxu0  ;;  %11318 = vmatmul.mubr.msk.bf16.gmra.mxu0 %vm368_vm3, %v1675_v33  ;;  %v13462_v44 = vpop.f32.mrf.mxu1  ;;  %v1678_v33 = vpack.c.bf16 %v13328_v30, %v13317_v57  ;;  %v1680_v30 = vpack.c.bf16 %v13350_v24, %v13340_v9  ;;  %v1682_v9 = vpack.c.bf16 %v13372_v36, %v13362_v1  ;;  %v1684_v1 = vpack.c.bf16 %v13394_v52, %v13384_v27 }
 0x3a0   :  { %11321 = vmatprep.mubr.msk.bf16.mxu0 %vm368_vm3, %v1676_v16  ;;  %15386 = vst [vmem:[#allocation83_spill] sm:$0xff] %v13462_v44  ;;  %v1686_v27 = vpack.c.bf16 %v13416_v8, %v13406_v39  ;;  %v1688_v39 = vpack.c.bf16 %v13438_v29, %v13428_v55 }
 0x3a1   :  { %v13450_v14 = vpop.f32.mrf.mxu0  ;;  %v13469_v16 = vpop.f32.mrf.mxu1 }
 0x3a2   :  { %15387 = vst [vmem:[#allocation84_spill] sm:$0xff] %v13469_v16 }
 0x3a3   :  { %v13454_v7 = vpop.f32.mrf.mxu0  ;;  %v13474_v62 = vpop.f32.mrf.mxu1 }
 0x3a4   :  { %15388 = vst [vmem:[#allocation85_spill] sm:$0xff] %v13474_v62  ;;  %v1691_v12 = vpack.c.bf16 %v13454_v7, %v13444_v53 }
 0x3a5   :  { %v13460_v47 = vpop.f32.mrf.mxu0  ;;  %v13482_v57 = vpop.f32.mrf.mxu1 }
 0x3a6   :  { %15389 = vst [vmem:[#allocation86_spill] sm:$0xff] %v13482_v57  ;;  %v1690_v55 = vpack.c.bf16 %v13460_v47, %v13450_v14 }
 0x3a7   :  { %v13466_v32 = vpop.f32.mrf.mxu0  ;;  %11322 = vmatmul.mubr.msk.bf16.gmra.mxu0 %vm368_vm3, %v1677_v41  ;;  %v13492_v62 = vpop.f32.mrf.mxu1 }
 0x3a8   :  { %11325 = vmatprep.mubr.msk.bf16.mxu0 %vm368_vm3, %v1678_v33  ;;  %15390 = vst [vmem:[#allocation87_spill] sm:$0xff] %v13492_v62 }
 0x3a9   :  { %v13472_v50 = vpop.f32.mrf.mxu0  ;;  %v13500_v57 = vpop.f32.mrf.mxu1 }
 0x3aa   :  { %15391 = vst [vmem:[#allocation88_spill] sm:$0xff] %v13500_v57 }
 0x3ab   :  { %v13476_v10 = vpop.f32.mrf.mxu0 }
 0x3ac   :  { %v1693_v53 = vpack.c.bf16 %v13476_v10, %v13466_v32  ;;  %v13619_v10 = vld [vmem:[%s12435_s3] ss:$0 sm:$0xff] }
 0x3ad   :  { %v13480_v44 = vpop.f32.mrf.mxu0 }
 0x3ae   :  { %v1692_v14 = vpack.c.bf16 %v13480_v44, %v13472_v50 }
 0x3af   :  { %v13486_v41 = vpop.f32.mrf.mxu0  ;;  %11326 = vmatmul.mubr.msk.bf16.gmra.mxu0 %vm368_vm3, %v1679_v56 }
 0x3b0   :  { %11329 = vmatprep.mubr.msk.bf16.mxu0 %vm368_vm3, %v1680_v30  ;;  %v13510_v30 = vpop.f32.mrf.mxu1 }
 0x3b1   :  { %v13490_v33 = vpop.f32.mrf.mxu0  ;;  %15392 = vst [vmem:[#allocation89_spill] sm:$0xff] %v13510_v30 }
 0x3b2   :  { %v13518_v57 = vpop.f32.mrf.mxu1 }
 0x3b3   :  { %v13494_v16 = vpop.f32.mrf.mxu0  ;;  %15393 = vst [vmem:[#allocation90_spill] sm:$0xff] %v13518_v57 }
 0x3b5   :  { %v13498_v25 = vpop.f32.mrf.mxu0 }
 0x3b6   :  { %v1694_v50 = vpack.c.bf16 %v13498_v25, %v13490_v33  ;;  %v1695_v33 = vpack.c.bf16 %v13494_v16, %v13486_v41 }
 0x3b7   :  { %v13504_v24 = vpop.f32.mrf.mxu0  ;;  %11330 = vmatmul.mubr.msk.bf16.gmra.mxu0 %vm368_vm3, %v1681_v2 }
 0x3b8   :  { %11333 = vmatprep.mubr.msk.bf16.mxu0 %vm368_vm3, %v1682_v9  ;;  %v13528_v9 = vpop.f32.mrf.mxu1 }
 0x3b9   :  { %v13508_v56 = vpop.f32.mrf.mxu0  ;;  %15394 = vst [vmem:[#allocation91_spill] sm:$0xff] %v13528_v9 }
 0x3ba   :  { %v13536_v57 = vpop.f32.mrf.mxu1 }
 0x3bb   :  { %v13512_v62 = vpop.f32.mrf.mxu0  ;;  %15395 = vst [vmem:[#allocation92_spill] sm:$0xff] %v13536_v57 }
 0x3bd   :  { %v13516_v20 = vpop.f32.mrf.mxu0 }
 0x3bf   :  { %v13522_v36 = vpop.f32.mrf.mxu0  ;;  %11334 = vmatmul.mubr.msk.bf16.gmra.mxu0 %vm368_vm3, %v1683_v58 }
 0x3c0   :  { %11337 = vmatprep.mubr.msk.bf16.mxu0 %vm368_vm3, %v1684_v1  ;;  %v13546_v1 = vpop.f32.mrf.mxu1 }
 0x3c1   :  { %v13526_v2 = vpop.f32.mrf.mxu0  ;;  %15396 = vst [vmem:[#allocation93_spill] sm:$0xff] %v13546_v1 }
 0x3c2   :  { %v13554_v57 = vpop.f32.mrf.mxu1 }
 0x3c3   :  { %v13530_v30 = vpop.f32.mrf.mxu0  ;;  %15397 = vst [vmem:[#allocation94_spill] sm:$0xff] %v13554_v57 }
 0x3c5   :  { %v13534_v42 = vpop.f32.mrf.mxu0 }
 0x3c7   :  { %v13540_v52 = vpop.f32.mrf.mxu0  ;;  %11338 = vmatmul.mubr.msk.bf16.gmra.mxu0 %vm368_vm3, %v1685_v5 }
 0x3c8   :  { %11341 = vmatprep.mubr.msk.bf16.mxu0 %vm368_vm3, %v1686_v27  ;;  %v13564_v27 = vpop.f32.mrf.mxu1 }
 0x3c9   :  { %v13544_v58 = vpop.f32.mrf.mxu0  ;;  %15398 = vst [vmem:[#allocation95_spill] sm:$0xff] %v13564_v27 }
 0x3ca   :  { %v13572_v57 = vpop.f32.mrf.mxu1 }
 0x3cb   :  { %v13548_v9 = vpop.f32.mrf.mxu0  ;;  %15399 = vst [vmem:[#allocation96_spill] sm:$0xff] %v13572_v57 }
 0x3cd   :  { %v13552_v18 = vpop.f32.mrf.mxu0 }
 0x3cf   :  { %v13558_v8 = vpop.f32.mrf.mxu0  ;;  %11342 = vmatmul.mubr.msk.bf16.gmra.mxu0 %vm368_vm3, %v1687_v13 }
 0x3d0   :  { %11345 = vmatprep.mubr.msk.bf16.mxu0 %vm368_vm3, %v1688_v39  ;;  %v13582_v39 = vpop.f32.mrf.mxu1 }
 0x3d1   :  { %v13562_v5 = vpop.f32.mrf.mxu0  ;;  %15400 = vst [vmem:[#allocation97_spill] sm:$0xff] %v13582_v39 }
 0x3d2   :  { %v13590_v57 = vpop.f32.mrf.mxu1 }
 0x3d3   :  { %v13566_v1 = vpop.f32.mrf.mxu0  ;;  %15401 = vst [vmem:[#allocation98_spill] sm:$0xff] %v13590_v57 }
 0x3d5   :  { %v13570_v60 = vpop.f32.mrf.mxu0 }
 0x3d7   :  { %v13576_v29 = vpop.f32.mrf.mxu0  ;;  %11346 = vmatmul.mubr.msk.bf16.gmra.mxu0 %vm368_vm3, %v1689_v11 }
 0x3d8   :  { %11349 = vmatprep.mubr.msk.bf16.mxu0 %vm368_vm3, %v1690_v55  ;;  %v13600_v55 = vpop.f32.mrf.mxu1 }
 0x3d9   :  { %v13580_v13 = vpop.f32.mrf.mxu0  ;;  %15402 = vst [vmem:[#allocation99_spill] sm:$0xff] %v13600_v55 }
 0x3da   :  { %v13608_v57 = vpop.f32.mrf.mxu1 }
 0x3db   :  { %v13584_v27 = vpop.f32.mrf.mxu0  ;;  %15403 = vst [vmem:[#allocation100_spill] sm:$0xff] %v13608_v57 }
 0x3dd   :  { %v13588_v21 = vpop.f32.mrf.mxu0 }
 0x3df   :  { %v13594_v47 = vpop.f32.mrf.mxu0  ;;  %11350 = vmatmul.mubr.msk.bf16.gmra.mxu0 %vm368_vm3, %v1691_v12 }
 0x3e0   :  { %11353 = vmatprep.mubr.msk.bf16.mxu0 %vm368_vm3, %v1692_v14  ;;  %v13614_v14 = vpop.f32.mrf.mxu1 }
 0x3e1   :  { %v13598_v11 = vpop.f32.mrf.mxu0  ;;  %15404 = vst [vmem:[#allocation101_spill] sm:$0xff] %v13614_v14 }
 0x3e2   :  { %v13624_v40 = vpop.f32.mrf.mxu1 }
 0x3e3   :  { %v13602_v39 = vpop.f32.mrf.mxu0 }
 0x3e5   :  { %v13606_v7 = vpop.f32.mrf.mxu0 }
 0x3e7   :  { %v11259_v44 = vpop.f32.mrf.mxu0  ;;  %11354 = vmatmul.mubr.msk.bf16.gmra.mxu0 %vm368_vm3, %v1693_v53  ;;  %v1696_v53 = vpack.c.bf16 %v13516_v20, %v13508_v56 }
 0x3e8   :  { %11357 = vmatprep.mubr.msk.bf16.mxu0 %vm368_vm3, %v1694_v50  ;;  %v2886_v38 = vadd.f32 %v11259_v44, %v13098_v59 }
 0x3e9   :  { %v2877_v12 = vpop.f32.mrf.mxu0 }
 0x3ea   :  { %v2878_v55 = vadd.f32 %v2877_v12, %v13103_v15  ;;  %v3397_v44 = vadd.f32 %v13619_v10, %v2886_v38 }
 0x3eb   :  { %v11260_v32 = vpop.f32.mrf.mxu0 }
 0x3ec   :  { %v2889_v57 = vadd.f32 %v11260_v32, %v13109_v0  ;;  %v3395_v50 = vadd.f32 %v13619_v10, %v2878_v55  ;;  %v13635_v32 = vpop.f32.mrf.mxu1 }
 0x3ed   :  { %v2880_v25 = vpop.f32.mrf.mxu0 }
 0x3ee   :  { %v3398_v15 = vadd.f32 %v13619_v10, %v2889_v57  ;;  %v2881_v59 = vadd.f32 %v2880_v25, %v13120_v22  ;;  %v3523_v56 = vmax.f32 %v3395_v50, 0.0  ;;  %v3525_v57 = vmax.f32 %v3397_v44, 0.0  ;;  %v13642_v14 = vpop.f32.mrf.mxu1 }
 0x3ef   :  { %v11263_v12 = vpop.f32.mrf.mxu0  ;;  %11358 = vmatmul.mubr.msk.bf16.gmra.mxu0 %vm368_vm3, %v1695_v33  ;;  %v1698_v50 = vpack.c.bf16 %v13534_v42, %v13526_v2 }
 0x3f0   :  { %v3396_v0 = vadd.f32 %v13619_v10, %v2881_v59  ;;  %11361 = vmatprep.mubr.msk.bf16.mxu0 %vm368_vm3, %v1696_v53  ;;  %v3526_v16 = vmax.f32 %v3398_v15, 0.0  ;;  %v2902_v22 = vadd.f32 %v11263_v12, %v13126_v23  ;;  %v1697_v59 = vpack.c.bf16 %v13512_v62, %v13504_v24  ;;  %v13655_v42 = vpop.f32.mrf.mxu1 }
 0x3f1   :  { %v2893_v41 = vpop.f32.mrf.mxu0 }
 0x3f2   :  { %v3524_v20 = vmax.f32 %v3396_v0, 0.0  ;;  %v2894_v55 = vadd.f32 %v2893_v41, %v13131_v26  ;;  %v3652_v53 = vpack.c.bf16 %v3526_v16, %v3525_v57 }
 0x3f3   :  { %v11264_v25 = vpop.f32.mrf.mxu0 }
 0x3f4   :  { %v3651_v38 = vpack.c.bf16 %v3524_v20, %v3523_v56  ;;  %v2905_v33 = vadd.f32 %v11264_v25, %v13137_v31  ;;  %v3399_v26 = vadd.f32 %v13619_v10, %v2894_v55  ;;  %v3401_v31 = vadd.f32 %v13619_v10, %v2902_v22 }
 0x3f5   :  { %v2896_v15 = vpop.f32.mrf.mxu0  ;;  %v1699_v22 = vpack.c.bf16 %v13530_v30, %v13522_v36 }
 0x3f6   :  { %v3402_v44 = vadd.f32 %v13619_v10, %v2905_v33  ;;  %v2897_v23 = vadd.f32 %v2896_v15, %v13148_v43  ;;  %11389 = vmatprep.mubr.msk.bf16.mxu1 %vm3734_vm7, %v3651_v38  ;;  %v3527_v0 = vmax.f32 %v3399_v26, 0.0  ;;  %v3529_v41 = vmax.f32 %v3401_v31, 0.0  ;;  %v13662_v33 = vpop.f32.mrf.mxu1 }
 0x3f7   :  { %v11267_v12 = vpop.f32.mrf.mxu0  ;;  %11362 = vmatmul.mubr.msk.bf16.gmra.mxu0 %vm368_vm3, %v1697_v59  ;;  %11390 = vmatmul.mubr.msk.bf16.vlgmr.msra.gmra.mxu1 %vm3734_vm7, %v3652_v53  ;;  %v1700_v59 = vpack.c.bf16 %v13552_v18, %v13544_v58 }
 0x3f8   :  { %v3400_v62 = vadd.f32 %v13619_v10, %v2897_v23  ;;  %11365 = vmatprep.mubr.msk.bf16.mxu0 %vm368_vm3, %v1698_v50  ;;  %v3530_v24 = vmax.f32 %v3402_v44, 0.0  ;;  %v2918_v56 = vadd.f32 %v11267_v12, %v13154_v35  ;;  %v13675_v18 = vpop.f32.mrf.mxu1 }
 0x3f9   :  { %v2909_v2 = vpop.f32.mrf.mxu0 }
 0x3fa   :  { %v3528_v16 = vmax.f32 %v3400_v62, 0.0  ;;  %v2910_v43 = vadd.f32 %v2909_v2, %v13159_v45  ;;  %v3654_v25 = vpack.c.bf16 %v3530_v24, %v3529_v41  ;;  %v1701_v24 = vpack.c.bf16 %v13548_v9, %v13540_v52 }
 0x3fb   :  { %v11268_v20 = vpop.f32.mrf.mxu0 }
 0x3fc   :  { %v3653_v55 = vpack.c.bf16 %v3528_v16, %v3527_v0  ;;  %v2921_v57 = vadd.f32 %v11268_v20, %v13165_v54  ;;  %v3403_v53 = vadd.f32 %v13619_v10, %v2910_v43  ;;  %v3405_v54 = vadd.f32 %v13619_v10, %v2918_v56  ;;  %v13682_v16 = vpop.f32.mrf.mxu1 }
 0x3fd   :  { %v2912_v38 = vpop.f32.mrf.mxu0  ;;  %v1702_v43 = vpack.c.bf16 %v13570_v60, %v13562_v5 }
 0x3fe   :  { %v3406_v45 = vadd.f32 %v13619_v10, %v2921_v57  ;;  %v2913_v35 = vadd.f32 %v2912_v38, %v13176_v19  ;;  %11393 = vmatprep.mubr.msk.bf16.mxu1 %vm3734_vm7, %v3653_v55  ;;  %v3531_v50 = vmax.f32 %v3403_v53, 0.0  ;;  %v3533_v44 = vmax.f32 %v3405_v54, 0.0  ;;  %v13695_v60 = vpop.f32.mrf.mxu1 }
 0x3ff   :  { %v11271_v15 = vpop.f32.mrf.mxu0  ;;  %11366 = vmatmul.mubr.msk.bf16.gmra.mxu0 %vm368_vm3, %v1699_v22  ;;  %11394 = vmatmul.mubr.msk.bf16.gmra.mxu1 %vm3734_vm7, %v3654_v25  ;;  %v1703_v53 = vpack.c.bf16 %v13566_v1, %v13558_v8 }
 0x400   :  { %v3404_v30 = vadd.f32 %v13619_v10, %v2913_v35  ;;  %11369 = vmatprep.mubr.msk.bf16.mxu0 %vm368_vm3, %v1700_v59  ;;  %v3534_v36 = vmax.f32 %v3406_v45, 0.0  ;;  %v2934_v23 = vadd.f32 %v11271_v15, %v13182_v51  ;;  %v13702_v54 = vpop.f32.mrf.mxu1  ;;  %v1704_v15 = vpack.c.bf16 %v13588_v21, %v13580_v13 }
 0x401   :  { %v2925_v58 = vpop.f32.mrf.mxu0 }
 0x402   :  { %v3532_v26 = vmax.f32 %v3404_v30, 0.0  ;;  %v2926_v19 = vadd.f32 %v2925_v58, %v13187_v6  ;;  %v3656_v2 = vpack.c.bf16 %v3534_v36, %v3533_v44  ;;  %v13715_v21 = vpop.f32.mrf.mxu1 }
 0x403   :  { %v11272_v31 = vpop.f32.mrf.mxu0 }
 0x404   :  { %v3655_v12 = vpack.c.bf16 %v3532_v26, %v3531_v50  ;;  %v2937_v62 = vadd.f32 %v11272_v31, %v13193_v34  ;;  %v3407_v41 = vadd.f32 %v13619_v10, %v2926_v19  ;;  %v3409_v34 = vadd.f32 %v13619_v10, %v2934_v23 }
 0x405   :  { %v2928_v0 = vpop.f32.mrf.mxu0 }
 0x406   :  { %v3410_v6 = vadd.f32 %v13619_v10, %v2937_v62  ;;  %v2929_v51 = vadd.f32 %v2928_v0, %v13204_v61  ;;  %11397 = vmatprep.mubr.msk.bf16.mxu1 %vm3734_vm7, %v3655_v12  ;;  %v3535_v20 = vmax.f32 %v3407_v41, 0.0  ;;  %v3537_v57 = vmax.f32 %v3409_v34, 0.0  ;;  %v15405_v41 = vld [vmem:[#allocation50_spill] sm:$0xff] }
 0x407   :  { %v11275_v56 = vpop.f32.mrf.mxu0  ;;  %11370 = vmatmul.mubr.msk.bf16.gmra.mxu0 %vm368_vm3, %v1701_v24  ;;  %11398 = vmatmul.mubr.msk.bf16.gmra.mxu1 %vm3734_vm7, %v3656_v2  ;;  %v1705_v12 = vpack.c.bf16 %v13584_v27, %v13576_v29  ;;  %v13722_v2 = vpop.f32.mrf.mxu1  ;;  %v1706_v0 = vpack.c.bf16 %v13606_v7, %v13598_v11 }
 0x408   :  { %v3408_v9 = vadd.f32 %v13619_v10, %v2929_v51  ;;  %11373 = vmatprep.mubr.msk.bf16.mxu0 %vm368_vm3, %v1702_v43  ;;  %v3538_v52 = vmax.f32 %v3410_v6, 0.0  ;;  %v2950_v22 = vadd.f32 %v11275_v56, %v13210_v4  ;;  %v15406_v56 = vld [vmem:[#allocation52_spill] sm:$0xff] }
 0x409   :  { %v2941_v5 = vpop.f32.mrf.mxu0  ;;  %v13735_v7 = vpop.f32.mrf.mxu1 }
 0x40a   :  { %v3536_v55 = vmax.f32 %v3408_v9, 0.0  ;;  %v2942_v61 = vadd.f32 %v2941_v5, %v13215_v3  ;;  %v3658_v45 = vpack.c.bf16 %v3538_v52, %v3537_v57  ;;  %v15407_v5 = vld [vmem:[#allocation51_spill] sm:$0xff]  ;;  %v15408_v57 = vld [vmem:[#allocation53_spill] sm:$0xff] }
 0x40b   :  { %v11276_v25 = vpop.f32.mrf.mxu0 }
 0x40c   :  { %v3657_v38 = vpack.c.bf16 %v3536_v55, %v3535_v20  ;;  %v2953_v59 = vadd.f32 %v11276_v25, %v13221_v17  ;;  %v3411_v30 = vadd.f32 %v13619_v10, %v2942_v61  ;;  %v3413_v17 = vadd.f32 %v13619_v10, %v2950_v22 }
 0x40d   :  { %v2944_v35 = vpop.f32.mrf.mxu0  ;;  %v1707_v25 = vpack.c.bf16 %v13602_v39, %v13594_v47 }
 0x40e   :  { %v3414_v3 = vadd.f32 %v13619_v10, %v2953_v59  ;;  %v2945_v4 = vadd.f32 %v2944_v35, %v13232_v49  ;;  %11401 = vmatprep.mubr.msk.bf16.mxu1 %vm3734_vm7, %v3657_v38  ;;  %v3539_v58 = vmax.f32 %v3411_v30, 0.0  ;;  %v3541_v26 = vmax.f32 %v3413_v17, 0.0 }
 0x40f   :  { %v11279_v36 = vpop.f32.mrf.mxu0  ;;  %11374 = vmatmul.mubr.msk.bf16.gmra.mxu0 %vm368_vm3, %v1703_v53  ;;  %11402 = vmatmul.mubr.msk.bf16.gmra.mxu1 %vm3734_vm7, %v3658_v45  ;;  %v13742_v53 = vpop.f32.mrf.mxu1 }
 0x410   :  { %v3412_v1 = vadd.f32 %v13619_v10, %v2945_v4  ;;  %11377 = vmatprep.mubr.msk.bf16.mxu0 %vm368_vm3, %v1704_v15  ;;  %v3542_v8 = vmax.f32 %v3414_v3, 0.0  ;;  %v2966_v19 = vadd.f32 %v11279_v36, %v13238_v28 }
 0x411   :  { %v2957_v13 = vpop.f32.mrf.mxu0  ;;  %v13752_v17 = vpop.f32.mrf.mxu1 }
 0x412   :  { %v3540_v50 = vmax.f32 %v3412_v1, 0.0  ;;  %v2958_v49 = vadd.f32 %v2957_v13, %v13243_v48  ;;  %v3660_v62 = vpack.c.bf16 %v3542_v8, %v3541_v26  ;;  %v15409_v13 = vld [vmem:[#allocation54_spill] sm:$0xff]  ;;  %v15410_v26 = vld [vmem:[#allocation55_spill] sm:$0xff] }
 0x413   :  { %v11280_v44 = vpop.f32.mrf.mxu0 }
 0x414   :  { %v3659_v23 = vpack.c.bf16 %v3540_v50, %v3539_v58  ;;  %v2969_v31 = vadd.f32 %v11280_v44, %v13249_v46  ;;  %v3415_v43 = vadd.f32 %v13619_v10, %v2958_v49  ;;  %v3417_v46 = vadd.f32 %v13619_v10, %v2966_v19 }
 0x415   :  { %v2960_v24 = vpop.f32.mrf.mxu0 }
 0x416   :  { %v3418_v48 = vadd.f32 %v13619_v10, %v2969_v31  ;;  %v2961_v28 = vadd.f32 %v2960_v24, %v15405_v41  ;;  %11405 = vmatprep.mubr.msk.bf16.mxu1 %vm3734_vm7, %v3659_v23  ;;  %v3543_v51 = vmax.f32 %v3415_v43, 0.0  ;;  %v3545_v52 = vmax.f32 %v3417_v46, 0.0  ;;  %v13757_v31 = vpop.f32.mrf.mxu1  ;;  %v15411_v24 = vld [vmem:[#allocation56_spill] sm:$0xff] }
 0x417   :  { %v11283_v6 = vpop.f32.mrf.mxu0  ;;  %11378 = vmatmul.mubr.msk.bf16.gmra.mxu0 %vm368_vm3, %v1705_v12  ;;  %11406 = vmatmul.mubr.msk.bf16.gmra.mxu1 %vm3734_vm7, %v3660_v62 }
 0x418   :  { %v3416_v27 = vadd.f32 %v13619_v10, %v2961_v28  ;;  %11381 = vmatprep.mubr.msk.bf16.mxu0 %vm368_vm3, %v1706_v0  ;;  %v3546_v29 = vmax.f32 %v3418_v48, 0.0  ;;  %v2982_v20 = vadd.f32 %v11283_v6, %v15407_v5  ;;  %v13766_v46 = vpop.f32.mrf.mxu1  ;;  %v15414_v5 = vld [vmem:[#allocation59_spill] sm:$0xff] }
 0x419   :  { %v2973_v11 = vpop.f32.mrf.mxu0 }
 0x41a   :  { %v3544_v34 = vmax.f32 %v3416_v27, 0.0  ;;  %v2974_v9 = vadd.f32 %v2973_v11, %v15406_v56  ;;  %v3662_v38 = vpack.c.bf16 %v3546_v29, %v3545_v52  ;;  %v3421_v30 = vadd.f32 %v13619_v10, %v2982_v20  ;;  %v15412_v29 = vld [vmem:[#allocation58_spill] sm:$0xff] }
 0x41b   :  { %v11284_v55 = vpop.f32.mrf.mxu0 }
 0x41c   :  { %v3661_v61 = vpack.c.bf16 %v3544_v34, %v3543_v51  ;;  %v2985_v22 = vadd.f32 %v11284_v55, %v15408_v57  ;;  %v3419_v45 = vadd.f32 %v13619_v10, %v2974_v9  ;;  %v15413_v34 = vld [vmem:[#allocation57_spill] sm:$0xff]  ;;  %v13771_v57 = vpop.f32.mrf.mxu1 }
 0x41d   :  { %v2976_v59 = vpop.f32.mrf.mxu0 }
 0x41e   :  { %v3422_v35 = vadd.f32 %v13619_v10, %v2985_v22  ;;  %v2977_v15 = vadd.f32 %v2976_v59, %v13288_v37  ;;  %11409 = vmatprep.mubr.msk.bf16.mxu1 %vm3734_vm7, %v3661_v61  ;;  %v3547_v36 = vmax.f32 %v3419_v45, 0.0  ;;  %v3549_v37 = vmax.f32 %v3421_v30, 0.0 }
 0x41f   :  { %v11287_v3 = vpop.f32.mrf.mxu0  ;;  %11382 = vmatmul.mubr.msk.bf16.gmra.mxu0 %vm368_vm3, %v1707_v25  ;;  %11410 = vmatmul.mubr.msk.bf16.gmra.mxu1 %vm3734_vm7, %v3662_v38  ;;  %v15415_v38 = vld [vmem:[#allocation60_spill] sm:$0xff] }
 0x420   :  { %v3420_v39 = vadd.f32 %v13619_v10, %v2977_v15  ;;  %v3550_v47 = vmax.f32 %v3422_v35, 0.0  ;;  %v2998_v58 = vadd.f32 %v11287_v3, %v15409_v13 }
 0x421   :  { %v2989_v4 = vpop.f32.mrf.mxu0 }
 0x422   :  { %v3548_v1 = vmax.f32 %v3420_v39, 0.0  ;;  %v2990_v8 = vadd.f32 %v2989_v4, %v13299_v63  ;;  %v3664_v44 = vpack.c.bf16 %v3550_v47, %v3549_v37  ;;  %v3425_v63 = vadd.f32 %v13619_v10, %v2998_v58  ;;  %v13780_v39 = vpop.f32.mrf.mxu1  ;;  %v15417_v37 = vld [vmem:[#allocation61_spill] sm:$0xff] }
 0x423   :  { %v11288_v50 = vpop.f32.mrf.mxu0 }
 0x424   :  { %v3663_v49 = vpack.c.bf16 %v3548_v1, %v3547_v36  ;;  %v3001_v19 = vadd.f32 %v11288_v50, %v15410_v26  ;;  %v3423_v12 = vadd.f32 %v13619_v10, %v2990_v8  ;;  %v3553_v51 = vmax.f32 %v3425_v63, 0.0  ;;  %v15416_v36 = vld [vmem:[#allocation62_spill] sm:$0xff] }
 0x425   :  { %v2992_v23 = vpop.f32.mrf.mxu0 }
 0x426   :  { %v3426_v62 = vadd.f32 %v13619_v10, %v3001_v19  ;;  %v2993_v0 = vadd.f32 %v2992_v23, %v15411_v24  ;;  %11413 = vmatprep.mubr.msk.bf16.mxu1 %vm3734_vm7, %v3663_v49  ;;  %v3551_v6 = vmax.f32 %v3423_v12, 0.0  ;;  %v15418_v49 = vld [vmem:[#allocation63_spill] sm:$0xff]  ;;  %v13785_v23 = vpop.f32.mrf.mxu1  ;;  %v15419_v24 = vld [vmem:[#allocation64_spill] sm:$0xff] }
 0x427   :  { %v11291_v43 = vpop.f32.mrf.mxu0  ;;  %11414 = vmatmul.mubr.msk.bf16.gmra.mxu1 %vm3734_vm7, %v3664_v44 }
 0x428   :  { %v3424_v48 = vadd.f32 %v13619_v10, %v2993_v0  ;;  %v3554_v41 = vmax.f32 %v3426_v62, 0.0  ;;  %v3014_v56 = vadd.f32 %v11291_v43, %v15413_v34 }
 0x429   :  { %v3005_v28 = vpop.f32.mrf.mxu0 }
 0x42a   :  { %v3552_v27 = vmax.f32 %v3424_v48, 0.0  ;;  %v3006_v11 = vadd.f32 %v3005_v28, %v15412_v29  ;;  %v3666_v55 = vpack.c.bf16 %v3554_v41, %v3553_v51  ;;  %v3429_v45 = vadd.f32 %v13619_v10, %v3014_v56  ;;  %v15421_v56 = vld [vmem:[#allocation65_spill] sm:$0xff] }
 0x42b   :  { %v11292_v9 = vpop.f32.mrf.mxu0 }
 0x42c   :  { %v3665_v52 = vpack.c.bf16 %v3552_v27, %v3551_v6  ;;  %v3017_v20 = vadd.f32 %v11292_v9, %v15414_v5  ;;  %v3427_v22 = vadd.f32 %v13619_v10, %v3006_v11  ;;  %v3557_v8 = vmax.f32 %v3429_v45, 0.0  ;;  %v13794_v6 = vpop.f32.mrf.mxu1  ;;  %v15420_v11 = vld [vmem:[#allocation66_spill] sm:$0xff]  ;;  %v15423_v45 = vld [vmem:[#allocation68_spill] sm:$0xff] }
 0x42d   :  { %v3008_v61 = vpop.f32.mrf.mxu0 }
 0x42e   :  { %v3430_v25 = vadd.f32 %v13619_v10, %v3017_v20  ;;  %v3009_v59 = vadd.f32 %v3008_v61, %v15415_v38  ;;  %11417 = vmatprep.mubr.msk.bf16.mxu1 %vm3734_vm7, %v3665_v52  ;;  %v3555_v47 = vmax.f32 %v3427_v22, 0.0  ;;  %v15422_v20 = vld [vmem:[#allocation67_spill] sm:$0xff] }
 0x42f   :  { %v11295_v35 = vpop.f32.mrf.mxu0  ;;  %11418 = vmatmul.mubr.msk.bf16.gmra.mxu1 %vm3734_vm7, %v3666_v55 }
 0x430   :  { %v3428_v15 = vadd.f32 %v13619_v10, %v3009_v59  ;;  %v3558_v30 = vmax.f32 %v3430_v25, 0.0  ;;  %v3030_v13 = vadd.f32 %v11295_v35, %v15417_v37  ;;  %v13799_v25 = vpop.f32.mrf.mxu1  ;;  %v15424_v37 = vld [vmem:[#allocation70_spill] sm:$0xff] }
 0x431   :  { %v3021_v3 = vpop.f32.mrf.mxu0 }
 0x432   :  { %v3556_v4 = vmax.f32 %v3428_v15, 0.0  ;;  %v3022_v1 = vadd.f32 %v3021_v3, %v15416_v36  ;;  %v3668_v19 = vpack.c.bf16 %v3558_v30, %v3557_v8  ;;  %v3433_v63 = vadd.f32 %v13619_v10, %v3030_v13  ;;  %v13808_v36 = vpop.f32.mrf.mxu1 }
 0x433   :  { %v11296_v58 = vpop.f32.mrf.mxu0 }
 0x434   :  { %v3667_v50 = vpack.c.bf16 %v3556_v4, %v3555_v47  ;;  %v3033_v26 = vadd.f32 %v11296_v58, %v15418_v49  ;;  %v3431_v12 = vadd.f32 %v13619_v10, %v3022_v1  ;;  %v3561_v34 = vmax.f32 %v3433_v63, 0.0 }
 0x435   :  { %v3024_v44 = vpop.f32.mrf.mxu0 }
 0x436   :  { %v3434_v62 = vadd.f32 %v13619_v10, %v3033_v26  ;;  %v3025_v0 = vadd.f32 %v3024_v44, %v15419_v24  ;;  %11421 = vmatprep.mubr.msk.bf16.mxu1 %vm3734_vm7, %v3667_v50  ;;  %v3559_v27 = vmax.f32 %v3431_v12, 0.0  ;;  %v15425_v50 = vld [vmem:[#allocation69_spill] sm:$0xff]  ;;  %v15426_v44 = vld [vmem:[#allocation71_spill] sm:$0xff] }
 0x437   :  { %v11299_v43 = vpop.f32.mrf.mxu0  ;;  %11422 = vmatmul.mubr.msk.bf16.gmra.mxu1 %vm3734_vm7, %v3668_v19 }
 0x438   :  { %v3432_v48 = vadd.f32 %v13619_v10, %v3025_v0  ;;  %v3562_v41 = vmax.f32 %v3434_v62, 0.0  ;;  %v3046_v9 = vadd.f32 %v11299_v43, %v15421_v56  ;;  %v13813_v0 = vpop.f32.mrf.mxu1 }
 0x439   :  { %v3037_v28 = vpop.f32.mrf.mxu0 }
 0x43a   :  { %v3560_v29 = vmax.f32 %v3432_v48, 0.0  ;;  %v3038_v51 = vadd.f32 %v3037_v28, %v15420_v11  ;;  %v3670_v61 = vpack.c.bf16 %v3562_v41, %v3561_v34  ;;  %v3437_v15 = vadd.f32 %v13619_v10, %v3046_v9  ;;  %v15427_v48 = vld [vmem:[#allocation72_spill] sm:$0xff]  ;;  %v13822_v34 = vpop.f32.mrf.mxu1 }
 0x43b   :  { %v11300_v52 = vpop.f32.mrf.mxu0 }
 0x43c   :  { %v3669_v5 = vpack.c.bf16 %v3560_v29, %v3559_v27  ;;  %v3049_v55 = vadd.f32 %v11300_v52, %v15422_v20  ;;  %v3435_v38 = vadd.f32 %v13619_v10, %v3038_v51  ;;  %v3565_v58 = vmax.f32 %v3437_v15, 0.0  ;;  %v15428_v52 = vld [vmem:[#allocation74_spill] sm:$0xff] }
 0x43d   :  { %v3040_v22 = vpop.f32.mrf.mxu0 }
 0x43e   :  { %v3438_v59 = vadd.f32 %v13619_v10, %v3049_v55  ;;  %v3041_v35 = vadd.f32 %v3040_v22, %v15423_v45  ;;  %11425 = vmatprep.mubr.msk.bf16.mxu1 %vm3734_vm7, %v3669_v5  ;;  %v3563_v1 = vmax.f32 %v3435_v38, 0.0  ;;  %v15429_v55 = vld [vmem:[#allocation73_spill] sm:$0xff] }
 0x43f   :  { %v11303_v30 = vpop.f32.mrf.mxu0  ;;  %11426 = vmatmul.mubr.msk.bf16.gmra.mxu1 %vm3734_vm7, %v3670_v61 }
 0x440   :  { %v3436_v3 = vadd.f32 %v13619_v10, %v3041_v35  ;;  %v3566_v47 = vmax.f32 %v3438_v59, 0.0  ;;  %v3062_v49 = vadd.f32 %v11303_v30, %v15425_v50  ;;  %v15430_v59 = vld [vmem:[#allocation75_spill] sm:$0xff]  ;;  %v13827_v30 = vpop.f32.mrf.mxu1 }
 0x441   :  { %v3053_v4 = vpop.f32.mrf.mxu0 }
 0x442   :  { %v3564_v8 = vmax.f32 %v3436_v3, 0.0  ;;  %v3054_v13 = vadd.f32 %v3053_v4, %v15424_v37  ;;  %v3672_v62 = vpack.c.bf16 %v3566_v47, %v3565_v58  ;;  %v3441_v28 = vadd.f32 %v13619_v10, %v3062_v49  ;;  %v15431_v4 = vld [vmem:[#allocation76_spill] sm:$0xff]  ;;  %v13836_v49 = vpop.f32.mrf.mxu1 }
 0x443   :  { %v11304_v26 = vpop.f32.mrf.mxu0 }
 0x444   :  { %v3671_v19 = vpack.c.bf16 %v3564_v8, %v3563_v1  ;;  %v3065_v12 = vadd.f32 %v11304_v26, %v15426_v44  ;;  %v3439_v63 = vadd.f32 %v13619_v10, %v3054_v13  ;;  %v3569_v20 = vmax.f32 %v3441_v28, 0.0  ;;  %v15432_v44 = vld [vmem:[#allocation78_spill] sm:$0xff] }
 0x445   :  { %v3056_v24 = vpop.f32.mrf.mxu0 }
 0x446   :  { %v3442_v43 = vadd.f32 %v13619_v10, %v3065_v12  ;;  %v3057_v41 = vadd.f32 %v3056_v24, %v15427_v48  ;;  %11429 = vmatprep.mubr.msk.bf16.mxu1 %vm3734_vm7, %v3671_v19  ;;  %v3567_v56 = vmax.f32 %v3439_v63, 0.0  ;;  %v15433_v24 = vld [vmem:[#allocation77_spill] sm:$0xff] }
 0x447   :  { %v11307_v27 = vpop.f32.mrf.mxu0  ;;  %11430 = vmatmul.mubr.msk.bf16.gmra.mxu1 %vm3734_vm7, %v3672_v62 }
 0x448   :  { %v3440_v29 = vadd.f32 %v13619_v10, %v3057_v41  ;;  %v3570_v11 = vmax.f32 %v3442_v43, 0.0  ;;  %v3078_v61 = vadd.f32 %v11307_v27, %v15429_v55  ;;  %v15434_v41 = vld [vmem:[#allocation79_spill] sm:$0xff] }
 0x449   :  { %v3069_v51 = vpop.f32.mrf.mxu0 }
 0x44a   :  { %v3568_v9 = vmax.f32 %v3440_v29, 0.0  ;;  %v3070_v5 = vadd.f32 %v3069_v51, %v15428_v52  ;;  %v3674_v35 = vpack.c.bf16 %v3570_v11, %v3569_v20  ;;  %v3445_v8 = vadd.f32 %v13619_v10, %v3078_v61  ;;  %v13841_v11 = vpop.f32.mrf.mxu1 }
 0x44b   :  { %v11308_v22 = vpop.f32.mrf.mxu0 }
 0x44c   :  { %v3673_v38 = vpack.c.bf16 %v3568_v9, %v3567_v56  ;;  %v3081_v45 = vadd.f32 %v11308_v22, %v15430_v59  ;;  %v3443_v3 = vadd.f32 %v13619_v10, %v3070_v5  ;;  %v3573_v62 = vmax.f32 %v3445_v8, 0.0  ;;  %v15435_v9 = vld [vmem:[#allocation80_spill] sm:$0xff] }
 0x44d   :  { %v3072_v15 = vpop.f32.mrf.mxu0 }
 0x44e   :  { %v3446_v47 = vadd.f32 %v13619_v10, %v3081_v45  ;;  %v3073_v1 = vadd.f32 %v3072_v15, %v15431_v4  ;;  %11433 = vmatprep.mubr.msk.bf16.mxu1 %vm3734_vm7, %v3673_v38  ;;  %v3571_v26 = vmax.f32 %v3443_v3, 0.0  ;;  %v13850_v38 = vpop.f32.mrf.mxu1 }
 0x44f   :  { %v11311_v37 = vpop.f32.mrf.mxu0  ;;  %11434 = vmatmul.mubr.msk.bf16.gmra.mxu1 %vm3734_vm7, %v3674_v35  ;;  %v15436_v35 = vld [vmem:[#allocation82_spill] sm:$0xff] }
 0x450   :  { %v3444_v13 = vadd.f32 %v13619_v10, %v3073_v1  ;;  %v3574_v58 = vmax.f32 %v3446_v47, 0.0  ;;  %v3094_v63 = vadd.f32 %v11311_v37, %v15433_v24  ;;  %v15437_v47 = vld [vmem:[#allocation81_spill] sm:$0xff]  ;;  %v15438_v37 = vld [vmem:[#allocation83_spill] sm:$0xff] }
 0x451   :  { %v3085_v50 = vpop.f32.mrf.mxu0 }
 0x452   :  { %v3572_v19 = vmax.f32 %v3444_v13, 0.0  ;;  %v3086_v12 = vadd.f32 %v3085_v50, %v15432_v44  ;;  %v3676_v27 = vpack.c.bf16 %v3574_v58, %v3573_v62  ;;  %v3449_v5 = vadd.f32 %v13619_v10, %v3094_v63 }
 0x453   :  { %v11312_v43 = vpop.f32.mrf.mxu0 }
 0x454   :  { %v3675_v48 = vpack.c.bf16 %v3572_v19, %v3571_v26  ;;  %v3097_v28 = vadd.f32 %v11312_v43, %v15434_v41  ;;  %v3447_v51 = vadd.f32 %v13619_v10, %v3086_v12  ;;  %v3577_v3 = vmax.f32 %v3449_v5, 0.0  ;;  %v13855_v26 = vpop.f32.mrf.mxu1  ;;  %v15439_v12 = vld [vmem:[#allocation84_spill] sm:$0xff] }
 0x455   :  { %v3088_v29 = vpop.f32.mrf.mxu0 }
 0x456   :  { %v3450_v56 = vadd.f32 %v13619_v10, %v3097_v28  ;;  %v3089_v52 = vadd.f32 %v3088_v29, %v15435_v9  ;;  %11437 = vmatprep.mubr.msk.bf16.mxu1 %vm3734_vm7, %v3675_v48  ;;  %v3575_v59 = vmax.f32 %v3447_v51, 0.0  ;;  %v13864_v28 = vpop.f32.mrf.mxu1  ;;  %v15440_v51 = vld [vmem:[#allocation86_spill] sm:$0xff] }
 0x457   :  { %v11315_v20 = vpop.f32.mrf.mxu0  ;;  %11438 = vmatmul.mubr.msk.bf16.gmra.mxu1 %vm3734_vm7, %v3676_v27 }
 0x458   :  { %v3448_v55 = vadd.f32 %v13619_v10, %v3089_v52  ;;  %v3578_v61 = vmax.f32 %v3450_v56, 0.0  ;;  %v3110_v4 = vadd.f32 %v11315_v20, %v15437_v47  ;;  %v15441_v52 = vld [vmem:[#allocation85_spill] sm:$0xff]  ;;  %v15443_v47 = vld [vmem:[#allocation88_spill] sm:$0xff] }
 0x459   :  { %v3101_v22 = vpop.f32.mrf.mxu0 }
 0x45a   :  { %v3576_v45 = vmax.f32 %v3448_v55, 0.0  ;;  %v3102_v15 = vadd.f32 %v3101_v22, %v15436_v35  ;;  %v3678_v58 = vpack.c.bf16 %v3578_v61, %v3577_v3  ;;  %v3453_v24 = vadd.f32 %v13619_v10, %v3110_v4  ;;  %v15442_v61 = vld [vmem:[#allocation87_spill] sm:$0xff]  ;;  %v13869_v35 = vpop.f32.mrf.mxu1 }
 0x45b   :  { %v11316_v1 = vpop.f32.mrf.mxu0 }
 0x45c   :  { %v3677_v8 = vpack.c.bf16 %v3576_v45, %v3575_v59  ;;  %v3113_v13 = vadd.f32 %v11316_v1, %v15438_v37  ;;  %v3451_v19 = vadd.f32 %v13619_v10, %v3102_v15  ;;  %v3581_v9 = vmax.f32 %v3453_v24, 0.0 }
 0x45d   :  { %v3104_v50 = vpop.f32.mrf.mxu0 }
 0x45e   :  { %v3454_v44 = vadd.f32 %v13619_v10, %v3113_v13  ;;  %v3105_v62 = vadd.f32 %v3104_v50, %v15439_v12  ;;  %11441 = vmatprep.mubr.msk.bf16.mxu1 %vm3734_vm7, %v3677_v8  ;;  %v3579_v27 = vmax.f32 %v3451_v19, 0.0  ;;  %v13878_v50 = vpop.f32.mrf.mxu1  ;;  %v15444_v12 = vld [vmem:[#allocation90_spill] sm:$0xff] }
 0x45f   :  { %v11319_v63 = vpop.f32.mrf.mxu0  ;;  %11442 = vmatmul.mubr.msk.bf16.gmra.mxu1 %vm3734_vm7, %v3678_v58 }
 0x460   :  { %v3452_v43 = vadd.f32 %v13619_v10, %v3105_v62  ;;  %v3582_v48 = vmax.f32 %v3454_v44, 0.0  ;;  %v3126_v5 = vadd.f32 %v11319_v63, %v15441_v52  ;;  %v15445_v63 = vld [vmem:[#allocation89_spill] sm:$0xff] }
 0x461   :  { %v3117_v41 = vpop.f32.mrf.mxu0 }
 0x462   :  { %v3580_v29 = vmax.f32 %v3452_v43, 0.0  ;;  %v3118_v56 = vadd.f32 %v3117_v41, %v15440_v51  ;;  %v3680_v59 = vpack.c.bf16 %v3582_v48, %v3581_v9  ;;  %v3457_v1 = vadd.f32 %v13619_v10, %v3126_v5  ;;  %v13883_v9 = vpop.f32.mrf.mxu1 }
 0x463   :  { %v11320_v20 = vpop.f32.mrf.mxu0 }
 0x464   :  { %v3679_v55 = vpack.c.bf16 %v3580_v29, %v3579_v27  ;;  %v3129_v22 = vadd.f32 %v11320_v20, %v15442_v61  ;;  %v3455_v15 = vadd.f32 %v13619_v10, %v3118_v56  ;;  %v3585_v24 = vmax.f32 %v3457_v1, 0.0  ;;  %v15446_v27 = vld [vmem:[#allocation91_spill] sm:$0xff]  ;;  %v15447_v20 = vld [vmem:[#allocation92_spill] sm:$0xff]  ;;  %v15448_v1 = vld [vmem:[#allocation94_spill] sm:$0xff] }
 0x465   :  { %v3120_v45 = vpop.f32.mrf.mxu0 }
 0x466   :  { %v3458_v3 = vadd.f32 %v13619_v10, %v3129_v22  ;;  %v3121_v4 = vadd.f32 %v3120_v45, %v15443_v47  ;;  %11445 = vmatprep.mubr.msk.bf16.mxu1 %vm3734_vm7, %v3679_v55  ;;  %v3583_v19 = vmax.f32 %v3455_v15, 0.0 }
 0x467   :  { %v11323_v8 = vpop.f32.mrf.mxu0  ;;  %11446 = vmatmul.mubr.msk.bf16.gmra.mxu1 %vm3734_vm7, %v3680_v59 }
 0x468   :  { %v3456_v37 = vadd.f32 %v13619_v10, %v3121_v4  ;;  %v3586_v13 = vmax.f32 %v3458_v3, 0.0  ;;  %v3142_v43 = vadd.f32 %v11323_v8, %v15445_v63  ;;  %v13892_v3 = vpop.f32.mrf.mxu1 }
 0x469   :  { %v3133_v58 = vpop.f32.mrf.mxu0 }
 0x46a   :  { %v3584_v44 = vmax.f32 %v3456_v37, 0.0  ;;  %v3134_v62 = vadd.f32 %v3133_v58, %v15444_v12  ;;  %v3682_v51 = vpack.c.bf16 %v3586_v13, %v3585_v24  ;;  %v3461_v61 = vadd.f32 %v13619_v10, %v3142_v43  ;;  %v15449_v13 = vld [vmem:[#allocation93_spill] sm:$0xff]  ;;  %v15450_v12 = vld [vmem:[#allocation95_spill] sm:$0xff]  ;;  %v13897_v43 = vpop.f32.mrf.mxu1 }
 0x46b   :  { %v11324_v48 = vpop.f32.mrf.mxu0 }
 0x46c   :  { %v3681_v41 = vpack.c.bf16 %v3584_v44, %v3583_v19  ;;  %v3145_v29 = vadd.f32 %v11324_v48, %v15446_v27  ;;  %v3459_v52 = vadd.f32 %v13619_v10, %v3134_v62  ;;  %v3589_v37 = vmax.f32 %v3461_v61, 0.0  ;;  %v15451_v27 = vld [vmem:[#allocation96_spill] sm:$0xff] }
 0x46d   :  { %v3136_v56 = vpop.f32.mrf.mxu0 }
 0x46e   :  { %v3462_v5 = vadd.f32 %v13619_v10, %v3145_v29  ;;  %v3137_v55 = vadd.f32 %v3136_v56, %v15447_v20  ;;  %11449 = vmatprep.mubr.msk.bf16.mxu1 %vm3734_vm7, %v3681_v41  ;;  %v3587_v47 = vmax.f32 %v3459_v52, 0.0 }
 0x46f   :  { %v11327_v22 = vpop.f32.mrf.mxu0  ;;  %11450 = vmatmul.mubr.msk.bf16.gmra.mxu1 %vm3734_vm7, %v3682_v51 }
 0x470   :  { %v3460_v59 = vadd.f32 %v13619_v10, %v3137_v55  ;;  %v3590_v45 = vmax.f32 %v3462_v5, 0.0  ;;  %v3158_v58 = vadd.f32 %v11327_v22, %v15449_v13  ;;  %v13906_v55 = vpop.f32.mrf.mxu1 }
 0x471   :  { %v3149_v15 = vpop.f32.mrf.mxu0 }
 0x472   :  { %v3588_v4 = vmax.f32 %v3460_v59, 0.0  ;;  %v3150_v8 = vadd.f32 %v3149_v15, %v15448_v1  ;;  %v3684_v24 = vpack.c.bf16 %v3590_v45, %v3589_v37  ;;  %v3465_v51 = vadd.f32 %v13619_v10, %v3158_v58  ;;  %v15452_v59 = vld [vmem:[#allocation98_spill] sm:$0xff]  ;;  %v15454_v37 = vld [vmem:[#allocation99_spill] sm:$0xff] }
 0x473   :  { %v11328_v19 = vpop.f32.mrf.mxu0 }
 0x474   :  { %v3683_v44 = vpack.c.bf16 %v3588_v4, %v3587_v47  ;;  %v3161_v62 = vadd.f32 %v11328_v19, %v15450_v12  ;;  %v3463_v48 = vadd.f32 %v13619_v10, %v3150_v8  ;;  %v3593_v15 = vmax.f32 %v3465_v51, 0.0  ;;  %v15453_v47 = vld [vmem:[#allocation97_spill] sm:$0xff] }
 0x475   :  { %v3152_v63 = vpop.f32.mrf.mxu0 }
 0x476   :  { %v3466_v41 = vadd.f32 %v13619_v10, %v3161_v62  ;;  %v3153_v29 = vadd.f32 %v3152_v63, %v15451_v27  ;;  %11453 = vmatprep.mubr.msk.bf16.mxu1 %vm3734_vm7, %v3683_v44  ;;  %v3591_v61 = vmax.f32 %v3463_v48, 0.0  ;;  %v13911_v44 = vpop.f32.mrf.mxu1 }
 0x477   :  { %v11331_v56 = vpop.f32.mrf.mxu0  ;;  %11454 = vmatmul.mubr.msk.bf16.gmra.mxu1 %vm3734_vm7, %v3684_v24  ;;  %v15455_v24 = vld [vmem:[#allocation100_spill] sm:$0xff] }
 0x478   :  { %v3464_v52 = vadd.f32 %v13619_v10, %v3153_v29  ;;  %v3594_v5 = vmax.f32 %v3466_v41, 0.0  ;;  %v3174_v4 = vadd.f32 %v11331_v56, %v15453_v47  ;;  %v13920_v56 = vpop.f32.mrf.mxu1 }
 0x479   :  { %v3165_v20 = vpop.f32.mrf.mxu0 }
 0x47a   :  { %v3592_v22 = vmax.f32 %v3464_v52, 0.0  ;;  %v3166_v45 = vadd.f32 %v3165_v20, %v15452_v59  ;;  %v3686_v58 = vpack.c.bf16 %v3594_v5, %v3593_v15  ;;  %v3469_v48 = vadd.f32 %v13619_v10, %v3174_v4 }
 0x47b   :  { %v11332_v1 = vpop.f32.mrf.mxu0 }
 0x47c   :  { %v3685_v8 = vpack.c.bf16 %v3592_v22, %v3591_v61  ;;  %v3177_v13 = vadd.f32 %v11332_v1, %v15454_v37  ;;  %v3467_v12 = vadd.f32 %v13619_v10, %v3166_v45  ;;  %v3597_v61 = vmax.f32 %v3469_v48, 0.0  ;;  %v15456_v22 = vld [vmem:[#allocation101_spill] sm:$0xff] }
 0x47d   :  { %v3168_v19 = vpop.f32.mrf.mxu0 }
 0x47e   :  { %v3470_v62 = vadd.f32 %v13619_v10, %v3177_v13  ;;  %v3169_v63 = vadd.f32 %v3168_v19, %v15455_v24  ;;  %11457 = vmatprep.mubr.msk.bf16.mxu1 %vm3734_vm7, %v3685_v8  ;;  %v3595_v52 = vmax.f32 %v3467_v12, 0.0  ;;  %v13925_v8 = vpop.f32.mrf.mxu1 }
 0x47f   :  { %v11335_v41 = vpop.f32.mrf.mxu0  ;;  %11458 = vmatmul.mubr.msk.bf16.gmra.mxu1 %vm3734_vm7, %v3686_v58 }
 0x480   :  { %v3468_v27 = vadd.f32 %v13619_v10, %v3169_v63  ;;  %v3598_v29 = vmax.f32 %v3470_v62, 0.0  ;;  %v3190_v59 = vadd.f32 %v11335_v41, %v15456_v22  ;;  %v13934_v24 = vpop.f32.mrf.mxu1 }
 0x481   :  { %v3181_v51 = vpop.f32.mrf.mxu0 }
 0x482   :  { %v3596_v5 = vmax.f32 %v3468_v27, 0.0  ;;  %v3182_v20 = vadd.f32 %v3181_v51, %v13624_v40  ;;  %v3688_v4 = vpack.c.bf16 %v3598_v29, %v3597_v61  ;;  %v3473_v40 = vadd.f32 %v13619_v10, %v3190_v59  ;;  %v13939_v61 = vpop.f32.mrf.mxu1 }
 0x483   :  { %v11336_v45 = vpop.f32.mrf.mxu0 }
 0x484   :  { %v3687_v15 = vpack.c.bf16 %v3596_v5, %v3595_v52  ;;  %v3193_v47 = vadd.f32 %v11336_v45, %v13635_v32  ;;  %v3471_v37 = vadd.f32 %v13619_v10, %v3182_v20  ;;  %v3601_v27 = vmax.f32 %v3473_v40, 0.0 }
 0x485   :  { %v3184_v1 = vpop.f32.mrf.mxu0 }
 0x486   :  { %v3474_v13 = vadd.f32 %v13619_v10, %v3193_v47  ;;  %v3185_v58 = vadd.f32 %v3184_v1, %v13642_v14  ;;  %11461 = vmatprep.mubr.msk.bf16.mxu1 %vm3734_vm7, %v3687_v15  ;;  %v3599_v63 = vmax.f32 %v3471_v37, 0.0 }
 0x487   :  { %v11339_v19 = vpop.f32.mrf.mxu0  ;;  %11462 = vmatmul.mubr.msk.bf16.gmra.mxu1 %vm3734_vm7, %v3688_v4  ;;  %v13948_v4 = vpop.f32.mrf.mxu1 }
 0x488   :  { %v3472_v12 = vadd.f32 %v13619_v10, %v3185_v58  ;;  %v3602_v32 = vmax.f32 %v3474_v13, 0.0  ;;  %v3206_v14 = vadd.f32 %v11339_v19, %v13655_v42 }
 0x489   :  { %v3197_v62 = vpop.f32.mrf.mxu0 }
 0x48a   :  { %v3600_v48 = vmax.f32 %v3472_v12, 0.0  ;;  %v3198_v41 = vadd.f32 %v3197_v62, %v13662_v33  ;;  %v3690_v5 = vpack.c.bf16 %v3602_v32, %v3601_v27  ;;  %v3477_v33 = vadd.f32 %v13619_v10, %v3206_v14 }
 0x48b   :  { %v11340_v29 = vpop.f32.mrf.mxu0 }
 0x48c   :  { %v3689_v51 = vpack.c.bf16 %v3600_v48, %v3599_v63  ;;  %v3209_v52 = vadd.f32 %v11340_v29, %v13675_v18  ;;  %v3475_v22 = vadd.f32 %v13619_v10, %v3198_v41  ;;  %v3605_v58 = vmax.f32 %v3477_v33, 0.0  ;;  %v13953_v63 = vpop.f32.mrf.mxu1 }
 0x48d   :  { %v3200_v20 = vpop.f32.mrf.mxu0 }
 0x48e   :  { %v3478_v59 = vadd.f32 %v13619_v10, %v3209_v52  ;;  %v3201_v45 = vadd.f32 %v3200_v20, %v13682_v16  ;;  %11465 = vmatprep.mubr.msk.bf16.mxu1 %vm3734_vm7, %v3689_v51  ;;  %v3603_v1 = vmax.f32 %v3475_v22, 0.0  ;;  %v13962_v51 = vpop.f32.mrf.mxu1 }
 0x48f   :  { %v11343_v15 = vpop.f32.mrf.mxu0  ;;  %11466 = vmatmul.mubr.msk.bf16.gmra.mxu1 %vm3734_vm7, %v3690_v5 }
 0x490   :  { %v3476_v42 = vadd.f32 %v13619_v10, %v3201_v45  ;;  %v3606_v18 = vmax.f32 %v3478_v59, 0.0  ;;  %v3222_v16 = vadd.f32 %v11343_v15, %v13695_v60 }
 0x491   :  { %v3213_v47 = vpop.f32.mrf.mxu0 }
 0x492   :  { %v3604_v37 = vmax.f32 %v3476_v42, 0.0  ;;  %v3214_v13 = vadd.f32 %v3213_v47, %v13702_v54  ;;  %v3692_v32 = vpack.c.bf16 %v3606_v18, %v3605_v58  ;;  %v3481_v54 = vadd.f32 %v13619_v10, %v3222_v16  ;;  %v13967_v18 = vpop.f32.mrf.mxu1 }
 0x493   :  { %v11344_v40 = vpop.f32.mrf.mxu0 }
 0x494   :  { %v3691_v19 = vpack.c.bf16 %v3604_v37, %v3603_v1  ;;  %v3225_v12 = vadd.f32 %v11344_v40, %v13715_v21  ;;  %v3479_v48 = vadd.f32 %v13619_v10, %v3214_v13  ;;  %v3609_v22 = vmax.f32 %v3481_v54, 0.0  ;;  %v13979_v16 = vpop.f32.mrf.mxu1 }
 0x495   :  { %v3216_v62 = vpop.f32.mrf.mxu0 }
 0x496   :  { %v3482_v41 = vadd.f32 %v13619_v10, %v3225_v12  ;;  %v3217_v27 = vadd.f32 %v3216_v62, %v13722_v2  ;;  %11469 = vmatprep.mubr.msk.bf16.mxu1 %vm3734_vm7, %v3691_v19  ;;  %v3607_v52 = vmax.f32 %v3479_v48, 0.0 }
 0x497   :  { %v11347_v14 = vpop.f32.mrf.mxu0  ;;  %11470 = vmatmul.mubr.msk.bf16.gmra.mxu1 %vm3734_vm7, %v3692_v32 }
 0x498   :  { %v3480_v60 = vadd.f32 %v13619_v10, %v3217_v27  ;;  %v3610_v21 = vmax.f32 %v3482_v41, 0.0  ;;  %v3238_v2 = vadd.f32 %v11347_v14, %v13735_v7  ;;  %v13970_v10 = vld [vmem:[%s12435_s3] ss:$0 sm:$0xff]  ;;  %v13984_v14 = vpop.f32.mrf.mxu1  ;;  %s15466_s3 = sld [smem:[#allocation9_spill]] }
 0x499   :  { %v3229_v29 = vpop.f32.mrf.mxu0 }
 0x49a   :  { %v3608_v5 = vmax.f32 %v3480_v60, 0.0  ;;  %v3230_v20 = vadd.f32 %v3229_v29, %v13742_v53  ;;  %v3694_v15 = vpack.c.bf16 %v3610_v21, %v3609_v22  ;;  %v3485_v7 = vadd.f32 %v13970_v10, %v3238_v2 }
 0x49b   :  { %v11348_v59 = vpop.f32.mrf.mxu0 }
 0x49c   :  { %v3693_v45 = vpack.c.bf16 %v3608_v5, %v3607_v52  ;;  %v3241_v33 = vadd.f32 %v11348_v59, %v13752_v17  ;;  %v3483_v47 = vadd.f32 %v13970_v10, %v3230_v20  ;;  %v3613_v32 = vmax.f32 %v3485_v7, 0.0  ;;  %v13993_v5 = vpop.f32.mrf.mxu1 }
 0x49d   :  { %v3232_v42 = vpop.f32.mrf.mxu0 }
 0x49e   :  { %v3486_v1 = vadd.f32 %v13970_v10, %v3241_v33  ;;  %v3233_v37 = vadd.f32 %v3232_v42, %v13757_v31  ;;  %11473 = vmatprep.mubr.msk.bf16.mxu1 %vm3734_vm7, %v3693_v45  ;;  %v3611_v40 = vmax.f32 %v3483_v47, 0.0 }
 0x49f   :  { %v11351_v53 = vpop.f32.mrf.mxu0  ;;  %11474 = vmatmul.mubr.msk.bf16.gmra.mxu1 %vm3734_vm7, %v3694_v15 }
 0x4a0   :  { %v3484_v17 = vadd.f32 %v13970_v10, %v3233_v37  ;;  %v3614_v13 = vmax.f32 %v3486_v1, 0.0  ;;  %v3254_v31 = vadd.f32 %v11351_v53, %v13766_v46  ;;  %v13998_v1 = vpop.f32.mrf.mxu1 }
 0x4a1   :  { %v3245_v58 = vpop.f32.mrf.mxu0 }
 0x4a2   :  { %v3612_v19 = vmax.f32 %v3484_v17, 0.0  ;;  %v3246_v12 = vadd.f32 %v3245_v58, %v13771_v57  ;;  %v3696_v27 = vpack.c.bf16 %v3614_v13, %v3613_v32  ;;  %v3489_v57 = vadd.f32 %v13970_v10, %v3254_v31  ;;  %v14007_v58 = vpop.f32.mrf.mxu1 }
 0x4a3   :  { %v11352_v62 = vpop.f32.mrf.mxu0 }
 0x4a4   :  { %v3695_v48 = vpack.c.bf16 %v3612_v19, %v3611_v40  ;;  %v3257_v41 = vadd.f32 %v11352_v62, %v13780_v39  ;;  %v3487_v60 = vadd.f32 %v13970_v10, %v3246_v12  ;;  %v3617_v45 = vmax.f32 %v3489_v57, 0.0 }
 0x4a5   :  { %v3248_v54 = vpop.f32.mrf.mxu0 }
 0x4a6   :  { %v3490_v21 = vadd.f32 %v13970_v10, %v3257_v41  ;;  %v3249_v29 = vadd.f32 %v3248_v54, %v13785_v23  ;;  %11477 = vmatprep.mubr.msk.bf16.mxu1 %vm3734_vm7, %v3695_v48  ;;  %v3615_v22 = vmax.f32 %v3487_v60, 0.0  ;;  %v14012_v54 = vpop.f32.mrf.mxu1 }
 0x4a7   :  { %v11355_v52 = vpop.f32.mrf.mxu0  ;;  %11478 = vmatmul.mubr.msk.bf16.gmra.mxu1 %vm3734_vm7, %v3696_v27 }
 0x4a8   :  { %v3488_v46 = vadd.f32 %v13970_v10, %v3249_v29  ;;  %v3618_v39 = vmax.f32 %v3490_v21, 0.0  ;;  %v3270_v23 = vadd.f32 %v11355_v52, %v13794_v6 }
 0x4a9   :  { %v3261_v20 = vpop.f32.mrf.mxu0 }
 0x4aa   :  { %v3616_v2 = vmax.f32 %v3488_v46, 0.0  ;;  %v3262_v59 = vadd.f32 %v3261_v20, %v13799_v25  ;;  %v3698_v47 = vpack.c.bf16 %v3618_v39, %v3617_v45  ;;  %v3493_v25 = vadd.f32 %v13970_v10, %v3270_v23  ;;  %v14023_v45 = vld [vmem:[%s12445_s14] ss:$0 sm:$0xff] }
 0x4ab   :  { %v11356_v33 = vpop.f32.mrf.mxu0 }
 0x4ac   :  { %v3697_v15 = vpack.c.bf16 %v3616_v2, %v3615_v22  ;;  %v3273_v42 = vadd.f32 %v11356_v33, %v13808_v36  ;;  %v3491_v7 = vadd.f32 %v13970_v10, %v3262_v59  ;;  %v3621_v31 = vmax.f32 %v3493_v25, 0.0 }
 0x4ad   :  { %v3264_v37 = vpop.f32.mrf.mxu0 }
 0x4ae   :  { %v3494_v53 = vadd.f32 %v13970_v10, %v3273_v42  ;;  %v3265_v17 = vadd.f32 %v3264_v37, %v13813_v0  ;;  %11481 = vmatprep.mubr.msk.bf16.mxu1 %vm3734_vm7, %v3697_v15  ;;  %v3619_v19 = vmax.f32 %v3491_v7, 0.0 }
 0x4af   :  { %v11359_v13 = vpop.f32.mrf.mxu0  ;;  %11482 = vmatmul.mubr.msk.bf16.gmra.mxu1 %vm3734_vm7, %v3698_v47 }
 0x4b0   :  { %v3492_v6 = vadd.f32 %v13970_v10, %v3265_v17  ;;  %v3622_v36 = vmax.f32 %v3494_v53, 0.0  ;;  %v3286_v0 = vadd.f32 %v11359_v13, %v13822_v34 }
 0x4b1   :  { %v3277_v40 = vpop.f32.mrf.mxu0 }
 0x4b2   :  { %v3620_v12 = vmax.f32 %v3492_v6, 0.0  ;;  %v3278_v32 = vadd.f32 %v3277_v40, %v13827_v30  ;;  %v3700_v27 = vpack.c.bf16 %v3622_v36, %v3621_v31  ;;  %v3497_v30 = vadd.f32 %v13970_v10, %v3286_v0 }
 0x4b3   :  { %v11360_v62 = vpop.f32.mrf.mxu0 }
 0x4b4   :  { %v3699_v48 = vpack.c.bf16 %v3620_v12, %v3619_v19  ;;  %v3289_v41 = vadd.f32 %v11360_v62, %v13836_v49  ;;  %v3495_v21 = vadd.f32 %v13970_v10, %v3278_v32 }
 0x4b5   :  { %v3280_v60 = vpop.f32.mrf.mxu0 }
 0x4b6   :  { %v3498_v29 = vadd.f32 %v13970_v10, %v3289_v41  ;;  %v3281_v57 = vadd.f32 %v3280_v60, %v13841_v11  ;;  %11485 = vmatprep.mubr.msk.bf16.mxu1 %vm3734_vm7, %v3699_v48  ;;  %v3623_v22 = vmax.f32 %v3495_v21, 0.0  ;;  %v3625_v11 = vmax.f32 %v3497_v30, 0.0 }
 0x4b7   :  { %v11363_v34 = vpop.f32.mrf.mxu0  ;;  %v11391_v52 = vpop.f32.mrf.mxu1  ;;  %11486 = vmatmul.mubr.msk.bf16.gmra.mxu1 %vm3734_vm7, %v3700_v27 }
 0x4b8   :  { %v3496_v49 = vadd.f32 %v13970_v10, %v3281_v57  ;;  %v3626_v46 = vmax.f32 %v3498_v29, 0.0  ;;  %v3302_v59 = vadd.f32 %v11363_v34, %v13850_v38  ;;  %v3973_v7 = vadd.f32 %v11391_v52, %v14023_v45 }
 0x4b9   :  { %v3293_v39 = vpop.f32.mrf.mxu0  ;;  %v3964_v20 = vpop.f32.mrf.mxu1 }
 0x4ba   :  { %v3624_v2 = vmax.f32 %v3496_v49, 0.0  ;;  %v3294_v23 = vadd.f32 %v3293_v39, %v13855_v26  ;;  %v3702_v37 = vpack.c.bf16 %v3626_v46, %v3625_v11  ;;  %v3501_v25 = vadd.f32 %v13970_v10, %v3302_v59 }
 0x4bb   :  { %v11364_v33 = vpop.f32.mrf.mxu0  ;;  %v11392_v15 = vpop.f32.mrf.mxu1  ;;  %v3965_v26 = vadd.f32 %v14023_v45, %v3964_v20  ;;  %v4477_v12 = vmax.f32 %v3973_v7, 0.0 }
 0x4bc   :  { %v3701_v42 = vpack.c.bf16 %v3624_v2, %v3623_v22  ;;  %v3305_v47 = vadd.f32 %v11364_v33, %v13864_v28  ;;  %v3499_v13 = vadd.f32 %v13970_v10, %v3294_v23  ;;  %v3629_v48 = vmax.f32 %v3501_v25, 0.0 }
 0x4bd   :  { %v3296_v53 = vpop.f32.mrf.mxu0  ;;  %v3967_v17 = vpop.f32.mrf.mxu1  ;;  %v4475_v60 = vmax.f32 %v3965_v26, 0.0  ;;  %v3976_v21 = vadd.f32 %v11392_v15, %v14023_v45 }
 0x4be   :  { %v3502_v38 = vadd.f32 %v13970_v10, %v3305_v47  ;;  %v3297_v6 = vadd.f32 %v3296_v53, %v13869_v35  ;;  %11489 = vmatprep.mubr.msk.bf16.mxu1 %vm3734_vm7, %v3701_v42  ;;  %v3627_v35 = vmax.f32 %v3499_v13, 0.0 }
 0x4bf   :  { %v11367_v36 = vpop.f32.mrf.mxu0  ;;  %v11395_v40 = vpop.f32.mrf.mxu1  ;;  %11490 = vmatmul.mubr.msk.bf16.gmra.mxu1 %vm3734_vm7, %v3702_v37  ;;  %v4478_v42 = vmax.f32 %v3976_v21, 0.0 }
 0x4c0   :  { %v3630_v28 = vmax.f32 %v3502_v38, 0.0  ;;  %v3500_v19 = vadd.f32 %v13970_v10, %v3297_v6  ;;  %v3318_v32 = vadd.f32 %v11367_v36, %v13878_v50  ;;  %v3989_v31 = vadd.f32 %v11395_v40, %v14023_v45 }
 0x4c1   :  { %v3309_v0 = vpop.f32.mrf.mxu0  ;;  %v3980_v62 = vpop.f32.mrf.mxu1  ;;  %v3968_v50 = vadd.f32 %v14023_v45, %v3967_v17 }
 0x4c2   :  { %v3628_v41 = vmax.f32 %v3500_v19, 0.0  ;;  %v3310_v27 = vadd.f32 %v3309_v0, %v13883_v9  ;;  %v4481_v29 = vmax.f32 %v3989_v31, 0.0  ;;  %v3981_v57 = vadd.f32 %v14023_v45, %v3980_v62 }
 0x4c3   :  { %v11368_v30 = vpop.f32.mrf.mxu0  ;;  %v11396_v34 = vpop.f32.mrf.mxu1  ;;  %v3704_v52 = vpack.c.bf16 %v3630_v28, %v3629_v48  ;;  %v3505_v39 = vadd.f32 %v13970_v10, %v3318_v32  ;;  %v4476_v53 = vmax.f32 %v3968_v50, 0.0 }
 0x4c4   :  { %v3703_v49 = vpack.c.bf16 %v3628_v41, %v3627_v35  ;;  %v3321_v46 = vadd.f32 %v11368_v30, %v13892_v3  ;;  %v4605_v20 = vmax.f32 %v4477_v12, %v4481_v29  ;;  %v4479_v22 = vmax.f32 %v3981_v57, 0.0 }
 0x4c5   :  { %v3992_v9 = vadd.f32 %v11396_v34, %v14023_v45  ;;  %v3312_v2 = vpop.f32.mrf.mxu0  ;;  %v3983_v59 = vpop.f32.mrf.mxu1  ;;  %v3503_v11 = vadd.f32 %v13970_v10, %v3310_v27  ;;  %v3633_v36 = vmax.f32 %v3505_v39, 0.0 }
 0x4c6   :  { %v3506_v23 = vadd.f32 %v13970_v10, %v3321_v46  ;;  %v3313_v33 = vadd.f32 %v3312_v2, %v13897_v43  ;;  %v3984_v15 = vadd.f32 %v14023_v45, %v3983_v59  ;;  %11493 = vmatprep.mubr.msk.bf16.mxu1 %vm3734_vm7, %v3703_v49  ;;  %v4603_v3 = vmax.f32 %v4475_v60, %v4479_v22 }
 0x4c7   :  { %v4482_v47 = vmax.f32 %v3992_v9, 0.0  ;;  %v11371_v37 = vpop.f32.mrf.mxu0  ;;  %v11399_v7 = vpop.f32.mrf.mxu1  ;;  %11494 = vmatmul.mubr.msk.bf16.gmra.mxu1 %vm3734_vm7, %v3704_v52  ;;  %v3631_v40 = vmax.f32 %v3503_v11, 0.0 }
 0x4c8   :  { %v3504_v17 = vadd.f32 %v13970_v10, %v3313_v33  ;;  %v4480_v25 = vmax.f32 %v3984_v15, 0.0  ;;  %v3634_v13 = vmax.f32 %v3506_v23, 0.0  ;;  %v4005_v6 = vadd.f32 %v11399_v7, %v14023_v45 }
 0x4c9   :  { %v4606_v38 = vmax.f32 %v4478_v42, %v4482_v47  ;;  %v3325_v43 = vpop.f32.mrf.mxu0  ;;  %v3996_v26 = vpop.f32.mrf.mxu1  ;;  %v3334_v12 = vadd.f32 %v11371_v37, %v13906_v55 }
 0x4ca   :  { %v3632_v28 = vmax.f32 %v3504_v17, 0.0  ;;  %v4604_v19 = vmax.f32 %v4476_v53, %v4480_v25  ;;  %v4485_v32 = vmax.f32 %v4005_v6, 0.0  ;;  %v3326_v31 = vadd.f32 %v3325_v43, %v13911_v44 }
 0x4cb   :  { %v3997_v0 = vadd.f32 %v14023_v45, %v3996_v26  ;;  %v11372_v62 = vpop.f32.mrf.mxu0  ;;  %v11400_v48 = vpop.f32.mrf.mxu1  ;;  %v3706_v60 = vpack.c.bf16 %v3634_v13, %v3633_v36 }
 0x4cc   :  { %v3705_v35 = vpack.c.bf16 %v3632_v28, %v3631_v40  ;;  %v3337_v41 = vadd.f32 %v11372_v62, %v13920_v56  ;;  %v4008_v27 = vadd.f32 %v11400_v48, %v14023_v45  ;;  %v4609_v21 = vmax.f32 %v4485_v32, %v4605_v20 }
 0x4cd   :  { %v3507_v29 = vadd.f32 %v13970_v10, %v3326_v31  ;;  %v4483_v57 = vmax.f32 %v3997_v0, 0.0  ;;  %v3328_v30 = vpop.f32.mrf.mxu0  ;;  %v3999_v34 = vpop.f32.mrf.mxu1  ;;  %v3509_v56 = vadd.f32 %v13970_v10, %v3334_v12 }
 0x4ce   :  { %v3510_v55 = vadd.f32 %v13970_v10, %v3337_v41  ;;  %v4486_v52 = vmax.f32 %v4008_v27, 0.0  ;;  %v3329_v44 = vadd.f32 %v3328_v30, %v13925_v8  ;;  %v4000_v49 = vadd.f32 %v14023_v45, %v3999_v34  ;;  %11497 = vmatprep.mubr.msk.bf16.mxu1 %vm3734_vm7, %v3705_v35 }
 0x4cf   :  { %v4607_v50 = vmax.f32 %v4483_v57, %v4603_v3  ;;  %v11375_v46 = vpop.f32.mrf.mxu0  ;;  %v11403_v39 = vpop.f32.mrf.mxu1  ;;  %11498 = vmatmul.mubr.msk.bf16.gmra.mxu1 %vm3734_vm7, %v3706_v60  ;;  %v3635_v23 = vmax.f32 %v3507_v29, 0.0  ;;  %v3637_v47 = vmax.f32 %v3509_v56, 0.0 }
 0x4d0   :  { %v4610_v20 = vmax.f32 %v4486_v52, %v4606_v38  ;;  %v3508_v22 = vadd.f32 %v13970_v10, %v3329_v44  ;;  %v4484_v9 = vmax.f32 %v4000_v49, 0.0  ;;  %v3638_v2 = vmax.f32 %v3510_v55, 0.0 }
 0x4d1   :  { %v4021_v59 = vadd.f32 %v11403_v39, %v14023_v45  ;;  %v3341_v11 = vpop.f32.mrf.mxu0  ;;  %v4012_v8 = vpop.f32.mrf.mxu1  ;;  %v3350_v3 = vadd.f32 %v11375_v46, %v13934_v24 }
 0x4d2   :  { %v3636_v33 = vmax.f32 %v3508_v22, 0.0  ;;  %v4608_v15 = vmax.f32 %v4484_v9, %v4604_v19  ;;  %v3342_v42 = vadd.f32 %v3341_v11, %v13939_v61  ;;  %v4013_v7 = vadd.f32 %v14023_v45, %v4012_v8 }
 0x4d3   :  { %v4489_v37 = vmax.f32 %v4021_v59, 0.0  ;;  %v11376_v53 = vpop.f32.mrf.mxu0  ;;  %v11404_v17 = vpop.f32.mrf.mxu1  ;;  %v3708_v6 = vpack.c.bf16 %v3638_v2, %v3637_v47  ;;  %v3513_v12 = vadd.f32 %v13970_v10, %v3350_v3 }
 0x4d4   :  { %v3707_v25 = vpack.c.bf16 %v3636_v33, %v3635_v23  ;;  %v3353_v13 = vadd.f32 %v11376_v53, %v13948_v4  ;;  %v4024_v38 = vadd.f32 %v11404_v17, %v14023_v45  ;;  %v4487_v26 = vmax.f32 %v4013_v7, 0.0 }
 0x4d5   :  { %v4613_v43 = vmax.f32 %v4489_v37, %v4609_v21  ;;  %v3344_v36 = vpop.f32.mrf.mxu0  ;;  %v4015_v40 = vpop.f32.mrf.mxu1  ;;  %v3511_v61 = vadd.f32 %v13970_v10, %v3342_v42  ;;  %v3641_v34 = vmax.f32 %v3513_v12, 0.0 }
 0x4d6   :  { %v3514_v28 = vadd.f32 %v13970_v10, %v3353_v13  ;;  %v4490_v24 = vmax.f32 %v4024_v38, 0.0  ;;  %v3345_v19 = vadd.f32 %v3344_v36, %v13953_v63  ;;  %11501 = vmatprep.mubr.msk.bf16.mxu1 %vm3734_vm7, %v3707_v25  ;;  %v4611_v32 = vmax.f32 %v4487_v26, %v4607_v50 }
 0x4d7   :  { %v4016_v4 = vadd.f32 %v14023_v45, %v4015_v40  ;;  %v11379_v31 = vpop.f32.mrf.mxu0  ;;  %v11407_v0 = vpop.f32.mrf.mxu1  ;;  %11502 = vmatmul.mubr.msk.bf16.gmra.mxu1 %vm3734_vm7, %v3708_v6  ;;  %v3639_v21 = vmax.f32 %v3511_v61, 0.0 }
 0x4d8   :  { %v4614_v62 = vmax.f32 %v4490_v24, %v4610_v20  ;;  %v3512_v48 = vadd.f32 %v13970_v10, %v3345_v19  ;;  %v3642_v35 = vmax.f32 %v3514_v28, 0.0  ;;  %v4037_v27 = vadd.f32 %v11407_v0, %v14023_v45 }
 0x4d9   :  { %v4488_v41 = vmax.f32 %v4016_v4, 0.0  ;;  %v3357_v60 = vpop.f32.mrf.mxu0  ;;  %v4028_v63 = vpop.f32.mrf.mxu1  ;;  %v3366_v57 = vadd.f32 %v11379_v31, %v13962_v51 }
 0x4da   :  { %v3640_v29 = vmax.f32 %v3512_v48, 0.0  ;;  %v3358_v30 = vadd.f32 %v3357_v60, %v13967_v18  ;;  %v4493_v52 = vmax.f32 %v4037_v27, 0.0  ;;  %v4029_v44 = vadd.f32 %v14023_v45, %v4028_v63 }
 0x4db   :  { %v14083_v55 = vmax.f32 %v4488_v41, %v4608_v15  ;;  %v11380_v49 = vpop.f32.mrf.mxu0  ;;  %v11408_v56 = vpop.f32.mrf.mxu1  ;;  %v3710_v39 = vpack.c.bf16 %v3642_v35, %v3641_v34  ;;  %v3517_v18 = vadd.f32 %v13970_v10, %v3366_v57 }
 0x4dc   :  { %v3709_v50 = vpack.c.bf16 %v3640_v29, %v3639_v21  ;;  %v3369_v46 = vadd.f32 %v11380_v49, %v13979_v16  ;;  %v4617_v20 = vmax.f32 %v4493_v52, %v4613_v43  ;;  %v4491_v22 = vmax.f32 %v4029_v44, 0.0 }
 0x4dd   :  { %v4040_v9 = vadd.f32 %v11408_v56, %v14023_v45  ;;  %v3360_v2 = vpop.f32.mrf.mxu0  ;;  %v14088_v51 = vpop.f32.mrf.mxu1  ;;  %v3515_v59 = vadd.f32 %v13970_v10, %v3358_v30  ;;  %v3645_v17 = vmax.f32 %v3517_v18, 0.0 }
 0x4de   :  { %v3518_v11 = vadd.f32 %v13970_v10, %v3369_v46  ;;  %v3361_v8 = vadd.f32 %v3360_v2, %v13984_v14  ;;  %11505 = vmatprep.mubr.msk.bf16.mxu1 %vm3734_vm7, %v3709_v50  ;;  %v4615_v23 = vmax.f32 %v4491_v22, %v4611_v32 }
 0x4df   :  { %v4494_v16 = vmax.f32 %v4040_v9, 0.0  ;;  %v11383_v33 = vpop.f32.mrf.mxu0  ;;  %v11411_v15 = vpop.f32.mrf.mxu1  ;;  %11506 = vmatmul.mubr.msk.bf16.gmra.mxu1 %vm3734_vm7, %v3710_v39  ;;  %v3643_v25 = vmax.f32 %v3515_v59, 0.0 }
 0x4e0   :  { %v3516_v42 = vadd.f32 %v13970_v10, %v3361_v8  ;;  %v3646_v47 = vmax.f32 %v3518_v11, 0.0  ;;  %v4053_v37 = vadd.f32 %v11411_v15, %v14023_v45  ;;  %v3382_v14 = vadd.f32 %v11383_v33, %v13993_v5 }
 0x4e1   :  { %v4618_v3 = vmax.f32 %v4494_v16, %v4614_v62  ;;  %v3373_v7 = vpop.f32.mrf.mxu0  ;;  %v4044_v53 = vpop.f32.mrf.mxu1 }
 0x4e2   :  { %v3644_v13 = vmax.f32 %v3516_v42, 0.0  ;;  %v4497_v38 = vmax.f32 %v4053_v37, 0.0  ;;  %v3374_v6 = vadd.f32 %v3373_v7, %v13998_v1  ;;  %v4045_v43 = vadd.f32 %v14023_v45, %v4044_v53 }
 0x4e3   :  { %v11384_v26 = vpop.f32.mrf.mxu0  ;;  %v11412_v36 = vpop.f32.mrf.mxu1  ;;  %v3712_v24 = vpack.c.bf16 %v3646_v47, %v3645_v17  ;;  %v3521_v62 = vadd.f32 %v13970_v10, %v3382_v14 }
 0x4e4   :  { %v3711_v40 = vpack.c.bf16 %v3644_v13, %v3643_v25  ;;  %v3385_v61 = vadd.f32 %v11384_v26, %v14007_v58  ;;  %v4056_v28 = vadd.f32 %v11412_v36, %v14023_v45  ;;  %v4621_v19 = vmax.f32 %v4497_v38, %v4617_v20 }
 0x4e5   :  { %v4495_v12 = vmax.f32 %v4045_v43, 0.0  ;;  %v3376_v32 = vpop.f32.mrf.mxu0  ;;  %v14103_v4 = vpop.f32.mrf.mxu1  ;;  %v3519_v5 = vadd.f32 %v13970_v10, %v3374_v6 }
 0x4e6   :  { %v3522_v31 = vadd.f32 %v13970_v10, %v3385_v61  ;;  %v4498_v1 = vmax.f32 %v4056_v28, 0.0  ;;  %v3377_v0 = vadd.f32 %v3376_v32, %v14012_v54  ;;  %11509 = vmatprep.mubr.msk.bf16.mxu1 %vm3734_vm7, %v3711_v40  ;;  %v3649_v54 = vmax.f32 %v3521_v62, 0.0 }
 0x4e7   :  { %v4619_v58 = vmax.f32 %v4495_v12, %v4615_v23  ;;  %v11415_v48 = vpop.f32.mrf.mxu1  ;;  %11510 = vmatmul.mubr.msk.bf16.gmra.mxu1 %vm3734_vm7, %v3712_v24  ;;  %v3647_v21 = vmax.f32 %v3519_v5, 0.0 }
 0x4e8   :  { %v4622_v35 = vmax.f32 %v4498_v1, %v4618_v3  ;;  %v3520_v41 = vadd.f32 %v13970_v10, %v3377_v0  ;;  %v3650_v27 = vmax.f32 %v3522_v31, 0.0  ;;  %v4069_v60 = vadd.f32 %v11415_v48, %v14023_v45 }
 0x4e9   :  { %v4060_v63 = vpop.f32.mrf.mxu1 }
 0x4ea   :  { %v3648_v29 = vmax.f32 %v3520_v41, 0.0  ;;  %v4061_v57 = vadd.f32 %v14023_v45, %v4060_v63  ;;  %v4501_v30 = vmax.f32 %v4069_v60, 0.0  ;;  %v3714_v56 = vpack.c.bf16 %v3650_v27, %v3649_v54 }
 0x4eb   :  { %v11416_v34 = vpop.f32.mrf.mxu1 }
 0x4ec   :  { %v3713_v52 = vpack.c.bf16 %v3648_v29, %v3647_v21  ;;  %v4499_v44 = vmax.f32 %v4061_v57, 0.0  ;;  %v4072_v49 = vadd.f32 %v11416_v34, %v14023_v45  ;;  %v4625_v50 = vmax.f32 %v4501_v30, %v4621_v19 }
 0x4ed   :  { %v14115_v46 = vpop.f32.mrf.mxu1 }
 0x4ee   :  { %v4623_v10 = vmax.f32 %v4499_v44, %v4619_v58  ;;  %v4502_v39 = vmax.f32 %v4072_v49, 0.0  ;;  %11513 = vmatprep.mubr.msk.bf16.mxu1 %vm3734_vm7, %v3713_v52 }
 0x4ef   :  { %v11419_v20 = vpop.f32.mrf.mxu1  ;;  %11514 = vmatmul.mubr.msk.bf16.gmra.mxu1 %vm3734_vm7, %v3714_v56 }
 0x4f0   :  { %v4626_v22 = vmax.f32 %v4502_v39, %v4622_v35  ;;  %v4085_v9 = vadd.f32 %v11419_v20, %v14023_v45 }
 0x4f1   :  { %v4076_v2 = vpop.f32.mrf.mxu1 }
 0x4f2   :  { %v4505_v18 = vmax.f32 %v4085_v9, 0.0  ;;  %v4077_v59 = vadd.f32 %v14023_v45, %v4076_v2 }
 0x4f3   :  { %v11420_v11 = vpop.f32.mrf.mxu1 }
 0x4f4   :  { %v4629_v8 = vmax.f32 %v4505_v18, %v4625_v50  ;;  %v4503_v23 = vmax.f32 %v4077_v59, 0.0  ;;  %v4088_v16 = vadd.f32 %v11420_v11, %v14023_v45 }
 0x4f5   :  { %v14122_v33 = vpop.f32.mrf.mxu1 }
 0x4f6   :  { %v4627_v15 = vmax.f32 %v4503_v23, %v4623_v10  ;;  %v4506_v42 = vmax.f32 %v4088_v16, 0.0 }
 0x4f7   :  { %v11423_v47 = vpop.f32.mrf.mxu1 }
 0x4f8   :  { %v4630_v3 = vmax.f32 %v4506_v42, %v4626_v22  ;;  %v4101_v37 = vadd.f32 %v11423_v47, %v14023_v45 }
 0x4f9   :  { %v4092_v7 = vpop.f32.mrf.mxu1 }
 0x4fa   :  { %v4509_v53 = vmax.f32 %v4101_v37, 0.0  ;;  %v4093_v17 = vadd.f32 %v14023_v45, %v4092_v7 }
 0x4fb   :  { %v11424_v25 = vpop.f32.mrf.mxu1 }
 0x4fc   :  { %v4633_v13 = vmax.f32 %v4509_v53, %v4629_v8  ;;  %v4507_v14 = vmax.f32 %v4093_v17, 0.0  ;;  %v4104_v38 = vadd.f32 %v11424_v25, %v14023_v45 }
 0x4fd   :  { %v14127_v6 = vpop.f32.mrf.mxu1 }
 0x4fe   :  { %v4631_v43 = vmax.f32 %v4507_v14, %v4627_v15  ;;  %v4510_v26 = vmax.f32 %v4104_v38, 0.0 }
 0x4ff   :  { %v11427_v36 = vpop.f32.mrf.mxu1 }
 0x500   :  { %v4634_v40 = vmax.f32 %v4510_v26, %v4630_v3  ;;  %v4117_v61 = vadd.f32 %v11427_v36, %v14023_v45 }
 0x501   :  { %v4108_v28 = vpop.f32.mrf.mxu1 }
 0x502   :  { %v4513_v24 = vmax.f32 %v4117_v61, 0.0  ;;  %v4109_v19 = vadd.f32 %v14023_v45, %v4108_v28 }
 0x503   :  { %v11428_v12 = vpop.f32.mrf.mxu1 }
 0x504   :  { %v4637_v32 = vmax.f32 %v4513_v24, %v4633_v13  ;;  %v4511_v5 = vmax.f32 %v4109_v19, 0.0  ;;  %v4120_v31 = vadd.f32 %v11428_v12, %v14023_v45 }
 0x505   :  { %v14132_v1 = vpop.f32.mrf.mxu1 }
 0x506   :  { %v4635_v0 = vmax.f32 %v4511_v5, %v4631_v43  ;;  %v4514_v62 = vmax.f32 %v4120_v31, 0.0 }
 0x507   :  { %v11431_v58 = vpop.f32.mrf.mxu1 }
 0x508   :  { %v4638_v48 = vmax.f32 %v4514_v62, %v4634_v40  ;;  %v4133_v35 = vadd.f32 %v11431_v58, %v14023_v45 }
 0x509   :  { %v4124_v41 = vpop.f32.mrf.mxu1 }
 0x50a   :  { %v4517_v27 = vmax.f32 %v4133_v35, 0.0  ;;  %v4125_v60 = vadd.f32 %v14023_v45, %v4124_v41 }
 0x50b   :  { %v11432_v63 = vpop.f32.mrf.mxu1 }
 0x50c   :  { %v4669_v21 = vmax.f32 %v4517_v27, %v4637_v32  ;;  %v4515_v29 = vmax.f32 %v4125_v60, 0.0  ;;  %v4136_v57 = vadd.f32 %v11432_v63, %v14023_v45 }
 0x50d   :  { %v14137_v54 = vpop.f32.mrf.mxu1 }
 0x50e   :  { %v4667_v30 = vmax.f32 %v4515_v29, %v4635_v0  ;;  %v4518_v34 = vmax.f32 %v4136_v57, 0.0 }
 0x50f   :  { %v11435_v52 = vpop.f32.mrf.mxu1 }
 0x510   :  { %v4670_v44 = vmax.f32 %v4518_v34, %v4638_v48  ;;  %v4149_v49 = vadd.f32 %v11435_v52, %v14023_v45 }
 0x511   :  { %v4140_v56 = vpop.f32.mrf.mxu1 }
 0x512   :  { %v4521_v50 = vmax.f32 %v4149_v49, 0.0  ;;  %v4141_v10 = vadd.f32 %v14023_v45, %v4140_v56 }
 0x513   :  { %v11436_v39 = vpop.f32.mrf.mxu1 }
 0x514   :  { %v4641_v20 = vmax.f32 %v4521_v50, %v4669_v21  ;;  %v4519_v22 = vmax.f32 %v4141_v10, 0.0  ;;  %v4152_v9 = vadd.f32 %v11436_v39, %v14023_v45 }
 0x515   :  { %v14142_v2 = vpop.f32.mrf.mxu1 }
 0x516   :  { %v4639_v18 = vmax.f32 %v4519_v22, %v4667_v30  ;;  %v4522_v59 = vmax.f32 %v4152_v9, 0.0 }
 0x517   :  { %v11439_v11 = vpop.f32.mrf.mxu1 }
 0x518   :  { %v4642_v8 = vmax.f32 %v4522_v59, %v4670_v44  ;;  %v4165_v23 = vadd.f32 %v11439_v11, %v14023_v45 }
 0x519   :  { %v4156_v16 = vpop.f32.mrf.mxu1 }
 0x51a   :  { %v4525_v15 = vmax.f32 %v4165_v23, 0.0  ;;  %v4157_v42 = vadd.f32 %v14023_v45, %v4156_v16 }
 0x51b   :  { %v11440_v47 = vpop.f32.mrf.mxu1 }
 0x51c   :  { %v4673_v3 = vmax.f32 %v4525_v15, %v4641_v20  ;;  %v4523_v37 = vmax.f32 %v4157_v42, 0.0  ;;  %v4168_v7 = vadd.f32 %v11440_v47, %v14023_v45 }
 0x51d   :  { %v14147_v53 = vpop.f32.mrf.mxu1 }
 0x51e   :  { %v4671_v17 = vmax.f32 %v4523_v37, %v4639_v18  ;;  %v4526_v25 = vmax.f32 %v4168_v7, 0.0 }
 0x51f   :  { %v11443_v13 = vpop.f32.mrf.mxu1 }
 0x520   :  { %v4674_v14 = vmax.f32 %v4526_v25, %v4642_v8  ;;  %v4181_v38 = vadd.f32 %v11443_v13, %v14023_v45 }
 0x521   :  { %v4172_v43 = vpop.f32.mrf.mxu1 }
 0x522   :  { %v4529_v26 = vmax.f32 %v4181_v38, 0.0  ;;  %v4173_v36 = vadd.f32 %v14023_v45, %v4172_v43  ;;  %v12219_v43 = vld [vmem:[%s12640_s27] sm:$0xff]  }
 0x523   :  { %v11444_v40 = vpop.f32.mrf.mxu1  ;;  %11521 = vmatprep.mubr.msk.bf16.mxu0 %vm4953_vm8, %v12219_v43 }
 0x524   :  { %v4645_v61 = vmax.f32 %v4529_v26, %v4673_v3  ;;  %v4527_v28 = vmax.f32 %v4173_v36, 0.0  ;;  %v4184_v24 = vadd.f32 %v11444_v40, %v14023_v45 }
 0x525   :  { %v14152_v19 = vpop.f32.mrf.mxu1 }
 0x526   :  { %v4643_v12 = vmax.f32 %v4527_v28, %v4671_v17  ;;  %v4530_v32 = vmax.f32 %v4184_v24, 0.0 }
 0x527   :  { %v11447_v5 = vpop.f32.mrf.mxu1 }
 0x528   :  { %v4646_v31 = vmax.f32 %v4530_v32, %v4674_v14  ;;  %v4197_v0 = vadd.f32 %v11447_v5, %v14023_v45 }
 0x529   :  { %v4188_v62 = vpop.f32.mrf.mxu1 }
 0x52a   :  { %v4533_v58 = vmax.f32 %v4197_v0, 0.0  ;;  %v4189_v48 = vadd.f32 %v14023_v45, %v4188_v62 }
 0x52b   :  { %v11448_v35 = vpop.f32.mrf.mxu1 }
 0x52c   :  { %v4677_v41 = vmax.f32 %v4533_v58, %v4645_v61  ;;  %v4531_v27 = vmax.f32 %v4189_v48, 0.0  ;;  %v4200_v60 = vadd.f32 %v11448_v35, %v14023_v45 }
 0x52d   :  { %v14157_v63 = vpop.f32.mrf.mxu1 }
 0x52e   :  { %v4675_v21 = vmax.f32 %v4531_v27, %v4643_v12  ;;  %v4534_v29 = vmax.f32 %v4200_v60, 0.0 }
 0x52f   :  { %v11451_v57 = vpop.f32.mrf.mxu1 }
 0x530   :  { %v4678_v30 = vmax.f32 %v4534_v29, %v4646_v31  ;;  %v4213_v34 = vadd.f32 %v11451_v57, %v14023_v45 }
 0x531   :  { %v4204_v52 = vpop.f32.mrf.mxu1 }
 0x532   :  { %v4537_v44 = vmax.f32 %v4213_v34, 0.0  ;;  %v4205_v49 = vadd.f32 %v14023_v45, %v4204_v52 }
 0x533   :  { %v11452_v56 = vpop.f32.mrf.mxu1 }
 0x534   :  { %v4649_v50 = vmax.f32 %v4537_v44, %v4677_v41  ;;  %v4535_v10 = vmax.f32 %v4205_v49, 0.0  ;;  %v4216_v39 = vadd.f32 %v11452_v56, %v14023_v45 }
 0x535   :  { %v14162_v20 = vpop.f32.mrf.mxu1 }
 0x536   :  { %v4647_v22 = vmax.f32 %v4535_v10, %v4675_v21  ;;  %v4538_v9 = vmax.f32 %v4216_v39, 0.0 }
 0x537   :  { %v11455_v18 = vpop.f32.mrf.mxu1 }
 0x538   :  { %v4650_v59 = vmax.f32 %v4538_v9, %v4678_v30  ;;  %v4229_v11 = vadd.f32 %v11455_v18, %v14023_v45 }
 0x539   :  { %v4220_v8 = vpop.f32.mrf.mxu1 }
 0x53a   :  { %v4541_v23 = vmax.f32 %v4229_v11, 0.0  ;;  %v4221_v16 = vadd.f32 %v14023_v45, %v4220_v8 }
 0x53b   :  { %v11456_v15 = vpop.f32.mrf.mxu1 }
 0x53c   :  { %v4681_v42 = vmax.f32 %v4541_v23, %v4649_v50  ;;  %v4539_v47 = vmax.f32 %v4221_v16, 0.0  ;;  %v4232_v3 = vadd.f32 %v11456_v15, %v14023_v45 }
 0x53d   :  { %v14167_v37 = vpop.f32.mrf.mxu1 }
 0x53e   :  { %v4679_v7 = vmax.f32 %v4539_v47, %v4647_v22  ;;  %v4542_v17 = vmax.f32 %v4232_v3, 0.0 }
 0x53f   :  { %v11459_v25 = vpop.f32.mrf.mxu1 }
 0x540   :  { %v4682_v13 = vmax.f32 %v4542_v17, %v4650_v59  ;;  %v4245_v14 = vadd.f32 %v11459_v25, %v14023_v45 }
 0x541   :  { %v4236_v38 = vpop.f32.mrf.mxu1 }
 0x542   :  { %v4545_v26 = vmax.f32 %v4245_v14, 0.0  ;;  %v4237_v36 = vadd.f32 %v14023_v45, %v4236_v38 }
 0x543   :  { %v11460_v40 = vpop.f32.mrf.mxu1 }
 0x544   :  { %v4653_v61 = vmax.f32 %v4545_v26, %v4681_v42  ;;  %v4543_v28 = vmax.f32 %v4237_v36, 0.0  ;;  %v4248_v24 = vadd.f32 %v11460_v40, %v14023_v45 }
 0x545   :  { %v14174_v12 = vpop.f32.mrf.mxu1 }
 0x546   :  { %v4651_v32 = vmax.f32 %v4543_v28, %v4679_v7  ;;  %v4546_v5 = vmax.f32 %v4248_v24, 0.0 }
 0x547   :  { %v11463_v31 = vpop.f32.mrf.mxu1 }
 0x548   :  { %v4654_v0 = vmax.f32 %v4546_v5, %v4682_v13  ;;  %v4261_v62 = vadd.f32 %v11463_v31, %v14023_v45 }
 0x549   :  { %v4252_v58 = vpop.f32.mrf.mxu1 }
 0x54a   :  { %v4549_v48 = vmax.f32 %v4261_v62, 0.0  ;;  %v4253_v35 = vadd.f32 %v14023_v45, %v4252_v58 }
 0x54b   :  { %v11464_v41 = vpop.f32.mrf.mxu1 }
 0x54c   :  { %v4685_v27 = vmax.f32 %v4549_v48, %v4653_v61  ;;  %v4547_v60 = vmax.f32 %v4253_v35, 0.0  ;;  %v4264_v21 = vadd.f32 %v11464_v41, %v14023_v45 }
 0x54d   :  { %v14179_v29 = vpop.f32.mrf.mxu1 }
 0x54e   :  { %v4683_v57 = vmax.f32 %v4547_v60, %v4651_v32  ;;  %v4550_v30 = vmax.f32 %v4264_v21, 0.0  ;;  %v4032_v60 = vadd.f32 %v14023_v45, %v14088_v51 }
 0x54f   :  { %v11467_v34 = vpop.f32.mrf.mxu1 }
 0x550   :  { %v4686_v52 = vmax.f32 %v4550_v30, %v4654_v0  ;;  %v4277_v44 = vadd.f32 %v11467_v34, %v14023_v45  ;;  %v4492_v34 = vmax.f32 %v4032_v60, 0.0 }
 0x551   :  { %v4268_v49 = vpop.f32.mrf.mxu1 }
 0x552   :  { %v4553_v56 = vmax.f32 %v4277_v44, 0.0  ;;  %v4269_v50 = vadd.f32 %v14023_v45, %v4268_v49  ;;  %v4616_v51 = vmax.f32 %v4492_v34, %v14083_v55 }
 0x553   :  { %v11468_v10 = vpop.f32.mrf.mxu1 }
 0x554   :  { %v4701_v39 = vmax.f32 %v4553_v56, %v4685_v27  ;;  %v4551_v22 = vmax.f32 %v4269_v50, 0.0  ;;  %v4280_v9 = vadd.f32 %v11468_v10, %v14023_v45  ;;  %v4080_v56 = vadd.f32 %v14023_v45, %v14122_v33 }
 0x555   :  { %v14184_v18 = vpop.f32.mrf.mxu1  ;;  %v4128_v33 = vadd.f32 %v14023_v45, %v14137_v54  ;;  %v4176_v54 = vadd.f32 %v14023_v45, %v14152_v19  ;;  %v4224_v19 = vadd.f32 %v14023_v45, %v14167_v37 }
 0x556   :  { %v4699_v59 = vmax.f32 %v4551_v22, %v4683_v57  ;;  %v4554_v11 = vmax.f32 %v4280_v9, 0.0  ;;  %v4048_v57 = vadd.f32 %v14023_v45, %v14103_v4  ;;  %v4096_v4 = vadd.f32 %v14023_v45, %v14127_v6 }
 0x557   :  { %v11471_v8 = vpop.f32.mrf.mxu1  ;;  %v4504_v9 = vmax.f32 %v4080_v56, 0.0  ;;  %v4144_v6 = vadd.f32 %v14023_v45, %v14142_v2  ;;  %v4192_v2 = vadd.f32 %v14023_v45, %v14157_v63  ;;  %v4240_v63 = vadd.f32 %v14023_v45, %v14174_v12 }
 0x558   :  { %v4702_v23 = vmax.f32 %v4554_v11, %v4686_v52  ;;  %v4293_v16 = vadd.f32 %v11471_v8, %v14023_v45  ;;  %v4064_v52 = vadd.f32 %v14023_v45, %v14115_v46  ;;  %v4496_v49 = vmax.f32 %v4048_v57, 0.0 }
 0x559   :  { %v4284_v15 = vpop.f32.mrf.mxu1  ;;  %v4112_v46 = vadd.f32 %v14023_v45, %v14132_v1  ;;  %v4508_v8 = vmax.f32 %v4096_v4, 0.0  ;;  %v4160_v1 = vadd.f32 %v14023_v45, %v14147_v53  ;;  %v4208_v53 = vadd.f32 %v14023_v45, %v14162_v20 }
 0x55a   :  { %v4557_v42 = vmax.f32 %v4293_v16, 0.0  ;;  %v4285_v47 = vadd.f32 %v14023_v45, %v4284_v15  ;;  %v4500_v10 = vmax.f32 %v4064_v52, 0.0  ;;  %v4620_v22 = vmax.f32 %v4496_v49, %v4616_v51 }
 0x55b   :  { %v11472_v3 = vpop.f32.mrf.mxu1  ;;  %v4512_v16 = vmax.f32 %v4112_v46, 0.0  ;;  %v4536_v34 = vmax.f32 %v4208_v53, 0.0  ;;  %v4540_v56 = vmax.f32 %v4224_v19, 0.0  ;;  %v4256_v20 = vadd.f32 %v14023_v45, %v14179_v29 }
 0x55c   :  { %v4657_v7 = vmax.f32 %v4557_v42, %v4701_v39  ;;  %v4555_v17 = vmax.f32 %v4285_v47, 0.0  ;;  %v4296_v25 = vadd.f32 %v11472_v3, %v14023_v45  ;;  %v4624_v11 = vmax.f32 %v4500_v10, %v4620_v22 }
 0x55d   :  { %v14189_v13 = vpop.f32.mrf.mxu1  ;;  %v4516_v47 = vmax.f32 %v4128_v33, 0.0  ;;  %v4544_v4 = vmax.f32 %v4240_v63, 0.0  ;;  %v4272_v37 = vadd.f32 %v14023_v45, %v14184_v18  ;;  %v4548_v46 = vmax.f32 %v4256_v20, 0.0 }
 0x55e   :  { %v4655_v14 = vmax.f32 %v4555_v17, %v4699_v59  ;;  %v4558_v38 = vmax.f32 %v4296_v25, 0.0  ;;  %v4628_v55 = vmax.f32 %v4504_v9, %v4624_v11  ;;  %v4520_v17 = vmax.f32 %v4144_v6, 0.0 }
 0x55f   :  { %v11475_v43 = vpop.f32.mrf.mxu1  ;;  %v4288_v12 = vadd.f32 %v14023_v45, %v14189_v13  ;;  %v4552_v33 = vmax.f32 %v4272_v37, 0.0 }
 0x560   :  { %v14191_v26 = vmax.f32 %v4558_v38, %v4702_v23  ;;  %v4309_v36 = vadd.f32 %v11475_v43, %v14023_v45  ;;  %v4632_v42 = vmax.f32 %v4508_v8, %v4628_v55  ;;  %v4524_v38 = vmax.f32 %v4160_v1, 0.0 }
 0x561   :  { %v4300_v40 = vpop.f32.mrf.mxu1  ;;  %v4556_v13 = vmax.f32 %v4288_v12, 0.0 }
 0x562   :  { %v4561_v61 = vmax.f32 %v4309_v36, 0.0  ;;  %v4301_v28 = vadd.f32 %v14023_v45, %v4300_v40  ;;  %v4528_v40 = vmax.f32 %v4176_v54, 0.0 }
 0x563   :  { %v14195_v24 = vpop.f32.mrf.mxu1 }
 0x564   :  { %v14197_v32 = vmax.f32 %v4561_v61, %v4657_v7  ;;  %v4559_v5 = vmax.f32 %v4301_v28, 0.0  ;;  %v4636_v7 = vmax.f32 %v4512_v16, %v4632_v42  ;;  %v4312_v29 = vadd.f32 %v14195_v24, %v14023_v45 }
 0x565   :  { %v14199_v31 = vpop.f32.mrf.mxu1 }
 0x566   :  { %v14201_v0 = vmax.f32 %v4559_v5, %v4655_v14  ;;  %v4668_v14 = vmax.f32 %v4516_v47, %v4636_v7  ;;  %v4532_v5 = vmax.f32 %v4192_v2, 0.0  ;;  %v4304_v55 = vadd.f32 %v14023_v45, %v14199_v31 }
 0x567   :  { %v14203_v62 = vpop.f32.mrf.mxu1 }
 0x568   :  { %v4640_v36 = vmax.f32 %v4520_v17, %v4668_v14  ;;  %v4325_v18 = vadd.f32 %v14203_v62, %v14023_v45  ;;  %v4562_v62 = vmax.f32 %v4312_v29, 0.0  ;;  %v4560_v17 = vmax.f32 %v4304_v55, 0.0 }
 0x569   :  { %v14205_v58 = vpop.f32.mrf.mxu1 }
 0x56a   :  { %v4672_v28 = vmax.f32 %v4524_v38, %v4640_v36  ;;  %v4317_v6 = vadd.f32 %v14023_v45, %v14205_v58  ;;  %v4565_v54 = vmax.f32 %v4325_v18, 0.0 }
 0x56b   :  { %v14207_v48 = vpop.f32.mrf.mxu1 }
 0x56c   :  { %v4644_v57 = vmax.f32 %v4528_v40, %v4672_v28  ;;  %v4328_v47 = vadd.f32 %v14207_v48, %v14023_v45  ;;  %v4563_v58 = vmax.f32 %v4317_v6, 0.0  ;;  %v4690_v28 = vmax.f32 %v4562_v62, %v14191_v26 }
 0x56d   :  { %v14209_v35 = vpop.f32.mrf.mxu1  ;;  %v4705_v19 = vmax.f32 %v4565_v54, %v14197_v32 }
 0x56e   :  { %v4676_v49 = vmax.f32 %v4532_v5, %v4644_v57  ;;  %v4320_v24 = vadd.f32 %v14023_v45, %v14209_v35  ;;  %v4566_v36 = vmax.f32 %v4328_v47, 0.0  ;;  %v14315_v57 = vld [vmem:[%s12445_s14] ss:$0 sm:$0xff]  ;;  %s15468_s14 = sld [smem:[#allocation11_spill]] }
 0x56f   :  { %v14211_v41 = vpop.f32.mrf.mxu1 }
 0x570   :  { %v4648_v10 = vmax.f32 %v4536_v34, %v4676_v49  ;;  %v4341_v31 = vadd.f32 %v14211_v41, %v14023_v45  ;;  %v4564_v40 = vmax.f32 %v4320_v24, 0.0  ;;  %v4703_v34 = vmax.f32 %v4563_v58, %v14201_v0 }
 0x571   :  { %v14213_v27 = vpop.f32.mrf.mxu1  ;;  %v4706_v20 = vmax.f32 %v4566_v36, %v4690_v28 }
 0x572   :  { %v4680_v9 = vmax.f32 %v4540_v56, %v4648_v10  ;;  %v4333_v38 = vadd.f32 %v14023_v45, %v14213_v27  ;;  %v4569_v41 = vmax.f32 %v4341_v31, 0.0 }
 0x573   :  { %v14217_v21 = vpop.f32.mrf.mxu1 }
 0x574   :  { %v4652_v8 = vmax.f32 %v4544_v4, %v4680_v9  ;;  %v4344_v48 = vadd.f32 %v14217_v21, %v14023_v45  ;;  %v4567_v63 = vmax.f32 %v4333_v38, 0.0  ;;  %v4661_v10 = vmax.f32 %v4569_v41, %v4705_v19 }
 0x575   :  { %v14221_v30 = vpop.f32.mrf.mxu1 }
 0x576   :  { %v4684_v42 = vmax.f32 %v4548_v46, %v4652_v8  ;;  %v4336_v53 = vadd.f32 %v14023_v45, %v14221_v30  ;;  %v4570_v49 = vmax.f32 %v4344_v48, 0.0  ;;  %v4659_v46 = vmax.f32 %v4567_v63, %v4703_v34 }
 0x577   :  { %v14225_v44 = vpop.f32.mrf.mxu1 }
 0x578   :  { %v4700_v7 = vmax.f32 %v4552_v33, %v4684_v42  ;;  %v4357_v27 = vadd.f32 %v14315_v57, %v14225_v44  ;;  %v4568_v4 = vmax.f32 %v4336_v53, 0.0 }
 0x579   :  { %v14229_v50 = vpop.f32.mrf.mxu1 }
 0x57a   :  { %v4656_v2 = vmax.f32 %v4556_v13, %v4700_v7  ;;  %v4349_v56 = vadd.f32 %v14315_v57, %v14229_v50  ;;  %v4573_v37 = vmax.f32 %v4357_v27, 0.0 }
 0x57b   :  { %v14234_v39 = vpop.f32.mrf.mxu1 }
 0x57c   :  { %v4688_v5 = vmax.f32 %v4560_v17, %v4656_v2  ;;  %v4360_v45 = vadd.f32 %v14315_v57, %v14234_v39  ;;  %v4571_v12 = vmax.f32 %v4349_v56, 0.0  ;;  %v4693_v42 = vmax.f32 %v4573_v37, %v4661_v10 }
 0x57d   :  { %v14238_v59 = vpop.f32.mrf.mxu1 }
 0x57e   :  { %v4352_v26 = vadd.f32 %v14315_v57, %v14238_v59  ;;  %v4704_v44 = vmax.f32 %v4564_v40, %v4688_v5  ;;  %v4574_v33 = vmax.f32 %v4360_v45, 0.0  ;;  %v4691_v31 = vmax.f32 %v4571_v12, %v4659_v46 }
 0x57f   :  { %v14242_v23 = vpop.f32.mrf.mxu1 }
 0x580   :  { %v4373_v32 = vadd.f32 %v14315_v57, %v14242_v23  ;;  %v4662_v23 = vmax.f32 %v4570_v49, %v4706_v20  ;;  %v4572_v29 = vmax.f32 %v4352_v26, 0.0  ;;  %v4660_v18 = vmax.f32 %v4568_v4, %v4704_v44 }
 0x581   :  { %v14246_v15 = vpop.f32.mrf.mxu1 }
 0x582   :  { %v4365_v0 = vadd.f32 %v14315_v57, %v14246_v15  ;;  %v4577_v15 = vmax.f32 %v4373_v32, 0.0  ;;  %v4694_v17 = vmax.f32 %v4574_v33, %v4662_v23  ;;  %v4692_v54 = vmax.f32 %v4572_v29, %v4660_v18 }
 0x583   :  { %v14250_v3 = vpop.f32.mrf.mxu1 }
 0x584   :  { %v4376_v50 = vadd.f32 %v14315_v57, %v14250_v3  ;;  %v4575_v6 = vmax.f32 %v4365_v0, 0.0  ;;  %v4709_v58 = vmax.f32 %v4577_v15, %v4693_v42 }
 0x585   :  { %v14254_v25 = vpop.f32.mrf.mxu1 }
 0x586   :  { %v4368_v39 = vadd.f32 %v14315_v57, %v14254_v25  ;;  %v4578_v13 = vmax.f32 %v4376_v50, 0.0  ;;  %v4707_v48 = vmax.f32 %v4575_v6, %v4691_v31 }
 0x587   :  { %v14258_v43 = vpop.f32.mrf.mxu1 }
 0x588   :  { %v4389_v59 = vadd.f32 %v14315_v57, %v14258_v43  ;;  %v4576_v47 = vmax.f32 %v4368_v39, 0.0  ;;  %v4710_v40 = vmax.f32 %v4578_v13, %v4694_v17 }
 0x589   :  { %v14262_v61 = vpop.f32.mrf.mxu1 }
 0x58a   :  { %v4381_v8 = vadd.f32 %v14315_v57, %v14262_v61  ;;  %v4581_v24 = vmax.f32 %v4389_v59, 0.0  ;;  %v4708_v41 = vmax.f32 %v4576_v47, %v4692_v54 }
 0x58b   :  { %v14266_v60 = vpop.f32.mrf.mxu1 }
 0x58c   :  { %v4392_v55 = vadd.f32 %v14315_v57, %v14266_v60  ;;  %v4579_v7 = vmax.f32 %v4381_v8, 0.0  ;;  %v4665_v53 = vmax.f32 %v4581_v24, %v4709_v58 }
 0x58d   :  { %v14270_v52 = vpop.f32.mrf.mxu1 }
 0x58e   :  { %v4384_v25 = vadd.f32 %v14315_v57, %v14270_v52  ;;  %v4582_v52 = vmax.f32 %v4392_v55, 0.0  ;;  %v4663_v5 = vmax.f32 %v4579_v7, %v4707_v48 }
 0x58f   :  { %v14274_v51 = vpop.f32.mrf.mxu1 }
 0x590   :  { %v4405_v43 = vadd.f32 %v14315_v57, %v14274_v51  ;;  %v4580_v51 = vmax.f32 %v4384_v25, 0.0  ;;  %v4666_v34 = vmax.f32 %v4582_v52, %v4710_v40 }
 0x591   :  { %v14278_v22 = vpop.f32.mrf.mxu1 }
 0x592   :  { %v4397_v62 = vadd.f32 %v14315_v57, %v14278_v22  ;;  %v4585_v2 = vmax.f32 %v4405_v43, 0.0  ;;  %v4664_v20 = vmax.f32 %v4580_v51, %v4708_v41 }
 0x593   :  { %v14282_v11 = vpop.f32.mrf.mxu1 }
 0x594   :  { %v4408_v60 = vadd.f32 %v14315_v57, %v14282_v11  ;;  %v4583_v11 = vmax.f32 %v4397_v62, 0.0  ;;  %v4697_v45 = vmax.f32 %v4585_v2, %v4665_v53 }
 0x595   :  { %v14290_v16 = vpop.f32.mrf.mxu1 }
 0x596   :  { %v4400_v36 = vadd.f32 %v14315_v57, %v14290_v16  ;;  %v4586_v19 = vmax.f32 %v4408_v60, 0.0  ;;  %v4695_v0 = vmax.f32 %v4583_v11, %v4663_v5 }
 0x597   :  { %v14296_v1 = vpop.f32.mrf.mxu1 }
 0x598   :  { %v4421_v22 = vadd.f32 %v14315_v57, %v14296_v1  ;;  %v4584_v26 = vmax.f32 %v4400_v36, 0.0 }
 0x599   :  { %v14302_v14 = vpop.f32.mrf.mxu1 }
 0x59a   :  { %v4413_v63 = vadd.f32 %v14315_v57, %v14302_v14  ;;  %v4589_v32 = vmax.f32 %v4421_v22, 0.0  ;;  %v4698_v14 = vmax.f32 %v4586_v19, %v4666_v34  ;;  %v4696_v23 = vmax.f32 %v4584_v26, %v4664_v20  ;;  %v12221_v19 = vld [vmem:[%s12640_s27 + $0x10] sm:$0xff]   ;;  %v12223_v34 = vld [vmem:[%s12640_s27 + $0x20] sm:$0xff]   ;;  %v12228_v20 = vld [vmem:[%s12640_s27 + $0x48] sm:$0xff]  }
 0x59b   :  { %v14308_v35 = vpop.f32.mrf.mxu1  ;;  %v12230_v26 = vld [vmem:[%s12640_s27 + $0x58] sm:$0xff]  }
 0x59c   :  { %v4424_v27 = vadd.f32 %v14315_v57, %v14308_v35  ;;  %v4713_v33 = vmax.f32 %v4589_v32, %v4697_v45  ;;  %v12229_v45 = vld [vmem:[%s12640_s27 + $0x50] sm:$0xff]   ;;  %v12232_v32 = vld [vmem:[%s12640_s27 + $0x68] sm:$0xff]  }
 0x59d   :  { %v4415_v21 = vpop.f32.mrf.mxu1 }
 0x59e   :  { %v4416_v49 = vadd.f32 %v14315_v57, %v4415_v21  ;;  %v4590_v37 = vmax.f32 %v4424_v27, 0.0  ;;  %v12222_v27 = vld [vmem:[%s12640_s27 + $0x18] sm:$0xff]  }
 0x59f   :  { %v11507_v30 = vpop.f32.mrf.mxu1 }
 0x5a0   :  { %v4437_v16 = vadd.f32 %v14315_v57, %v11507_v30  ;;  %v4587_v30 = vmax.f32 %v4413_v63, 0.0  ;;  %v4588_v50 = vmax.f32 %v4416_v49, 0.0  ;;  %v4714_v18 = vmax.f32 %v4590_v37, %v4698_v14  ;;  %v12224_v63 = vld [vmem:[%s12640_s27 + $0x28] sm:$0xff]   ;;  %v12225_v49 = vld [vmem:[%s12640_s27 + $0x30] sm:$0xff]   ;;  %v5469_v14 = vld [vmem:[%s12455_s24] sm:$0xf] }
 0x5a1   :  { %v4428_v9 = vpop.f32.mrf.mxu1  ;;  %12088 = vmatprep.subr.msk.bf16.mxu1 %vm2096_vm5, %v5469_v14  ;;  %v5567_v37 = vsel %vm2096_vm5, %v5469_v14, 0  ;;  %v5404_v14 = vld [vmem:[%s15457_s0 + $0xf8] sm:$0xff]  ;;  %s15469_s24 = sld [smem:[#allocation15_spill]] }
 0x5a2   :  { %v4429_v44 = vadd.f32 %v14315_v57, %v4428_v9  ;;  %v4593_v39 = vmax.f32 %v4437_v16, 0.0  ;;  %v4711_v43 = vmax.f32 %v4587_v30, %v4695_v0  ;;  %v4712_v42 = vmax.f32 %v4588_v50, %v4696_v23  ;;  %v12226_v16 = vld [vmem:[%s12640_s27 + $0x38] sm:$0xff]   ;;  %v12237_v0 = vld [vmem:[%s12640_s27 + $0x90] sm:$0xff]   ;;  %v5374_v30 = vld [vmem:[%s15457_s0 + $0x8] sm:$0xff]  ;;  %11586 = vmatpush3.bf16.msra.mxu1 %v5567_v37 }
 0x5a3   :  { %v11508_v3 = vpop.f32.mrf.mxu1  ;;  %v12238_v23 = vld [vmem:[%s12640_s27 + $0x98] sm:$0xff]  }
 0x5a4   :  { %v4440_v1 = vadd.f32 %v14315_v57, %v11508_v3  ;;  %v4591_v29 = vmax.f32 %v4429_v44, 0.0  ;;  %v4717_v13 = vmax.f32 %v4593_v39, %v4713_v33  ;;  %v12233_v44 = vld [vmem:[%s12640_s27 + $0x70] sm:$0xff]   ;;  %v5378_v33 = vld [vmem:[%s15457_s0 + $0x28] sm:$0xff] }
 0x5a5   :  { %v4431_v61 = vpop.f32.mrf.mxu1  ;;  %v5375_v39 = vld [vmem:[%s15457_s0 + $0x10] sm:$0xff] }
 0x5a6   :  { %v4432_v10 = vadd.f32 %v14315_v57, %v4431_v61  ;;  %v4594_v12 = vmax.f32 %v4440_v1, 0.0  ;;  %v4715_v60 = vmax.f32 %v4591_v29, %v4711_v43  ;;  %v12231_v1 = vld [vmem:[%s12640_s27 + $0x60] sm:$0xff]   ;;  %v5382_v43 = vld [vmem:[%s15457_s0 + $0x48] sm:$0xff] }
 0x5a7   :  { %v11511_v38 = vpop.f32.mrf.mxu1 }
 0x5a8   :  { %v4453_v35 = vadd.f32 %v14315_v57, %v11511_v38  ;;  %v4592_v15 = vmax.f32 %v4432_v10, 0.0  ;;  %v4718_v61 = vmax.f32 %v4594_v12, %v4714_v18  ;;  %v12234_v10 = vld [vmem:[%s12640_s27 + $0x78] sm:$0xff]   ;;  %v12239_v12 = vld [vmem:[%s12640_s27 + $0xa0] sm:$0xff]   ;;  %v12240_v18 = vld [vmem:[%s12640_s27 + $0xa8] sm:$0xff]  }
 0x5a9   :  { %v4444_v28 = vpop.f32.mrf.mxu1 }
 0x5aa   :  { %v4445_v59 = vadd.f32 %v14315_v57, %v4444_v28  ;;  %v4597_v55 = vmax.f32 %v4453_v35, 0.0  ;;  %v4716_v17 = vmax.f32 %v4592_v15, %v4712_v42  ;;  %v12235_v35 = vld [vmem:[%s12640_s27 + $0x80] sm:$0xff]   ;;  %v5379_v15 = vld [vmem:[%s15457_s0 + $0x30] sm:$0xff] }
 0x5ab   :  { %v11512_v56 = vpop.f32.mrf.mxu1 }
 0x5ac   :  { %v4456_v21 = vadd.f32 %v14315_v57, %v11512_v56  ;;  %v4595_v47 = vmax.f32 %v4445_v59, 0.0  ;;  %v4721_v54 = vmax.f32 %v4597_v55, %v4717_v13  ;;  %v12227_v56 = vld [vmem:[%s12640_s27 + $0x40] sm:$0xff]   ;;  %v5376_v59 = vld [vmem:[%s15457_s0 + $0x18] sm:$0xff]  ;;  %v5383_v13 = vld [vmem:[%s15457_s0 + $0x50] sm:$0xff] }
 0x5ad   :  { %v4447_v4 = vpop.f32.mrf.mxu1  ;;  %v5380_v55 = vld [vmem:[%s15457_s0 + $0x38] sm:$0xff] }
 0x5ae   :  { %v4448_v9 = vadd.f32 %v14315_v57, %v4447_v4  ;;  %v4598_v6 = vmax.f32 %v4456_v21, 0.0  ;;  %v4719_v2 = vmax.f32 %v4595_v47, %v4715_v60  ;;  %v12236_v4 = vld [vmem:[%s12640_s27 + $0x88] sm:$0xff]   ;;  %v5373_v21 = vld [vmem:[%s15457_s0] sm:$0xff]  ;;  %v5384_v47 = vld [vmem:[%s15457_s0 + $0x58] sm:$0xff] }
 0x5af   :  { %v11515_v46 = vpop.f32.mrf.mxu1  ;;  %v5437_v50 = vpack.c.bf16 %v5374_v30, %v5373_v21  ;;  %v5405_v21 = vld [vmem:[%s15457_s0 + $0x100] sm:$0xff]  ;;  %v5406_v30 = vld [vmem:[%s15457_s0 + $0x108] sm:$0xff] }
 0x5b0   :  { %v4469_v8 = vadd.f32 %v14315_v57, %v11515_v46  ;;  %v4596_v31 = vmax.f32 %v4448_v9, 0.0  ;;  %v4722_v52 = vmax.f32 %v4598_v6, %v4718_v61  ;;  %v5438_v46 = vpack.c.bf16 %v5376_v59, %v5375_v39  ;;  %v12251_v9 = vld [vmem:[%s15458_s5] sm:$0xff]   ;;  %v12241_v6 = vld [vmem:[%s12640_s27 + $0xb0] sm:$0xff]   ;;  %v12242_v61 = vld [vmem:[%s12640_s27 + $0xb8] sm:$0xff]   ;;  %s15491_s5 = sld [smem:[#allocation28_spill]] }
 0x5b1   :  { %v4460_v3 = vpop.f32.mrf.mxu1  ;;  %11587 = vmatprep.mubr.msk.bf16.mxu1 %vm1903_vm6, %v5437_v50  ;;  %v5453_v50 = vpack.c.bf16 %v5406_v30, %v5405_v21  ;;  %v5407_v39 = vld [vmem:[%s15457_s0 + $0x110] sm:$0xff]  ;;  %v5408_v59 = vld [vmem:[%s15457_s0 + $0x118] sm:$0xff] }
 0x5b2   :  { %v4461_v25 = vadd.f32 %v14315_v57, %v4460_v3  ;;  %v4601_v7 = vmax.f32 %v4469_v8, 0.0  ;;  %v4720_v36 = vmax.f32 %v4596_v31, %v4716_v17  ;;  %11588 = vmatmul.mubr.msk.bf16.vlgmr.msra.gmra.mxu1 %vm1903_vm6, %v5438_v46  ;;  %v5377_v8 = vld [vmem:[%s15457_s0 + $0x20] sm:$0xff]  ;;  %v5440_v3 = vpack.c.bf16 %v5380_v55, %v5379_v15  ;;  %v5387_v17 = vld [vmem:[%s15457_s0 + $0x70] sm:$0xff]  ;;  %v5414_v55 = vld [vmem:[%s15457_s0 + $0x148] sm:$0xff] }
 0x5b3   :  { %v11516_v24 = vpop.f32.mrf.mxu1  ;;  %v5439_v29 = vpack.c.bf16 %v5378_v33, %v5377_v8  ;;  %v12243_v31 = vld [vmem:[%s12640_s27 + $0xc0] sm:$0xff]   ;;  %v5454_v46 = vpack.c.bf16 %v5408_v59, %v5407_v39  ;;  %v5411_v8 = vld [vmem:[%s15457_s0 + $0x130] sm:$0xff]  ;;  %v5412_v33 = vld [vmem:[%s15457_s0 + $0x138] sm:$0xff] }
 0x5b4   :  { %v4472_v62 = vadd.f32 %v14315_v57, %v11516_v24  ;;  %v4599_v38 = vmax.f32 %v4461_v25, 0.0  ;;  %v4725_v40 = vmax.f32 %v4601_v7, %v4721_v54  ;;  %v5381_v25 = vld [vmem:[%s15457_s0 + $0x40] sm:$0xff]  ;;  %v5442_v24 = vpack.c.bf16 %v5384_v47, %v5383_v13  ;;  %v5388_v54 = vld [vmem:[%s15457_s0 + $0x78] sm:$0xff]  ;;  %v5419_v47 = vld [vmem:[%s15457_s0 + $0x170] sm:$0xff] }
 0x5b5   :  { %v4463_v58 = vpop.f32.mrf.mxu1  ;;  %11591 = vmatprep.mubr.msk.bf16.mxu1 %vm1903_vm6, %v5439_v29  ;;  %v5441_v42 = vpack.c.bf16 %v5382_v43, %v5381_v25  ;;  %v5385_v7 = vld [vmem:[%s15457_s0 + $0x60] sm:$0xff]  ;;  %v5456_v29 = vpack.c.bf16 %v5412_v33, %v5411_v8 }
 0x5b6   :  { %v4602_v48 = vmax.f32 %v4472_v62, 0.0  ;;  %v4464_v51 = vadd.f32 %v14315_v57, %v4463_v58  ;;  %v4723_v22 = vmax.f32 %v4599_v38, %v4719_v2  ;;  %v12220_v57 = vld [vmem:[%s12640_s27 + $0x8] sm:$0xff]   ;;  %v5444_v58 = vpack.c.bf16 %v5388_v54, %v5387_v17  ;;  %v12245_v38 = vld [vmem:[%s12640_s27 + $0xd0] sm:$0xff]   ;;  %v5413_v15 = vld [vmem:[%s15457_s0 + $0x140] sm:$0xff] }
 0x5b7   :  { %v5386_v62 = vld [vmem:[%s15457_s0 + $0x68] sm:$0xff]  ;;  %v5417_v43 = vld [vmem:[%s15457_s0 + $0x160] sm:$0xff]  ;;  %v5424_v17 = vld [vmem:[%s15457_s0 + $0x198] sm:$0xff] }
 0x5b8   :  { %v4726_v41 = vmax.f32 %v4602_v48, %v4722_v52  ;;  %v4600_v53 = vmax.f32 %v4464_v51, 0.0  ;;  %v5443_v60 = vpack.c.bf16 %v5386_v62, %v5385_v7  ;;  %v12244_v52 = vld [vmem:[%s12640_s27 + $0xc8] sm:$0xff]   ;;  %v5389_v48 = vld [vmem:[%s15457_s0 + $0x80] sm:$0xff] }
 0x5b9   :  { %v5390_v51 = vld [vmem:[%s15457_s0 + $0x88] sm:$0xff] }
 0x5ba   :  { %v4724_v28 = vmax.f32 %v4600_v53, %v4720_v36  ;;  %v14369_v5 = vpack.c.bf16 %v4726_v41, %v4725_v40  ;;  %11592 = vmatmul.mubr.msk.bf16.gmra.mxu1 %vm1903_vm6, %v5440_v3  ;;  %v5445_v2 = vpack.c.bf16 %v5390_v51, %v5389_v48  ;;  %v5391_v36 = vld [vmem:[%s15457_s0 + $0x90] sm:$0xff]  ;;  %v5392_v40 = vld [vmem:[%s15457_s0 + $0x98] sm:$0xff]  ;;  %v5457_v3 = vpack.c.bf16 %v5414_v55, %v5413_v15  ;;  %v5422_v7 = vld [vmem:[%s15457_s0 + $0x188] sm:$0xff] }
 0x5bb   :  { %11595 = vmatprep.mubr.msk.bf16.mxu1 %vm1903_vm6, %v5441_v42  ;;  %v5446_v41 = vpack.c.bf16 %v5392_v40, %v5391_v36  ;;  %v12246_v53 = vld [vmem:[%s12640_s27 + $0xd8] sm:$0xff]   ;;  %v5418_v42 = vld [vmem:[%s15457_s0 + $0x168] sm:$0xff]  ;;  %v5427_v48 = vld [vmem:[%s15457_s0 + $0x1b0] sm:$0xff] }
 0x5bc   :  { %11517 = vmatprep.subr.bf16.mxu0 %v14369_v5  ;;  %v14372_v11 = vpack.c.bf16 %v4724_v28, %v4723_v22  ;;  %v12247_v22 = vld [vmem:[%s12640_s27 + $0xe0] sm:$0xff]   ;;  %v5459_v13 = vpack.c.bf16 %v5418_v42, %v5417_v43  ;;  %v5428_v51 = vld [vmem:[%s15457_s0 + $0x1b8] sm:$0xff]  ;;  %v5430_v40 = vld [vmem:[%s15457_s0 + $0x1c8] sm:$0xff] }
 0x5bd   :  { %11518 = vmatpush3.bf16.msra.mxu0 %v14369_v5  ;;  %v5393_v28 = vld [vmem:[%s15457_s0 + $0xa0] sm:$0xff] }
 0x5be   :  { %11519 = vmatprep.subr.bf16.mxu0 %v14372_v11  ;;  %v5429_v36 = vld [vmem:[%s15457_s0 + $0x1c0] sm:$0xff] }
 0x5c1   :  { %11520 = vmatpush3.bf16.msra.mxu0 %v14372_v11 }
 0x5c2   :  { %11651 = vmatprep.subr.bf16.mxu0 %v12251_v9  ;;  %11596 = vmatmul.mubr.msk.bf16.gmra.mxu1 %vm1903_vm6, %v5442_v24  ;;  %v5420_v24 = vld [vmem:[%s15457_s0 + $0x178] sm:$0xff] }
 0x5c3   :  { %11599 = vmatprep.mubr.msk.bf16.mxu1 %vm1903_vm6, %v5443_v60  ;;  %v5423_v60 = vld [vmem:[%s15457_s0 + $0x190] sm:$0xff] }
 0x5c4   :  { %11522 = vmatmul.mubr.msk.bf16.vlgmr.msra.gmra.mxu0 %vm4953_vm8, %v12220_v57  ;;  %v5394_v57 = vld [vmem:[%s15457_s0 + $0xa8] sm:$0xff]  ;;  %v5462_v54 = vpack.c.bf16 %v5424_v17, %v5423_v60 }
 0x5c5   :  { %11525 = vmatprep.mubr.msk.bf16.mxu0 %vm4953_vm8, %v12221_v19  ;;  %11652 = vmatpush3.bf16.msra.mxu0 %v12251_v9  ;;  %v5447_v19 = vpack.c.bf16 %v5394_v57, %v5393_v28  ;;  %v5433_v57 = vld [vmem:[%s15457_s0 + $0x1e0] sm:$0xff] }
 0x5ca   :  { %11600 = vmatmul.mubr.msk.bf16.gmra.mxu1 %vm1903_vm6, %v5444_v58  ;;  %v5425_v58 = vld [vmem:[%s15457_s0 + $0x1a0] sm:$0xff] }
 0x5cb   :  { %11603 = vmatprep.mubr.msk.bf16.mxu1 %vm1903_vm6, %v5445_v2  ;;  %v5464_v2 = vpack.c.bf16 %v5428_v51, %v5427_v48 }
 0x5cc   :  { %11526 = vmatmul.mubr.msk.bf16.gmra.mxu0 %vm4953_vm8, %v12222_v27  ;;  %v5395_v27 = vld [vmem:[%s15457_s0 + $0xb0] sm:$0xff] }
 0x5cd   :  { %11529 = vmatprep.mubr.msk.bf16.mxu0 %vm4953_vm8, %v12223_v34  ;;  %v5396_v34 = vld [vmem:[%s15457_s0 + $0xb8] sm:$0xff] }
 0x5d2   :  { %11604 = vmatmul.mubr.msk.bf16.gmra.mxu1 %vm1903_vm6, %v5446_v41  ;;  %v5465_v41 = vpack.c.bf16 %v5430_v40, %v5429_v36 }
 0x5d3   :  { %11607 = vmatprep.mubr.msk.bf16.mxu1 %vm1903_vm6, %v5447_v19  ;;  %v5434_v19 = vld [vmem:[%s15457_s0 + $0x1e8] sm:$0xff] }
 0x5d4   :  { %11530 = vmatmul.mubr.msk.bf16.gmra.mxu0 %vm4953_vm8, %v12224_v63  ;;  %v5448_v63 = vpack.c.bf16 %v5396_v34, %v5395_v27  ;;  %v5467_v27 = vpack.c.bf16 %v5434_v19, %v5433_v57  ;;  %v5435_v34 = vld [vmem:[%s15457_s0 + $0x1f0] sm:$0xff] }
 0x5d5   :  { %11533 = vmatprep.mubr.msk.bf16.mxu0 %vm4953_vm8, %v12225_v49  ;;  %v12248_v49 = vld [vmem:[%s12640_s27 + $0xe8] sm:$0xff]  }
 0x5da   :  { %11608 = vmatmul.mubr.msk.bf16.gmra.mxu1 %vm1903_vm6, %v5448_v63  ;;  %v5436_v63 = vld [vmem:[%s15457_s0 + $0x1f8] sm:$0xff] }
 0x5dc   :  { %11534 = vmatmul.mubr.msk.bf16.gmra.mxu0 %vm4953_vm8, %v12226_v16  ;;  %v12249_v16 = vld [vmem:[%s12640_s27 + $0xf0] sm:$0xff]  }
 0x5dd   :  { %11537 = vmatprep.mubr.msk.bf16.mxu0 %vm4953_vm8, %v12227_v56  ;;  %v5397_v56 = vld [vmem:[%s15457_s0 + $0xc0] sm:$0xff] }
 0x5e4   :  { %11538 = vmatmul.mubr.msk.bf16.gmra.mxu0 %vm4953_vm8, %v12228_v20  ;;  %v5398_v20 = vld [vmem:[%s15457_s0 + $0xc8] sm:$0xff] }
 0x5e5   :  { %11541 = vmatprep.mubr.msk.bf16.mxu0 %vm4953_vm8, %v12229_v45  ;;  %v5449_v45 = vpack.c.bf16 %v5398_v20, %v5397_v56 }
 0x5e7   :  { %11611 = vmatprep.mubr.msk.bf16.mxu1 %vm1903_vm6, %v5449_v45 }
 0x5ec   :  { %11542 = vmatmul.mubr.msk.bf16.gmra.mxu0 %vm4953_vm8, %v12230_v26  ;;  %v5399_v26 = vld [vmem:[%s15457_s0 + $0xd0] sm:$0xff] }
 0x5ed   :  { %11545 = vmatprep.mubr.msk.bf16.mxu0 %vm4953_vm8, %v12231_v1  ;;  %v5400_v1 = vld [vmem:[%s15457_s0 + $0xd8] sm:$0xff] }
 0x5f4   :  { %11546 = vmatmul.mubr.msk.bf16.gmra.mxu0 %vm4953_vm8, %v12232_v32  ;;  %v5450_v32 = vpack.c.bf16 %v5400_v1, %v5399_v26 }
 0x5f5   :  { %11549 = vmatprep.mubr.msk.bf16.mxu0 %vm4953_vm8, %v12233_v44  ;;  %v12250_v44 = vld [vmem:[%s12640_s27 + $0xf8] sm:$0xff]   ;;  %s15472_s27 = sld [smem:[#allocation14_spill]] }
 0x5f6   :  { %11612 = vmatmul.mubr.msk.bf16.gmra.mxu1 %vm1903_vm6, %v5450_v32 }
 0x5fc   :  { %11550 = vmatmul.mubr.msk.bf16.gmra.mxu0 %vm4953_vm8, %v12234_v10  ;;  %v5401_v10 = vld [vmem:[%s15457_s0 + $0xe0] sm:$0xff] }
 0x5fd   :  { %11553 = vmatprep.mubr.msk.bf16.mxu0 %vm4953_vm8, %v12235_v35  ;;  %v5402_v35 = vld [vmem:[%s15457_s0 + $0xe8] sm:$0xff] }
 0x604   :  { %11554 = vmatmul.mubr.msk.bf16.gmra.mxu0 %vm4953_vm8, %v12236_v4  ;;  %v5451_v4 = vpack.c.bf16 %v5402_v35, %v5401_v10 }
 0x605   :  { %11557 = vmatprep.mubr.msk.bf16.mxu0 %vm4953_vm8, %v12237_v0  ;;  %v5403_v0 = vld [vmem:[%s15457_s0 + $0xf0] sm:$0xff] }
 0x606   :  { %v5452_v37 = vpack.c.bf16 %v5404_v14, %v5403_v0  ;;  %11615 = vmatprep.mubr.msk.bf16.mxu1 %vm1903_vm6, %v5451_v4 }
 0x608   :  { %11616 = vmatmul.mubr.msk.bf16.gmra.mxu1 %vm1903_vm6, %v5452_v37 }
 0x609   :  { %11619 = vmatprep.mubr.msk.bf16.mxu1 %vm1903_vm6, %v5453_v50 }
 0x60c   :  { %11558 = vmatmul.mubr.msk.bf16.gmra.mxu0 %vm4953_vm8, %v12238_v23  ;;  %v5409_v23 = vld [vmem:[%s15457_s0 + $0x120] sm:$0xff] }
 0x60d   :  { %11561 = vmatprep.mubr.msk.bf16.mxu0 %vm4953_vm8, %v12239_v12  ;;  %v5410_v12 = vld [vmem:[%s15457_s0 + $0x128] sm:$0xff] }
 0x60e   :  { %v5455_v9 = vpack.c.bf16 %v5410_v12, %v5409_v23 }
 0x610   :  { %11620 = vmatmul.mubr.msk.bf16.gmra.mxu1 %vm1903_vm6, %v5454_v46 }
 0x611   :  { %11623 = vmatprep.mubr.msk.bf16.mxu1 %vm1903_vm6, %v5455_v9 }
 0x614   :  { %11562 = vmatmul.mubr.msk.bf16.gmra.mxu0 %vm4953_vm8, %v12240_v18  ;;  %v5415_v18 = vld [vmem:[%s15457_s0 + $0x150] sm:$0xff] }
 0x615   :  { %11565 = vmatprep.mubr.msk.bf16.mxu0 %vm4953_vm8, %v12241_v6  ;;  %v5416_v6 = vld [vmem:[%s15457_s0 + $0x158] sm:$0xff] }
 0x616   :  { %v5458_v25 = vpack.c.bf16 %v5416_v6, %v5415_v18 }
 0x618   :  { %11624 = vmatmul.mubr.msk.bf16.gmra.mxu1 %vm1903_vm6, %v5456_v29 }
 0x619   :  { %11627 = vmatprep.mubr.msk.bf16.mxu1 %vm1903_vm6, %v5457_v3 }
 0x61c   :  { %11566 = vmatmul.mubr.msk.bf16.gmra.mxu0 %vm4953_vm8, %v12242_v61  ;;  %v5460_v61 = vpack.c.bf16 %v5420_v24, %v5419_v47 }
 0x61d   :  { %11569 = vmatprep.mubr.msk.bf16.mxu0 %vm4953_vm8, %v12243_v31  ;;  %v5421_v31 = vld [vmem:[%s15457_s0 + $0x180] sm:$0xff] }
 0x61e   :  { %v5461_v62 = vpack.c.bf16 %v5422_v7, %v5421_v31 }
 0x620   :  { %11628 = vmatmul.mubr.msk.bf16.gmra.mxu1 %vm1903_vm6, %v5458_v25 }
 0x621   :  { %11631 = vmatprep.mubr.msk.bf16.mxu1 %vm1903_vm6, %v5459_v13 }
 0x624   :  { %11570 = vmatmul.mubr.msk.bf16.gmra.mxu0 %vm4953_vm8, %v12244_v52  ;;  %v5426_v52 = vld [vmem:[%s15457_s0 + $0x1a8] sm:$0xff] }
 0x625   :  { %11573 = vmatprep.mubr.msk.bf16.mxu0 %vm4953_vm8, %v12245_v38  ;;  %v5463_v38 = vpack.c.bf16 %v5426_v52, %v5425_v58 }
 0x628   :  { %11632 = vmatmul.mubr.msk.bf16.gmra.mxu1 %vm1903_vm6, %v5460_v61 }
 0x629   :  { %11635 = vmatprep.mubr.msk.bf16.mxu1 %vm1903_vm6, %v5461_v62 }
 0x62c   :  { %11574 = vmatmul.mubr.msk.bf16.gmra.mxu0 %vm4953_vm8, %v12246_v53  ;;  %v5431_v53 = vld [vmem:[%s15457_s0 + $0x1d0] sm:$0xff] }
 0x62d   :  { %11577 = vmatprep.mubr.msk.bf16.mxu0 %vm4953_vm8, %v12247_v22  ;;  %v5432_v22 = vld [vmem:[%s15457_s0 + $0x1d8] sm:$0xff]  ;;  %s15490_s0 = sld [smem:[#allocation29_spill]] }
 0x62e   :  { %v5466_v28 = vpack.c.bf16 %v5432_v22, %v5431_v53 }
 0x630   :  { %11636 = vmatmul.mubr.msk.bf16.gmra.mxu1 %vm1903_vm6, %v5462_v54 }
 0x631   :  { %11639 = vmatprep.mubr.msk.bf16.mxu1 %vm1903_vm6, %v5463_v38 }
 0x634   :  { %11578 = vmatmul.mubr.msk.bf16.gmra.mxu0 %vm4953_vm8, %v12248_v49  ;;  %v5468_v49 = vpack.c.bf16 %v5436_v63, %v5435_v34  ;;  %v12252_v63 = vld [vmem:[%s15459_s9 + $0x8] ss:$0 sps:$4 sm:$0x33]  }
 0x635   :  { %11581 = vmatprep.mubr.msk.bf16.mxu0 %vm4953_vm8, %v12249_v16 }
 0x638   :  { %11640 = vmatmul.mubr.msk.bf16.gmra.mxu1 %vm1903_vm6, %v5464_v2 }
 0x639   :  { %11643 = vmatprep.mubr.msk.bf16.mxu1 %vm1903_vm6, %v5465_v41 }
 0x63c   :  { %11582 = vmatmul.mubr.msk.bf16.gmra.mxu0 %vm4953_vm8, %v12250_v44 }
 0x640   :  { %11644 = vmatmul.mubr.msk.bf16.gmra.mxu1 %vm1903_vm6, %v5466_v28 }
 0x641   :  { %11647 = vmatprep.mubr.msk.bf16.mxu1 %vm1903_vm6, %v5467_v27 }
 0x648   :  { %11648 = vmatmul.mubr.msk.bf16.gmra.mxu1 %vm1903_vm6, %v5468_v49 }
 0x672   :  { %v14557_v19 = vpop.f32.mrf.mxu1 }
 0x684   :  { %v11523_v16 = vpop.f32.mrf.mxu0 }
 0x686   :  { %v5084_v56 = vpop.f32.mrf.mxu0 }
 0x688   :  { %v11524_v20 = vpop.f32.mrf.mxu0 }
 0x689   :  { %v5340_v1 = vpack.c.bf16 %v11524_v20, %v11523_v16  ;;  %v15460_v20 = vld [vmem:[#allocation45_spill] sm:$0xff] }
 0x68a   :  { %v5087_v45 = vpop.f32.mrf.mxu0 }
 0x68b   :  { %v5339_v26 = vpack.c.bf16 %v5087_v45, %v5084_v56  ;;  %v14560_v56 = vpop.f32.mrf.mxu1  ;;  %v6532_v45 = vand.u32 %v12252_v63, %v15460_v20 }
 0x68c   :  { %v11527_v32 = vpop.f32.mrf.mxu0 }
 0x68d   :  { %11653 = vmatprep.mubr.msk.bf16.mxu0 %vm368_vm3, %v5339_v26  ;;  %11717 = vmatprep.subr.bf16.mxu1 %v6532_v45 }
 0x68e   :  { %v5100_v44 = vpop.f32.mrf.mxu0  ;;  %11654 = vmatmul.mubr.msk.bf16.vlgmr.msra.gmra.mxu0 %vm368_vm3, %v5340_v1  ;;  %11718 = vmatpush3.bf16.msra.mxu1 %v6532_v45 }
 0x690   :  { %v11528_v10 = vpop.f32.mrf.mxu0 }
 0x691   :  { %v5342_v0 = vpack.c.bf16 %v11528_v10, %v11527_v32  ;;  %v14565_v32 = vpop.f32.mrf.mxu1 }
 0x692   :  { %v5103_v35 = vpop.f32.mrf.mxu0 }
 0x693   :  { %v5341_v4 = vpack.c.bf16 %v5103_v35, %v5100_v44  ;;  %v12253_v44 = vld [vmem:[%s15459_s9] sm:$0xff]   ;;  %s15492_s9 = sld [smem:[#allocation31_spill]] }
 0x694   :  { %v11531_v14 = vpop.f32.mrf.mxu0  ;;  %11719 = vmatprep.subr.bf16.mxu1 %v12253_v44 }
 0x695   :  { %11657 = vmatprep.mubr.msk.bf16.mxu0 %vm368_vm3, %v5341_v4  ;;  %11720 = vmatpush3.bf16.msra.mxu1 %v12253_v44 }
 0x696   :  { %v5116_v37 = vpop.f32.mrf.mxu0  ;;  %11658 = vmatmul.mubr.msk.bf16.gmra.mxu0 %vm368_vm3, %v5342_v0 }
 0x698   :  { %v11532_v21 = vpop.f32.mrf.mxu0 }
 0x699   :  { %v5344_v39 = vpack.c.bf16 %v11532_v21, %v11531_v14  ;;  %v14568_v14 = vpop.f32.mrf.mxu1 }
 0x69a   :  { %v5119_v30 = vpop.f32.mrf.mxu0 }
 0x69b   :  { %v5343_v50 = vpack.c.bf16 %v5119_v30, %v5116_v37  ;;  %v14572_v30 = vpop.f32.mrf.mxu1 }
 0x69c   :  { %v11535_v59 = vpop.f32.mrf.mxu0 }
 0x69d   :  { %11661 = vmatprep.mubr.msk.bf16.mxu0 %vm368_vm3, %v5343_v50 }
 0x69e   :  { %v5132_v46 = vpop.f32.mrf.mxu0  ;;  %11662 = vmatmul.mubr.msk.bf16.gmra.mxu0 %vm368_vm3, %v5344_v39 }
 0x6a0   :  { %v11536_v23 = vpop.f32.mrf.mxu0 }
 0x6a1   :  { %v5346_v8 = vpack.c.bf16 %v11536_v23, %v11535_v59  ;;  %v14574_v23 = vpop.f32.mrf.mxu1 }
 0x6a2   :  { %v5135_v12 = vpop.f32.mrf.mxu0 }
 0x6a3   :  { %v5345_v9 = vpack.c.bf16 %v5135_v12, %v5132_v46 }
 0x6a4   :  { %v11539_v33 = vpop.f32.mrf.mxu0 }
 0x6a5   :  { %11665 = vmatprep.mubr.msk.bf16.mxu0 %vm368_vm3, %v5345_v9 }
 0x6a6   :  { %v5148_v29 = vpop.f32.mrf.mxu0  ;;  %11666 = vmatmul.mubr.msk.bf16.gmra.mxu0 %vm368_vm3, %v5346_v8  ;;  %v14578_v8 = vpop.f32.mrf.mxu1 }
 0x6a8   :  { %v11540_v15 = vpop.f32.mrf.mxu0 }
 0x6a9   :  { %v5348_v18 = vpack.c.bf16 %v11540_v15, %v11539_v33 }
 0x6aa   :  { %v5151_v55 = vpop.f32.mrf.mxu0 }
 0x6ab   :  { %v5347_v3 = vpack.c.bf16 %v5151_v55, %v5148_v29 }
 0x6ac   :  { %v11543_v6 = vpop.f32.mrf.mxu0 }
 0x6ad   :  { %11669 = vmatprep.mubr.msk.bf16.mxu0 %vm368_vm3, %v5347_v3  ;;  %v14580_v3 = vpop.f32.mrf.mxu1 }
 0x6ae   :  { %v5164_v25 = vpop.f32.mrf.mxu0  ;;  %11670 = vmatmul.mubr.msk.bf16.gmra.mxu0 %vm368_vm3, %v5348_v18 }
 0x6b0   :  { %v11544_v43 = vpop.f32.mrf.mxu0 }
 0x6b1   :  { %v5350_v47 = vpack.c.bf16 %v11544_v43, %v11543_v6 }
 0x6b2   :  { %v5167_v42 = vpop.f32.mrf.mxu0 }
 0x6b3   :  { %v5349_v13 = vpack.c.bf16 %v5167_v42, %v5164_v25  ;;  %v14584_v25 = vpop.f32.mrf.mxu1 }
 0x6b4   :  { %v11547_v24 = vpop.f32.mrf.mxu0 }
 0x6b5   :  { %11673 = vmatprep.mubr.msk.bf16.mxu0 %vm368_vm3, %v5349_v13 }
 0x6b6   :  { %v5180_v61 = vpop.f32.mrf.mxu0  ;;  %11674 = vmatmul.mubr.msk.bf16.gmra.mxu0 %vm368_vm3, %v5350_v47 }
 0x6b8   :  { %v11548_v31 = vpop.f32.mrf.mxu0 }
 0x6b9   :  { %v5352_v60 = vpack.c.bf16 %v11548_v31, %v11547_v24  ;;  %v14586_v24 = vpop.f32.mrf.mxu1 }
 0x6ba   :  { %v5183_v7 = vpop.f32.mrf.mxu0 }
 0x6bb   :  { %v5351_v62 = vpack.c.bf16 %v5183_v7, %v5180_v61  ;;  %v14590_v7 = vpop.f32.mrf.mxu1 }
 0x6bc   :  { %v11551_v17 = vpop.f32.mrf.mxu0 }
 0x6bd   :  { %11677 = vmatprep.mubr.msk.bf16.mxu0 %vm368_vm3, %v5351_v62 }
 0x6be   :  { %v5196_v54 = vpop.f32.mrf.mxu0  ;;  %11678 = vmatmul.mubr.msk.bf16.gmra.mxu0 %vm368_vm3, %v5352_v60 }
 0x6c0   :  { %v11552_v58 = vpop.f32.mrf.mxu0 }
 0x6c1   :  { %v5354_v48 = vpack.c.bf16 %v11552_v58, %v11551_v17  ;;  %v14592_v58 = vpop.f32.mrf.mxu1 }
 0x6c2   :  { %v5199_v52 = vpop.f32.mrf.mxu0 }
 0x6c3   :  { %v5353_v38 = vpack.c.bf16 %v5199_v52, %v5196_v54 }
 0x6c4   :  { %v11555_v51 = vpop.f32.mrf.mxu0 }
 0x6c5   :  { %11681 = vmatprep.mubr.msk.bf16.mxu0 %vm368_vm3, %v5353_v38 }
 0x6c6   :  { %v5212_v2 = vpop.f32.mrf.mxu0  ;;  %11682 = vmatmul.mubr.msk.bf16.gmra.mxu0 %vm368_vm3, %v5354_v48  ;;  %v14596_v48 = vpop.f32.mrf.mxu1 }
 0x6c8   :  { %v11556_v36 = vpop.f32.mrf.mxu0 }
 0x6c9   :  { %v5356_v53 = vpack.c.bf16 %v11556_v36, %v11555_v51 }
 0x6ca   :  { %v5215_v40 = vpop.f32.mrf.mxu0 }
 0x6cb   :  { %v5355_v41 = vpack.c.bf16 %v5215_v40, %v5212_v2  ;;  %v14598_v40 = vpop.f32.mrf.mxu1 }
 0x6cc   :  { %v11559_v22 = vpop.f32.mrf.mxu0 }
 0x6cd   :  { %11685 = vmatprep.mubr.msk.bf16.mxu0 %vm368_vm3, %v5355_v41  ;;  %v14602_v41 = vpop.f32.mrf.mxu1 }
 0x6ce   :  { %v5228_v28 = vpop.f32.mrf.mxu0  ;;  %11686 = vmatmul.mubr.msk.bf16.gmra.mxu0 %vm368_vm3, %v5356_v53 }
 0x6cf   :  { %v14604_v53 = vpop.f32.mrf.mxu1 }
 0x6d0   :  { %v11560_v57 = vpop.f32.mrf.mxu0 }
 0x6d1   :  { %v5358_v49 = vpack.c.bf16 %v11560_v57, %v11559_v22  ;;  %v14606_v22 = vpop.f32.mrf.mxu1 }
 0x6d2   :  { %v5231_v27 = vpop.f32.mrf.mxu0 }
 0x6d3   :  { %v5357_v34 = vpack.c.bf16 %v5231_v27, %v5228_v28  ;;  %v14608_v28 = vpop.f32.mrf.mxu1 }
 0x6d4   :  { %v11563_v16 = vpop.f32.mrf.mxu0 }
 0x6d5   :  { %11689 = vmatprep.mubr.msk.bf16.mxu0 %vm368_vm3, %v5357_v34  ;;  %v14610_v57 = vpop.f32.mrf.mxu1 }
 0x6d6   :  { %v5244_v26 = vpop.f32.mrf.mxu0  ;;  %11690 = vmatmul.mubr.msk.bf16.gmra.mxu0 %vm368_vm3, %v5358_v49 }
 0x6d7   :  { %v14612_v27 = vpop.f32.mrf.mxu1 }
 0x6d8   :  { %v11564_v1 = vpop.f32.mrf.mxu0 }
 0x6d9   :  { %v5360_v4 = vpack.c.bf16 %v11564_v1, %v11563_v16  ;;  %v14614_v34 = vpop.f32.mrf.mxu1 }
 0x6da   :  { %v5247_v10 = vpop.f32.mrf.mxu0 }
 0x6db   :  { %v5359_v35 = vpack.c.bf16 %v5247_v10, %v5244_v26  ;;  %v14616_v63 = vpop.f32.mrf.mxu1 }
 0x6dc   :  { %v11567_v0 = vpop.f32.mrf.mxu0 }
 0x6dd   :  { %11693 = vmatprep.mubr.msk.bf16.mxu0 %vm368_vm3, %v5359_v35  ;;  %v14618_v49 = vpop.f32.mrf.mxu1 }
 0x6de   :  { %v5260_v37 = vpop.f32.mrf.mxu0  ;;  %11694 = vmatmul.mubr.msk.bf16.gmra.mxu0 %vm368_vm3, %v5360_v4 }
 0x6df   :  { %v14620_v16 = vpop.f32.mrf.mxu1 }
 0x6e0   :  { %v11568_v21 = vpop.f32.mrf.mxu0 }
 0x6e1   :  { %v5362_v59 = vpack.c.bf16 %v11568_v21, %v11567_v0  ;;  %v14622_v45 = vpop.f32.mrf.mxu1 }
 0x6e2   :  { %v5263_v50 = vpop.f32.mrf.mxu0 }
 0x6e3   :  { %v5361_v39 = vpack.c.bf16 %v5263_v50, %v5260_v37  ;;  %v14624_v26 = vpop.f32.mrf.mxu1 }
 0x6e4   :  { %v11571_v46 = vpop.f32.mrf.mxu0 }
 0x6e5   :  { %11697 = vmatprep.mubr.msk.bf16.mxu0 %vm368_vm3, %v5361_v39  ;;  %v14626_v1 = vpop.f32.mrf.mxu1 }
 0x6e6   :  { %v5276_v12 = vpop.f32.mrf.mxu0  ;;  %11698 = vmatmul.mubr.msk.bf16.gmra.mxu0 %vm368_vm3, %v5362_v59 }
 0x6e7   :  { %v14628_v44 = vpop.f32.mrf.mxu1 }
 0x6e8   :  { %v11572_v9 = vpop.f32.mrf.mxu0 }
 0x6e9   :  { %v5364_v15 = vpack.c.bf16 %v11572_v9, %v11571_v46  ;;  %v14630_v10 = vpop.f32.mrf.mxu1 }
 0x6ea   :  { %v5279_v33 = vpop.f32.mrf.mxu0 }
 0x6eb   :  { %v5363_v29 = vpack.c.bf16 %v5279_v33, %v5276_v12  ;;  %v14632_v35 = vpop.f32.mrf.mxu1  ;;  %v14643_v12 = vld [vmem:[%s15461_s13] ss:$0 sm:$0xff]  ;;  %s15493_s13 = sld [smem:[#allocation30_spill]] }
 0x6ec   :  { %v11575_v55 = vpop.f32.mrf.mxu0 }
 0x6ed   :  { %11701 = vmatprep.mubr.msk.bf16.mxu0 %vm368_vm3, %v5363_v29  ;;  %v14634_v4 = vpop.f32.mrf.mxu1 }
 0x6ee   :  { %v5292_v18 = vpop.f32.mrf.mxu0  ;;  %11702 = vmatmul.mubr.msk.bf16.gmra.mxu0 %vm368_vm3, %v5364_v15 }
 0x6ef   :  { %v14636_v0 = vpop.f32.mrf.mxu1 }
 0x6f0   :  { %v11576_v6 = vpop.f32.mrf.mxu0 }
 0x6f1   :  { %v5366_v13 = vpack.c.bf16 %v11576_v6, %v11575_v55  ;;  %v14638_v50 = vpop.f32.mrf.mxu1 }
 0x6f2   :  { %v5295_v43 = vpop.f32.mrf.mxu0 }
 0x6f3   :  { %v5365_v42 = vpack.c.bf16 %v5295_v43, %v5292_v18  ;;  %v14646_v29 = vpop.f32.mrf.mxu1 }
 0x6f4   :  { %v11579_v47 = vpop.f32.mrf.mxu0 }
 0x6f5   :  { %11705 = vmatprep.mubr.msk.bf16.mxu0 %vm368_vm3, %v5365_v42 }
 0x6f6   :  { %v5308_v61 = vpop.f32.mrf.mxu0  ;;  %11706 = vmatmul.mubr.msk.bf16.gmra.mxu0 %vm368_vm3, %v5366_v13  ;;  %v14653_v13 = vpop.f32.mrf.mxu1 }
 0x6f8   :  { %v11580_v31 = vpop.f32.mrf.mxu0 }
 0x6f9   :  { %v5368_v17 = vpack.c.bf16 %v11580_v31, %v11579_v47 }
 0x6fa   :  { %v5311_v62 = vpop.f32.mrf.mxu0 }
 0x6fb   :  { %v5367_v60 = vpack.c.bf16 %v5311_v62, %v5308_v61 }
 0x6fc   :  { %v11583_v54 = vpop.f32.mrf.mxu0 }
 0x6fd   :  { %11709 = vmatprep.mubr.msk.bf16.mxu0 %vm368_vm3, %v5367_v60 }
 0x6fe   :  { %v5324_v52 = vpop.f32.mrf.mxu0  ;;  %11710 = vmatmul.mubr.msk.bf16.gmra.mxu0 %vm368_vm3, %v5368_v17 }
 0x700   :  { %v11584_v38 = vpop.f32.mrf.mxu0 }
 0x701   :  { %v5370_v36 = vpack.c.bf16 %v11584_v38, %v11583_v54  ;;  %v14658_v38 = vpop.f32.mrf.mxu1 }
 0x702   :  { %v5327_v51 = vpop.f32.mrf.mxu0 }
 0x703   :  { %v5369_v2 = vpack.c.bf16 %v5327_v51, %v5324_v52 }
 0x705   :  { %11713 = vmatprep.mubr.msk.bf16.mxu0 %vm368_vm3, %v5369_v2 }
 0x706   :  { %11714 = vmatmul.mubr.msk.bf16.gmra.mxu0 %vm368_vm3, %v5370_v36 }
 0x74e   :  { %v11655_v37 = vpop.f32.mrf.mxu0 }
 0x74f   :  { %v6003_v59 = vadd.f32 %v11655_v37, %v14557_v19 }
 0x750   :  { %v5994_v21 = vpop.f32.mrf.mxu0 }
 0x751   :  { %v5995_v39 = vadd.f32 %v5994_v21, %v14560_v56  ;;  %v6258_v6 = vadd.f32 %v14643_v12, %v6003_v59 }
 0x752   :  { %v11656_v46 = vpop.f32.mrf.mxu0 }
 0x753   :  { %v6006_v9 = vadd.f32 %v11656_v46, %v14565_v32  ;;  %v6256_v15 = vadd.f32 %v14643_v12, %v5995_v39  ;;  %v6322_v31 = vmax.f32 %v6258_v6, 0.0  ;;  %v14667_v39 = vpop.f32.mrf.mxu1 }
 0x754   :  { %v5997_v33 = vpop.f32.mrf.mxu0 }
 0x755   :  { %v6259_v55 = vadd.f32 %v14643_v12, %v6006_v9  ;;  %v5998_v18 = vadd.f32 %v5997_v33, %v14568_v14  ;;  %v6320_v47 = vmax.f32 %v6256_v15, 0.0 }
 0x756   :  { %v11659_v43 = vpop.f32.mrf.mxu0 }
 0x757   :  { %v6257_v56 = vadd.f32 %v14643_v12, %v5998_v18  ;;  %v6323_v19 = vmax.f32 %v6259_v55, 0.0  ;;  %v6019_v62 = vadd.f32 %v11659_v43, %v14572_v30 }
 0x758   :  { %v6010_v42 = vpop.f32.mrf.mxu0 }
 0x759   :  { %v6321_v32 = vmax.f32 %v6257_v56, 0.0  ;;  %v6011_v61 = vadd.f32 %v6010_v42, %v14574_v23  ;;  %v6385_v54 = vpack.c.bf16 %v6323_v19, %v6322_v31  ;;  %v6262_v23 = vadd.f32 %v14643_v12, %v6019_v62  ;;  %v14672_v56 = vpop.f32.mrf.mxu1 }
 0x75a   :  { %v11660_v60 = vpop.f32.mrf.mxu0 }
 0x75b   :  { %v6384_v17 = vpack.c.bf16 %v6321_v32, %v6320_v47  ;;  %v6022_v14 = vadd.f32 %v11660_v60, %v14578_v8  ;;  %v6260_v51 = vadd.f32 %v14643_v12, %v6011_v61  ;;  %v6326_v33 = vmax.f32 %v6262_v23, 0.0  ;;  %v14681_v31 = vpop.f32.mrf.mxu1 }
 0x75c   :  { %v6013_v52 = vpop.f32.mrf.mxu0 }
 0x75d   :  { %v6263_v2 = vadd.f32 %v14643_v12, %v6022_v14  ;;  %v6014_v36 = vadd.f32 %v6013_v52, %v14580_v3  ;;  %11721 = vmatprep.mubr.msk.bf16.mxu1 %vm3734_vm7, %v6384_v17  ;;  %v6324_v59 = vmax.f32 %v6260_v51, 0.0  ;;  %v14686_v23 = vpop.f32.mrf.mxu1 }
 0x75e   :  { %v11663_v37 = vpop.f32.mrf.mxu0  ;;  %11722 = vmatmul.mubr.msk.bf16.vlgmr.msra.gmra.mxu1 %vm3734_vm7, %v6385_v54 }
 0x75f   :  { %v6261_v30 = vadd.f32 %v14643_v12, %v6014_v36  ;;  %v6327_v8 = vmax.f32 %v6263_v2, 0.0  ;;  %v6035_v3 = vadd.f32 %v11663_v37, %v14584_v25 }
 0x760   :  { %v6026_v21 = vpop.f32.mrf.mxu0 }
 0x761   :  { %v6325_v46 = vmax.f32 %v6261_v30, 0.0  ;;  %v6027_v9 = vadd.f32 %v6026_v21, %v14586_v24  ;;  %v6387_v6 = vpack.c.bf16 %v6327_v8, %v6326_v33  ;;  %v6266_v24 = vadd.f32 %v14643_v12, %v6035_v3 }
 0x762   :  { %v11664_v15 = vpop.f32.mrf.mxu0 }
 0x763   :  { %v6386_v55 = vpack.c.bf16 %v6325_v46, %v6324_v59  ;;  %v6038_v18 = vadd.f32 %v11664_v15, %v14590_v7  ;;  %v6264_v19 = vadd.f32 %v14643_v12, %v6027_v9  ;;  %v6330_v14 = vmax.f32 %v6266_v24, 0.0  ;;  %v14695_v46 = vpop.f32.mrf.mxu1 }
 0x764   :  { %v6029_v43 = vpop.f32.mrf.mxu0 }
 0x765   :  { %v6267_v42 = vadd.f32 %v14643_v12, %v6038_v18  ;;  %v6030_v47 = vadd.f32 %v6029_v43, %v14592_v58  ;;  %11725 = vmatprep.mubr.msk.bf16.mxu1 %vm3734_vm7, %v6386_v55  ;;  %v6328_v62 = vmax.f32 %v6264_v19, 0.0 }
 0x766   :  { %v11667_v32 = vpop.f32.mrf.mxu0  ;;  %11726 = vmatmul.mubr.msk.bf16.gmra.mxu1 %vm3734_vm7, %v6387_v6 }
 0x767   :  { %v6265_v25 = vadd.f32 %v14643_v12, %v6030_v47  ;;  %v6331_v7 = vmax.f32 %v6267_v42, 0.0  ;;  %v6051_v58 = vadd.f32 %v11667_v32, %v14596_v48  ;;  %v14700_v42 = vpop.f32.mrf.mxu1 }
 0x768   :  { %v6042_v61 = vpop.f32.mrf.mxu0 }
 0x769   :  { %v6329_v60 = vmax.f32 %v6265_v25, 0.0  ;;  %v6043_v17 = vadd.f32 %v6042_v61, %v14598_v40  ;;  %v6389_v2 = vpack.c.bf16 %v6331_v7, %v6330_v14  ;;  %v6270_v40 = vadd.f32 %v14643_v12, %v6051_v58  ;;  %v14709_v61 = vpop.f32.mrf.mxu1 }
 0x76a   :  { %v11668_v54 = vpop.f32.mrf.mxu0 }
 0x76b   :  { %v6388_v52 = vpack.c.bf16 %v6329_v60, %v6328_v62  ;;  %v6054_v51 = vadd.f32 %v11668_v54, %v14602_v41  ;;  %v6268_v37 = vadd.f32 %v14643_v12, %v6043_v17  ;;  %v6334_v15 = vmax.f32 %v6270_v40, 0.0 }
 0x76c   :  { %v6045_v36 = vpop.f32.mrf.mxu0 }
 0x76d   :  { %v6271_v30 = vadd.f32 %v14643_v12, %v6054_v51  ;;  %v6046_v8 = vadd.f32 %v6045_v36, %v14604_v53  ;;  %11729 = vmatprep.mubr.msk.bf16.mxu1 %vm3734_vm7, %v6388_v52  ;;  %v6332_v9 = vmax.f32 %v6268_v37, 0.0  ;;  %v14714_v36 = vpop.f32.mrf.mxu1 }
 0x76e   :  { %v11671_v21 = vpop.f32.mrf.mxu0  ;;  %11730 = vmatmul.mubr.msk.bf16.gmra.mxu1 %vm3734_vm7, %v6389_v2 }
 0x76f   :  { %v6269_v48 = vadd.f32 %v14643_v12, %v6046_v8  ;;  %v6335_v41 = vmax.f32 %v6271_v30, 0.0  ;;  %v6067_v53 = vadd.f32 %v11671_v21, %v14606_v22 }
 0x770   :  { %v6058_v59 = vpop.f32.mrf.mxu0 }
 0x771   :  { %v6333_v33 = vmax.f32 %v6269_v48, 0.0  ;;  %v6059_v3 = vadd.f32 %v6058_v59, %v14608_v28  ;;  %v6391_v43 = vpack.c.bf16 %v6335_v41, %v6334_v15  ;;  %v6274_v28 = vadd.f32 %v14643_v12, %v6067_v53  ;;  %v14723_v48 = vpop.f32.mrf.mxu1 }
 0x772   :  { %v11672_v55 = vpop.f32.mrf.mxu0 }
 0x773   :  { %v6390_v18 = vpack.c.bf16 %v6333_v33, %v6332_v9  ;;  %v6070_v6 = vadd.f32 %v11672_v55, %v14610_v57  ;;  %v6272_v47 = vadd.f32 %v14643_v12, %v6059_v3  ;;  %v6338_v14 = vmax.f32 %v6274_v28, 0.0 }
 0x774   :  { %v6061_v19 = vpop.f32.mrf.mxu0 }
 0x775   :  { %v6275_v24 = vadd.f32 %v14643_v12, %v6070_v6  ;;  %v6062_v32 = vadd.f32 %v6061_v19, %v14612_v27  ;;  %11733 = vmatprep.mubr.msk.bf16.mxu1 %vm3734_vm7, %v6390_v18  ;;  %v6336_v62 = vmax.f32 %v6272_v47, 0.0  ;;  %v14728_v6 = vpop.f32.mrf.mxu1 }
 0x776   :  { %v11675_v25 = vpop.f32.mrf.mxu0  ;;  %11734 = vmatmul.mubr.msk.bf16.gmra.mxu1 %vm3734_vm7, %v6391_v43 }
 0x777   :  { %v6273_v22 = vadd.f32 %v14643_v12, %v6062_v32  ;;  %v6339_v57 = vmax.f32 %v6275_v24, 0.0  ;;  %v6083_v27 = vadd.f32 %v11675_v25, %v14614_v34  ;;  %v14737_v28 = vpop.f32.mrf.mxu1 }
 0x778   :  { %v6074_v7 = vpop.f32.mrf.mxu0 }
 0x779   :  { %v6337_v60 = vmax.f32 %v6273_v22, 0.0  ;;  %v6075_v17 = vadd.f32 %v6074_v7, %v14616_v63  ;;  %v6393_v51 = vpack.c.bf16 %v6339_v57, %v6338_v14  ;;  %v6278_v63 = vadd.f32 %v14643_v12, %v6083_v27 }
 0x77a   :  { %v11676_v58 = vpop.f32.mrf.mxu0 }
 0x77b   :  { %v6392_v54 = vpack.c.bf16 %v6337_v60, %v6336_v62  ;;  %v6086_v52 = vadd.f32 %v11676_v58, %v14618_v49  ;;  %v6276_v37 = vadd.f32 %v14643_v12, %v6075_v17  ;;  %v6342_v33 = vmax.f32 %v6278_v63, 0.0  ;;  %v14742_v58 = vpop.f32.mrf.mxu1 }
 0x77c   :  { %v6077_v2 = vpop.f32.mrf.mxu0 }
 0x77d   :  { %v6279_v30 = vadd.f32 %v14643_v12, %v6086_v52  ;;  %v6078_v8 = vadd.f32 %v6077_v2, %v14620_v16  ;;  %11737 = vmatprep.mubr.msk.bf16.mxu1 %vm3734_vm7, %v6392_v54  ;;  %v6340_v41 = vmax.f32 %v6276_v37, 0.0 }
 0x77e   :  { %v11679_v40 = vpop.f32.mrf.mxu0  ;;  %11738 = vmatmul.mubr.msk.bf16.gmra.mxu1 %vm3734_vm7, %v6393_v51 }
 0x77f   :  { %v6277_v34 = vadd.f32 %v14643_v12, %v6078_v8  ;;  %v6343_v49 = vmax.f32 %v6279_v30, 0.0  ;;  %v6099_v16 = vadd.f32 %v11679_v40, %v14622_v45  ;;  %v14751_v30 = vpop.f32.mrf.mxu1 }
 0x780   :  { %v6090_v21 = vpop.f32.mrf.mxu0 }
 0x781   :  { %v6341_v59 = vmax.f32 %v6277_v34, 0.0  ;;  %v6091_v9 = vadd.f32 %v6090_v21, %v14624_v26  ;;  %v6395_v55 = vpack.c.bf16 %v6343_v49, %v6342_v33  ;;  %v6282_v26 = vadd.f32 %v14643_v12, %v6099_v16  ;;  %v14756_v33 = vpop.f32.mrf.mxu1 }
 0x782   :  { %v11680_v3 = vpop.f32.mrf.mxu0 }
 0x783   :  { %v6394_v15 = vpack.c.bf16 %v6341_v59, %v6340_v41  ;;  %v6102_v53 = vadd.f32 %v11680_v3, %v14626_v1  ;;  %v6280_v43 = vadd.f32 %v14643_v12, %v6091_v9  ;;  %v6346_v7 = vmax.f32 %v6282_v26, 0.0 }
 0x784   :  { %v6093_v18 = vpop.f32.mrf.mxu0 }
 0x785   :  { %v6283_v19 = vadd.f32 %v14643_v12, %v6102_v53  ;;  %v6094_v47 = vadd.f32 %v6093_v18, %v14628_v44  ;;  %11741 = vmatprep.mubr.msk.bf16.mxu1 %vm3734_vm7, %v6394_v15  ;;  %v6344_v25 = vmax.f32 %v6280_v43, 0.0  ;;  %v14765_v18 = vpop.f32.mrf.mxu1 }
 0x786   :  { %v11683_v24 = vpop.f32.mrf.mxu0  ;;  %11742 = vmatmul.mubr.msk.bf16.gmra.mxu1 %vm3734_vm7, %v6395_v55 }
 0x787   :  { %v6281_v45 = vadd.f32 %v14643_v12, %v6094_v47  ;;  %v6347_v1 = vmax.f32 %v6283_v19, 0.0  ;;  %v6115_v44 = vadd.f32 %v11683_v24, %v14630_v10 }
 0x788   :  { %v6106_v32 = vpop.f32.mrf.mxu0 }
 0x789   :  { %v6345_v22 = vmax.f32 %v6281_v45, 0.0  ;;  %v6107_v57 = vadd.f32 %v6106_v32, %v14632_v35  ;;  %v6397_v14 = vpack.c.bf16 %v6347_v1, %v6346_v7  ;;  %v6286_v35 = vadd.f32 %v14643_v12, %v6115_v44 }
 0x78a   :  { %v11684_v62 = vpop.f32.mrf.mxu0 }
 0x78b   :  { %v6396_v60 = vpack.c.bf16 %v6345_v22, %v6344_v25  ;;  %v6118_v17 = vadd.f32 %v11684_v62, %v14634_v4  ;;  %v6284_v54 = vadd.f32 %v14643_v12, %v6107_v57  ;;  %v6350_v34 = vmax.f32 %v6286_v35, 0.0  ;;  %v14770_v22 = vpop.f32.mrf.mxu1 }
 0x78c   :  { %v6109_v27 = vpop.f32.mrf.mxu0 }
 0x78d   :  { %v6287_v52 = vadd.f32 %v14643_v12, %v6118_v17  ;;  %v6110_v51 = vadd.f32 %v6109_v27, %v14636_v0  ;;  %11745 = vmatprep.mubr.msk.bf16.mxu1 %vm3734_vm7, %v6396_v60  ;;  %v6348_v8 = vmax.f32 %v6284_v54, 0.0  ;;  %v14779_v17 = vpop.f32.mrf.mxu1 }
 0x78e   :  { %v11687_v2 = vpop.f32.mrf.mxu0  ;;  %11746 = vmatmul.mubr.msk.bf16.gmra.mxu1 %vm3734_vm7, %v6397_v14 }
 0x78f   :  { %v6285_v10 = vadd.f32 %v14643_v12, %v6110_v51  ;;  %v6351_v4 = vmax.f32 %v6287_v52, 0.0  ;;  %v6131_v0 = vadd.f32 %v11687_v2, %v14638_v50 }
 0x790   :  { %v6122_v37 = vpop.f32.mrf.mxu0 }
 0x791   :  { %v6349_v63 = vmax.f32 %v6285_v10, 0.0  ;;  %v6123_v40 = vadd.f32 %v6122_v37, %v14646_v29  ;;  %v6399_v59 = vpack.c.bf16 %v6351_v4, %v6350_v34  ;;  %v6290_v29 = vadd.f32 %v14643_v12, %v6131_v0  ;;  %v5811_v37 = vpop.f32.mrf.mxu1 }
 0x792   :  { %v11688_v49 = vpop.f32.mrf.mxu0 }
 0x793   :  { %v6398_v21 = vpack.c.bf16 %v6349_v63, %v6348_v8  ;;  %v6134_v41 = vadd.f32 %v11688_v49, %v14653_v13  ;;  %v6288_v16 = vadd.f32 %v14643_v12, %v6123_v40  ;;  %v6354_v26 = vmax.f32 %v6290_v29, 0.0  ;;  %v11642_v49 = vpop.f32.mrf.mxu1 }
 0x794   :  { %v6125_v9 = vpop.f32.mrf.mxu0 }
 0x795   :  { %v6291_v3 = vadd.f32 %v14643_v12, %v6134_v41  ;;  %v6126_v15 = vadd.f32 %v6125_v9, %v14658_v38  ;;  %11749 = vmatprep.mubr.msk.bf16.mxu1 %vm3734_vm7, %v6398_v21  ;;  %v6352_v43 = vmax.f32 %v6288_v16, 0.0 }
 0x796   :  { %v11691_v53 = vpop.f32.mrf.mxu0  ;;  %11750 = vmatmul.mubr.msk.bf16.gmra.mxu1 %vm3734_vm7, %v6399_v59 }
 0x797   :  { %v6289_v50 = vadd.f32 %v14643_v12, %v6126_v15  ;;  %v6355_v13 = vmax.f32 %v6291_v3, 0.0  ;;  %v6147_v38 = vadd.f32 %v11691_v53, %v14667_v39 }
 0x798   :  { %v6138_v55 = vpop.f32.mrf.mxu0 }
 0x799   :  { %v6353_v19 = vmax.f32 %v6289_v50, 0.0  ;;  %v6139_v47 = vadd.f32 %v6138_v55, %v14672_v56  ;;  %v6401_v32 = vpack.c.bf16 %v6355_v13, %v6354_v26  ;;  %v6294_v56 = vadd.f32 %v14643_v12, %v6147_v38  ;;  %v5814_v50 = vpop.f32.mrf.mxu1 }
 0x79a   :  { %v11692_v24 = vpop.f32.mrf.mxu0 }
 0x79b   :  { %v6400_v45 = vpack.c.bf16 %v6353_v19, %v6352_v43  ;;  %v6150_v1 = vadd.f32 %v11692_v24, %v14681_v31  ;;  %v6292_v57 = vadd.f32 %v14643_v12, %v6139_v47  ;;  %v6358_v52 = vmax.f32 %v6294_v56, 0.0  ;;  %v11645_v26 = vpop.f32.mrf.mxu1 }
 0x79c   :  { %v6141_v25 = vpop.f32.mrf.mxu0 }
 0x79d   :  { %v6295_v7 = vadd.f32 %v14643_v12, %v6150_v1  ;;  %v6142_v44 = vadd.f32 %v6141_v25, %v14686_v23  ;;  %11753 = vmatprep.mubr.msk.bf16.mxu1 %vm3734_vm7, %v6400_v45  ;;  %v6356_v14 = vmax.f32 %v6292_v57, 0.0  ;;  %v5827_v56 = vpop.f32.mrf.mxu1 }
 0x79e   :  { %v11695_v62 = vpop.f32.mrf.mxu0  ;;  %11754 = vmatmul.mubr.msk.bf16.gmra.mxu1 %vm3734_vm7, %v6401_v32 }
 0x79f   :  { %v6293_v39 = vadd.f32 %v14643_v12, %v6142_v44  ;;  %v6359_v31 = vmax.f32 %v6295_v7, 0.0  ;;  %v6163_v23 = vadd.f32 %v11695_v62, %v14695_v46 }
 0x7a0   :  { %v6154_v60 = vpop.f32.mrf.mxu0 }
 0x7a1   :  { %v6357_v27 = vmax.f32 %v6293_v39, 0.0  ;;  %v6155_v54 = vadd.f32 %v6154_v60, %v14700_v42  ;;  %v6403_v10 = vpack.c.bf16 %v6359_v31, %v6358_v52  ;;  %v6298_v42 = vadd.f32 %v14643_v12, %v6163_v23 }
 0x7a2   :  { %v11696_v51 = vpop.f32.mrf.mxu0 }
 0x7a3   :  { %v6402_v35 = vpack.c.bf16 %v6357_v27, %v6356_v14  ;;  %v6166_v2 = vadd.f32 %v11696_v51, %v14709_v61  ;;  %v6296_v8 = vadd.f32 %v14643_v12, %v6155_v54  ;;  %v6362_v9 = vmax.f32 %v6298_v42, 0.0  ;;  %v11646_v27 = vpop.f32.mrf.mxu1 }
 0x7a4   :  { %v6157_v4 = vpop.f32.mrf.mxu0 }
 0x7a5   :  { %v6299_v63 = vadd.f32 %v14643_v12, %v6166_v2  ;;  %v6158_v40 = vadd.f32 %v6157_v4, %v14714_v36  ;;  %11757 = vmatprep.mubr.msk.bf16.mxu1 %vm3734_vm7, %v6402_v35  ;;  %v6360_v21 = vmax.f32 %v6296_v8, 0.0 }
 0x7a6   :  { %v11699_v34 = vpop.f32.mrf.mxu0  ;;  %11758 = vmatmul.mubr.msk.bf16.gmra.mxu1 %vm3734_vm7, %v6403_v10 }
 0x7a7   :  { %v6297_v46 = vadd.f32 %v14643_v12, %v6158_v40  ;;  %v6363_v0 = vmax.f32 %v6299_v63, 0.0  ;;  %v6179_v16 = vadd.f32 %v11699_v34, %v14723_v48  ;;  %v5830_v63 = vpop.f32.mrf.mxu1 }
 0x7a8   :  { %v6170_v61 = vpop.f32.mrf.mxu0 }
 0x7a9   :  { %v6361_v41 = vmax.f32 %v6297_v46, 0.0  ;;  %v6171_v59 = vadd.f32 %v6170_v61, %v14728_v6  ;;  %v6405_v29 = vpack.c.bf16 %v6363_v0, %v6362_v9  ;;  %v6302_v6 = vadd.f32 %v14643_v12, %v6179_v16 }
 0x7aa   :  { %v11700_v36 = vpop.f32.mrf.mxu0 }
 0x7ab   :  { %v6404_v3 = vpack.c.bf16 %v6361_v41, %v6360_v21  ;;  %v6182_v15 = vadd.f32 %v11700_v36, %v14737_v28  ;;  %v6300_v13 = vadd.f32 %v14643_v12, %v6171_v59  ;;  %v6366_v1 = vmax.f32 %v6302_v6, 0.0 }
 0x7ac   :  { %v6173_v53 = vpop.f32.mrf.mxu0 }
 0x7ad   :  { %v6303_v55 = vadd.f32 %v14643_v12, %v6182_v15  ;;  %v6174_v43 = vadd.f32 %v6173_v53, %v14742_v58  ;;  %11761 = vmatprep.mubr.msk.bf16.mxu1 %vm3734_vm7, %v6404_v3  ;;  %v6364_v38 = vmax.f32 %v6300_v13, 0.0 }
 0x7ae   :  { %v11703_v19 = vpop.f32.mrf.mxu0  ;;  %11762 = vmatmul.mubr.msk.bf16.gmra.mxu1 %vm3734_vm7, %v6405_v29 }
 0x7af   :  { %v6301_v48 = vadd.f32 %v14643_v12, %v6174_v43  ;;  %v6367_v47 = vmax.f32 %v6303_v55, 0.0  ;;  %v6195_v32 = vadd.f32 %v11703_v19, %v14751_v30 }
 0x7b0   :  { %v6186_v28 = vpop.f32.mrf.mxu0 }
 0x7b1   :  { %v6365_v24 = vmax.f32 %v6301_v48, 0.0  ;;  %v6187_v45 = vadd.f32 %v6186_v28, %v14756_v33  ;;  %v6407_v7 = vpack.c.bf16 %v6367_v47, %v6366_v1  ;;  %v6306_v33 = vadd.f32 %v14643_v12, %v6195_v32 }
 0x7b2   :  { %v11704_v58 = vpop.f32.mrf.mxu0 }
 0x7b3   :  { %v6406_v25 = vpack.c.bf16 %v6365_v24, %v6364_v38  ;;  %v6198_v57 = vadd.f32 %v11704_v58, %v14765_v18  ;;  %v6304_v62 = vadd.f32 %v14643_v12, %v6187_v45  ;;  %v6370_v51 = vmax.f32 %v6306_v33, 0.0 }
 0x7b4   :  { %v6189_v44 = vpop.f32.mrf.mxu0 }
 0x7b5   :  { %v6307_v39 = vadd.f32 %v14643_v12, %v6198_v57  ;;  %v6190_v31 = vadd.f32 %v6189_v44, %v14770_v22  ;;  %11765 = vmatprep.mubr.msk.bf16.mxu1 %vm3734_vm7, %v6406_v25  ;;  %v6368_v54 = vmax.f32 %v6304_v62, 0.0 }
 0x7b6   :  { %v11707_v60 = vpop.f32.mrf.mxu0  ;;  %11766 = vmatmul.mubr.msk.bf16.gmra.mxu1 %vm3734_vm7, %v6407_v7 }
 0x7b7   :  { %v6305_v30 = vadd.f32 %v14643_v12, %v6190_v31  ;;  %v6371_v14 = vmax.f32 %v6307_v39, 0.0  ;;  %v6211_v35 = vadd.f32 %v11707_v60, %v14779_v17 }
 0x7b8   :  { %v6202_v18 = vpop.f32.mrf.mxu0 }
 0x7b9   :  { %v6369_v52 = vmax.f32 %v6305_v30, 0.0  ;;  %v6203_v23 = vadd.f32 %v6202_v18, %v5811_v37  ;;  %v6409_v4 = vpack.c.bf16 %v6371_v14, %v6370_v51  ;;  %v6310_v46 = vadd.f32 %v14643_v12, %v6211_v35 }
 0x7ba   :  { %v11708_v2 = vpop.f32.mrf.mxu0 }
 0x7bb   :  { %v6408_v22 = vpack.c.bf16 %v6369_v52, %v6368_v54  ;;  %v6214_v10 = vadd.f32 %v11708_v2, %v11642_v49  ;;  %v6308_v40 = vadd.f32 %v14643_v12, %v6203_v23  ;;  %v11649_v49 = vpop.f32.mrf.mxu1  ;;  %v6374_v9 = vmax.f32 %v6310_v46, 0.0  ;;  %v14833_v23 = vld [vmem:[%s15462_s17] ss:$0 sm:$0xff]  ;;  %s15494_s17 = sld [smem:[#allocation32_spill]] }
 0x7bc   :  { %v6205_v8 = vpop.f32.mrf.mxu0 }
 0x7bd   :  { %v6311_v42 = vadd.f32 %v14643_v12, %v6214_v10  ;;  %v6206_v34 = vadd.f32 %v6205_v8, %v5814_v50  ;;  %11769 = vmatprep.mubr.msk.bf16.mxu1 %vm3734_vm7, %v6408_v22  ;;  %v6372_v21 = vmax.f32 %v6308_v40, 0.0  ;;  %v5843_v50 = vpop.f32.mrf.mxu1 }
 0x7be   :  { %v11711_v0 = vpop.f32.mrf.mxu0  ;;  %11770 = vmatmul.mubr.msk.bf16.gmra.mxu1 %vm3734_vm7, %v6409_v4 }
 0x7bf   :  { %v6309_v17 = vadd.f32 %v14643_v12, %v6206_v34  ;;  %v6375_v37 = vmax.f32 %v6311_v42, 0.0  ;;  %v6227_v16 = vadd.f32 %v11711_v0, %v11645_v26  ;;  %v11650_v26 = vpop.f32.mrf.mxu1  ;;  %v12254_v42 = vld [vmem:[%s15463_s21] sm:$0xff]  }
 0x7c0   :  { %v6218_v61 = vpop.f32.mrf.mxu0  ;;  %11787 = vmatprep.mubr.msk.bf16.mxu0 %vm368_vm3, %v12254_v42 }
 0x7c1   :  { %v6373_v41 = vmax.f32 %v6309_v17, 0.0  ;;  %v6219_v59 = vadd.f32 %v6218_v61, %v5827_v56  ;;  %v6411_v29 = vpack.c.bf16 %v6375_v37, %v6374_v9  ;;  %v6314_v6 = vadd.f32 %v14643_v12, %v6227_v16  ;;  %v5846_v44 = vpop.f32.mrf.mxu1 }
 0x7c2   :  { %v11712_v36 = vpop.f32.mrf.mxu0 }
 0x7c3   :  { %v6410_v3 = vpack.c.bf16 %v6373_v41, %v6372_v21  ;;  %v6230_v15 = vadd.f32 %v11712_v36, %v11646_v27  ;;  %v6312_v13 = vadd.f32 %v14643_v12, %v6219_v59  ;;  %v6378_v1 = vmax.f32 %v6314_v6, 0.0 }
 0x7c4   :  { %v6221_v53 = vpop.f32.mrf.mxu0 }
 0x7c5   :  { %v6315_v55 = vadd.f32 %v14643_v12, %v6230_v15  ;;  %v6222_v43 = vadd.f32 %v6221_v53, %v5830_v63  ;;  %11773 = vmatprep.mubr.msk.bf16.mxu1 %vm3734_vm7, %v6410_v3  ;;  %v6376_v38 = vmax.f32 %v6312_v13, 0.0 }
 0x7c6   :  { %v11715_v19 = vpop.f32.mrf.mxu0  ;;  %11774 = vmatmul.mubr.msk.bf16.gmra.mxu1 %vm3734_vm7, %v6411_v29 }
 0x7c7   :  { %v6313_v48 = vadd.f32 %v14643_v12, %v6222_v43  ;;  %v6379_v47 = vmax.f32 %v6315_v55, 0.0  ;;  %v6243_v32 = vadd.f32 %v11715_v19, %v11649_v49 }
 0x7c8   :  { %v6234_v28 = vpop.f32.mrf.mxu0 }
 0x7c9   :  { %v6377_v24 = vmax.f32 %v6313_v48, 0.0  ;;  %v6235_v45 = vadd.f32 %v6234_v28, %v5843_v50  ;;  %v6413_v7 = vpack.c.bf16 %v6379_v47, %v6378_v1  ;;  %v6318_v33 = vadd.f32 %v14643_v12, %v6243_v32 }
 0x7ca   :  { %v11716_v58 = vpop.f32.mrf.mxu0 }
 0x7cb   :  { %v6412_v25 = vpack.c.bf16 %v6377_v24, %v6376_v38  ;;  %v6246_v57 = vadd.f32 %v11716_v58, %v11650_v26  ;;  %v6316_v62 = vadd.f32 %v14643_v12, %v6235_v45  ;;  %v6382_v27 = vmax.f32 %v6318_v33, 0.0 }
 0x7cc   :  { %v6237_v56 = vpop.f32.mrf.mxu0 }
 0x7cd   :  { %v6319_v39 = vadd.f32 %v14643_v12, %v6246_v57  ;;  %v6238_v31 = vadd.f32 %v6237_v56, %v5846_v44  ;;  %11777 = vmatprep.mubr.msk.bf16.mxu1 %vm3734_vm7, %v6412_v25  ;;  %v6380_v14 = vmax.f32 %v6316_v62, 0.0 }
 0x7ce   :  { %11778 = vmatmul.mubr.msk.bf16.gmra.mxu1 %vm3734_vm7, %v6413_v7 }
 0x7cf   :  { %v6317_v60 = vadd.f32 %v14643_v12, %v6238_v31  ;;  %v6383_v30 = vmax.f32 %v6319_v39, 0.0 }
 0x7d1   :  { %v6381_v18 = vmax.f32 %v6317_v60, 0.0  ;;  %v6415_v52 = vpack.c.bf16 %v6383_v30, %v6382_v27 }
 0x7d3   :  { %v6414_v54 = vpack.c.bf16 %v6381_v18, %v6380_v14 }
 0x7d5   :  { %11781 = vmatprep.mubr.msk.bf16.mxu1 %vm3734_vm7, %v6414_v54 }
 0x7d6   :  { %11782 = vmatmul.mubr.msk.bf16.gmra.mxu1 %vm3734_vm7, %v6415_v52 }
 0x81e   :  { %v11723_v51 = vpop.f32.mrf.mxu1 }
 0x81f   :  { %v6577_v35 = vadd.f32 %v11723_v51, %v14833_v23 }
 0x820   :  { %v6568_v2 = vpop.f32.mrf.mxu1 }
 0x821   :  { %v6569_v22 = vadd.f32 %v14833_v23, %v6568_v2  ;;  %v6825_v10 = vmax.f32 %v6577_v35, 0.0 }
 0x822   :  { %v11724_v12 = vpop.f32.mrf.mxu1 }
 0x823   :  { %v6823_v4 = vmax.f32 %v6569_v22, 0.0  ;;  %v6580_v29 = vadd.f32 %v11724_v12, %v14833_v23 }
 0x824   :  { %v6571_v8 = vpop.f32.mrf.mxu1 }
 0x825   :  { %v6889_v63 = vmax.f32 %v6825_v10, %v6823_v4  ;;  %v6572_v36 = vadd.f32 %v14833_v23, %v6571_v8  ;;  %v6826_v19 = vmax.f32 %v6580_v29, 0.0 }
 0x826   :  { %v11727_v40 = vpop.f32.mrf.mxu1 }
 0x827   :  { %v6593_v15 = vadd.f32 %v11727_v40, %v14833_v23  ;;  %v6824_v13 = vmax.f32 %v6572_v36, 0.0 }
 0x828   :  { %v6584_v34 = vpop.f32.mrf.mxu1 }
 0x829   :  { %v6829_v43 = vmax.f32 %v6593_v15, 0.0  ;;  %v6585_v6 = vadd.f32 %v14833_v23, %v6584_v34  ;;  %v6890_v38 = vmax.f32 %v6826_v19, %v6824_v13 }
 0x82a   :  { %v11728_v46 = vpop.f32.mrf.mxu1 }
 0x82b   :  { %v6596_v53 = vadd.f32 %v11728_v46, %v14833_v23  ;;  %v6887_v1 = vmax.f32 %v6829_v43, %v6889_v63  ;;  %v6827_v32 = vmax.f32 %v6585_v6, 0.0 }
 0x82c   :  { %v6587_v0 = vpop.f32.mrf.mxu1 }
 0x82d   :  { %v6830_v48 = vmax.f32 %v6596_v53, 0.0  ;;  %v6588_v47 = vadd.f32 %v14833_v23, %v6587_v0  ;;  %v6893_v31 = vmax.f32 %v6827_v32, %v6887_v1 }
 0x82e   :  { %v11731_v17 = vpop.f32.mrf.mxu1 }
 0x82f   :  { %v6609_v26 = vadd.f32 %v11731_v17, %v14833_v23  ;;  %v6888_v58 = vmax.f32 %v6830_v48, %v6890_v38  ;;  %v6828_v25 = vmax.f32 %v6588_v47, 0.0 }
 0x830   :  { %v6600_v37 = vpop.f32.mrf.mxu1 }
 0x831   :  { %v6833_v7 = vmax.f32 %v6609_v26, 0.0  ;;  %v6601_v44 = vadd.f32 %v14833_v23, %v6600_v37  ;;  %v6894_v60 = vmax.f32 %v6828_v25, %v6888_v58 }
 0x832   :  { %v11732_v61 = vpop.f32.mrf.mxu1 }
 0x833   :  { %v6612_v24 = vadd.f32 %v11732_v61, %v14833_v23  ;;  %v6891_v18 = vmax.f32 %v6833_v7, %v6893_v31  ;;  %v6831_v27 = vmax.f32 %v6601_v44, 0.0 }
 0x834   :  { %v6603_v49 = vpop.f32.mrf.mxu1 }
 0x835   :  { %v6834_v56 = vmax.f32 %v6612_v24, 0.0  ;;  %v6604_v62 = vadd.f32 %v14833_v23, %v6603_v49  ;;  %v6897_v4 = vmax.f32 %v6831_v27, %v6891_v18 }
 0x836   :  { %v11735_v21 = vpop.f32.mrf.mxu1 }
 0x837   :  { %v6625_v33 = vadd.f32 %v11735_v21, %v14833_v23  ;;  %v6892_v54 = vmax.f32 %v6834_v56, %v6894_v60  ;;  %v6832_v52 = vmax.f32 %v6604_v62, 0.0 }
 0x838   :  { %v6616_v41 = vpop.f32.mrf.mxu1 }
 0x839   :  { %v6837_v35 = vmax.f32 %v6625_v33, 0.0  ;;  %v6617_v2 = vadd.f32 %v14833_v23, %v6616_v41  ;;  %v6898_v63 = vmax.f32 %v6832_v52, %v6892_v54 }
 0x83a   :  { %v11736_v59 = vpop.f32.mrf.mxu1 }
 0x83b   :  { %v6628_v30 = vadd.f32 %v11736_v59, %v14833_v23  ;;  %v6895_v34 = vmax.f32 %v6837_v35, %v6897_v4  ;;  %v6835_v46 = vmax.f32 %v6617_v2, 0.0 }
 0x83c   :  { %v6619_v9 = vpop.f32.mrf.mxu1 }
 0x83d   :  { %v6838_v22 = vmax.f32 %v6628_v30, 0.0  ;;  %v6620_v12 = vadd.f32 %v14833_v23, %v6619_v9  ;;  %v6901_v9 = vmax.f32 %v6835_v46, %v6895_v34 }
 0x83e   :  { %v11739_v16 = vpop.f32.mrf.mxu1 }
 0x83f   :  { %v6641_v8 = vadd.f32 %v11739_v16, %v14833_v23  ;;  %v6896_v0 = vmax.f32 %v6838_v22, %v6898_v63  ;;  %v6836_v17 = vmax.f32 %v6620_v12, 0.0 }
 0x840   :  { %v6632_v3 = vpop.f32.mrf.mxu1 }
 0x841   :  { %v6841_v61 = vmax.f32 %v6641_v8, 0.0  ;;  %v6633_v49 = vadd.f32 %v14833_v23, %v6632_v3  ;;  %v6902_v16 = vmax.f32 %v6836_v17, %v6896_v0 }
 0x842   :  { %v11740_v50 = vpop.f32.mrf.mxu1 }
 0x843   :  { %v6644_v40 = vadd.f32 %v11740_v50, %v14833_v23  ;;  %v6899_v53 = vmax.f32 %v6841_v61, %v6901_v9  ;;  %v6839_v50 = vmax.f32 %v6633_v49, 0.0 }
 0x844   :  { %v6635_v55 = vpop.f32.mrf.mxu1 }
 0x845   :  { %v6842_v21 = vmax.f32 %v6644_v40, 0.0  ;;  %v6636_v41 = vadd.f32 %v14833_v23, %v6635_v55  ;;  %v6905_v26 = vmax.f32 %v6839_v50, %v6899_v53 }
 0x846   :  { %v11743_v28 = vpop.f32.mrf.mxu1 }
 0x847   :  { %v6657_v36 = vadd.f32 %v11743_v28, %v14833_v23  ;;  %v6900_v13 = vmax.f32 %v6842_v21, %v6902_v16  ;;  %v6840_v43 = vmax.f32 %v6636_v41, 0.0 }
 0x848   :  { %v6648_v45 = vpop.f32.mrf.mxu1 }
 0x849   :  { %v6845_v19 = vmax.f32 %v6657_v36, 0.0  ;;  %v6649_v48 = vadd.f32 %v14833_v23, %v6648_v45  ;;  %v6906_v28 = vmax.f32 %v6840_v43, %v6900_v13 }
 0x84a   :  { %v11744_v57 = vpop.f32.mrf.mxu1 }
 0x84b   :  { %v6660_v15 = vadd.f32 %v11744_v57, %v14833_v23  ;;  %v6921_v32 = vmax.f32 %v6845_v19, %v6905_v26  ;;  %v6843_v58 = vmax.f32 %v6649_v48, 0.0 }
 0x84c   :  { %v6651_v39 = vpop.f32.mrf.mxu1 }
 0x84d   :  { %v6846_v3 = vmax.f32 %v6660_v15, 0.0  ;;  %v6652_v47 = vadd.f32 %v14833_v23, %v6651_v39  ;;  %v6903_v31 = vmax.f32 %v6843_v58, %v6921_v32 }
 0x84e   :  { %v11747_v14 = vpop.f32.mrf.mxu1 }
 0x84f   :  { %v6673_v38 = vadd.f32 %v11747_v14, %v14833_v23  ;;  %v6922_v25 = vmax.f32 %v6846_v3, %v6906_v28  ;;  %v6844_v57 = vmax.f32 %v6652_v47, 0.0 }
 0x850   :  { %v6664_v51 = vpop.f32.mrf.mxu1 }
 0x851   :  { %v6849_v44 = vmax.f32 %v6673_v38, 0.0  ;;  %v6665_v56 = vadd.f32 %v14833_v23, %v6664_v51  ;;  %v6904_v60 = vmax.f32 %v6844_v57, %v6922_v25 }
 0x852   :  { %v11748_v10 = vpop.f32.mrf.mxu1 }
 0x853   :  { %v6676_v24 = vadd.f32 %v11748_v10, %v14833_v23  ;;  %v6919_v18 = vmax.f32 %v6849_v44, %v6903_v31  ;;  %v6847_v27 = vmax.f32 %v6665_v56, 0.0 }
 0x854   :  { %v6667_v42 = vpop.f32.mrf.mxu1 }
 0x855   :  { %v6850_v45 = vmax.f32 %v6676_v24, 0.0  ;;  %v6668_v62 = vadd.f32 %v14833_v23, %v6667_v42  ;;  %v6909_v4 = vmax.f32 %v6847_v27, %v6919_v18 }
 0x856   :  { %v11751_v37 = vpop.f32.mrf.mxu1 }
 0x857   :  { %v6689_v33 = vadd.f32 %v11751_v37, %v14833_v23  ;;  %v6920_v54 = vmax.f32 %v6850_v45, %v6904_v60  ;;  %v6848_v52 = vmax.f32 %v6668_v62, 0.0 }
 0x858   :  { %v6680_v59 = vpop.f32.mrf.mxu1 }
 0x859   :  { %v6853_v2 = vmax.f32 %v6689_v33, 0.0  ;;  %v6681_v22 = vadd.f32 %v14833_v23, %v6680_v59  ;;  %v6910_v63 = vmax.f32 %v6848_v52, %v6920_v54 }
 0x85a   :  { %v11752_v29 = vpop.f32.mrf.mxu1 }
 0x85b   :  { %v6692_v30 = vadd.f32 %v11752_v29, %v14833_v23  ;;  %v6925_v34 = vmax.f32 %v6853_v2, %v6909_v4  ;;  %v6851_v46 = vmax.f32 %v6681_v22, 0.0 }
 0x85c   :  { %v6683_v6 = vpop.f32.mrf.mxu1 }
 0x85d   :  { %v6854_v51 = vmax.f32 %v6692_v30, 0.0  ;;  %v6684_v12 = vadd.f32 %v14833_v23, %v6683_v6  ;;  %v6907_v9 = vmax.f32 %v6851_v46, %v6925_v34 }
 0x85e   :  { %v11755_v55 = vpop.f32.mrf.mxu1 }
 0x85f   :  { %v6705_v8 = vadd.f32 %v11755_v55, %v14833_v23  ;;  %v6926_v0 = vmax.f32 %v6854_v51, %v6910_v63  ;;  %v6852_v17 = vmax.f32 %v6684_v12, 0.0 }
 0x860   :  { %v6696_v1 = vpop.f32.mrf.mxu1 }
 0x861   :  { %v6857_v61 = vmax.f32 %v6705_v8, 0.0  ;;  %v6697_v49 = vadd.f32 %v14833_v23, %v6696_v1  ;;  %v6908_v16 = vmax.f32 %v6852_v17, %v6926_v0 }
 0x862   :  { %v11756_v7 = vpop.f32.mrf.mxu1 }
 0x863   :  { %v6708_v40 = vadd.f32 %v11756_v7, %v14833_v23  ;;  %v6923_v53 = vmax.f32 %v6857_v61, %v6907_v9  ;;  %v6855_v50 = vmax.f32 %v6697_v49, 0.0 }
 0x864   :  { %v6699_v39 = vpop.f32.mrf.mxu1 }
 0x865   :  { %v6858_v21 = vmax.f32 %v6708_v40, 0.0  ;;  %v6700_v41 = vadd.f32 %v14833_v23, %v6699_v39  ;;  %v6913_v26 = vmax.f32 %v6855_v50, %v6923_v53 }
 0x866   :  { %v11759_v14 = vpop.f32.mrf.mxu1 }
 0x867   :  { %v6721_v36 = vadd.f32 %v11759_v14, %v14833_v23  ;;  %v6924_v13 = vmax.f32 %v6858_v21, %v6908_v16  ;;  %v6856_v43 = vmax.f32 %v6700_v41, 0.0 }
 0x868   :  { %v6712_v35 = vpop.f32.mrf.mxu1 }
 0x869   :  { %v6861_v19 = vmax.f32 %v6721_v36, 0.0  ;;  %v6713_v48 = vadd.f32 %v14833_v23, %v6712_v35  ;;  %v6914_v28 = vmax.f32 %v6856_v43, %v6924_v13 }
 0x86a   :  { %v11760_v10 = vpop.f32.mrf.mxu1 }
 0x86b   :  { %v6724_v15 = vadd.f32 %v11760_v10, %v14833_v23  ;;  %v6929_v32 = vmax.f32 %v6861_v19, %v6913_v26  ;;  %v6859_v58 = vmax.f32 %v6713_v48, 0.0 }
 0x86c   :  { %v6715_v42 = vpop.f32.mrf.mxu1 }
 0x86d   :  { %v6862_v3 = vmax.f32 %v6724_v15, 0.0  ;;  %v6716_v47 = vadd.f32 %v14833_v23, %v6715_v42  ;;  %v6937_v31 = vmax.f32 %v6859_v58, %v6929_v32 }
 0x86e   :  { %v11763_v37 = vpop.f32.mrf.mxu1 }
 0x86f   :  { %v6737_v38 = vadd.f32 %v11763_v37, %v14833_v23  ;;  %v6930_v25 = vmax.f32 %v6862_v3, %v6914_v28  ;;  %v6860_v57 = vmax.f32 %v6716_v47, 0.0 }
 0x870   :  { %v6728_v59 = vpop.f32.mrf.mxu1 }
 0x871   :  { %v6865_v44 = vmax.f32 %v6737_v38, 0.0  ;;  %v6729_v56 = vadd.f32 %v14833_v23, %v6728_v59  ;;  %v6938_v60 = vmax.f32 %v6860_v57, %v6930_v25 }
 0x872   :  { %v11764_v29 = vpop.f32.mrf.mxu1 }
 0x873   :  { %v6740_v24 = vadd.f32 %v11764_v29, %v14833_v23  ;;  %v6911_v18 = vmax.f32 %v6865_v44, %v6937_v31  ;;  %v6863_v27 = vmax.f32 %v6729_v56, 0.0 }
 0x874   :  { %v6731_v6 = vpop.f32.mrf.mxu1 }
 0x875   :  { %v6866_v45 = vmax.f32 %v6740_v24, 0.0  ;;  %v6732_v62 = vadd.f32 %v14833_v23, %v6731_v6  ;;  %v6927_v4 = vmax.f32 %v6863_v27, %v6911_v18 }
 0x876   :  { %v11767_v55 = vpop.f32.mrf.mxu1 }
 0x877   :  { %v6753_v33 = vadd.f32 %v11767_v55, %v14833_v23  ;;  %v6912_v54 = vmax.f32 %v6866_v45, %v6938_v60  ;;  %v6864_v52 = vmax.f32 %v6732_v62, 0.0 }
 0x878   :  { %v6744_v1 = vpop.f32.mrf.mxu1 }
 0x879   :  { %v6869_v2 = vmax.f32 %v6753_v33, 0.0  ;;  %v6745_v22 = vadd.f32 %v14833_v23, %v6744_v1  ;;  %v6928_v63 = vmax.f32 %v6864_v52, %v6912_v54 }
 0x87a   :  { %v11768_v7 = vpop.f32.mrf.mxu1 }
 0x87b   :  { %v6756_v30 = vadd.f32 %v11768_v7, %v14833_v23  ;;  %v6935_v34 = vmax.f32 %v6869_v2, %v6927_v4  ;;  %v6867_v46 = vmax.f32 %v6745_v22, 0.0 }
 0x87c   :  { %v6747_v39 = vpop.f32.mrf.mxu1 }
 0x87d   :  { %v6870_v51 = vmax.f32 %v6756_v30, 0.0  ;;  %v6748_v12 = vadd.f32 %v14833_v23, %v6747_v39  ;;  %v6917_v9 = vmax.f32 %v6867_v46, %v6935_v34 }
 0x87e   :  { %v11771_v14 = vpop.f32.mrf.mxu1 }
 0x87f   :  { %v6769_v8 = vadd.f32 %v11771_v14, %v14833_v23  ;;  %v6936_v0 = vmax.f32 %v6870_v51, %v6928_v63  ;;  %v6868_v17 = vmax.f32 %v6748_v12, 0.0 }
 0x880   :  { %v6760_v35 = vpop.f32.mrf.mxu1 }
 0x881   :  { %v6873_v61 = vmax.f32 %v6769_v8, 0.0  ;;  %v6761_v49 = vadd.f32 %v14833_v23, %v6760_v35  ;;  %v6918_v16 = vmax.f32 %v6868_v17, %v6936_v0 }
 0x882   :  { %v11772_v10 = vpop.f32.mrf.mxu1 }
 0x883   :  { %v6772_v40 = vadd.f32 %v11772_v10, %v14833_v23  ;;  %v6933_v29 = vmax.f32 %v6873_v61, %v6917_v9  ;;  %v6871_v53 = vmax.f32 %v6761_v49, 0.0  ;;  %v12255_v61 = vld [vmem:[%s15463_s21 + $0x8] sm:$0xff]   ;;  %v12256_v49 = vld [vmem:[%s15463_s21 + $0x10] sm:$0xff]   ;;  %v12261_v9 = vld [vmem:[%s15463_s21 + $0x38] sm:$0xff]  }
 0x884   :  { %v6763_v42 = vpop.f32.mrf.mxu1 }
 0x885   :  { %v6874_v21 = vmax.f32 %v6772_v40, 0.0  ;;  %v6764_v41 = vadd.f32 %v14833_v23, %v6763_v42  ;;  %v6941_v26 = vmax.f32 %v6871_v53, %v6933_v29  ;;  %v12265_v29 = vld [vmem:[%s15463_s21 + $0x58] sm:$0xff]   ;;  %v12266_v53 = vld [vmem:[%s15463_s21 + $0x60] sm:$0xff]  }
 0x886   :  { %v11775_v37 = vpop.f32.mrf.mxu1 }
 0x887   :  { %v6785_v36 = vadd.f32 %v11775_v37, %v14833_v23  ;;  %v6934_v13 = vmax.f32 %v6874_v21, %v6918_v16  ;;  %v6872_v43 = vmax.f32 %v6764_v41, 0.0  ;;  %v12258_v21 = vld [vmem:[%s15463_s21 + $0x20] sm:$0xff]   ;;  %v12259_v41 = vld [vmem:[%s15463_s21 + $0x28] sm:$0xff]  }
 0x888   :  { %v6776_v59 = vpop.f32.mrf.mxu1  ;;  %v12263_v16 = vld [vmem:[%s15463_s21 + $0x48] sm:$0xff]  }
 0x889   :  { %v6877_v19 = vmax.f32 %v6785_v36, 0.0  ;;  %v6777_v48 = vadd.f32 %v14833_v23, %v6776_v59  ;;  %v6942_v28 = vmax.f32 %v6872_v43, %v6934_v13  ;;  %v12260_v59 = vld [vmem:[%s15463_s21 + $0x30] sm:$0xff]   ;;  %v12262_v36 = vld [vmem:[%s15463_s21 + $0x40] sm:$0xff]   ;;  %v12269_v43 = vld [vmem:[%s15463_s21 + $0x78] sm:$0xff]  }
 0x88a   :  { %v11776_v15 = vpop.f32.mrf.mxu1  ;;  %v12268_v13 = vld [vmem:[%s15463_s21 + $0x70] sm:$0xff]  }
 0x88b   :  { %v6788_v50 = vadd.f32 %v11776_v15, %v14833_v23  ;;  %v6915_v1 = vmax.f32 %v6877_v19, %v6941_v26  ;;  %v6875_v32 = vmax.f32 %v6777_v48, 0.0  ;;  %v12264_v15 = vld [vmem:[%s15463_s21 + $0x50] sm:$0xff]   ;;  %v7289_v48 = vld [vmem:[%s15465_s29] sm:$0xff]  ;;  %v7292_v26 = vld [vmem:[%s15465_s29 + $0x18] sm:$0xff] }
 0x88c   :  { %v6779_v6 = vpop.f32.mrf.mxu1 }
 0x88d   :  { %v6878_v3 = vmax.f32 %v6788_v50, 0.0  ;;  %v6780_v47 = vadd.f32 %v14833_v23, %v6779_v6  ;;  %v6931_v62 = vmax.f32 %v6875_v32, %v6915_v1  ;;  %v12267_v50 = vld [vmem:[%s15463_s21 + $0x68] sm:$0xff]   ;;  %v7337_v6 = vld [vmem:[%s15464_s25] sm:$0xf]  ;;  %s15496_s25 = sld [smem:[#allocation33_spill]] }
 0x88e   :  { %v11779_v55 = vpop.f32.mrf.mxu1  ;;  %12089 = vmatprep.subr.msk.bf16.mxu1 %vm2096_vm5, %v7337_v6  ;;  %v7387_v19 = vsel %vm2096_vm5, %v7337_v6, 0  ;;  %v7294_v1 = vld [vmem:[%s15465_s29 + $0x28] sm:$0xff] }
 0x88f   :  { %v6801_v38 = vadd.f32 %v11779_v55, %v14833_v23  ;;  %v6916_v58 = vmax.f32 %v6878_v3, %v6942_v28  ;;  %v6876_v25 = vmax.f32 %v6780_v47, 0.0  ;;  %v7290_v3 = vld [vmem:[%s15465_s29 + $0x8] sm:$0xff]  ;;  %11820 = vmatpush3.bf16.msra.mxu1 %v7387_v19  ;;  %v7291_v55 = vld [vmem:[%s15465_s29 + $0x10] sm:$0xff]  ;;  %v12270_v28 = vld [vmem:[%s15466_s3] sm:$0xff]   ;;  %s15500_s3 = sld [smem:[#allocation37_spill]] }
 0x890   :  { %v6792_v24 = vpop.f32.mrf.mxu1  ;;  %v7321_v47 = vpack.c.bf16 %v7290_v3, %v7289_v48 }
 0x891   :  { %v6881_v7 = vmax.f32 %v6801_v38, 0.0  ;;  %v6793_v44 = vadd.f32 %v14833_v23, %v6792_v24  ;;  %v6932_v33 = vmax.f32 %v6876_v25, %v6916_v58  ;;  %v7322_v38 = vpack.c.bf16 %v7292_v26, %v7291_v55  ;;  %v7293_v24 = vld [vmem:[%s15465_s29 + $0x20] sm:$0xff]  ;;  %v7295_v58 = vld [vmem:[%s15465_s29 + $0x30] sm:$0xff]  ;;  %v7296_v25 = vld [vmem:[%s15465_s29 + $0x38] sm:$0xff] }
 0x892   :  { %v11780_v57 = vpop.f32.mrf.mxu1  ;;  %11821 = vmatprep.mubr.msk.bf16.mxu1 %vm1903_vm6, %v7321_v47  ;;  %v7323_v32 = vpack.c.bf16 %v7294_v1, %v7293_v24 }
 0x893   :  { %v6804_v56 = vadd.f32 %v11780_v57, %v14833_v23  ;;  %v6939_v30 = vmax.f32 %v6881_v7, %v6931_v62  ;;  %v6879_v14 = vmax.f32 %v6793_v44, 0.0  ;;  %11822 = vmatmul.mubr.msk.bf16.vlgmr.msra.gmra.mxu1 %vm1903_vm6, %v7322_v38  ;;  %v7324_v57 = vpack.c.bf16 %v7296_v25, %v7295_v58  ;;  %v7297_v7 = vld [vmem:[%s15465_s29 + $0x40] sm:$0xff]  ;;  %v7298_v44 = vld [vmem:[%s15465_s29 + $0x48] sm:$0xff]  ;;  %v7300_v62 = vld [vmem:[%s15465_s29 + $0x58] sm:$0xff] }
 0x894   :  { %v6795_v45 = vpop.f32.mrf.mxu1  ;;  %11825 = vmatprep.mubr.msk.bf16.mxu1 %vm1903_vm6, %v7323_v32 }
 0x895   :  { %v6882_v39 = vmax.f32 %v6804_v56, 0.0  ;;  %v6796_v31 = vadd.f32 %v14833_v23, %v6795_v45  ;;  %v6943_v51 = vmax.f32 %v6879_v14, %v6939_v30  ;;  %v7325_v56 = vpack.c.bf16 %v7298_v44, %v7297_v7  ;;  %v7299_v45 = vld [vmem:[%s15465_s29 + $0x50] sm:$0xff]  ;;  %v7304_v14 = vld [vmem:[%s15465_s29 + $0x78] sm:$0xff] }
 0x896   :  { %v11783_v60 = vpop.f32.mrf.mxu1  ;;  %v7303_v30 = vld [vmem:[%s15465_s29 + $0x70] sm:$0xff] }
 0x897   :  { %v6817_v18 = vadd.f32 %v11783_v60, %v14833_v23  ;;  %v6940_v27 = vmax.f32 %v6882_v39, %v6932_v33  ;;  %v6880_v54 = vmax.f32 %v6796_v31, 0.0  ;;  %v7326_v39 = vpack.c.bf16 %v7300_v62, %v7299_v45  ;;  %v7301_v31 = vld [vmem:[%s15465_s29 + $0x60] sm:$0xff]  ;;  %v7302_v33 = vld [vmem:[%s15465_s29 + $0x68] sm:$0xff] }
 0x898   :  { %v6808_v52 = vpop.f32.mrf.mxu1  ;;  %v7327_v60 = vpack.c.bf16 %v7302_v33, %v7301_v31 }
 0x899   :  { %v6885_v35 = vmax.f32 %v6817_v18, 0.0  ;;  %v6809_v2 = vadd.f32 %v14833_v23, %v6808_v52  ;;  %v6944_v10 = vmax.f32 %v6880_v54, %v6940_v27  ;;  %v7328_v18 = vpack.c.bf16 %v7304_v14, %v7303_v30  ;;  %v7305_v27 = vld [vmem:[%s15465_s29 + $0x80] sm:$0xff]  ;;  %v7306_v54 = vld [vmem:[%s15465_s29 + $0x88] sm:$0xff] }
 0x89a   :  { %v11784_v22 = vpop.f32.mrf.mxu1  ;;  %v7329_v52 = vpack.c.bf16 %v7306_v54, %v7305_v27 }
 0x89b   :  { %v6820_v12 = vadd.f32 %v11784_v22, %v14833_v23  ;;  %v6945_v8 = vmax.f32 %v6885_v35, %v6943_v51  ;;  %v6883_v63 = vmax.f32 %v6809_v2, 0.0  ;;  %11826 = vmatmul.mubr.msk.bf16.gmra.mxu1 %vm1903_vm6, %v7324_v57  ;;  %v7307_v35 = vld [vmem:[%s15465_s29 + $0x90] sm:$0xff]  ;;  %v7308_v2 = vld [vmem:[%s15465_s29 + $0x98] sm:$0xff]  ;;  %v7309_v51 = vld [vmem:[%s15465_s29 + $0xa0] sm:$0xff] }
 0x89c   :  { %v6811_v4 = vpop.f32.mrf.mxu1  ;;  %11829 = vmatprep.mubr.msk.bf16.mxu1 %vm1903_vm6, %v7325_v56  ;;  %v7330_v22 = vpack.c.bf16 %v7308_v2, %v7307_v35 }
 0x89d   :  { %v6886_v40 = vmax.f32 %v6820_v12, 0.0  ;;  %v6812_v42 = vadd.f32 %v14833_v23, %v6811_v4  ;;  %v6947_v0 = vmax.f32 %v6883_v63, %v6945_v8  ;;  %v12257_v23 = vld [vmem:[%s15463_s21 + $0x18] sm:$0xff]   ;;  %v7310_v12 = vld [vmem:[%s15465_s29 + $0xa8] sm:$0xff]  ;;  %v7311_v4 = vld [vmem:[%s15465_s29 + $0xb0] sm:$0xff]  ;;  %s15495_s21 = sld [smem:[#allocation34_spill]] }
 0x89e   :  { %v7312_v8 = vld [vmem:[%s15465_s29 + $0xb8] sm:$0xff] }
 0x89f   :  { %v6946_v34 = vmax.f32 %v6886_v40, %v6944_v10  ;;  %v6884_v46 = vmax.f32 %v6812_v42, 0.0  ;;  %v7331_v10 = vpack.c.bf16 %v7310_v12, %v7309_v51  ;;  %v7332_v63 = vpack.c.bf16 %v7312_v8, %v7311_v4  ;;  %v7313_v40 = vld [vmem:[%s15465_s29 + $0xc0] sm:$0xff]  ;;  %v7314_v42 = vld [vmem:[%s15465_s29 + $0xc8] sm:$0xff] }
 0x8a1   :  { %v6948_v17 = vmax.f32 %v6884_v46, %v6946_v34  ;;  %v7333_v34 = vpack.c.bf16 %v7314_v42, %v7313_v40  ;;  %v7315_v46 = vld [vmem:[%s15465_s29 + $0xd0] sm:$0xff]  ;;  %v12271_v40 = vld [vmem:[%s15467_s8 + $0x8] ss:$0 sps:$4 sm:$0x33]  }
 0x8a2   :  { %v7920_v42 = vand.u32 %v12271_v40, %v15460_v20 }
 0x8a3   :  { %v14901_v37 = vpack.c.bf16 %v6948_v17, %v6947_v0  ;;  %11830 = vmatmul.mubr.msk.bf16.gmra.mxu1 %vm1903_vm6, %v7326_v39  ;;  %v7316_v0 = vld [vmem:[%s15465_s29 + $0xd8] sm:$0xff] }
 0x8a4   :  { %11833 = vmatprep.mubr.msk.bf16.mxu1 %vm1903_vm6, %v7327_v60  ;;  %v7334_v17 = vpack.c.bf16 %v7316_v0, %v7315_v46  ;;  %11887 = vmatprep.subr.bf16.mxu1 %v7920_v42 }
 0x8a5   :  { %11785 = vmatprep.subr.bf16.mxu0 %v14901_v37  ;;  %11888 = vmatpush3.bf16.msra.mxu1 %v7920_v42 }
 0x8a6   :  { %11786 = vmatpush3.bf16.msra.mxu0 %v14901_v37 }
 0x8a7   :  { %11853 = vmatprep.subr.bf16.mxu0 %v12270_v28 }
 0x8a9   :  { %11788 = vmatmul.mubr.msk.bf16.vlgmr.msra.gmra.mxu0 %vm368_vm3, %v12255_v61  ;;  %v7317_v61 = vld [vmem:[%s15465_s29 + $0xe0] sm:$0xff] }
 0x8aa   :  { %11791 = vmatprep.mubr.msk.bf16.mxu0 %vm368_vm3, %v12256_v49  ;;  %11854 = vmatpush3.bf16.msra.mxu0 %v12270_v28  ;;  %v7318_v49 = vld [vmem:[%s15465_s29 + $0xe8] sm:$0xff] }
 0x8ab   :  { %11834 = vmatmul.mubr.msk.bf16.gmra.mxu1 %vm1903_vm6, %v7328_v18 }
 0x8ac   :  { %11837 = vmatprep.mubr.msk.bf16.mxu1 %vm1903_vm6, %v7329_v52 }
 0x8b1   :  { %11792 = vmatmul.mubr.msk.bf16.gmra.mxu0 %vm368_vm3, %v12257_v23  ;;  %v7335_v23 = vpack.c.bf16 %v7318_v49, %v7317_v61 }
 0x8b2   :  { %11795 = vmatprep.mubr.msk.bf16.mxu0 %vm368_vm3, %v12258_v21  ;;  %v7319_v21 = vld [vmem:[%s15465_s29 + $0xf0] sm:$0xff] }
 0x8b3   :  { %11838 = vmatmul.mubr.msk.bf16.gmra.mxu1 %vm1903_vm6, %v7330_v22 }
 0x8b4   :  { %11841 = vmatprep.mubr.msk.bf16.mxu1 %vm1903_vm6, %v7331_v10 }
 0x8b9   :  { %11796 = vmatmul.mubr.msk.bf16.gmra.mxu0 %vm368_vm3, %v12259_v41  ;;  %v7320_v41 = vld [vmem:[%s15465_s29 + $0xf8] sm:$0xff]  ;;  %s15499_s29 = sld [smem:[#allocation38_spill]] }
 0x8ba   :  { %11799 = vmatprep.mubr.msk.bf16.mxu0 %vm368_vm3, %v12260_v59  ;;  %v7336_v59 = vpack.c.bf16 %v7320_v41, %v7319_v21 }
 0x8bb   :  { %11842 = vmatmul.mubr.msk.bf16.gmra.mxu1 %vm1903_vm6, %v7332_v63 }
 0x8bc   :  { %11845 = vmatprep.mubr.msk.bf16.mxu1 %vm1903_vm6, %v7333_v34  ;;  %v12272_v34 = vld [vmem:[%s15467_s8] sm:$0xff]   ;;  %s15501_s8 = sld [smem:[#allocation39_spill]] }
 0x8bd   :  { %11889 = vmatprep.subr.bf16.mxu1 %v12272_v34 }
 0x8be   :  { %11890 = vmatpush3.bf16.msra.mxu1 %v12272_v34 }
 0x8c1   :  { %11800 = vmatmul.mubr.msk.bf16.gmra.mxu0 %vm368_vm3, %v12261_v9 }
 0x8c2   :  { %11803 = vmatprep.mubr.msk.bf16.mxu0 %vm368_vm3, %v12262_v36 }
 0x8c3   :  { %11846 = vmatmul.mubr.msk.bf16.gmra.mxu1 %vm1903_vm6, %v7334_v17  ;;  %v12389_v17 = vmov 0.0  }
 0x8c4   :  { %11849 = vmatprep.mubr.msk.bf16.mxu1 %vm1903_vm6, %v7335_v23  ;;  %11929 = vmatprep.subr.bf16.mxu1 %v12389_v17 }
 0x8c5   :  { %11923 = vmatprep.subr.bf16.mxu0 %v12389_v17 }
 0x8c9   :  { %11804 = vmatmul.mubr.msk.bf16.gmra.mxu0 %vm368_vm3, %v12263_v16 }
 0x8ca   :  { %11807 = vmatprep.mubr.msk.bf16.mxu0 %vm368_vm3, %v12264_v15 }
 0x8cb   :  { %11850 = vmatmul.mubr.msk.bf16.gmra.mxu1 %vm1903_vm6, %v7336_v59 }
 0x8d1   :  { %11808 = vmatmul.mubr.msk.bf16.gmra.mxu0 %vm368_vm3, %v12265_v29 }
 0x8d2   :  { %11811 = vmatprep.mubr.msk.bf16.mxu0 %vm368_vm3, %v12266_v53 }
 0x8d9   :  { %11812 = vmatmul.mubr.msk.bf16.gmra.mxu0 %vm368_vm3, %v12267_v50 }
 0x8da   :  { %11815 = vmatprep.mubr.msk.bf16.mxu0 %vm368_vm3, %v12268_v13 }
 0x8e1   :  { %11816 = vmatmul.mubr.msk.bf16.gmra.mxu0 %vm368_vm3, %v12269_v43 }
 0x953   :  { %v11823_v46 = vpop.f32.mrf.mxu1 }
 0x955   :  { %v7423_v0 = vpop.f32.mrf.mxu1 }
 0x957   :  { %v11824_v61 = vpop.f32.mrf.mxu1 }
 0x959   :  { %v7426_v49 = vpop.f32.mrf.mxu1 }
 0x95b   :  { %v11827_v23 = vpop.f32.mrf.mxu1 }
 0x95d   :  { %v7439_v20 = vpop.f32.mrf.mxu1 }
 0x95f   :  { %v11828_v21 = vpop.f32.mrf.mxu1 }
 0x961   :  { %v7442_v41 = vpop.f32.mrf.mxu1 }
 0x963   :  { %v11831_v59 = vpop.f32.mrf.mxu1 }
 0x969   :  { %v11789_v9 = vpop.f32.mrf.mxu0 }
 0x96b   :  { %v7144_v36 = vpop.f32.mrf.mxu0 }
 0x96d   :  { %v11790_v16 = vpop.f32.mrf.mxu0 }
 0x96e   :  { %v7272_v53 = vpack.c.bf16 %v11790_v16, %v11789_v9  ;;  %v7455_v9 = vpop.f32.mrf.mxu1 }
 0x96f   :  { %v7147_v15 = vpop.f32.mrf.mxu0 }
 0x970   :  { %v7271_v29 = vpack.c.bf16 %v7147_v15, %v7144_v36  ;;  %v11832_v36 = vpop.f32.mrf.mxu1 }
 0x971   :  { %v11793_v50 = vpop.f32.mrf.mxu0 }
 0x972   :  { %11855 = vmatprep.mubr.msk.bf16.mxu0 %vm368_vm3, %v7271_v29  ;;  %v7458_v16 = vpop.f32.mrf.mxu1 }
 0x973   :  { %v7160_v13 = vpop.f32.mrf.mxu0  ;;  %11856 = vmatmul.mubr.msk.bf16.vlgmr.msra.gmra.mxu0 %vm368_vm3, %v7272_v53 }
 0x974   :  { %v15010_v15 = vpop.f32.mrf.mxu1 }
 0x975   :  { %v11794_v43 = vpop.f32.mrf.mxu0 }
 0x976   :  { %v7274_v48 = vpack.c.bf16 %v11794_v43, %v11793_v50  ;;  %v15012_v29 = vpop.f32.mrf.mxu1 }
 0x977   :  { %v7163_v6 = vpop.f32.mrf.mxu0 }
 0x978   :  { %v7273_v19 = vpack.c.bf16 %v7163_v6, %v7160_v13  ;;  %v15014_v53 = vpop.f32.mrf.mxu1 }
 0x979   :  { %v11797_v3 = vpop.f32.mrf.mxu0 }
 0x97a   :  { %11859 = vmatprep.mubr.msk.bf16.mxu0 %vm368_vm3, %v7273_v19  ;;  %v15016_v50 = vpop.f32.mrf.mxu1 }
 0x97b   :  { %v7176_v47 = vpop.f32.mrf.mxu0  ;;  %11860 = vmatmul.mubr.msk.bf16.gmra.mxu0 %vm368_vm3, %v7274_v48 }
 0x97c   :  { %v15018_v6 = vpop.f32.mrf.mxu1 }
 0x97d   :  { %v11798_v55 = vpop.f32.mrf.mxu0 }
 0x97e   :  { %v7276_v28 = vpack.c.bf16 %v11798_v55, %v11797_v3 }
 0x97f   :  { %v7179_v26 = vpop.f32.mrf.mxu0 }
 0x980   :  { %v7275_v38 = vpack.c.bf16 %v7179_v26, %v7176_v47  ;;  %v15021_v47 = vld [vmem:[%s15468_s14] ss:$0 sm:$0xff]  ;;  %s12391_s14 = smov [#allocation2]  }
 0x981   :  { %v11801_v24 = vpop.f32.mrf.mxu0 }
 0x982   :  { %11863 = vmatprep.mubr.msk.bf16.mxu0 %vm368_vm3, %v7275_v38  ;;  %v15023_v38 = vpop.f32.mrf.mxu1 }
 0x983   :  { %v7192_v1 = vpop.f32.mrf.mxu0  ;;  %11864 = vmatmul.mubr.msk.bf16.gmra.mxu0 %vm368_vm3, %v7276_v28 }
 0x985   :  { %v11802_v32 = vpop.f32.mrf.mxu0 }
 0x986   :  { %v7278_v57 = vpack.c.bf16 %v11802_v32, %v11801_v24 }
 0x987   :  { %v7195_v58 = vpop.f32.mrf.mxu0 }
 0x988   :  { %v7277_v25 = vpack.c.bf16 %v7195_v58, %v7192_v1 }
 0x989   :  { %v11805_v7 = vpop.f32.mrf.mxu0 }
 0x98a   :  { %11867 = vmatprep.mubr.msk.bf16.mxu0 %vm368_vm3, %v7277_v25 }
 0x98b   :  { %v7208_v44 = vpop.f32.mrf.mxu0  ;;  %11868 = vmatmul.mubr.msk.bf16.gmra.mxu0 %vm368_vm3, %v7278_v57 }
 0x98d   :  { %v11806_v56 = vpop.f32.mrf.mxu0 }
 0x98e   :  { %v7280_v39 = vpack.c.bf16 %v11806_v56, %v11805_v7 }
 0x98f   :  { %v7211_v45 = vpop.f32.mrf.mxu0 }
 0x990   :  { %v7279_v62 = vpack.c.bf16 %v7211_v45, %v7208_v44  ;;  %v15029_v44 = vpop.f32.mrf.mxu1 }
 0x991   :  { %v11809_v31 = vpop.f32.mrf.mxu0 }
 0x992   :  { %11871 = vmatprep.mubr.msk.bf16.mxu0 %vm368_vm3, %v7279_v62 }
 0x993   :  { %v7224_v33 = vpop.f32.mrf.mxu0  ;;  %11872 = vmatmul.mubr.msk.bf16.gmra.mxu0 %vm368_vm3, %v7280_v39 }
 0x995   :  { %v11810_v60 = vpop.f32.mrf.mxu0 }
 0x996   :  { %v7282_v18 = vpack.c.bf16 %v11810_v60, %v11809_v31 }
 0x997   :  { %v7227_v30 = vpop.f32.mrf.mxu0 }
 0x998   :  { %v7281_v14 = vpack.c.bf16 %v7227_v30, %v7224_v33 }
 0x999   :  { %v11813_v27 = vpop.f32.mrf.mxu0 }
 0x99a   :  { %11875 = vmatprep.mubr.msk.bf16.mxu0 %vm368_vm3, %v7281_v14  ;;  %v12273_v14 = vld [vmem:[%s15469_s24] sm:$0xff]   ;;  %s9686_s24 = sshll.u32 %s12391_s14, 4  ;;  %s9687_s24 = int_to_ptr.vmem [resolvable:$true] %s9686_s24 }
 0x99b   :  { %v7240_v54 = vpop.f32.mrf.mxu0  ;;  %11876 = vmatmul.mubr.msk.bf16.gmra.mxu0 %vm368_vm3, %v7282_v18  ;;  %p12314_p1 = scmp.lt.s32.totalorder %s9687_s24, %s9687_s24 }
 0x99d   :  { %v11814_v52 = vpop.f32.mrf.mxu0 }
 0x99e   :  { %v7284_v22 = vpack.c.bf16 %v11814_v52, %v11813_v27 }
 0x99f   :  { %v7243_v35 = vpop.f32.mrf.mxu0 }
 0x9a0   :  { %v7283_v2 = vpack.c.bf16 %v7243_v35, %v7240_v54  ;;  %v15032_v54 = vpop.f32.mrf.mxu1 }
 0x9a1   :  { %v11817_v51 = vpop.f32.mrf.mxu0 }
 0x9a2   :  { %11879 = vmatprep.mubr.msk.bf16.mxu0 %vm368_vm3, %v7283_v2 }
 0x9a3   :  { %v7256_v12 = vpop.f32.mrf.mxu0  ;;  %11880 = vmatmul.mubr.msk.bf16.gmra.mxu0 %vm368_vm3, %v7284_v22 }
 0x9a5   :  { %v11818_v10 = vpop.f32.mrf.mxu0 }
 0x9a6   :  { %v7286_v63 = vpack.c.bf16 %v11818_v10, %v11817_v51 }
 0x9a7   :  { %v7259_v4 = vpop.f32.mrf.mxu0 }
 0x9a8   :  { %v7285_v8 = vpack.c.bf16 %v7259_v4, %v7256_v12 }
 0x9aa   :  { %11883 = vmatprep.mubr.msk.bf16.mxu0 %vm368_vm3, %v7285_v8  ;;  %v15040_v8 = vpop.f32.mrf.mxu1 }
 0x9ab   :  { %11884 = vmatmul.mubr.msk.bf16.gmra.mxu0 %vm368_vm3, %v7286_v63 }
 0x9ac   :  { %11925 = vmatprep.mubr.msk.bf16.mxu0 %vm12390_vm9, %v12389_v17 }
 0xa33   :  { %v11857_v13 = vpop.f32.mrf.mxu0 }
 0xa34   :  { %v7647_v48 = vadd.f32 %v11857_v13, %v11823_v46 }
 0xa35   :  { %v7638_v43 = vpop.f32.mrf.mxu0 }
 0xa36   :  { %v7639_v19 = vadd.f32 %v7638_v43, %v7423_v0  ;;  %v7774_v32 = vadd.f32 %v15021_v47, %v7647_v48 }
 0xa37   :  { %v11858_v3 = vpop.f32.mrf.mxu0 }
 0xa38   :  { %v7650_v55 = vadd.f32 %v11858_v3, %v11824_v61  ;;  %v7772_v28 = vadd.f32 %v15021_v47, %v7639_v19  ;;  %v7806_v39 = vmax.f32 %v7774_v32, 0.0 }
 0xa39   :  { %v7641_v26 = vpop.f32.mrf.mxu0 }
 0xa3a   :  { %v7775_v24 = vadd.f32 %v15021_v47, %v7650_v55  ;;  %v7642_v1 = vadd.f32 %v7641_v26, %v7426_v49  ;;  %v7804_v56 = vmax.f32 %v7772_v28, 0.0 }
 0xa3b   :  { %v11861_v58 = vpop.f32.mrf.mxu0 }
 0xa3c   :  { %v7773_v25 = vadd.f32 %v15021_v47, %v7642_v1  ;;  %v7807_v57 = vmax.f32 %v7775_v24, 0.0  ;;  %v7663_v31 = vadd.f32 %v11861_v58, %v11827_v23 }
 0xa3d   :  { %v7654_v7 = vpop.f32.mrf.mxu0 }
 0xa3e   :  { %v7805_v45 = vmax.f32 %v7773_v25, 0.0  ;;  %v7655_v62 = vadd.f32 %v7654_v7, %v7439_v20  ;;  %v7837_v18 = vpack.c.bf16 %v7807_v57, %v7806_v39  ;;  %v7778_v22 = vadd.f32 %v15021_v47, %v7663_v31 }
 0xa3f   :  { %v11862_v33 = vpop.f32.mrf.mxu0 }
 0xa40   :  { %v7836_v60 = vpack.c.bf16 %v7805_v45, %v7804_v56  ;;  %v7666_v30 = vadd.f32 %v11862_v33, %v11828_v21  ;;  %v7776_v52 = vadd.f32 %v15021_v47, %v7655_v62  ;;  %v7810_v34 = vmax.f32 %v7778_v22, 0.0  ;;  %v7503_v21 = vpop.f32.mrf.mxu1 }
 0xa41   :  { %v7657_v27 = vpop.f32.mrf.mxu0 }
 0xa42   :  { %v7779_v35 = vadd.f32 %v15021_v47, %v7666_v30  ;;  %v7658_v2 = vadd.f32 %v7657_v27, %v7442_v41  ;;  %11891 = vmatprep.mubr.msk.bf16.mxu1 %vm3734_vm7, %v7836_v60  ;;  %v7808_v63 = vmax.f32 %v7776_v52, 0.0 }
 0xa43   :  { %v11865_v51 = vpop.f32.mrf.mxu0  ;;  %11892 = vmatmul.mubr.msk.bf16.vlgmr.msra.gmra.mxu1 %vm3734_vm7, %v7837_v18 }
 0xa44   :  { %v7777_v12 = vadd.f32 %v15021_v47, %v7658_v2  ;;  %11930 = vmatpush3.bf16.msra.mxu1 %v12273_v14  ;;  %v7811_v10 = vmax.f32 %v7779_v35, 0.0  ;;  %v7679_v46 = vadd.f32 %v11865_v51, %v11831_v59 }
 0xa45   :  { %v7670_v4 = vpop.f32.mrf.mxu0  ;;  %11941 = vmatprep.subr.bf16.mxu1 %v12389_v17 }
 0xa46   :  { %v7809_v40 = vmax.f32 %v7777_v12, 0.0  ;;  %v7671_v42 = vadd.f32 %v7670_v4, %v7455_v9  ;;  %v7839_v23 = vpack.c.bf16 %v7811_v10, %v7810_v34  ;;  %v7782_v19 = vadd.f32 %v15021_v47, %v7679_v46 }
 0xa47   :  { %v11866_v0 = vpop.f32.mrf.mxu0 }
 0xa48   :  { %v7838_v61 = vpack.c.bf16 %v7809_v40, %v7808_v63  ;;  %v7682_v49 = vadd.f32 %v11866_v0, %v11832_v36  ;;  %v7780_v41 = vadd.f32 %v15021_v47, %v7671_v42  ;;  %v11844_v36 = vpop.f32.mrf.mxu1  ;;  %v7814_v24 = vmax.f32 %v7782_v19, 0.0 }
 0xa49   :  { %v7673_v20 = vpop.f32.mrf.mxu0 }
 0xa4a   :  { %v7783_v13 = vadd.f32 %v15021_v47, %v7682_v49  ;;  %v7674_v43 = vadd.f32 %v7673_v20, %v7458_v16  ;;  %11895 = vmatprep.mubr.msk.bf16.mxu1 %vm3734_vm7, %v7838_v61  ;;  %v7812_v55 = vmax.f32 %v7780_v41, 0.0  ;;  %v7506_v7 = vpop.f32.mrf.mxu1 }
 0xa4b   :  { %v11869_v48 = vpop.f32.mrf.mxu0  ;;  %11896 = vmatmul.mubr.msk.bf16.gmra.mxu1 %vm3734_vm7, %v7839_v23 }
 0xa4c   :  { %v7781_v59 = vadd.f32 %v15021_v47, %v7674_v43  ;;  %v7815_v9 = vmax.f32 %v7783_v13, 0.0  ;;  %v7695_v1 = vadd.f32 %v11869_v48, %v15010_v15  ;;  %v11847_v33 = vpop.f32.mrf.mxu1 }
 0xa4d   :  { %v7686_v3 = vpop.f32.mrf.mxu0 }
 0xa4e   :  { %v7813_v26 = vmax.f32 %v7781_v59, 0.0  ;;  %v7687_v28 = vadd.f32 %v7686_v3, %v15012_v29  ;;  %v7841_v25 = vpack.c.bf16 %v7815_v9, %v7814_v24  ;;  %v7786_v29 = vadd.f32 %v15021_v47, %v7695_v1  ;;  %v7519_v51 = vpop.f32.mrf.mxu1 }
 0xa4f   :  { %v11870_v16 = vpop.f32.mrf.mxu0 }
 0xa50   :  { %v7840_v32 = vpack.c.bf16 %v7813_v26, %v7812_v55  ;;  %v7698_v58 = vadd.f32 %v11870_v16, %v15014_v53  ;;  %v7784_v56 = vadd.f32 %v15021_v47, %v7687_v28  ;;  %v7818_v18 = vmax.f32 %v7786_v29, 0.0  ;;  %v11848_v42 = vpop.f32.mrf.mxu1 }
 0xa51   :  { %v7689_v57 = vpop.f32.mrf.mxu0 }
 0xa52   :  { %v7787_v45 = vadd.f32 %v15021_v47, %v7698_v58  ;;  %v7690_v62 = vadd.f32 %v7689_v57, %v15016_v50  ;;  %11899 = vmatprep.mubr.msk.bf16.mxu1 %vm3734_vm7, %v7840_v32  ;;  %v7816_v60 = vmax.f32 %v7784_v56, 0.0  ;;  %v7522_v43 = vpop.f32.mrf.mxu1 }
 0xa53   :  { %v11873_v39 = vpop.f32.mrf.mxu0  ;;  %11900 = vmatmul.mubr.msk.bf16.gmra.mxu1 %vm3734_vm7, %v7841_v25 }
 0xa54   :  { %v7785_v15 = vadd.f32 %v15021_v47, %v7690_v62  ;;  %v7819_v31 = vmax.f32 %v7787_v45, 0.0  ;;  %v7711_v27 = vadd.f32 %v11873_v39, %v15018_v6 }
 0xa55   :  { %v7702_v53 = vpop.f32.mrf.mxu0 }
 0xa56   :  { %v7817_v30 = vmax.f32 %v7785_v15, 0.0  ;;  %v7703_v14 = vadd.f32 %v7702_v53, %v15023_v38  ;;  %v7843_v2 = vpack.c.bf16 %v7819_v31, %v7818_v18  ;;  %v7790_v38 = vadd.f32 %v15021_v47, %v7711_v27 }
 0xa57   :  { %v11874_v50 = vpop.f32.mrf.mxu0 }
 0xa58   :  { %v7842_v52 = vpack.c.bf16 %v7817_v30, %v7816_v60  ;;  %v7714_v35 = vadd.f32 %v11874_v50, %v15029_v44  ;;  %v7788_v12 = vadd.f32 %v15021_v47, %v7703_v14  ;;  %v7822_v61 = vmax.f32 %v7790_v38, 0.0 }
 0xa59   :  { %v7705_v22 = vpop.f32.mrf.mxu0 }
 0xa5a   :  { %v7791_v10 = vadd.f32 %v15021_v47, %v7714_v35  ;;  %v7706_v4 = vadd.f32 %v7705_v22, %v15032_v54  ;;  %11903 = vmatprep.mubr.msk.bf16.mxu1 %vm3734_vm7, %v7842_v52  ;;  %v7820_v34 = vmax.f32 %v7788_v12, 0.0 }
 0xa5b   :  { %v11877_v63 = vpop.f32.mrf.mxu0  ;;  %11904 = vmatmul.mubr.msk.bf16.gmra.mxu1 %vm3734_vm7, %v7843_v2 }
 0xa5c   :  { %v7789_v6 = vadd.f32 %v15021_v47, %v7706_v4  ;;  %v7823_v40 = vmax.f32 %v7791_v10, 0.0  ;;  %v7727_v49 = vadd.f32 %v11877_v63, %v15040_v8 }
 0xa5d   :  { %v7718_v44 = vpop.f32.mrf.mxu0 }
 0xa5e   :  { %v7821_v46 = vmax.f32 %v7789_v6, 0.0  ;;  %v7719_v0 = vadd.f32 %v7718_v44, %v7503_v21  ;;  %v7845_v41 = vpack.c.bf16 %v7823_v40, %v7822_v61  ;;  %v7794_v9 = vadd.f32 %v15021_v47, %v7727_v49 }
 0xa5f   :  { %v11878_v23 = vpop.f32.mrf.mxu0 }
 0xa60   :  { %v7844_v54 = vpack.c.bf16 %v7821_v46, %v7820_v34  ;;  %v7730_v20 = vadd.f32 %v11878_v23, %v11844_v36  ;;  %v7792_v19 = vadd.f32 %v15021_v47, %v7719_v0  ;;  %v11851_v36 = vpop.f32.mrf.mxu1  ;;  %v7826_v1 = vmax.f32 %v7794_v9, 0.0 }
 0xa61   :  { %v7721_v13 = vpop.f32.mrf.mxu0 }
 0xa62   :  { %v7795_v48 = vadd.f32 %v15021_v47, %v7730_v20  ;;  %v7722_v59 = vadd.f32 %v7721_v13, %v7506_v7  ;;  %11907 = vmatprep.mubr.msk.bf16.mxu1 %vm3734_vm7, %v7844_v54  ;;  %v7824_v26 = vmax.f32 %v7792_v19, 0.0  ;;  %v7535_v56 = vpop.f32.mrf.mxu1 }
 0xa63   :  { %v11881_v3 = vpop.f32.mrf.mxu0  ;;  %11908 = vmatmul.mubr.msk.bf16.gmra.mxu1 %vm3734_vm7, %v7845_v41 }
 0xa64   :  { %v7793_v8 = vadd.f32 %v15021_v47, %v7722_v59  ;;  %v7827_v21 = vmax.f32 %v7795_v48, 0.0  ;;  %v7743_v16 = vadd.f32 %v11881_v3, %v11847_v33  ;;  %v11852_v60 = vpop.f32.mrf.mxu1 }
 0xa65   :  { %v7734_v55 = vpop.f32.mrf.mxu0 }
 0xa66   :  { %v7825_v28 = vmax.f32 %v7793_v8, 0.0  ;;  %v7735_v24 = vadd.f32 %v7734_v55, %v7519_v51  ;;  %v7847_v57 = vpack.c.bf16 %v7827_v21, %v7826_v1  ;;  %v7798_v39 = vadd.f32 %v15021_v47, %v7743_v16  ;;  %v7538_v51 = vpop.f32.mrf.mxu1 }
 0xa67   :  { %v11882_v32 = vpop.f32.mrf.mxu0 }
 0xa68   :  { %v7846_v58 = vpack.c.bf16 %v7825_v28, %v7824_v26  ;;  %v7746_v25 = vadd.f32 %v11882_v32, %v11848_v42  ;;  %v7796_v45 = vadd.f32 %v15021_v47, %v7735_v24  ;;  %v7830_v27 = vmax.f32 %v7798_v39, 0.0  ;;  %v15097_v24 = vld [vmem:[%s15470_s12] ss:$0 sm:$0xff]  ;;  %s12309_s12 = scalar_lea.vmem %s9687_s24, 16 }
 0xa69   :  { %v7737_v7 = vpop.f32.mrf.mxu0  ;;  %p12310_p0 = scmp.ne.s32.totalorder %s9687_s24, %s12309_s12 }
 0xa6a   :  { %v7799_v62 = vadd.f32 %v15021_v47, %v7746_v25  ;;  %v7738_v29 = vadd.f32 %v7737_v7, %v7522_v43  ;;  %11911 = vmatprep.mubr.msk.bf16.mxu1 %vm3734_vm7, %v7846_v58  ;;  %v7828_v30 = vmax.f32 %v7796_v45, 0.0 }
 0xa6b   :  { %v11885_v15 = vpop.f32.mrf.mxu0  ;;  %11912 = vmatmul.mubr.msk.bf16.gmra.mxu1 %vm3734_vm7, %v7847_v57 }
 0xa6c   :  { %v7797_v31 = vadd.f32 %v15021_v47, %v7738_v29  ;;  %v7831_v53 = vmax.f32 %v7799_v62, 0.0  ;;  %v7759_v50 = vadd.f32 %v11885_v15, %v11851_v36 }
 0xa6d   :  { %v7750_v33 = vpop.f32.mrf.mxu0 }
 0xa6e   :  { %v7829_v14 = vmax.f32 %v7797_v31, 0.0  ;;  %v7751_v18 = vadd.f32 %v7750_v33, %v7535_v56  ;;  %v7849_v22 = vpack.c.bf16 %v7831_v53, %v7830_v27  ;;  %v7802_v63 = vadd.f32 %v15021_v47, %v7759_v50 }
 0xa6f   :  { %v11886_v52 = vpop.f32.mrf.mxu0 }
 0xa70   :  { %v7848_v35 = vpack.c.bf16 %v7829_v14, %v7828_v30  ;;  %v7762_v2 = vadd.f32 %v11886_v52, %v11852_v60  ;;  %v7800_v10 = vadd.f32 %v15021_v47, %v7751_v18  ;;  %v7834_v34 = vmax.f32 %v7802_v63, 0.0 }
 0xa71   :  { %v7753_v12 = vpop.f32.mrf.mxu0 }
 0xa72   :  { %v7803_v4 = vadd.f32 %v15021_v47, %v7762_v2  ;;  %v7754_v38 = vadd.f32 %v7753_v12, %v7538_v51  ;;  %11915 = vmatprep.mubr.msk.bf16.mxu1 %vm3734_vm7, %v7848_v35  ;;  %v7832_v44 = vmax.f32 %v7800_v10, 0.0 }
 0xa73   :  { %11916 = vmatmul.mubr.msk.bf16.gmra.mxu1 %vm3734_vm7, %v7849_v22 }
 0xa74   :  { %v7801_v6 = vadd.f32 %v15021_v47, %v7754_v38  ;;  %v7835_v40 = vmax.f32 %v7803_v4, 0.0 }
 0xa76   :  { %v7833_v42 = vmax.f32 %v7801_v6, 0.0  ;;  %v7851_v0 = vpack.c.bf16 %v7835_v40, %v7834_v34 }
 0xa78   :  { %v7850_v46 = vpack.c.bf16 %v7833_v42, %v7832_v44 }
 0xa7a   :  { %11919 = vmatprep.mubr.msk.bf16.mxu1 %vm3734_vm7, %v7850_v46 }
 0xa7b   :  { %11920 = vmatmul.mubr.msk.bf16.gmra.mxu1 %vm3734_vm7, %v7851_v0 }
 0xa7c   :  { %11931 = vmatprep.mubr.msk.bf16.mxu1 %vm12390_vm9, %v12389_v17 }
 0xa83   :  { %11932 = vmatmul.mubr.msk.bf16.vlgmr.msra.gmra.mxu1 %vm368_vm3, %v14901_v37 }
 0xa84   :  { %11945 = vmatprep.mubr.msk.bf16.mxu1 %vm12390_vm9, %v12389_v17 }
 0xb03   :  { %v11893_v47 = vpop.f32.mrf.mxu1 }
 0xb04   :  { %v15100_v32 = vadd.f32 %v11893_v47, %v15097_v24 }
 0xb05   :  { %v7956_v61 = vpop.f32.mrf.mxu1 }
 0xb06   :  { %v7957_v58 = vadd.f32 %v15097_v24, %v7956_v61  ;;  %v8085_v15 = vmax.f32 %v15100_v32, 0.0 }
 0xb07   :  { %v11894_v49 = vpop.f32.mrf.mxu1 }
 0xb08   :  { %v15104_v25 = vadd.f32 %v11894_v49, %v15097_v24  ;;  %v8083_v60 = vmax.f32 %v7957_v58, 0.0 }
 0xb09   :  { %v7959_v23 = vpop.f32.mrf.mxu1 }
 0xb0a   :  { %v15107_v7 = vadd.f32 %v15097_v24, %v7959_v23  ;;  %v8086_v30 = vmax.f32 %v15104_v25, 0.0 }
 0xb0b   :  { %v11897_v54 = vpop.f32.mrf.mxu1 }
 0xb0c   :  { %v15110_v56 = vadd.f32 %v11897_v54, %v15097_v24  ;;  %v8084_v50 = vmax.f32 %v15107_v7, 0.0 }
 0xb0d   :  { %v7972_v20 = vpop.f32.mrf.mxu1 }
 0xb0e   :  { %v15113_v45 = vadd.f32 %v15097_v24, %v7972_v20  ;;  %v8089_v22 = vmax.f32 %v15110_v56, 0.0 }
 0xb0f   :  { %v11898_v41 = vpop.f32.mrf.mxu1 }
 0xb10   :  { %v15116_v62 = vadd.f32 %v11898_v41, %v15097_v24  ;;  %v8087_v51 = vmax.f32 %v15113_v45, 0.0 }
 0xb11   :  { %v7975_v13 = vpop.f32.mrf.mxu1 }
 0xb12   :  { %v15119_v29 = vadd.f32 %v15097_v24, %v7975_v13  ;;  %v8090_v12 = vmax.f32 %v15116_v62, 0.0 }
 0xb13   :  { %v11901_v43 = vpop.f32.mrf.mxu1 }
 0xb14   :  { %v15123_v31 = vadd.f32 %v11901_v43, %v15097_v24  ;;  %v8088_v10 = vmax.f32 %v15119_v29, 0.0 }
 0xb15   :  { %v7988_v19 = vpop.f32.mrf.mxu1 }
 0xb16   :  { %v7989_v53 = vadd.f32 %v15097_v24, %v7988_v19  ;;  %v8093_v38 = vmax.f32 %v15123_v31, 0.0 }
 0xb17   :  { %v11902_v48 = vpop.f32.mrf.mxu1 }
 0xb18   :  { %v15127_v33 = vadd.f32 %v11902_v48, %v15097_v24  ;;  %v8091_v63 = vmax.f32 %v7989_v53, 0.0 }
 0xb19   :  { %v7991_v59 = vpop.f32.mrf.mxu1 }
 0xb1a   :  { %v15131_v14 = vadd.f32 %v15097_v24, %v7991_v59  ;;  %v8094_v6 = vmax.f32 %v15127_v33, 0.0 }
 0xb1b   :  { %v11905_v9 = vpop.f32.mrf.mxu1 }
 0xb1c   :  { %v8013_v18 = vadd.f32 %v11905_v9, %v15097_v24  ;;  %v8092_v44 = vmax.f32 %v15131_v14, 0.0 }
 0xb1d   :  { %v8004_v3 = vpop.f32.mrf.mxu1 }
 0xb1e   :  { %v8005_v52 = vadd.f32 %v15097_v24, %v8004_v3  ;;  %v8097_v42 = vmax.f32 %v8013_v18, 0.0 }
 0xb1f   :  { %v11906_v8 = vpop.f32.mrf.mxu1 }
 0xb20   :  { %v15137_v35 = vadd.f32 %v11906_v8, %v15097_v24  ;;  %v8095_v47 = vmax.f32 %v8005_v52, 0.0 }
 0xb21   :  { %v8007_v37 = vpop.f32.mrf.mxu1 }
 0xb22   :  { %v15147_v40 = vadd.f32 %v15097_v24, %v8007_v37  ;;  %v8098_v61 = vmax.f32 %v15137_v35, 0.0 }
 0xb23   :  { %v11909_v21 = vpop.f32.mrf.mxu1 }
 0xb24   :  { %v8029_v49 = vadd.f32 %v11909_v21, %v15097_v24  ;;  %v8096_v19 = vmax.f32 %v15147_v40, 0.0 }
 0xb25   :  { %v8020_v55 = vpop.f32.mrf.mxu1 }
 0xb26   :  { %v8021_v2 = vadd.f32 %v15097_v24, %v8020_v55 }
 0xb27   :  { %v11910_v36 = vpop.f32.mrf.mxu1 }
 0xb28   :  { %v8099_v23 = vmax.f32 %v8021_v2, 0.0  ;;  %v8032_v48 = vadd.f32 %v11910_v36, %v15097_v24 }
 0xb29   :  { %v8023_v26 = vpop.f32.mrf.mxu1 }
 0xb2a   :  { %v8024_v3 = vadd.f32 %v15097_v24, %v8023_v26  ;;  %v8102_v31 = vmax.f32 %v8032_v48, 0.0 }
 0xb2b   :  { %v11913_v28 = vpop.f32.mrf.mxu1 }
 0xb2c   :  { %v8045_v54 = vadd.f32 %v11913_v28, %v15097_v24  ;;  %v8101_v28 = vmax.f32 %v8029_v49, 0.0  ;;  %v8100_v14 = vmax.f32 %v8024_v3, 0.0  ;;  %v12275_v3 = vld [vmem:[%s15472_s27] sm:$0xff]  }
 0xb2d   :  { %v8036_v1 = vpop.f32.mrf.mxu1 }
 0xb2e   :  { %v8037_v34 = vadd.f32 %v15097_v24, %v8036_v1  ;;  %v8115_v1 = vmax.f32 %v8083_v60, %v8099_v23  ;;  %v8105_v56 = vmax.f32 %v8045_v54, 0.0 }
 0xb2f   :  { %v11914_v16 = vpop.f32.mrf.mxu1 }
 0xb30   :  { %v8048_v20 = vadd.f32 %v11914_v16, %v15097_v24  ;;  %v8103_v8 = vmax.f32 %v8037_v34, 0.0  ;;  %v8121_v40 = vmax.f32 %v8089_v22, %v8105_v56 }
 0xb31   :  { %v8039_v57 = vpop.f32.mrf.mxu1 }
 0xb32   :  { %v8040_v37 = vadd.f32 %v15097_v24, %v8039_v57  ;;  %v8106_v45 = vmax.f32 %v8048_v20, 0.0  ;;  %v8119_v18 = vmax.f32 %v8087_v51, %v8103_v8  ;;  %v8117_v51 = vmax.f32 %v8085_v15, %v8101_v28 }
 0xb33   :  { %v11917_v39 = vpop.f32.mrf.mxu1 }
 0xb34   :  { %v8061_v41 = vadd.f32 %v11917_v39, %v15097_v24  ;;  %v8104_v57 = vmax.f32 %v8040_v37, 0.0  ;;  %v8122_v34 = vmax.f32 %v8090_v12, %v8106_v45 }
 0xb35   :  { %v8052_v27 = vpop.f32.mrf.mxu1 }
 0xb36   :  { %v8053_v46 = vadd.f32 %v15097_v24, %v8052_v27  ;;  %v8109_v62 = vmax.f32 %v8061_v41, 0.0 }
 0xb37   :  { %v11918_v4 = vpop.f32.mrf.mxu1 }
 0xb38   :  { %v8064_v13 = vadd.f32 %v11918_v4, %v15097_v24  ;;  %v8107_v21 = vmax.f32 %v8053_v46, 0.0  ;;  %v8125_v46 = vmax.f32 %v8093_v38, %v8109_v62  ;;  %v10343_v62 = vld [vmem:[%s15475_s11] ss:$0 sm:$0xff] }
 0xb39   :  { %v8055_v0 = vpop.f32.mrf.mxu1 }
 0xb3a   :  { %v8056_v59 = vadd.f32 %v15097_v24, %v8055_v0  ;;  %v8110_v36 = vmax.f32 %v8064_v13, 0.0  ;;  %v8123_v27 = vmax.f32 %v8091_v63, %v8107_v21  ;;  %v8118_v63 = vmax.f32 %v8086_v30, %v8102_v31 }
 0xb3b   :  { %v11921_v43 = vpop.f32.mrf.mxu1 }
 0xb3c   :  { %v8077_v9 = vadd.f32 %v11921_v43, %v15097_v24  ;;  %v8108_v53 = vmax.f32 %v8056_v59, 0.0  ;;  %v8126_v0 = vmax.f32 %v8094_v6, %v8110_v36  ;;  %v8131_v12 = vmax.f32 %v8115_v1, %v8123_v27  ;;  %v12276_v1 = vld [vmem:[%s15473_s7 + $0x8] sm:$0xff]   ;;  %v12279_v27 = vld [vmem:[%s15476_s15] sm:$0xff]  }
 0xb3d   :  { %v8068_v55 = vpop.f32.mrf.mxu1  ;;  %11942 = vmatpush3.bf16.msra.mxu1 %v12276_v1  ;;  %v15486_v1 = vld [vmem:[#allocation46_spill] sm:$0xff] }
 0xb3e   :  { %v8113_v16 = vmax.f32 %v8077_v9, 0.0  ;;  %v8069_v58 = vadd.f32 %v15097_v24, %v8068_v55  ;;  %v8124_v23 = vmax.f32 %v8092_v44, %v8108_v53  ;;  %v8134_v13 = vmax.f32 %v8118_v63, %v8126_v0  ;;  %11943 = vmatprep.subr.bf16.mxu1 %v12389_v17 }
 0xb3f   :  { %v11922_v39 = vpop.f32.mrf.mxu1 }
 0xb40   :  { %v8111_v33 = vmax.f32 %v8069_v58, 0.0  ;;  %v8080_v26 = vadd.f32 %v11922_v39, %v15097_v24  ;;  %v8129_v35 = vmax.f32 %v8097_v42, %v8113_v16  ;;  %v8116_v42 = vmax.f32 %v8084_v50, %v8100_v14  ;;  %v12277_v16 = vld [vmem:[%s15473_s7] sm:$0xff]  }
 0xb41   :  { %v8071_v52 = vpop.f32.mrf.mxu1  ;;  %11944 = vmatpush3.bf16.msra.mxu1 %v12277_v16  ;;  %v12278_v58 = vld [vmem:[%s15474_s10] sm:$0xff]  }
 0xb42   :  { %v8127_v60 = vmax.f32 %v8095_v47, %v8111_v33  ;;  %v8114_v2 = vmax.f32 %v8080_v26, 0.0  ;;  %v8072_v4 = vadd.f32 %v15097_v24, %v8071_v52  ;;  %v8120_v24 = vmax.f32 %v8088_v10, %v8104_v57  ;;  %11955 = vmatprep.subr.bf16.mxu1 %v12278_v58  ;;  %v10344_v52 = vld [vmem:[%s15477_s16] ss:$0 sm:$0xff] }
 0xb43   :  { %v8249_v49 = vpop.f32.mrf.mxu1  ;;  %v8137_v38 = vmax.f32 %v8121_v40, %v8129_v35  ;;  %v8133_v47 = vmax.f32 %v8117_v51, %v8125_v46  ;;  %v8132_v32 = vmax.f32 %v8116_v42, %v8124_v23  ;;  %v12282_v42 = vld [vmem:[%s15479_s22 + $0x8] sm:$0xff]   ;;  %v12285_v16 = vld [vmem:[%s12670_s30] sm:$0xff]  }
 0xb44   :  { %v8135_v54 = vmax.f32 %v8119_v18, %v8127_v60  ;;  %v8130_v20 = vmax.f32 %v8098_v61, %v8114_v2  ;;  %v8112_v41 = vmax.f32 %v8072_v4, 0.0 }
 0xb45   :  { %v11933_v22 = vpop.f32.mrf.mxu1  ;;  %v8141_v43 = vmax.f32 %v8133_v47, %v8137_v38 }
 0xb46   :  { %v8138_v6 = vmax.f32 %v8122_v34, %v8130_v20  ;;  %v8128_v44 = vmax.f32 %v8096_v19, %v8112_v41  ;;  %v8139_v15 = vmax.f32 %v8131_v12, %v8135_v54  ;;  %v12274_v19 = vld [vmem:[%s15471_s20] sm:$0xff]   ;;  %s12313_s20 = scalar_lea.vmem %s9687_s24, 32 }
 0xb47   :  { %v8252_v61 = vpop.f32.mrf.mxu1  ;;  %v12284_v22 = vld [vmem:[%s15480_s23] sm:$0xff]   ;;  %p12315_p2 = scmp.lt.s32.totalorder %s12313_s20, %s12309_s12 }
 0xb48   :  { %v8136_v25 = vmax.f32 %v8120_v24, %v8128_v44  ;;  %v8142_v7 = vmax.f32 %v8134_v13, %v8138_v6  ;;  %v8143_v48 = vmax.f32 %v8139_v15, %v8141_v43  ;;  %v12283_v24 = vld [vmem:[%s15479_s22] sm:$0xff]  }
 0xb49   :  { %v11934_v30 = vpop.f32.mrf.mxu1  ;;  %v10358_v15 = vld [vmem:[%s15481_s26] ss:$0 sm:$0xff]  ;;  %p12316_p3 = por %p12315_p2, %p12314_p1 }
 0xb4a   :  { %v8140_v50 = vmax.f32 %v8132_v32, %v8136_v25 }
 0xb4b   :  { %p12317_p4 = pnand %p12316_p3, %p12310_p0 }
 0xb4c   :  { %v8144_v29 = vmax.f32 %v8140_v50, %v8142_v7 }
 0xb4e   :  { %v8145_v10 = vmax.f32 %v8143_v48, %v8144_v29 }
 0xb50   :  { %v8148_v59 = vpack.c.bf16 %v8145_v10, %v8145_v10 }
 0xb52   :  { %v8158_v9 = vsel %vm2096_vm5, %v8148_v59, 0 }
 0xb53   :  { %11924 = vmatpush3.bf16.msra.mxu0 %v8158_v9 }
 0xb54   :  { %11935 = vmatprep.subr.bf16.mxu0 %v12389_v17 }
 0xb56   :  { %11926 = vmatmul.mubr.msk.bf16.vlgmr.msra.gmra.mxu0 %vm1903_vm6, %v12274_v19 }
 0xb57   :  { %11937 = vmatprep.mubr.msk.bf16.mxu0 %vm12390_vm9, %v12389_v17  ;;  %11936 = vmatpush3.bf16.msra.mxu0 %v12275_v3 }
 0xc16   :  { %v8194_v8 = vpop.f32.mrf.mxu0 }
 0xc18   :  { %v11927_v37 = vpop.f32.mrf.mxu0 }
 0xc1a   :  { %v8197_v21 = vpop.f32.mrf.mxu0 }
 0xc1b   :  { %v8201_v55 = vpack.c.bf16 %v8197_v21, %v8194_v8  ;;  %v15483_v21 = vld [vmem:[#allocation49_spill] sm:$0xff] }
 0xc1c   :  { %v11928_v28 = vpop.f32.mrf.mxu0 }
 0xc1d   :  { %11938 = vmatmul.mubr.msk.bf16.vlgmr.msra.gmra.mxu0 %vm368_vm3, %v8201_v55  ;;  %v15484_v55 = vld [vmem:[#allocation48_spill] sm:$0xff]  ;;  %v15485_v28 = vld [vmem:[#allocation47_spill] sm:$0xff] }
 0xc1e   :  { %11951 = vmatprep.mubr.msk.bf16.mxu0 %vm368_vm3, %v12279_v27 }
 0xcdd   :  { %v8299_v56 = vpop.f32.mrf.mxu0 }
 0xcde   :  { %v8300_v45 = vadd.f32 %v8299_v56, %v8249_v49  ;;  %v10359_v56 = vld [vmem:[%s15482_s28] ss:$0 sm:$0xff] }
 0xcdf   :  { %v11939_v36 = vpop.f32.mrf.mxu0 }
 0xce0   :  { %v8313_v31 = vadd.f32 %v10343_v62, %v8300_v45 }
 0xce1   :  { %v8302_v39 = vpop.f32.mrf.mxu0 }
 0xce2   :  { %v8303_v53 = vadd.f32 %v8302_v39, %v8252_v61  ;;  %v8315_v14 = vmax.f32 %v8313_v31, 0.0 }
 0xce3   :  { %v11940_v33 = vpop.f32.mrf.mxu0 }
 0xce4   :  { %v8314_v26 = vadd.f32 %v10343_v62, %v8303_v53 }
 0xce6   :  { %v8316_v18 = vmax.f32 %v8314_v26, 0.0 }
 0xce8   :  { %v8317_v57 = vpack.c.bf16 %v8316_v18, %v8315_v14 }
 0xcea   :  { %11946 = vmatmul.mubr.msk.bf16.vlgmr.msra.gmra.mxu1 %vm4953_vm8, %v8317_v57 }
 0xceb   :  { %11957 = vmatprep.mubr.msk.bf16.mxu1 %vm368_vm3, %v14372_v11  ;;  %11956 = vmatpush3.bf16.msra.mxu1 %v12278_v58  ;;  %v12280_v11 = vld [vmem:[%s15476_s15 + $0x8] sm:$0xff]  }
 0xcec   :  { %11967 = vmatprep.subr.bf16.mxu1 %v12282_v42 }
 0xcf2   :  { %11958 = vmatmul.mubr.msk.bf16.vlgmr.msra.gmra.mxu1 %vm368_vm3, %v14369_v5  ;;  %v12281_v5 = vld [vmem:[%s15478_s18] sm:$0xff]  }
 0xcf3   :  { %11968 = vmatpush3.bf16.msra.mxu1 %v12282_v42  ;;  %v12291_v42 = vld [vmem:[%s15488_s2] sm:$0xff]  }
 0xcf4   :  { %11969 = vmatprep.subr.bf16.mxu1 %v12283_v24 }
 0xcf7   :  { %11970 = vmatpush3.bf16.msra.mxu1 %v12283_v24 }
 0xcf8   :  { %11987 = vmatprep.subr.bf16.mxu1 %v12284_v22 }
 0xdaa   :  { %v8378_v35 = vpop.f32.mrf.mxu1 }
 0xdab   :  { %v8379_v2 = vadd.f32 %v10344_v52, %v8378_v35  ;;  %v12286_v35 = vld [vmem:[%s12670_s30 + $0x8] sm:$0xff]  }
 0xdac   :  { %v11947_v60 = vpop.f32.mrf.mxu1 }
 0xdad   :  { %v8385_v46 = vmax.f32 %v8379_v2, 0.0  ;;  %v12287_v60 = vld [vmem:[%s12670_s30 + $0x10] sm:$0xff]   ;;  %v12288_v2 = vld [vmem:[%s12670_s30 + $0x18] sm:$0xff]   ;;  %s15489_s30 = sld [smem:[#allocation26_spill]] }
 0xdae   :  { %v8381_v4 = vpop.f32.mrf.mxu1 }
 0xdaf   :  { %v8382_v40 = vadd.f32 %v10344_v52, %v8381_v4  ;;  %v12289_v4 = vld [vmem:[%s15487_s1] sm:$0xff]  }
 0xdb0   :  { %v11948_v34 = vpop.f32.mrf.mxu1 }
 0xdb1   :  { %v8386_v0 = vmax.f32 %v8382_v40, 0.0 }
 0xdb2   :  { %v11959_v12 = vpop.f32.mrf.mxu1 }
 0xdb3   :  { %v8391_v49 = vpack.c.bf16 %v8386_v0, %v8385_v46 }
 0xdb4   :  { %v8509_v38 = vpop.f32.mrf.mxu1 }
 0xdb5   :  { %11949 = vmatprep.subr.bf16.mxu0 %v8391_v49 }
 0xdb6   :  { %11950 = vmatpush3.bf16.msra.mxu0 %v8391_v49  ;;  %v11960_v44 = vpop.f32.mrf.mxu1 }
 0xdb7   :  { %11961 = vmatprep.subr.bf16.mxu0 %v12281_v5 }
 0xdb8   :  { %v8512_v30 = vpop.f32.mrf.mxu1 }
 0xdb9   :  { %11952 = vmatmul.mubr.msk.bf16.vlgmr.msra.gmra.mxu0 %vm368_vm3, %v12280_v11 }
 0xdba   :  { %11962 = vmatpush3.bf16.msra.mxu0 %v12281_v5 }
 0xe79   :  { %v11953_v23 = vpop.f32.mrf.mxu0 }
 0xe7b   :  { %v8442_v54 = vpop.f32.mrf.mxu0 }
 0xe7d   :  { %v11954_v20 = vpop.f32.mrf.mxu0 }
 0xe7e   :  { %v8458_v63 = vpack.c.bf16 %v11954_v20, %v11953_v23 }
 0xe7f   :  { %v8445_v41 = vpop.f32.mrf.mxu0 }
 0xe80   :  { %v8457_v51 = vpack.c.bf16 %v8445_v41, %v8442_v54 }
 0xe82   :  { %11963 = vmatprep.mubr.msk.bf16.mxu0 %vm368_vm3, %v8457_v51 }
 0xe83   :  { %11964 = vmatmul.mubr.msk.bf16.vlgmr.msra.gmra.mxu0 %vm368_vm3, %v8458_v63  ;;  %v12290_v63 = vld [vmem:[%s15488_s2 + $0x8] sm:$0xff]  }
 0xe84   :  { %11979 = vmatprep.mubr.msk.bf16.mxu0 %vm4953_vm8, %v12285_v16 }
 0xf43   :  { %v11965_v6 = vpop.f32.mrf.mxu0 }
 0xf44   :  { %v8579_v13 = vadd.f32 %v11965_v6, %v11959_v12 }
 0xf45   :  { %v8570_v47 = vpop.f32.mrf.mxu0 }
 0xf46   :  { %v8571_v61 = vadd.f32 %v8570_v47, %v8509_v38  ;;  %v8594_v29 = vadd.f32 %v10358_v15, %v8579_v13 }
 0xf47   :  { %v11966_v32 = vpop.f32.mrf.mxu0 }
 0xf48   :  { %v8582_v25 = vadd.f32 %v11966_v32, %v11960_v44  ;;  %v8592_v7 = vadd.f32 %v10358_v15, %v8571_v61  ;;  %v8598_v3 = vmax.f32 %v8594_v29, 0.0 }
 0xf49   :  { %v8573_v43 = vpop.f32.mrf.mxu0 }
 0xf4a   :  { %v8595_v50 = vadd.f32 %v10358_v15, %v8582_v25  ;;  %v8574_v48 = vadd.f32 %v8573_v43, %v8512_v30  ;;  %v8596_v9 = vmax.f32 %v8592_v7, 0.0 }
 0xf4c   :  { %v8593_v10 = vadd.f32 %v10358_v15, %v8574_v48  ;;  %v8599_v59 = vmax.f32 %v8595_v50, 0.0  ;;  %v10382_v15 = vld [vmem:[%s15489_s30] ss:$0 sm:$0xff] }
 0xf4e   :  { %v8597_v19 = vmax.f32 %v8593_v10, 0.0  ;;  %v8601_v37 = vpack.c.bf16 %v8599_v59, %v8598_v3 }
 0xf50   :  { %v8600_v8 = vpack.c.bf16 %v8597_v19, %v8596_v9 }
 0xf52   :  { %11971 = vmatprep.mubr.msk.bf16.mxu1 %vm4953_vm8, %v8600_v8 }
 0xf53   :  { %11972 = vmatmul.mubr.msk.bf16.vlgmr.msra.gmra.mxu1 %vm4953_vm8, %v8601_v37 }
 0xf54   :  { %11989 = vmatprep.mubr.msk.bf16.mxu1 %vm368_vm3, %v15483_v21  ;;  %11988 = vmatpush3.bf16.msra.mxu1 %v12284_v22 }
 0xf55   :  { %12007 = vmatprep.subr.bf16.mxu1 %v12290_v63 }
 0xf5b   :  { %11990 = vmatmul.mubr.msk.bf16.vlgmr.msra.gmra.mxu1 %vm368_vm3, %v15484_v55 }
 0xf5c   :  { %11993 = vmatprep.mubr.msk.bf16.mxu1 %vm368_vm3, %v15485_v28  ;;  %12008 = vmatpush3.bf16.msra.mxu1 %v12290_v63 }
 0xf5d   :  { %12009 = vmatprep.subr.bf16.mxu1 %v12291_v42 }
 0xf60   :  { %12010 = vmatpush3.bf16.msra.mxu1 %v12291_v42 }
 0xf63   :  { %11994 = vmatmul.mubr.msk.bf16.gmra.mxu1 %vm368_vm3, %v15486_v1 }
0x1013   :  { %v11973_v58 = vpop.f32.mrf.mxu1 }
0x1014   :  { %v8674_v62 = vadd.f32 %v11973_v58, %v10359_v56 }
0x1015   :  { %v8665_v45 = vpop.f32.mrf.mxu1 }
0x1016   :  { %v8666_v39 = vadd.f32 %v10359_v56, %v8665_v45  ;;  %v8682_v33 = vmax.f32 %v8674_v62, 0.0 }
0x1017   :  { %v11974_v36 = vpop.f32.mrf.mxu1 }
0x1018   :  { %v8677_v31 = vadd.f32 %v11974_v36, %v10359_v56  ;;  %v8680_v18 = vmax.f32 %v8666_v39, 0.0 }
0x1019   :  { %v8668_v53 = vpop.f32.mrf.mxu1 }
0x101a   :  { %v8683_v26 = vmax.f32 %v8677_v31, 0.0  ;;  %v8669_v14 = vadd.f32 %v10359_v56, %v8668_v53 }
0x101b   :  { %v11991_v24 = vpop.f32.mrf.mxu1 }
0x101c   :  { %v8693_v57 = vpack.c.bf16 %v8683_v26, %v8682_v33  ;;  %v8681_v27 = vmax.f32 %v8669_v14, 0.0 }
0x101d   :  { %v8851_v22 = vpop.f32.mrf.mxu1 }
0x101e   :  { %v8692_v52 = vpack.c.bf16 %v8681_v27, %v8680_v18  ;;  %11975 = vmatprep.subr.bf16.mxu0 %v8693_v57 }
0x101f   :  { %11976 = vmatpush3.bf16.msra.mxu0 %v8693_v57  ;;  %v11992_v12 = vpop.f32.mrf.mxu1 }
0x1020   :  { %11977 = vmatprep.subr.bf16.mxu0 %v8692_v52 }
0x1021   :  { %v8854_v38 = vpop.f32.mrf.mxu1 }
0x1023   :  { %11978 = vmatpush3.bf16.msra.mxu0 %v8692_v52  ;;  %v11995_v44 = vpop.f32.mrf.mxu1 }
0x1024   :  { %11997 = vmatprep.subr.bf16.mxu0 %v12289_v4 }
0x1025   :  { %v8867_v30 = vpop.f32.mrf.mxu1 }
0x1026   :  { %11980 = vmatmul.mubr.msk.bf16.vlgmr.msra.gmra.mxu0 %vm4953_vm8, %v12286_v35  ;;  %v12292_v35 = vld [vmem:[%s15490_s0] sm:$0xff]  }
0x1027   :  { %11983 = vmatprep.mubr.msk.bf16.mxu0 %vm4953_vm8, %v12287_v60  ;;  %11998 = vmatpush3.bf16.msra.mxu0 %v12289_v4  ;;  %v11996_v9 = vpop.f32.mrf.mxu1  ;;  %v10383_v4 = vld [vmem:[%s15491_s5] ss:$0 sm:$0xff] }
0x1028   :  { %12019 = vmatprep.subr.bf16.mxu0 %v12292_v35 }
0x1029   :  { %v8870_v56 = vpop.f32.mrf.mxu1 }
0x102e   :  { %11984 = vmatmul.mubr.msk.bf16.gmra.mxu0 %vm4953_vm8, %v12288_v2 }
0x10e6   :  { %v11981_v40 = vpop.f32.mrf.mxu0 }
0x10e8   :  { %v8760_v34 = vpop.f32.mrf.mxu0 }
0x10ea   :  { %v11982_v46 = vpop.f32.mrf.mxu0 }
0x10eb   :  { %v8792_v11 = vpack.c.bf16 %v11982_v46, %v11981_v40 }
0x10ec   :  { %v8763_v0 = vpop.f32.mrf.mxu0 }
0x10ed   :  { %v8791_v49 = vpack.c.bf16 %v8763_v0, %v8760_v34 }
0x10ee   :  { %v11985_v5 = vpop.f32.mrf.mxu0 }
0x10ef   :  { %11999 = vmatprep.mubr.msk.bf16.mxu0 %vm368_vm3, %v8791_v49 }
0x10f0   :  { %v8776_v23 = vpop.f32.mrf.mxu0  ;;  %12000 = vmatmul.mubr.msk.bf16.vlgmr.msra.gmra.mxu0 %vm368_vm3, %v8792_v11 }
0x10f1   :  { %12020 = vmatpush3.bf16.msra.mxu0 %v12292_v35 }
0x10f2   :  { %v11986_v54 = vpop.f32.mrf.mxu0  ;;  %12039 = vmatprep.subr.bf16.mxu0 %v12389_v17 }
0x10f3   :  { %v8794_v51 = vpack.c.bf16 %v11986_v54, %v11985_v5 }
0x10f4   :  { %v8779_v20 = vpop.f32.mrf.mxu0 }
0x10f5   :  { %v8793_v41 = vpack.c.bf16 %v8779_v20, %v8776_v23 }
0x10f7   :  { %12003 = vmatprep.mubr.msk.bf16.mxu0 %vm368_vm3, %v8793_v41 }
0x10f8   :  { %12004 = vmatmul.mubr.msk.bf16.gmra.mxu0 %vm368_vm3, %v8794_v51 }
0x11b0   :  { %v12001_v6 = vpop.f32.mrf.mxu0 }
0x11b1   :  { %v8943_v13 = vadd.f32 %v12001_v6, %v11991_v24 }
0x11b2   :  { %v8934_v47 = vpop.f32.mrf.mxu0 }
0x11b3   :  { %v8935_v61 = vadd.f32 %v8934_v47, %v8851_v22  ;;  %v8974_v29 = vadd.f32 %v10382_v15, %v8943_v13 }
0x11b4   :  { %v12002_v32 = vpop.f32.mrf.mxu0 }
0x11b5   :  { %v8946_v25 = vadd.f32 %v12002_v32, %v11992_v12  ;;  %v8972_v7 = vadd.f32 %v10382_v15, %v8935_v61  ;;  %v8982_v55 = vmax.f32 %v8974_v29, 0.0 }
0x11b6   :  { %v8937_v43 = vpop.f32.mrf.mxu0 }
0x11b7   :  { %v8975_v50 = vadd.f32 %v10382_v15, %v8946_v25  ;;  %v8938_v48 = vadd.f32 %v8937_v43, %v8854_v38  ;;  %v8980_v8 = vmax.f32 %v8972_v7, 0.0 }
0x11b8   :  { %v12005_v10 = vpop.f32.mrf.mxu0 }
0x11b9   :  { %v8973_v59 = vadd.f32 %v10382_v15, %v8938_v48  ;;  %v8983_v19 = vmax.f32 %v8975_v50, 0.0  ;;  %v8959_v28 = vadd.f32 %v12005_v10, %v11995_v44  ;;  %v10390_v50 = vld [vmem:[%s15493_s13] ss:$0 sm:$0xff] }
0x11ba   :  { %v8950_v3 = vpop.f32.mrf.mxu0 }
0x11bb   :  { %v8981_v37 = vmax.f32 %v8973_v59, 0.0  ;;  %v8951_v21 = vadd.f32 %v8950_v3, %v8867_v30  ;;  %v8989_v45 = vpack.c.bf16 %v8983_v19, %v8982_v55  ;;  %v8978_v53 = vadd.f32 %v10382_v15, %v8959_v28  ;;  %v12293_v30 = vld [vmem:[%s15492_s9] sm:$0xff]  }
0x11bc   :  { %v12006_v1 = vpop.f32.mrf.mxu0  ;;  %12029 = vmatprep.subr.bf16.mxu1 %v12293_v30 }
0x11bd   :  { %v8988_v16 = vpack.c.bf16 %v8981_v37, %v8980_v8  ;;  %v8962_v58 = vadd.f32 %v12006_v1, %v11996_v9  ;;  %v8976_v36 = vadd.f32 %v10382_v15, %v8951_v21  ;;  %v8986_v57 = vmax.f32 %v8978_v53, 0.0 }
0x11be   :  { %v8953_v62 = vpop.f32.mrf.mxu0 }
0x11bf   :  { %v8979_v39 = vadd.f32 %v10382_v15, %v8962_v58  ;;  %v8954_v31 = vadd.f32 %v8953_v62, %v8870_v56  ;;  %12011 = vmatprep.mubr.msk.bf16.mxu1 %vm4953_vm8, %v8988_v16  ;;  %v8984_v14 = vmax.f32 %v8976_v36, 0.0 }
0x11c0   :  { %12012 = vmatmul.mubr.msk.bf16.vlgmr.msra.gmra.mxu1 %vm4953_vm8, %v8989_v45 }
0x11c1   :  { %v8977_v33 = vadd.f32 %v10382_v15, %v8954_v31  ;;  %v8987_v26 = vmax.f32 %v8979_v39, 0.0  ;;  %12030 = vmatpush3.bf16.msra.mxu1 %v12293_v30 }
0x11c2   :  { %12051 = vmatprep.subr.bf16.mxu1 %v12389_v17 }
0x11c3   :  { %v8985_v18 = vmax.f32 %v8977_v33, 0.0  ;;  %v8991_v52 = vpack.c.bf16 %v8987_v26, %v8986_v57 }
0x11c5   :  { %v8990_v27 = vpack.c.bf16 %v8985_v18, %v8984_v14 }
0x11c7   :  { %12015 = vmatprep.mubr.msk.bf16.mxu1 %vm4953_vm8, %v8990_v27 }
0x11c8   :  { %12016 = vmatmul.mubr.msk.bf16.gmra.mxu1 %vm4953_vm8, %v8991_v52 }
0x1280   :  { %v12013_v60 = vpop.f32.mrf.mxu1 }
0x1281   :  { %v9070_v0 = vadd.f32 %v12013_v60, %v10383_v4 }
0x1282   :  { %v9061_v2 = vpop.f32.mrf.mxu1 }
0x1283   :  { %v9062_v34 = vadd.f32 %v10383_v4, %v9061_v2  ;;  %v9094_v41 = vmax.f32 %v9070_v0, 0.0 }
0x1284   :  { %v12014_v40 = vpop.f32.mrf.mxu1 }
0x1285   :  { %v9073_v46 = vadd.f32 %v12014_v40, %v10383_v4  ;;  %v9092_v54 = vmax.f32 %v9062_v34, 0.0 }
0x1286   :  { %v9064_v49 = vpop.f32.mrf.mxu1 }
0x1287   :  { %v9065_v11 = vadd.f32 %v10383_v4, %v9064_v49  ;;  %v9095_v5 = vmax.f32 %v9073_v46, 0.0 }
0x1288   :  { %v12017_v23 = vpop.f32.mrf.mxu1 }
0x1289   :  { %v9093_v20 = vmax.f32 %v9065_v11, 0.0  ;;  %v9101_v42 = vpack.c.bf16 %v9095_v5, %v9094_v41  ;;  %v9086_v38 = vadd.f32 %v12017_v23, %v10383_v4 }
0x128a   :  { %v9077_v51 = vpop.f32.mrf.mxu1 }
0x128b   :  { %v9100_v63 = vpack.c.bf16 %v9093_v20, %v9092_v54  ;;  %v9078_v22 = vadd.f32 %v10383_v4, %v9077_v51  ;;  %v9098_v32 = vmax.f32 %v9086_v38, 0.0  ;;  %v12297_v38 = vld [vmem:[%s15496_s25] sm:$0xff]  }
0x128c   :  { %v12018_v24 = vpop.f32.mrf.mxu1 }
0x128d   :  { %v9089_v12 = vadd.f32 %v12018_v24, %v10383_v4  ;;  %12021 = vmatprep.mubr.msk.bf16.mxu0 %vm368_vm3, %v9100_v63  ;;  %v9096_v61 = vmax.f32 %v9078_v22, 0.0  ;;  %v12294_v24 = vld [vmem:[%s12675_s6] sm:$0xff]   ;;  %s15498_s6 = sld [smem:[#allocation35_spill]] }
0x128e   :  { %v9080_v6 = vpop.f32.mrf.mxu1  ;;  %12022 = vmatmul.mubr.msk.bf16.vlgmr.msra.gmra.mxu0 %vm368_vm3, %v9101_v42  ;;  %v12295_v22 = vld [vmem:[%s12680_s19] sm:$0xff]   ;;  %s15497_s19 = sld [smem:[#allocation36_spill]] }
0x128f   :  { %v9081_v44 = vadd.f32 %v10383_v4, %v9080_v6  ;;  %v9099_v47 = vmax.f32 %v9089_v12, 0.0  ;;  %v10396_v4 = vld [vmem:[%s15494_s17] ss:$0 sm:$0xff] }
0x1290   :  { %v12296_v12 = vld [vmem:[%s15495_s21] sm:$0xff]  }
0x1291   :  { %v9097_v13 = vmax.f32 %v9081_v44, 0.0  ;;  %v9103_v25 = vpack.c.bf16 %v9099_v47, %v9098_v32 }
0x1293   :  { %v9102_v15 = vpack.c.bf16 %v9097_v13, %v9096_v61 }
0x1295   :  { %12025 = vmatprep.mubr.msk.bf16.mxu0 %vm368_vm3, %v9102_v15 }
0x1296   :  { %12026 = vmatmul.mubr.msk.bf16.gmra.mxu0 %vm368_vm3, %v9103_v25 }
0x1297   :  { %12047 = vmatprep.mubr.msk.bf16.mxu0 %vm12390_vm9, %v12389_v17 }
0x134e   :  { %v12023_v43 = vpop.f32.mrf.mxu0 }
0x134f   :  { %v9174_v59 = vadd.f32 %v12023_v43, %v10390_v50 }
0x1350   :  { %v9165_v7 = vpop.f32.mrf.mxu0 }
0x1351   :  { %v9166_v29 = vadd.f32 %v10390_v50, %v9165_v7  ;;  %v9198_v55 = vmax.f32 %v9174_v59, 0.0  ;;  %v12298_v7 = vld [vmem:[%s15497_s19] sm:$0xff]  }
0x1352   :  { %v12024_v48 = vpop.f32.mrf.mxu0 }
0x1353   :  { %v9177_v10 = vadd.f32 %v12024_v48, %v10390_v50  ;;  %v9196_v37 = vmax.f32 %v9166_v29, 0.0  ;;  %v10410_v29 = vld [vmem:[%s15498_s6] ss:$0 sm:$0xff] }
0x1354   :  { %v9168_v9 = vpop.f32.mrf.mxu0 }
0x1355   :  { %v9169_v19 = vadd.f32 %v10390_v50, %v9168_v9  ;;  %v9199_v3 = vmax.f32 %v9177_v10, 0.0 }
0x1356   :  { %v12027_v8 = vpop.f32.mrf.mxu0 }
0x1357   :  { %v9197_v21 = vmax.f32 %v9169_v19, 0.0  ;;  %v9205_v16 = vpack.c.bf16 %v9199_v3, %v9198_v55  ;;  %v9190_v62 = vadd.f32 %v12027_v8, %v10390_v50 }
0x1358   :  { %v9181_v28 = vpop.f32.mrf.mxu0 }
0x1359   :  { %v9204_v1 = vpack.c.bf16 %v9197_v21, %v9196_v37  ;;  %v9182_v56 = vadd.f32 %v10390_v50, %v9181_v28  ;;  %v9202_v26 = vmax.f32 %v9190_v62, 0.0 }
0x135a   :  { %v12028_v58 = vpop.f32.mrf.mxu0 }
0x135b   :  { %v9193_v45 = vadd.f32 %v12028_v58, %v10390_v50  ;;  %12031 = vmatprep.mubr.msk.bf16.mxu1 %vm368_vm3, %v9204_v1  ;;  %v9200_v53 = vmax.f32 %v9182_v56, 0.0 }
0x135c   :  { %v9184_v36 = vpop.f32.mrf.mxu0  ;;  %12032 = vmatmul.mubr.msk.bf16.vlgmr.msra.gmra.mxu1 %vm368_vm3, %v9205_v16 }
0x135d   :  { %v9185_v39 = vadd.f32 %v10390_v50, %v9184_v36  ;;  %v9203_v31 = vmax.f32 %v9193_v45, 0.0 }
0x135f   :  { %v9201_v33 = vmax.f32 %v9185_v39, 0.0  ;;  %v9207_v18 = vpack.c.bf16 %v9203_v31, %v9202_v26  ;;  %v9602_v31 = vld [vmem:[%s15499_s29] sm:$0xf] }
0x1361   :  { %v9206_v14 = vpack.c.bf16 %v9201_v33, %v9200_v53  ;;  %v9614_v53 = vsel %vm2096_vm5, %v9602_v31, 0  ;;  %v10413_v33 = vld [vmem:[%s15500_s3] ss:$0 sm:$0xff] }
0x1363   :  { %12035 = vmatprep.mubr.msk.bf16.mxu1 %vm368_vm3, %v9206_v14 }
0x1364   :  { %12036 = vmatmul.mubr.msk.bf16.gmra.mxu1 %vm368_vm3, %v9207_v18 }
0x1365   :  { %12059 = vmatprep.mubr.msk.bf16.mxu1 %vm12390_vm9, %v12389_v17 }
0x141c   :  { %v12033_v57 = vpop.f32.mrf.mxu1 }
0x141d   :  { %v9278_v20 = vadd.f32 %v12033_v57, %v10396_v4 }
0x141e   :  { %v9269_v27 = vpop.f32.mrf.mxu1 }
0x141f   :  { %v9270_v63 = vadd.f32 %v10396_v4, %v9269_v27 }
0x1420   :  { %v12034_v52 = vpop.f32.mrf.mxu1 }
0x1421   :  { %v9281_v23 = vadd.f32 %v12034_v52, %v10396_v4 }
0x1422   :  { %v9272_v35 = vpop.f32.mrf.mxu1 }
0x1423   :  { %v9301_v41 = vpack.c.bf16 %v9281_v23, %v9278_v20  ;;  %v9273_v51 = vadd.f32 %v10396_v4, %v9272_v35  ;;  %v10418_v23 = vld [vmem:[%s15501_s8] ss:$0 sm:$0xff] }
0x1424   :  { %v12037_v60 = vpop.f32.mrf.mxu1 }
0x1425   :  { %v9294_v34 = vadd.f32 %v12037_v60, %v10396_v4  ;;  %v9300_v42 = vpack.c.bf16 %v9273_v51, %v9270_v63 }
0x1426   :  { %v9285_v2 = vpop.f32.mrf.mxu1 }
0x1427   :  { %v9286_v5 = vadd.f32 %v10396_v4, %v9285_v2 }
0x1428   :  { %v12038_v40 = vpop.f32.mrf.mxu1 }
0x1429   :  { %v9297_v46 = vadd.f32 %v12038_v40, %v10396_v4 }
0x142a   :  { %v9288_v0 = vpop.f32.mrf.mxu1 }
0x142b   :  { %v9303_v49 = vpack.c.bf16 %v9297_v46, %v9294_v34  ;;  %v9289_v11 = vadd.f32 %v10396_v4, %v9288_v0 }
0x142d   :  { %12040 = vmatpush3.bf16.msra.mxu0 %v9303_v49  ;;  %12052 = vmatpush3.bf16.msra.mxu1 %v9303_v49  ;;  %v9302_v54 = vpack.c.bf16 %v9289_v11, %v9286_v5  ;;  %v9657_v11 = vlaneseq }
0x142e   :  { %12041 = vmatprep.subr.bf16.mxu0 %v12389_v17  ;;  %12053 = vmatprep.subr.bf16.mxu1 %v12389_v17 }
0x142f   :  { %v9658_v5 = vshrl.u32 %v9657_v11, 7 }
0x1431   :  { %12042 = vmatpush3.bf16.msra.mxu0 %v9302_v54  ;;  %12054 = vmatpush3.bf16.msra.mxu1 %v9302_v54  ;;  %v9659_v20 = vadd.s32 8, %v9658_v5 }
0x1432   :  { %12043 = vmatprep.subr.bf16.mxu0 %v12389_v17  ;;  %12055 = vmatprep.subr.bf16.mxu1 %v12389_v17 }
0x1433   :  { %vm9661_vm14 = vcmp.lt.s32.totalorder %v9659_v20, 10 }
0x1435   :  { %12044 = vmatpush3.bf16.msra.mxu0 %v9301_v41  ;;  %12056 = vmatpush3.bf16.msra.mxu1 %v9301_v41 }
0x1436   :  { %12045 = vmatprep.subr.bf16.mxu0 %v12389_v17  ;;  %12057 = vmatprep.subr.bf16.mxu1 %v12389_v17 }
0x1439   :  { %12046 = vmatpush3.bf16.msra.mxu0 %v9300_v42  ;;  %12058 = vmatpush3.bf16.msra.mxu1 %v9300_v42 }
0x143a   :  { %12063 = vmatprep.subr.bf16.mxu0 %v12389_v17  ;;  %12069 = vmatprep.subr.bf16.mxu1 %v12389_v17 }
0x143c   :  { %12048 = vmatmul.mubr.msk.bf16.vlgmr.msra.gmra.mxu0 %vm906_vm4, %v12294_v24  ;;  %12060 = vmatmul.mubr.msk.bf16.vlgmr.msra.gmra.mxu1 %vm906_vm4, %v12295_v22 }
0x143d   :  { %12065 = vmatprep.mubr.msk.bf16.mxu0 %vm12390_vm9, %v12389_v17  ;;  %12071 = vmatprep.mubr.msk.bf16.mxu1 %vm12390_vm9, %v12389_v17 }
0x143e   :  { %12064 = vmatpush3.bf16.msra.mxu0 %v12296_v12  ;;  %12070 = vmatpush3.bf16.msra.mxu1 %v12297_v38 }
0x143f   :  { %12075 = vmatprep.subr.bf16.mxu0 %v12389_v17  ;;  %12081 = vmatprep.subr.bf16.mxu1 %v12389_v17 }
0x14fc   :  { %v9348_v6 = vpop.f32.mrf.mxu0  ;;  %v9399_v44 = vpop.f32.mrf.mxu1 }
0x14fe   :  { %v12049_v47 = vpop.f32.mrf.mxu0  ;;  %v12061_v61 = vpop.f32.mrf.mxu1 }
0x1500   :  { %v9351_v13 = vpop.f32.mrf.mxu0  ;;  %v9402_v32 = vpop.f32.mrf.mxu1 }
0x1501   :  { %v9406_v15 = vpack.c.bf16 %v9351_v13, %v9348_v6  ;;  %v9409_v25 = vpack.c.bf16 %v9402_v32, %v9399_v44 }
0x1502   :  { %v12050_v30 = vpop.f32.mrf.mxu0  ;;  %v12062_v43 = vpop.f32.mrf.mxu1 }
0x1503   :  { %12066 = vmatmul.mubr.msk.bf16.vlgmr.msra.gmra.mxu0 %vm368_vm3, %v9409_v25  ;;  %12072 = vmatmul.mubr.msk.bf16.vlgmr.msra.gmra.mxu1 %vm368_vm3, %v9406_v15 }
0x1504   :  { %12077 = vmatprep.mubr.msk.bf16.mxu0 %vm12390_vm9, %v12389_v17  ;;  %12083 = vmatprep.mubr.msk.bf16.mxu1 %vm12390_vm9, %v12389_v17 }
0x1505   :  { %12076 = vmatpush3.bf16.msra.mxu0 %v12298_v7  ;;  %12082 = vmatpush3.bf16.msra.mxu1 %v9614_v53 }
0x15c3   :  { %v9455_v50 = vpop.f32.mrf.mxu0  ;;  %v9505_v48 = vpop.f32.mrf.mxu1 }
0x15c4   :  { %v9506_v10 = vadd.f32 %v9505_v48, %v9455_v50 }
0x15c5   :  { %v12067_v59 = vpop.f32.mrf.mxu0  ;;  %v12073_v9 = vpop.f32.mrf.mxu1 }
0x15c6   :  { %v9519_v19 = vadd.f32 %v10410_v29, %v9506_v10 }
0x15c7   :  { %v9458_v3 = vpop.f32.mrf.mxu0  ;;  %v9508_v8 = vpop.f32.mrf.mxu1 }
0x15c8   :  { %v9523_v37 = vmul.f32 1.442695, %v9519_v19  ;;  %v9509_v21 = vadd.f32 %v9508_v8, %v9458_v3  ;;  %vm9521_vm10 = vcmp.gt.f32.partialorder %v9519_v19, 0.0 }
0x15c9   :  { %v12068_v55 = vpop.f32.mrf.mxu0  ;;  %v12074_v28 = vpop.f32.mrf.mxu1 }
0x15ca   :  { %12299 = vpow2.f32 %v9523_v37  ;;  %v9520_v1 = vadd.f32 %v10410_v29, %v9509_v21 }
0x15cc   :  { %v9525_v17 = vmul.f32 1.442695, %v9520_v1  ;;  %vm9522_vm11 = vcmp.gt.f32.partialorder %v9520_v1, 0.0 }
0x15ce   :  { %12301 = vpow2.f32 %v9525_v17 }
0x15d7   :  { %v12300_v16 = vpop.eup %12299 }
0x15d8   :  { %v10411_v58 = vadd.f32 -1.0, %v12300_v16 }
0x15da   :  { %v9529_v62 = vsel %vm9521_vm10, %v9519_v19, %v10411_v58 }
0x15db   :  { %v12302_v56 = vpop.eup %12301 }
0x15dc   :  { %v10412_v45 = vadd.f32 -1.0, %v12302_v56 }
0x15de   :  { %v9530_v36 = vsel %vm9522_vm11, %v9520_v1, %v10412_v45 }
0x15df   :  { %v9531_v39 = vpack.c.bf16 %v9530_v36, %v9529_v62 }
0x15e1   :  { %12078 = vmatmul.mubr.msk.bf16.vlgmr.msra.gmra.mxu0 %vm368_vm3, %v9531_v39 }
0x16a1   :  { %v9584_v26 = vpop.f32.mrf.mxu0 }
0x16a2   :  { %v9585_v14 = vadd.f32 %v10413_v33, %v9584_v26 }
0x16a3   :  { %v12079_v18 = vpop.f32.mrf.mxu0 }
0x16a4   :  { %v9593_v57 = vmul.f32 1.442695, %v9585_v14  ;;  %vm9591_vm12 = vcmp.gt.f32.partialorder %v9585_v14, 0.0 }
0x16a5   :  { %v9587_v27 = vpop.f32.mrf.mxu0 }
0x16a6   :  { %12303 = vpow2.f32 %v9593_v57  ;;  %v9588_v52 = vadd.f32 %v10413_v33, %v9587_v27 }
0x16a7   :  { %v12080_v35 = vpop.f32.mrf.mxu0 }
0x16a8   :  { %v9595_v60 = vmul.f32 1.442695, %v9588_v52  ;;  %vm9592_vm13 = vcmp.gt.f32.partialorder %v9588_v52, 0.0 }
0x16aa   :  { %12305 = vpow2.f32 %v9595_v60 }
0x16b3   :  { %v12304_v2 = vpop.eup %12303 }
0x16b4   :  { %v10416_v4 = vadd.f32 -1.0, %v12304_v2 }
0x16b6   :  { %v9599_v46 = vsel %vm9591_vm12, %v9585_v14, %v10416_v4 }
0x16b7   :  { %v12306_v40 = vpop.eup %12305 }
0x16b8   :  { %v10417_v34 = vadd.f32 -1.0, %v12306_v40 }
0x16ba   :  { %v9600_v0 = vsel %vm9592_vm13, %v9588_v52, %v10417_v34 }
0x16bb   :  { %v9601_v49 = vpack.c.bf16 %v9600_v0, %v9599_v46 }
0x16bd   :  { %12084 = vmatmul.mubr.msk.bf16.vlgmr.msra.gmra.mxu1 %vm1903_vm6, %v9601_v49 }
0x177d   :  { %v9650_v54 = vpop.f32.mrf.mxu1 }
0x177e   :  { %v9651_v41 = vadd.f32 %v10418_v23, %v9650_v54 }
0x177f   :  { %v12085_v51 = vpop.f32.mrf.mxu1 }
0x1780   :  { %v9664_v63 = vsel %vm368_vm3, %v9651_v41, 0.0 }
0x1781   :  { %v9653_v42 = vpop.f32.mrf.mxu1  ;;  %9665 = vadd.xlane.f32.xlu0 %v9664_v63 }
0x1782   :  { %v9654_v24 = vadd.f32 %v10418_v23, %v9653_v42 }
0x1783   :  { %v12086_v22 = vpop.f32.mrf.mxu1 }
0x1784   :  { %v9663_v12 = vsel %vm9661_vm14, %v9654_v24, 0.0 }
0x1785   :  { %v9667_v38 = vsel %vm368_vm3, %v9663_v12, 0.0 }
0x1786   :  { %9668 = vadd.xlane.f32.xlu0 %v9667_v38 }
0x180a   :  { %v9666_v6 = vpop.xlane.xlu0 %9665 }
0x180f   :  { %v9669_v44 = vpop.xlane.xlu0 %9668 }
0x1810   :  { %v9670_v47 = vadd.f32 %v9669_v44, %v9666_v6 }
0x1812   :  { %v9671_v61 = vrot.slane %v9670_v47, 4 }
0x1814   :  { %v9672_v13 = vadd.f32 %v9671_v61, %v9670_v47 }
0x1816   :  { %v9673_v32 = vrot.slane %v9672_v13, 2 }
0x1818   :  { %v9674_v15 = vadd.f32 %v9673_v32, %v9672_v13 }
0x181a   :  { %v9675_v25 = vrot.slane %v9674_v15, 1 }
0x181c   :  { %v9676_v30 = vadd.f32 %v9675_v25, %v9674_v15 }
0x181e   :  { %v9677_v43 = vmul.f32 0.00625, %v9676_v30 }
0x1820   :  { %9679 = vst [vmem:[#allocation2] sm:$0x1] %v9677_v43 }
0x1821   :  { %12320 = shalt.err (!%p12317_p4)
}
0x1822   :  { %9689 = dma.vmem_to_hbm [thread:$0]  %s9687_s24, 16, %s12685_s4, [#allocation3]  }
0x1823   :  { %12329 = dma.done.wait [#allocation3], 16  }
0x1824   :  { %12330 = vsyncadd [#allocation3], 4294967280 }
0x1825   :  { %9693 = vsyncpa [#allocation3], 1 }

</bundles_post_ra>
